<compile_context>
chip_gen: v7x
topology: tpu7x:2x2x1
jax: 0.10.0
libtpu: 0.0.40
codegen_flags: <defaults>
</compile_context>

<pallas_src>
import functools
import math

import jax
import jax.numpy as jnp
from jax.experimental import pallas as pl
from jax.experimental.pallas import tpu as pltpu

_LN_EPS = 1e-5      # PyTorch nn.LayerNorm default eps
_LANE = 128


def _round_up(v, m):
    return ((v + m - 1) // m) * m


def _gelu_exact(x):
    # nn.GELU() default: 0.5 * x * (1 + erf(x / sqrt(2))).
    # erf via Abramowitz & Stegun 7.1.26 (|err| ~ 1.5e-7), exact division here.
    u = x * 0.7071067811865476
    au = jnp.abs(u)
    t = 1.0 / (1.0 + 0.3275911 * au)
    poly = ((((1.061405429 * t - 1.453152027) * t + 1.421413741) * t
             - 0.284496736) * t + 0.254829592) * t
    erf_abs = 1.0 - poly * jnp.exp(-au * au)
    erf_u = jnp.where(u < 0.0, -erf_abs, erf_abs)
    return 0.5 * x * (1.0 + erf_u)


# ---------------------------------------------------------------------------
# Fused kernel: one grid step == one batch item.
# ---------------------------------------------------------------------------
def _fused_kernel(xc_ref, w1_ref, b1_ref, w_in_ref, b_in_ref, w_o_ref, b_o_ref,
                  g1_ref, be1_ref, w2_ref, b2_ref, mask2_ref,
                  o_ref,
                  ybuf_ref,
                  *, heads, head_dim, e_real, img_w, seq, seq_v):
    S = seq            # H*W rows (conv1 / attention / LN1)
    Sv = seq_v         # (H-2)*W rows actually needed by conv2 / GELU / LN2 / output
    Ep = o_ref.shape[-1]
    f32 = jnp.float32
    bf16 = jnp.bfloat16

    # ---------- conv1 (3x3, pad 1) + channel-repeated t: ONE K=(9*Cin+Cin) matmul
    x1 = jax.lax.dot_general(xc_ref[0], w1_ref[...], (((1,), (0,)), ((), ())),
                             preferred_element_type=f32) + b1_ref[...]
    # padded lanes (>= E) of x1 are exactly zero (padded weight columns are zero).

    # ---------- multi-head self-attention (QKV packed: 3 lane groups of width Ep)
    x1_bf = x1.astype(bf16)
    qkv = jax.lax.dot_general(x1_bf, w_in_ref[...], (((1,), (0,)), ((), ())),
                              preferred_element_type=f32) + b_in_ref[...]
    q = qkv[:, 0:Ep].astype(bf16)              # 1/sqrt(head_dim) folded into Wq/bq
    k = qkv[:, Ep:2 * Ep].astype(bf16)
    v = qkv[:, 2 * Ep:3 * Ep].astype(bf16)

    lane_ids = jax.lax.broadcasted_iota(jnp.int32, (1, Ep), 1)
    o_all = jnp.zeros((S, Ep), f32)
    for h in range(heads):                     # static loop; lane masks are constants
        lo = h * head_dim
        hmask = ((lane_ids >= lo) & (lane_ids < lo + head_dim)).astype(bf16)
        k_h = k * hmask                        # zero outside this head's lanes
        v_h = v * hmask
        s = jax.lax.dot_general(q, k_h, (((1,), (1,)), ((), ())),
                                preferred_element_type=f32)
        s = s - jnp.max(s, axis=-1, keepdims=True)
        p = jnp.exp(s)
        p = p * pl.reciprocal(jnp.sum(p, axis=-1, keepdims=True), approx=True)
        # head "concat" = accumulate per-head AV into disjoint lane groups
        o_all = o_all + jax.lax.dot_general(p.astype(bf16), v_h,
                                            (((1,), (0,)), ((), ())),
                                            preferred_element_type=f32)
    attn = jax.lax.dot_general(o_all.astype(bf16), w_o_ref[...],
                               (((1,), (0,)), ((), ())),
                               preferred_element_type=f32) + b_o_ref[...]

    # ---------- residual + LayerNorm(E); padded lanes of r are exactly zero, so
    # full-lane sums equal sums over the E real lanes.
    r = attn + x1
    inv_e = 1.0 / float(e_real)
    mu = jnp.sum(r, axis=-1, keepdims=True) * inv_e
    msq = jnp.sum(r * r, axis=-1, keepdims=True) * inv_e
    var = msq - mu * mu
    y = (r - mu) * jax.lax.rsqrt(var + _LN_EPS) * g1_ref[...] + be1_ref[...]
    # gamma/beta zero on padded lanes -> padded lanes of y stay exactly zero.

    # ---------- conv2 (3x3, valid): 9 contiguous row-shifted slices of a FLAT
    # (S + tail, Ep) bf16 scratch; then exact GELU and LayerNorm([C, Ho, Wo]).
    tail = ybuf_ref.shape[0] - S
    @pl.when(pl.program_id(0) == 0)            # tail must be finite: Inf*0 -> NaN
    def _zero_tail():
        ybuf_ref[pl.ds(S, tail), :] = jnp.zeros((tail, Ep), bf16)
    ybuf_ref[pl.ds(0, S), :] = y.astype(bf16)  # contiguous store, no relayout

    acc2 = jnp.zeros((Sv, Ep), f32)
    for kk in range(9):
        off = (kk // 3) * img_w + (kk % 3)     # static row offset of this window
        win = ybuf_ref[pl.ds(off, Sv), :]
        acc2 = acc2 + jax.lax.dot_general(win, w2_ref[kk],
                                          (((1,), (0,)), ((), ())),
                                          preferred_element_type=f32)
    g = _gelu_exact(acc2 + b2_ref[...])

    # LN2: mask is a compile-time constant from the wrapper (valid cols & lanes);
    # rows that wrapped past W or lanes >= E are killed here.
    m2 = mask2_ref[...]
    gm = g * m2
    s1 = jnp.sum(jnp.sum(gm, axis=1, keepdims=True), axis=0, keepdims=True)
    s2 = jnp.sum(jnp.sum(gm * g, axis=1, keepdims=True), axis=0, keepdims=True)
    n_inv = 1.0 / float((Sv // img_w) * (img_w - 2) * e_real)
    mu2 = s1 * n_inv
    var2 = s2 * n_inv - mu2 * mu2
    out = (g - mu2) * jax.lax.rsqrt(var2 + _LN_EPS) * m2
    # Final LayerNorm([c,h,w]) is constructed fresh in the PyTorch forward, so its
    # affine is identity (ones/zeros) -> no gamma/beta applied here.
    o_ref[0] = out.astype(o_ref.dtype)


# ---------------------------------------------------------------------------
# Forward wrapper: layout plumbing + weight padding, one pallas_call.
# ---------------------------------------------------------------------------
def conv_block_with_t(x, t, params, heads):
    B, Cin, H, W = x.shape
    E = params["b1"].shape[-1]
    assert x.shape == t.shape, "x and t must have the same shape"
    assert E % heads == 0, "embed dim must be divisible by heads"
    assert E % Cin == 0, "out_channels must be a multiple of in_channels"
    hd = E // heads
    c_new = E // Cin
    Ep = _round_up(max(E, _LANE), _LANE)
    S = H * W
    Ho, Wo = H - 2, W - 2
    Sv = Ho * W                                  # conv2/LN2/output row count
    K1 = 9 * Cin + Cin
    f32, bf16 = jnp.float32, jnp.bfloat16

    # ---- conv1 im2col + t columns (tiny: S x K1 bf16 per batch item) ----
    x_nhwc = jnp.transpose(x, (0, 2, 3, 1)).astype(f32)
    t_nhwc = jnp.transpose(t, (0, 2, 3, 1)).astype(f32)
    x_pad = jnp.pad(x_nhwc, ((0, 0), (1, 1), (1, 1), (0, 0)))
    cols = [x_pad[:, dh:dh + H, dw:dw + W, :] for dh in range(3) for dw in range(3)]
    xcols = jnp.concatenate(cols + [t_nhwc], axis=-1).reshape(B, S, K1).astype(bf16)

    # ---- weights padded to Ep lanes (zeros outside the real block) ----
    w1 = params["w1"].reshape(9 * Cin, E)                       # HWIO -> (9*Cin, E)
    co = jnp.arange(E)
    rmat = ((co[None, :] // c_new) == jnp.arange(Cin)[:, None]).astype(f32)  # t repeat
    w1cat = jnp.concatenate([w1, rmat], axis=0)                 # (K1, E)
    w1_p = jnp.zeros((K1, Ep), f32).at[:, :E].set(w1cat).astype(bf16)
    b1_p = jnp.zeros((1, Ep), f32).at[:, :E].set(params["b1"])

    scale = 1.0 / math.sqrt(hd)
    w_in, b_in = params["w_in"], params["b_in"]
    w_in_p = jnp.zeros((Ep, 3 * Ep), f32)
    w_in_p = (w_in_p.at[:E, 0:E].set(w_in[:, 0:E] * scale)              # Q (scaled)
                    .at[:E, Ep:Ep + E].set(w_in[:, E:2 * E])            # K
                    .at[:E, 2 * Ep:2 * Ep + E].set(w_in[:, 2 * E:3 * E]))  # V
    w_in_p = w_in_p.astype(bf16)
    b_in_p = jnp.zeros((1, 3 * Ep), f32)
    b_in_p = (b_in_p.at[:, 0:E].set(b_in[:, 0:E] * scale)
                     .at[:, Ep:Ep + E].set(b_in[:, E:2 * E])
                     .at[:, 2 * Ep:2 * Ep + E].set(b_in[:, 2 * E:3 * E]))

    w_o_p = jnp.zeros((Ep, Ep), f32).at[:E, :E].set(params["w_o"]).astype(bf16)
    b_o_p = jnp.zeros((1, Ep), f32).at[:, :E].set(params["b_o"])
    g1_p = jnp.zeros((1, Ep), f32).at[:, :E].set(params["ln1_g"])
    be1_p = jnp.zeros((1, Ep), f32).at[:, :E].set(params["ln1_b"])
    w2_p = jnp.zeros((9, Ep, Ep), f32).at[:, :E, :E].set(
        params["w2"].reshape(9, E, E)).astype(bf16)
    b2_p = jnp.zeros((1, Ep), f32).at[:, :E].set(params["b2"])

    # ---- LN2 validity mask (compile-time constant): col < Wo and lane < E ----
    rr = jnp.arange(Sv)
    mask2 = (((rr % W) < Wo)[:, None] & (jnp.arange(Ep) < E)[None, :]).astype(f32)

    n_rows = _round_up(S + 2, 8)                 # flat conv2 scratch rows (S + tail)
    kern = functools.partial(_fused_kernel, heads=heads, head_dim=hd, e_real=E,
                             img_w=W, seq=S, seq_v=Sv)

    out_full = pl.pallas_call(
        kern,
        out_shape=jax.ShapeDtypeStruct((B, Sv, Ep), bf16),   # lane-dense, compact
        grid=(B,),
        in_specs=[
            pl.BlockSpec((1, S, K1), lambda b: (b, 0, 0)),
            pl.BlockSpec((K1, Ep), lambda b: (0, 0)),
            pl.BlockSpec((1, Ep), lambda b: (0, 0)),
            pl.BlockSpec((Ep, 3 * Ep), lambda b: (0, 0)),
            pl.BlockSpec((1, 3 * Ep), lambda b: (0, 0)),
            pl.BlockSpec((Ep, Ep), lambda b: (0, 0)),
            pl.BlockSpec((1, Ep), lambda b: (0, 0)),
            pl.BlockSpec((1, Ep), lambda b: (0, 0)),
            pl.BlockSpec((1, Ep), lambda b: (0, 0)),
            pl.BlockSpec((9, Ep, Ep), lambda b: (0, 0, 0)),
            pl.BlockSpec((1, Ep), lambda b: (0, 0)),
            pl.BlockSpec((Sv, Ep), lambda b: (0, 0)),
        ],
        out_specs=pl.BlockSpec((1, Sv, Ep), lambda b: (b, 0, 0)),
        scratch_shapes=[pltpu.VMEM((n_rows, Ep), bf16)],
        compiler_params=pltpu.CompilerParams(
            dimension_semantics=("parallel",),      # batch axis feeds both v7x TCs
            vmem_limit_bytes=48 * 1024 * 1024),
    )(xcols, w1_p, b1_p, w_in_p, b_in_p, w_o_p, b_o_p,
      g1_p, be1_p, w2_p, b2_p, mask2)

    out_img = out_full.reshape(B, Ho, W, Ep)[:, :, :Wo, :E].astype(f32)
    return jnp.transpose(out_img, (0, 3, 1, 2))                 # NCHW


def init_params(key, in_channels, out_channels):
    E = out_channels
    ks = jax.random.split(key, 8)
    return {
        # conv1 weight stored HWIO: (3, 3, Cin, Cout)
        "w1": jax.random.normal(ks[0], (3, 3, in_channels, E), jnp.float32) * 0.1,
        "b1": jax.random.normal(ks[1], (1, E), jnp.float32) * 0.1,
        # MultiheadAttention in/out projections (stored transposed: x @ W)
        "w_in": jax.random.normal(ks[2], (E, 3 * E), jnp.float32) * 0.1,
        "b_in": jax.random.normal(ks[3], (1, 3 * E), jnp.float32) * 0.1,
        "w_o": jax.random.normal(ks[4], (E, E), jnp.float32) * 0.1,
        "b_o": jax.random.normal(ks[5], (1, E), jnp.float32) * 0.1,
        # SelfAttention.norm (LayerNorm(E)) affine (PyTorch init: ones/zeros)
        "ln1_g": jnp.ones((1, E), jnp.float32),
        "ln1_b": jnp.zeros((1, E), jnp.float32),
        # conv2 weight HWIO: (3, 3, Cout, Cout)
        "w2": jax.random.normal(ks[6], (3, 3, E, E), jnp.float32) * 0.1,
        "b2": jax.random.normal(ks[7], (1, E), jnp.float32) * 0.1,
    }


if __name__ == "__main__":
    B, Cin, Cout, heads, H, W = 2, 4, 8, 2, 16, 16
    key = jax.random.PRNGKey(0)
    kx, kt, kp = jax.random.split(key, 3)
    x = jax.random.normal(kx, (B, Cin, H, W), jnp.float32)
    t = jax.random.normal(kt, (B, Cin, H, W), jnp.float32)
    params = init_params(kp, Cin, Cout)

    fwd = jax.jit(functools.partial(conv_block_with_t, heads=heads))
    out = fwd(x, t, params)
    jax.block_until_ready(out)
    assert out.shape == (B, Cout, H - 2, W - 2), out.shape
    assert bool(jnp.all(jnp.isfinite(out)))
    print("KERNEL_OK")
</pallas_src>

<mosaic_0001>
module attributes {stable_mosaic.version = 11 : i64} {
  func.func @_fused_kernel(%arg0: i32, %arg1: memref<1x256x40xbf16, #tpu.memory_space<vmem>>, %arg2: memref<40x128xbf16, #tpu.memory_space<vmem>>, %arg3: memref<1x128xf32, #tpu.memory_space<vmem>>, %arg4: memref<128x384xbf16, #tpu.memory_space<vmem>>, %arg5: memref<1x384xf32, #tpu.memory_space<vmem>>, %arg6: memref<128x128xbf16, #tpu.memory_space<vmem>>, %arg7: memref<1x128xf32, #tpu.memory_space<vmem>>, %arg8: memref<1x128xf32, #tpu.memory_space<vmem>>, %arg9: memref<1x128xf32, #tpu.memory_space<vmem>>, %arg10: memref<9x128x128xbf16, #tpu.memory_space<vmem>>, %arg11: memref<1x128xf32, #tpu.memory_space<vmem>>, %arg12: memref<224x128xf32, #tpu.memory_space<vmem>>, %arg13: memref<1x224x128xbf16, #tpu.memory_space<vmem>>, %arg14: memref<264x128xbf16, #tpu.memory_space<vmem>>) attributes {dimension_semantics = [#tpu.dimension_semantics<parallel>], iteration_bounds = array<i64: 2>, scalar_prefetch = 0 : i64, scratch_operands = 1 : i64, tpu.core_type = #tpu.core_type<tc>, window_params = [{transform_indices = @transform_0, window_bounds = array<i64: 1, 256, 40>}, {pipeline_mode = #tpu.pipeline_mode<synchronous>, transform_indices = @transform_1, window_bounds = array<i64: 40, 128>}, {pipeline_mode = #tpu.pipeline_mode<synchronous>, transform_indices = @transform_2, window_bounds = array<i64: 1, 128>}, {pipeline_mode = #tpu.pipeline_mode<synchronous>, transform_indices = @transform_3, window_bounds = array<i64: 128, 384>}, {pipeline_mode = #tpu.pipeline_mode<synchronous>, transform_indices = @transform_4, window_bounds = array<i64: 1, 384>}, {pipeline_mode = #tpu.pipeline_mode<synchronous>, transform_indices = @transform_5, window_bounds = array<i64: 128, 128>}, {pipeline_mode = #tpu.pipeline_mode<synchronous>, transform_indices = @transform_6, window_bounds = array<i64: 1, 128>}, {pipeline_mode = #tpu.pipeline_mode<synchronous>, transform_indices = @transform_7, window_bounds = array<i64: 1, 128>}, {pipeline_mode = #tpu.pipeline_mode<synchronous>, transform_indices = @transform_8, window_bounds = array<i64: 1, 128>}, {pipeline_mode = #tpu.pipeline_mode<synchronous>, transform_indices = @transform_9, window_bounds = array<i64: 9, 128, 128>}, {pipeline_mode = #tpu.pipeline_mode<synchronous>, transform_indices = @transform_10, window_bounds = array<i64: 1, 128>}, {pipeline_mode = #tpu.pipeline_mode<synchronous>, transform_indices = @transform_11, window_bounds = array<i64: 224, 128>}, {transform_indices = @transform_12, window_bounds = array<i64: 1, 224, 128>}]} {
    %c0 = arith.constant 0 : index
    %c0_0 = arith.constant 0 : index
    %c0_1 = arith.constant 0 : index
    %0 = vector.load %arg1[%c0, %c0_0, %c0_1] : memref<1x256x40xbf16, #tpu.memory_space<vmem>>, vector<1x256x40xbf16>
    %1 = vector.shape_cast %0 : vector<1x256x40xbf16> to vector<256x40xbf16>
    %c0_2 = arith.constant 0 : index
    %c0_3 = arith.constant 0 : index
    %2 = vector.load %arg2[%c0_2, %c0_3] : memref<40x128xbf16, #tpu.memory_space<vmem>>, vector<40x128xbf16>
    %cst = arith.constant dense<0.000000e+00> : vector<256x128xf32>
    %3 = tpu.matmul %1, %2, %cst {dimension_numbers = #tpu.dot_dimension_numbers<[1], [0], [0], [1], [0, 0, 1, 1], [], []>} : vector<256x40xbf16>, vector<40x128xbf16>, vector<256x128xf32> -> vector<256x128xf32>
    %c0_4 = arith.constant 0 : index
    %c0_5 = arith.constant 0 : index
    %4 = vector.load %arg3[%c0_4, %c0_5] : memref<1x128xf32, #tpu.memory_space<vmem>>, vector<1x128xf32>
    %5 = vector.broadcast %4 : vector<1x128xf32> to vector<256x128xf32>
    %6 = arith.addf %3, %5 : vector<256x128xf32>
    %7 = arith.truncf %6 : vector<256x128xf32> to vector<256x128xbf16>
    %c0_6 = arith.constant 0 : index
    %c0_7 = arith.constant 0 : index
    %8 = vector.load %arg4[%c0_6, %c0_7] : memref<128x384xbf16, #tpu.memory_space<vmem>>, vector<128x384xbf16>
    %cst_8 = arith.constant dense<0.000000e+00> : vector<256x384xf32>
    %9 = tpu.matmul %7, %8, %cst_8 {dimension_numbers = #tpu.dot_dimension_numbers<[1], [0], [0], [1], [0, 0, 1, 1], [], []>} : vector<256x128xbf16>, vector<128x384xbf16>, vector<256x384xf32> -> vector<256x384xf32>
    %c0_9 = arith.constant 0 : index
    %c0_10 = arith.constant 0 : index
    %10 = vector.load %arg5[%c0_9, %c0_10] : memref<1x384xf32, #tpu.memory_space<vmem>>, vector<1x384xf32>
    %11 = vector.broadcast %10 : vector<1x384xf32> to vector<256x384xf32>
    %12 = arith.addf %9, %11 : vector<256x384xf32>
    %13 = vector.extract_strided_slice %12 {offsets = [0, 0], sizes = [256, 128], strides = [1, 1]} : vector<256x384xf32> to vector<256x128xf32>
    %14 = arith.truncf %13 : vector<256x128xf32> to vector<256x128xbf16>
    %15 = vector.extract_strided_slice %12 {offsets = [0, 128], sizes = [256, 128], strides = [1, 1]} : vector<256x384xf32> to vector<256x128xf32>
    %16 = arith.truncf %15 : vector<256x128xf32> to vector<256x128xbf16>
    %17 = vector.extract_strided_slice %12 {offsets = [0, 256], sizes = [256, 128], strides = [1, 1]} : vector<256x384xf32> to vector<256x128xf32>
    %18 = arith.truncf %17 : vector<256x128xf32> to vector<256x128xbf16>
    %19 = tpu.iota {dimensions = array<i32: 1>} : vector<1x128xi32>
    %cst_11 = arith.constant 0.000000e+00 : f32
    %20 = vector.broadcast %cst_11 : f32 to vector<256x128xf32>
    %c0_i32 = arith.constant 0 : i32
    %21 = vector.broadcast %c0_i32 : i32 to vector<1x128xi32>
    %22 = arith.cmpi sge, %19, %21 : vector<1x128xi32>
    %c4_i32 = arith.constant 4 : i32
    %23 = vector.broadcast %c4_i32 : i32 to vector<1x128xi32>
    %24 = arith.cmpi slt, %19, %23 : vector<1x128xi32>
    %25 = arith.andi %22, %24 : vector<1x128xi1>
    %26 = arith.extui %25 : vector<1x128xi1> to vector<1x128xi32>
    %27 = arith.sitofp %26 : vector<1x128xi32> to vector<1x128xf32>
    %28 = arith.truncf %27 : vector<1x128xf32> to vector<1x128xbf16>
    %29 = vector.broadcast %28 : vector<1x128xbf16> to vector<256x128xbf16>
    %30 = arith.mulf %16, %29 : vector<256x128xbf16>
    %31 = vector.broadcast %28 : vector<1x128xbf16> to vector<256x128xbf16>
    %32 = arith.mulf %18, %31 : vector<256x128xbf16>
    %cst_12 = arith.constant dense<0.000000e+00> : vector<256x256xf32>
    %33 = tpu.matmul %14, %30, %cst_12 {dimension_numbers = #tpu.dot_dimension_numbers<[1], [1], [0], [0], [0, 0, 1, 0], [], []>} : vector<256x128xbf16>, vector<256x128xbf16>, vector<256x256xf32> -> vector<256x256xf32>
    %cst_13 = arith.constant dense<0xFF800000> : vector<256xf32>
    %34 = vector.multi_reduction <maximumf>, %33, %cst_13 [1] : vector<256x256xf32> to vector<256xf32>
    %35 = vector.shape_cast %34 : vector<256xf32> to vector<256x1xf32>
    %36 = vector.broadcast %35 : vector<256x1xf32> to vector<256x256xf32>
    %37 = arith.subf %33, %36 : vector<256x256xf32>
    %38 = math.exp %37 : vector<256x256xf32>
    %cst_14 = arith.constant dense<0.000000e+00> : vector<256xf32>
    %39 = vector.multi_reduction <add>, %38, %cst_14 [1] : vector<256x256xf32> to vector<256xf32>
    %40 = vector.shape_cast %39 : vector<256xf32> to vector<256x1xf32>
    %41 = tpu.reciprocal %40 {approx = true} : vector<256x1xf32> -> vector<256x1xf32>
    %42 = vector.broadcast %41 : vector<256x1xf32> to vector<256x256xf32>
    %43 = arith.mulf %38, %42 : vector<256x256xf32>
    %44 = arith.truncf %43 : vector<256x256xf32> to vector<256x256xbf16>
    %cst_15 = arith.constant dense<0.000000e+00> : vector<256x128xf32>
    %45 = tpu.matmul %44, %32, %cst_15 {dimension_numbers = #tpu.dot_dimension_numbers<[1], [0], [0], [1], [0, 0, 1, 1], [], []>} : vector<256x256xbf16>, vector<256x128xbf16>, vector<256x128xf32> -> vector<256x128xf32>
    %46 = arith.addf %20, %45 : vector<256x128xf32>
    %c4_i32_16 = arith.constant 4 : i32
    %47 = vector.broadcast %c4_i32_16 : i32 to vector<1x128xi32>
    %48 = arith.cmpi sge, %19, %47 : vector<1x128xi32>
    %c8_i32 = arith.constant 8 : i32
    %49 = vector.broadcast %c8_i32 : i32 to vector<1x128xi32>
    %50 = arith.cmpi slt, %19, %49 : vector<1x128xi32>
    %51 = arith.andi %48, %50 : vector<1x128xi1>
    %52 = arith.extui %51 : vector<1x128xi1> to vector<1x128xi32>
    %53 = arith.sitofp %52 : vector<1x128xi32> to vector<1x128xf32>
    %54 = arith.truncf %53 : vector<1x128xf32> to vector<1x128xbf16>
    %55 = vector.broadcast %54 : vector<1x128xbf16> to vector<256x128xbf16>
    %56 = arith.mulf %16, %55 : vector<256x128xbf16>
    %57 = vector.broadcast %54 : vector<1x128xbf16> to vector<256x128xbf16>
    %58 = arith.mulf %18, %57 : vector<256x128xbf16>
    %cst_17 = arith.constant dense<0.000000e+00> : vector<256x256xf32>
    %59 = tpu.matmul %14, %56, %cst_17 {dimension_numbers = #tpu.dot_dimension_numbers<[1], [1], [0], [0], [0, 0, 1, 0], [], []>} : vector<256x128xbf16>, vector<256x128xbf16>, vector<256x256xf32> -> vector<256x256xf32>
    %cst_18 = arith.constant dense<0xFF800000> : vector<256xf32>
    %60 = vector.multi_reduction <maximumf>, %59, %cst_18 [1] : vector<256x256xf32> to vector<256xf32>
    %61 = vector.shape_cast %60 : vector<256xf32> to vector<256x1xf32>
    %62 = vector.broadcast %61 : vector<256x1xf32> to vector<256x256xf32>
    %63 = arith.subf %59, %62 : vector<256x256xf32>
    %64 = math.exp %63 : vector<256x256xf32>
    %cst_19 = arith.constant dense<0.000000e+00> : vector<256xf32>
    %65 = vector.multi_reduction <add>, %64, %cst_19 [1] : vector<256x256xf32> to vector<256xf32>
    %66 = vector.shape_cast %65 : vector<256xf32> to vector<256x1xf32>
    %67 = tpu.reciprocal %66 {approx = true} : vector<256x1xf32> -> vector<256x1xf32>
    %68 = vector.broadcast %67 : vector<256x1xf32> to vector<256x256xf32>
    %69 = arith.mulf %64, %68 : vector<256x256xf32>
    %70 = arith.truncf %69 : vector<256x256xf32> to vector<256x256xbf16>
    %cst_20 = arith.constant dense<0.000000e+00> : vector<256x128xf32>
    %71 = tpu.matmul %70, %58, %cst_20 {dimension_numbers = #tpu.dot_dimension_numbers<[1], [0], [0], [1], [0, 0, 1, 1], [], []>} : vector<256x256xbf16>, vector<256x128xbf16>, vector<256x128xf32> -> vector<256x128xf32>
    %72 = arith.addf %46, %71 : vector<256x128xf32>
    %73 = arith.truncf %72 : vector<256x128xf32> to vector<256x128xbf16>
    %c0_21 = arith.constant 0 : index
    %c0_22 = arith.constant 0 : index
    %74 = vector.load %arg6[%c0_21, %c0_22] : memref<128x128xbf16, #tpu.memory_space<vmem>>, vector<128x128xbf16>
    %cst_23 = arith.constant dense<0.000000e+00> : vector<256x128xf32>
    %75 = tpu.matmul %73, %74, %cst_23 {dimension_numbers = #tpu.dot_dimension_numbers<[1], [0], [0], [1], [0, 0, 1, 1], [], []>} : vector<256x128xbf16>, vector<128x128xbf16>, vector<256x128xf32> -> vector<256x128xf32>
    %c0_24 = arith.constant 0 : index
    %c0_25 = arith.constant 0 : index
    %76 = vector.load %arg7[%c0_24, %c0_25] : memref<1x128xf32, #tpu.memory_space<vmem>>, vector<1x128xf32>
    %77 = vector.broadcast %76 : vector<1x128xf32> to vector<256x128xf32>
    %78 = arith.addf %75, %77 : vector<256x128xf32>
    %79 = arith.addf %78, %6 : vector<256x128xf32>
    %cst_26 = arith.constant dense<0.000000e+00> : vector<256xf32>
    %80 = vector.multi_reduction <add>, %79, %cst_26 [1] : vector<256x128xf32> to vector<256xf32>
    %81 = vector.shape_cast %80 : vector<256xf32> to vector<256x1xf32>
    %cst_27 = arith.constant 1.250000e-01 : f32
    %82 = vector.broadcast %cst_27 : f32 to vector<256x1xf32>
    %83 = arith.mulf %81, %82 : vector<256x1xf32>
    %84 = arith.mulf %79, %79 : vector<256x128xf32>
    %cst_28 = arith.constant dense<0.000000e+00> : vector<256xf32>
    %85 = vector.multi_reduction <add>, %84, %cst_28 [1] : vector<256x128xf32> to vector<256xf32>
    %86 = vector.shape_cast %85 : vector<256xf32> to vector<256x1xf32>
    %cst_29 = arith.constant 1.250000e-01 : f32
    %87 = vector.broadcast %cst_29 : f32 to vector<256x1xf32>
    %88 = arith.mulf %86, %87 : vector<256x1xf32>
    %89 = arith.mulf %83, %83 : vector<256x1xf32>
    %90 = arith.subf %88, %89 : vector<256x1xf32>
    %91 = vector.broadcast %83 : vector<256x1xf32> to vector<256x128xf32>
    %92 = arith.subf %79, %91 : vector<256x128xf32>
    %cst_30 = arith.constant 9.99999974E-6 : f32
    %93 = vector.broadcast %cst_30 : f32 to vector<256x1xf32>
    %94 = arith.addf %90, %93 : vector<256x1xf32>
    %95 = math.rsqrt %94 : vector<256x1xf32>
    %96 = vector.broadcast %95 : vector<256x1xf32> to vector<256x128xf32>
    %97 = arith.mulf %92, %96 : vector<256x128xf32>
    %c0_31 = arith.constant 0 : index
    %c0_32 = arith.constant 0 : index
    %98 = vector.load %arg8[%c0_31, %c0_32] : memref<1x128xf32, #tpu.memory_space<vmem>>, vector<1x128xf32>
    %99 = vector.broadcast %98 : vector<1x128xf32> to vector<256x128xf32>
    %100 = arith.mulf %97, %99 : vector<256x128xf32>
    %c0_33 = arith.constant 0 : index
    %c0_34 = arith.constant 0 : index
    %101 = vector.load %arg9[%c0_33, %c0_34] : memref<1x128xf32, #tpu.memory_space<vmem>>, vector<1x128xf32>
    %102 = vector.broadcast %101 : vector<1x128xf32> to vector<256x128xf32>
    %103 = arith.addf %100, %102 : vector<256x128xf32>
    %c0_i32_35 = arith.constant 0 : i32
    %104 = arith.cmpi eq, %arg0, %c0_i32_35 : i32
    %105 = arith.extui %104 : i1 to i32
    %c0_i32_36 = arith.constant 0 : i32
    %106 = arith.cmpi ne, %105, %c0_i32_36 : i32
    scf.if %106 {
      %cst_109 = arith.constant 0.000000e+00 : bf16
      %227 = vector.broadcast %cst_109 : bf16 to vector<8x128xbf16>
      %c256 = arith.constant 256 : index
      %c0_110 = arith.constant 0 : index
      %228 = vector.load %arg14[%c256, %c0_110] : memref<264x128xbf16, #tpu.memory_space<vmem>>, vector<8x128xbf16>
      tpu.vector_store %arg14[%c256, %c0_110], %227 {strides = array<i32>} : memref<264x128xbf16, #tpu.memory_space<vmem>>, vector<8x128xbf16>,
    } else {
    }
    %107 = arith.truncf %103 : vector<256x128xf32> to vector<256x128xbf16>
    %c0_37 = arith.constant 0 : index
    %c0_38 = arith.constant 0 : index
    %108 = vector.load %arg14[%c0_37, %c0_38] : memref<264x128xbf16, #tpu.memory_space<vmem>>, vector<256x128xbf16>
    tpu.vector_store %arg14[%c0_37, %c0_38], %107 {strides = array<i32>} : memref<264x128xbf16, #tpu.memory_space<vmem>>, vector<256x128xbf16>,
    %cst_39 = arith.constant 0.000000e+00 : f32
    %109 = vector.broadcast %cst_39 : f32 to vector<224x128xf32>
    %c0_40 = arith.constant 0 : index
    %c0_41 = arith.constant 0 : index
    %110 = vector.load %arg14[%c0_40, %c0_41] : memref<264x128xbf16, #tpu.memory_space<vmem>>, vector<224x128xbf16>
    %c0_42 = arith.constant 0 : index
    %c0_43 = arith.constant 0 : index
    %c0_44 = arith.constant 0 : index
    %111 = vector.load %arg10[%c0_42, %c0_43, %c0_44] : memref<9x128x128xbf16, #tpu.memory_space<vmem>>, vector<1x128x128xbf16>
    %112 = vector.shape_cast %111 : vector<1x128x128xbf16> to vector<128x128xbf16>
    %cst_45 = arith.constant dense<0.000000e+00> : vector<224x128xf32>
    %113 = tpu.matmul %110, %112, %cst_45 {dimension_numbers = #tpu.dot_dimension_numbers<[1], [0], [0], [1], [0, 0, 1, 1], [], []>} : vector<224x128xbf16>, vector<128x128xbf16>, vector<224x128xf32> -> vector<224x128xf32>
    %114 = arith.addf %109, %113 : vector<224x128xf32>
    %c1 = arith.constant 1 : index
    %c0_46 = arith.constant 0 : index
    %115 = vector.load %arg14[%c1, %c0_46] : memref<264x128xbf16, #tpu.memory_space<vmem>>, vector<224x128xbf16>
    %c1_47 = arith.constant 1 : index
    %c0_48 = arith.constant 0 : index
    %c0_49 = arith.constant 0 : index
    %116 = vector.load %arg10[%c1_47, %c0_48, %c0_49] : memref<9x128x128xbf16, #tpu.memory_space<vmem>>, vector<1x128x128xbf16>
    %117 = vector.shape_cast %116 : vector<1x128x128xbf16> to vector<128x128xbf16>
    %cst_50 = arith.constant dense<0.000000e+00> : vector<224x128xf32>
    %118 = tpu.matmul %115, %117, %cst_50 {dimension_numbers = #tpu.dot_dimension_numbers<[1], [0], [0], [1], [0, 0, 1, 1], [], []>} : vector<224x128xbf16>, vector<128x128xbf16>, vector<224x128xf32> -> vector<224x128xf32>
    %119 = arith.addf %114, %118 : vector<224x128xf32>
    %c2 = arith.constant 2 : index
    %c0_51 = arith.constant 0 : index
    %120 = vector.load %arg14[%c2, %c0_51] : memref<264x128xbf16, #tpu.memory_space<vmem>>, vector<224x128xbf16>
    %c2_52 = arith.constant 2 : index
    %c0_53 = arith.constant 0 : index
    %c0_54 = arith.constant 0 : index
    %121 = vector.load %arg10[%c2_52, %c0_53, %c0_54] : memref<9x128x128xbf16, #tpu.memory_space<vmem>>, vector<1x128x128xbf16>
    %122 = vector.shape_cast %121 : vector<1x128x128xbf16> to vector<128x128xbf16>
    %cst_55 = arith.constant dense<0.000000e+00> : vector<224x128xf32>
    %123 = tpu.matmul %120, %122, %cst_55 {dimension_numbers = #tpu.dot_dimension_numbers<[1], [0], [0], [1], [0, 0, 1, 1], [], []>} : vector<224x128xbf16>, vector<128x128xbf16>, vector<224x128xf32> -> vector<224x128xf32>
    %124 = arith.addf %119, %123 : vector<224x128xf32>
    %c16 = arith.constant 16 : index
    %c0_56 = arith.constant 0 : index
    %125 = vector.load %arg14[%c16, %c0_56] : memref<264x128xbf16, #tpu.memory_space<vmem>>, vector<224x128xbf16>
    %c3 = arith.constant 3 : index
    %c0_57 = arith.constant 0 : index
    %c0_58 = arith.constant 0 : index
    %126 = vector.load %arg10[%c3, %c0_57, %c0_58] : memref<9x128x128xbf16, #tpu.memory_space<vmem>>, vector<1x128x128xbf16>
    %127 = vector.shape_cast %126 : vector<1x128x128xbf16> to vector<128x128xbf16>
    %cst_59 = arith.constant dense<0.000000e+00> : vector<224x128xf32>
    %128 = tpu.matmul %125, %127, %cst_59 {dimension_numbers = #tpu.dot_dimension_numbers<[1], [0], [0], [1], [0, 0, 1, 1], [], []>} : vector<224x128xbf16>, vector<128x128xbf16>, vector<224x128xf32> -> vector<224x128xf32>
    %129 = arith.addf %124, %128 : vector<224x128xf32>
    %c17 = arith.constant 17 : index
    %c0_60 = arith.constant 0 : index
    %130 = vector.load %arg14[%c17, %c0_60] : memref<264x128xbf16, #tpu.memory_space<vmem>>, vector<224x128xbf16>
    %c4 = arith.constant 4 : index
    %c0_61 = arith.constant 0 : index
    %c0_62 = arith.constant 0 : index
    %131 = vector.load %arg10[%c4, %c0_61, %c0_62] : memref<9x128x128xbf16, #tpu.memory_space<vmem>>, vector<1x128x128xbf16>
    %132 = vector.shape_cast %131 : vector<1x128x128xbf16> to vector<128x128xbf16>
    %cst_63 = arith.constant dense<0.000000e+00> : vector<224x128xf32>
    %133 = tpu.matmul %130, %132, %cst_63 {dimension_numbers = #tpu.dot_dimension_numbers<[1], [0], [0], [1], [0, 0, 1, 1], [], []>} : vector<224x128xbf16>, vector<128x128xbf16>, vector<224x128xf32> -> vector<224x128xf32>
    %134 = arith.addf %129, %133 : vector<224x128xf32>
    %c18 = arith.constant 18 : index
    %c0_64 = arith.constant 0 : index
    %135 = vector.load %arg14[%c18, %c0_64] : memref<264x128xbf16, #tpu.memory_space<vmem>>, vector<224x128xbf16>
    %c5 = arith.constant 5 : index
    %c0_65 = arith.constant 0 : index
    %c0_66 = arith.constant 0 : index
    %136 = vector.load %arg10[%c5, %c0_65, %c0_66] : memref<9x128x128xbf16, #tpu.memory_space<vmem>>, vector<1x128x128xbf16>
    %137 = vector.shape_cast %136 : vector<1x128x128xbf16> to vector<128x128xbf16>
    %cst_67 = arith.constant dense<0.000000e+00> : vector<224x128xf32>
    %138 = tpu.matmul %135, %137, %cst_67 {dimension_numbers = #tpu.dot_dimension_numbers<[1], [0], [0], [1], [0, 0, 1, 1], [], []>} : vector<224x128xbf16>, vector<128x128xbf16>, vector<224x128xf32> -> vector<224x128xf32>
    %139 = arith.addf %134, %138 : vector<224x128xf32>
    %c32 = arith.constant 32 : index
    %c0_68 = arith.constant 0 : index
    %140 = vector.load %arg14[%c32, %c0_68] : memref<264x128xbf16, #tpu.memory_space<vmem>>, vector<224x128xbf16>
    %c6 = arith.constant 6 : index
    %c0_69 = arith.constant 0 : index
    %c0_70 = arith.constant 0 : index
    %141 = vector.load %arg10[%c6, %c0_69, %c0_70] : memref<9x128x128xbf16, #tpu.memory_space<vmem>>, vector<1x128x128xbf16>
    %142 = vector.shape_cast %141 : vector<1x128x128xbf16> to vector<128x128xbf16>
    %cst_71 = arith.constant dense<0.000000e+00> : vector<224x128xf32>
    %143 = tpu.matmul %140, %142, %cst_71 {dimension_numbers = #tpu.dot_dimension_numbers<[1], [0], [0], [1], [0, 0, 1, 1], [], []>} : vector<224x128xbf16>, vector<128x128xbf16>, vector<224x128xf32> -> vector<224x128xf32>
    %144 = arith.addf %139, %143 : vector<224x128xf32>
    %c33 = arith.constant 33 : index
    %c0_72 = arith.constant 0 : index
    %145 = vector.load %arg14[%c33, %c0_72] : memref<264x128xbf16, #tpu.memory_space<vmem>>, vector<224x128xbf16>
    %c7 = arith.constant 7 : index
    %c0_73 = arith.constant 0 : index
    %c0_74 = arith.constant 0 : index
    %146 = vector.load %arg10[%c7, %c0_73, %c0_74] : memref<9x128x128xbf16, #tpu.memory_space<vmem>>, vector<1x128x128xbf16>
    %147 = vector.shape_cast %146 : vector<1x128x128xbf16> to vector<128x128xbf16>
    %cst_75 = arith.constant dense<0.000000e+00> : vector<224x128xf32>
    %148 = tpu.matmul %145, %147, %cst_75 {dimension_numbers = #tpu.dot_dimension_numbers<[1], [0], [0], [1], [0, 0, 1, 1], [], []>} : vector<224x128xbf16>, vector<128x128xbf16>, vector<224x128xf32> -> vector<224x128xf32>
    %149 = arith.addf %144, %148 : vector<224x128xf32>
    %c34 = arith.constant 34 : index
    %c0_76 = arith.constant 0 : index
    %150 = vector.load %arg14[%c34, %c0_76] : memref<264x128xbf16, #tpu.memory_space<vmem>>, vector<224x128xbf16>
    %c8 = arith.constant 8 : index
    %c0_77 = arith.constant 0 : index
    %c0_78 = arith.constant 0 : index
    %151 = vector.load %arg10[%c8, %c0_77, %c0_78] : memref<9x128x128xbf16, #tpu.memory_space<vmem>>, vector<1x128x128xbf16>
    %152 = vector.shape_cast %151 : vector<1x128x128xbf16> to vector<128x128xbf16>
    %cst_79 = arith.constant dense<0.000000e+00> : vector<224x128xf32>
    %153 = tpu.matmul %150, %152, %cst_79 {dimension_numbers = #tpu.dot_dimension_numbers<[1], [0], [0], [1], [0, 0, 1, 1], [], []>} : vector<224x128xbf16>, vector<128x128xbf16>, vector<224x128xf32> -> vector<224x128xf32>
    %154 = arith.addf %149, %153 : vector<224x128xf32>
    %c0_80 = arith.constant 0 : index
    %c0_81 = arith.constant 0 : index
    %155 = vector.load %arg11[%c0_80, %c0_81] : memref<1x128xf32, #tpu.memory_space<vmem>>, vector<1x128xf32>
    %156 = vector.broadcast %155 : vector<1x128xf32> to vector<224x128xf32>
    %157 = arith.addf %154, %156 : vector<224x128xf32>
    %cst_82 = arith.constant 0.707106769 : f32
    %158 = vector.broadcast %cst_82 : f32 to vector<224x128xf32>
    %159 = arith.mulf %157, %158 : vector<224x128xf32>
    %160 = math.absf %159 : vector<224x128xf32>
    %cst_83 = arith.constant 0.327591091 : f32
    %161 = vector.broadcast %cst_83 : f32 to vector<224x128xf32>
    %162 = arith.mulf %161, %160 : vector<224x128xf32>
    %cst_84 = arith.constant 1.000000e+00 : f32
    %163 = vector.broadcast %cst_84 : f32 to vector<224x128xf32>
    %164 = arith.addf %163, %162 : vector<224x128xf32>
    %cst_85 = arith.constant 1.000000e+00 : f32
    %165 = vector.broadcast %cst_85 : f32 to vector<224x128xf32>
    %166 = arith.divf %165, %164 : vector<224x128xf32>
    %cst_86 = arith.constant 1.06140542 : f32
    %167 = vector.broadcast %cst_86 : f32 to vector<224x128xf32>
    %168 = arith.mulf %167, %166 : vector<224x128xf32>
    %cst_87 = arith.constant 1.45315206 : f32
    %169 = vector.broadcast %cst_87 : f32 to vector<224x128xf32>
    %170 = arith.subf %168, %169 : vector<224x128xf32>
    %171 = arith.mulf %170, %166 : vector<224x128xf32>
    %cst_88 = arith.constant 1.42141378 : f32
    %172 = vector.broadcast %cst_88 : f32 to vector<224x128xf32>
    %173 = arith.addf %171, %172 : vector<224x128xf32>
    %174 = arith.mulf %173, %166 : vector<224x128xf32>
    %cst_89 = arith.constant 0.284496725 : f32
    %175 = vector.broadcast %cst_89 : f32 to vector<224x128xf32>
    %176 = arith.subf %174, %175 : vector<224x128xf32>
    %177 = arith.mulf %176, %166 : vector<224x128xf32>
    %cst_90 = arith.constant 0.254829586 : f32
    %178 = vector.broadcast %cst_90 : f32 to vector<224x128xf32>
    %179 = arith.addf %177, %178 : vector<224x128xf32>
    %180 = arith.mulf %179, %166 : vector<224x128xf32>
    %cst_91 = arith.constant 0.000000e+00 : f32
    %181 = vector.broadcast %cst_91 : f32 to vector<224x128xf32>
    %182 = arith.subf %181, %160 : vector<224x128xf32>
    %183 = arith.mulf %182, %160 : vector<224x128xf32>
    %184 = math.exp %183 : vector<224x128xf32>
    %185 = arith.mulf %180, %184 : vector<224x128xf32>
    %cst_92 = arith.constant 1.000000e+00 : f32
    %186 = vector.broadcast %cst_92 : f32 to vector<224x128xf32>
    %187 = arith.subf %186, %185 : vector<224x128xf32>
    %cst_93 = arith.constant 0.000000e+00 : f32
    %188 = vector.broadcast %cst_93 : f32 to vector<224x128xf32>
    %189 = arith.cmpf olt, %159, %188 : vector<224x128xf32>
    %cst_94 = arith.constant 0.000000e+00 : f32
    %190 = vector.broadcast %cst_94 : f32 to vector<224x128xf32>
    %191 = arith.subf %190, %187 : vector<224x128xf32>
    %192 = arith.select %189, %191, %187 : vector<224x128xi1>, vector<224x128xf32>
    %cst_95 = arith.constant 5.000000e-01 : f32
    %193 = vector.broadcast %cst_95 : f32 to vector<224x128xf32>
    %194 = arith.mulf %193, %157 : vector<224x128xf32>
    %cst_96 = arith.constant 1.000000e+00 : f32
    %195 = vector.broadcast %cst_96 : f32 to vector<224x128xf32>
    %196 = arith.addf %195, %192 : vector<224x128xf32>
    %197 = arith.mulf %194, %196 : vector<224x128xf32>
    %c0_97 = arith.constant 0 : index
    %c0_98 = arith.constant 0 : index
    %198 = vector.load %arg12[%c0_97, %c0_98] : memref<224x128xf32, #tpu.memory_space<vmem>>, vector<224x128xf32>
    %199 = arith.mulf %197, %198 : vector<224x128xf32>
    %cst_99 = arith.constant dense<0.000000e+00> : vector<224xf32>
    %200 = vector.multi_reduction <add>, %199, %cst_99 [1] : vector<224x128xf32> to vector<224xf32>
    %201 = vector.shape_cast %200 : vector<224xf32> to vector<224x1xf32>
    %cst_100 = arith.constant dense<0.000000e+00> : vector<1xf32>
    %202 = vector.multi_reduction <add>, %201, %cst_100 [0] : vector<224x1xf32> to vector<1xf32>
    %203 = vector.shape_cast %202 : vector<1xf32> to vector<1x1xf32>
    %204 = arith.mulf %199, %197 : vector<224x128xf32>
    %cst_101 = arith.constant dense<0.000000e+00> : vector<224xf32>
    %205 = vector.multi_reduction <add>, %204, %cst_101 [1] : vector<224x128xf32> to vector<224xf32>
    %206 = vector.shape_cast %205 : vector<224xf32> to vector<224x1xf32>
    %cst_102 = arith.constant dense<0.000000e+00> : vector<1xf32>
    %207 = vector.multi_reduction <add>, %206, %cst_102 [0] : vector<224x1xf32> to vector<1xf32>
    %208 = vector.shape_cast %207 : vector<1xf32> to vector<1x1xf32>
    %cst_103 = arith.constant 6.37755089E-4 : f32
    %209 = vector.broadcast %cst_103 : f32 to vector<1x1xf32>
    %210 = arith.mulf %203, %209 : vector<1x1xf32>
    %cst_104 = arith.constant 6.37755089E-4 : f32
    %211 = vector.broadcast %cst_104 : f32 to vector<1x1xf32>
    %212 = arith.mulf %208, %211 : vector<1x1xf32>
    %213 = arith.mulf %210, %210 : vector<1x1xf32>
    %214 = arith.subf %212, %213 : vector<1x1xf32>
    %215 = vector.broadcast %210 : vector<1x1xf32> to vector<224x128xf32>
    %216 = arith.subf %197, %215 : vector<224x128xf32>
    %cst_105 = arith.constant 9.99999974E-6 : f32
    %217 = vector.broadcast %cst_105 : f32 to vector<1x1xf32>
    %218 = arith.addf %214, %217 : vector<1x1xf32>
    %219 = math.rsqrt %218 : vector<1x1xf32>
    %220 = vector.broadcast %219 : vector<1x1xf32> to vector<224x128xf32>
    %221 = arith.mulf %216, %220 : vector<224x128xf32>
    %222 = arith.mulf %221, %198 : vector<224x128xf32>
    %223 = arith.truncf %222 : vector<224x128xf32> to vector<224x128xbf16>
    %c0_106 = arith.constant 0 : index
    %c0_107 = arith.constant 0 : index
    %c0_108 = arith.constant 0 : index
    %224 = vector.load %arg13[%c0_106, %c0_107, %c0_108] : memref<1x224x128xbf16, #tpu.memory_space<vmem>>, vector<1x224x128xbf16>
    %225 = vector.shape_cast %224 : vector<1x224x128xbf16> to vector<224x128xbf16>
    %226 = vector.shape_cast %223 : vector<224x128xbf16> to vector<1x224x128xbf16>
    tpu.vector_store %arg13[%c0_106, %c0_107, %c0_108], %226 {strides = array<i32>} : memref<1x224x128xbf16, #tpu.memory_space<vmem>>, vector<1x224x128xbf16>,
    return
  }
  func.func @transform_0(%arg0: i32) -> (i32, i32, i32) {
    %c0_i32 = arith.constant 0 : i32
    %c0_i32_0 = arith.constant 0 : i32
    %c0_i32_1 = arith.constant 0 : i32
    return %arg0, %c0_i32, %c0_i32_0 : i32, i32, i32
  }
  func.func @transform_1(%arg0: i32) -> (i32, i32) {
    %c0_i32 = arith.constant 0 : i32
    %c0_i32_0 = arith.constant 0 : i32
    %c0_i32_1 = arith.constant 0 : i32
    return %c0_i32, %c0_i32_0 : i32, i32
  }
  func.func @transform_2(%arg0: i32) -> (i32, i32) {
    %c0_i32 = arith.constant 0 : i32
    %c0_i32_0 = arith.constant 0 : i32
    %c0_i32_1 = arith.constant 0 : i32
    return %c0_i32, %c0_i32_0 : i32, i32
  }
  func.func @transform_3(%arg0: i32) -> (i32, i32) {
    %c0_i32 = arith.constant 0 : i32
    %c0_i32_0 = arith.constant 0 : i32
    %c0_i32_1 = arith.constant 0 : i32
    return %c0_i32, %c0_i32_0 : i32, i32
  }
  func.func @transform_4(%arg0: i32) -> (i32, i32) {
    %c0_i32 = arith.constant 0 : i32
    %c0_i32_0 = arith.constant 0 : i32
    %c0_i32_1 = arith.constant 0 : i32
    return %c0_i32, %c0_i32_0 : i32, i32
  }
  func.func @transform_5(%arg0: i32) -> (i32, i32) {
    %c0_i32 = arith.constant 0 : i32
    %c0_i32_0 = arith.constant 0 : i32
    %c0_i32_1 = arith.constant 0 : i32
    return %c0_i32, %c0_i32_0 : i32, i32
  }
  func.func @transform_6(%arg0: i32) -> (i32, i32) {
    %c0_i32 = arith.constant 0 : i32
    %c0_i32_0 = arith.constant 0 : i32
    %c0_i32_1 = arith.constant 0 : i32
    return %c0_i32, %c0_i32_0 : i32, i32
  }
  func.func @transform_7(%arg0: i32) -> (i32, i32) {
    %c0_i32 = arith.constant 0 : i32
    %c0_i32_0 = arith.constant 0 : i32
    %c0_i32_1 = arith.constant 0 : i32
    return %c0_i32, %c0_i32_0 : i32, i32
  }
  func.func @transform_8(%arg0: i32) -> (i32, i32) {
    %c0_i32 = arith.constant 0 : i32
    %c0_i32_0 = arith.constant 0 : i32
    %c0_i32_1 = arith.constant 0 : i32
    return %c0_i32, %c0_i32_0 : i32, i32
  }
  func.func @transform_9(%arg0: i32) -> (i32, i32, i32) {
    %c0_i32 = arith.constant 0 : i32
    %c0_i32_0 = arith.constant 0 : i32
    %c0_i32_1 = arith.constant 0 : i32
    %c0_i32_2 = arith.constant 0 : i32
    return %c0_i32, %c0_i32_0, %c0_i32_1 : i32, i32, i32
  }
  func.func @transform_10(%arg0: i32) -> (i32, i32) {
    %c0_i32 = arith.constant 0 : i32
    %c0_i32_0 = arith.constant 0 : i32
    %c0_i32_1 = arith.constant 0 : i32
    return %c0_i32, %c0_i32_0 : i32, i32
  }
  func.func @transform_11(%arg0: i32) -> (i32, i32) {
    %c0_i32 = arith.constant 0 : i32
    %c0_i32_0 = arith.constant 0 : i32
    %c0_i32_1 = arith.constant 0 : i32
    return %c0_i32, %c0_i32_0 : i32, i32
  }
  func.func @transform_12(%arg0: i32) -> (i32, i32, i32) {
    %c0_i32 = arith.constant 0 : i32
    %c0_i32_0 = arith.constant 0 : i32
    %c0_i32_1 = arith.constant 0 : i32
    return %arg0, %c0_i32, %c0_i32_0 : i32, i32, i32
  }
}

</mosaic_0001>

<bundles_post_ra>
// kernel: conv_block_with_t.1
= control target key start
LH: loop header
LB: loop body
LE: loop exit
PB: predicated region body
PF: predicated region fallthrough
CT: control target
= control target key end

     0   :  { %s11551_s21 = smov 0   ;;  %s15673_s0 = inlined_call_operand.vmem [shape: bf16[2,256,40], index: 0, kind: input, shape index: {}]   ;;  %s15674_s1 = inlined_call_operand.vmem [shape: bf16[40,128], index: 1, kind: input, shape index: {}]   ;;  %s15675_s2 = inlined_call_operand.vmem [shape: f32[1,128], index: 2, kind: input, shape index: {}]   ;;  %s15676_s3 = inlined_call_operand.vmem [shape: bf16[128,384], index: 3, kind: input, shape index: {}]   ;;  %s15677_s4 = inlined_call_operand.vmem [shape: f32[1,384], index: 4, kind: input, shape index: {}]   ;;  %s15678_s5 = inlined_call_operand.vmem [shape: bf16[128,128], index: 5, kind: input, shape index: {}]   ;;  %s15679_s6 = inlined_call_operand.vmem [shape: f32[1,128], index: 6, kind: input, shape index: {}]   ;;  %s15680_s7 = inlined_call_operand.vmem [shape: f32[1,128], index: 7, kind: input, shape index: {}]   ;;  %s15681_s8 = inlined_call_operand.vmem [shape: f32[1,128], index: 8, kind: input, shape index: {}]   ;;  %s15682_s9 = inlined_call_operand.vmem [shape: bf16[9,128,128], index: 9, kind: input, shape index: {}]   ;;  %s15683_s10 = inlined_call_operand.vmem [shape: f32[1,128], index: 10, kind: input, shape index: {}]   ;;  %s15684_s11 = inlined_call_operand.vmem [shape: f32[224,128], index: 11, kind: input, shape index: {}]   ;;  %s15685_s12 = inlined_call_operand.vmem [shape: bf16[2,224,128], index: 12, kind: output, shape index: {}]  }
   0x1 LB: > { %s11557_s22 = sadd.s32 4294967295, %s11481_s21   ;;  %p8616_p0 = scmp.ge.s32.totalorder %s11481_s21, 1  ;;  %s11481_s21 = sphi %s11551_s21, %s22_s21  }
   0x2   : > { %p362_p1 = scmp.lt.s32.totalorder %s11481_s21, 3 }
   0x4   : > { %p363_p2 = pnand %p8616_p0, %p362_p1 }
   0x6   : > { %366 = sbr.rel (%p363_p2) target bundleno = 3206 (0xc86), region = 68 }
   0xd   : > { %v10696_v0 = vld [vmem:[%s15674_s1] sm:$0xff]   ;;  %v10697_v1 = vld [vmem:[%s15674_s1 + $0x8] sm:$0xff]   ;;  %p404_p3 = scmp.lt.s32.totalorder %s11557_s22, 1  ;;  %v10698_v2 = vld [vmem:[%s15674_s1 + $0x10] ss:$0 sps:$4 sm:$0xff]   ;;  %vm603_vm0 = vcmask 1043456  }
   0xe   : > { %9913 = vmatprep.subr.bf16.mxu0 %v10696_v0  ;;  %v10717_v3 = vld [vmem:[%s15676_s3 + $0x4] ss:$12 sps:$4 sm:$0xff]   ;;  %v10715_v4 = vld [vmem:[%s15676_s3] ss:$12 sps:$4 sm:$0xff]   ;;  %v10720_v5 = vld [vmem:[%s15676_s3 + $0x1c] ss:$12 sps:$4 sm:$0xff]  }
   0xf   : > { %9914 = vmatpush3.bf16.msra.mxu0 %v10696_v0  ;;  %s405_s29 = scalar_select %p404_p3, %s11557_s22, 1  ;;  %10443 = vmatprep.subr.bf16.mxu1 %v10717_v3  ;;  %vm554_vm1 = vcmask 326656   ;;  %v605_v6 = vsel %vm603_vm0, %v10698_v2, 0  ;;  %v10718_v8 = vld [vmem:[%s15676_s3 + $0x18] ss:$12 sps:$4 sm:$0xff]   ;;  %v11483_v36 = vmov 0  }
  0x10   : > { %9915 = vmatprep.subr.bf16.mxu0 %v10697_v1  ;;  %10451 = vmatpush1.bf16.msra.mxu1 %v10715_v4  ;;  %v10723_v9 = vld [vmem:[%s15676_s3 + $0x34] ss:$12 sps:$4 sm:$0xff]   ;;  %v10721_v12 = vld [vmem:[%s15676_s3 + $0x30] ss:$12 sps:$4 sm:$0xff]   ;;  %v10726_v16 = vld [vmem:[%s15676_s3 + $0x4c] ss:$12 sps:$4 sm:$0xff]  }
  0x11   : > { %s9089_s16 = sshll.u32 %s405_s29, 7  ;;  %s10684_s17 = smul.u32 112, %s405_s29  ;;  %10444 = vmatprep.subr.bf16.mxu1 %v10720_v5  ;;  %v10724_v15 = vld [vmem:[%s15676_s3 + $0x48] ss:$12 sps:$4 sm:$0xff]   ;;  %v10729_v17 = vld [vmem:[%s15676_s3 + $0x64] ss:$12 sps:$4 sm:$0xff]   ;;  %1113 = vmatprep.mubr.bf16.mxu1 %v11483_v36 }
  0x12   : > { %s11584_s24 = scalar_lea.vmem %s15673_s0, %s9089_s16  ;;  %v10727_v20 = vld [vmem:[%s15676_s3 + $0x60] ss:$12 sps:$4 sm:$0xff]   ;;  %v10732_v21 = vld [vmem:[%s15676_s3 + $0x7c] ss:$12 sps:$4 sm:$0xff]   ;;  %v10730_v22 = vld [vmem:[%s15676_s3 + $0x78] ss:$12 sps:$4 sm:$0xff]  }
  0x13   : > { %9916 = vmatpush3.bf16.msra.mxu0 %v10697_v1  ;;  %s11589_s27 = scalar_lea.vmem %s15685_s12, %s10684_s17  ;;  %v10699_v7 = vld [vmem:[%s11584_s24] sm:$0xff]   ;;  %v10700_v10 = vld [vmem:[%s11584_s24 + $0x8] sm:$0xff]   ;;  %v10701_v11 = vld [vmem:[%s11584_s24 + $0x10] sm:$0xff]   ;;  %p8693_p4 = scmp.ne.s32.totalorder %s11557_s22, 0 }
  0x14   : > { %10683 = vmatprep.subr.msk.bf16.mxu0 %vm603_vm0, %v10698_v2  ;;  %9919 = vmatprep.mubr.msk.bf16.mxu0 %vm554_vm1, %v10699_v7  ;;  %v10702_v13 = vld [vmem:[%s11584_s24 + $0x18] sm:$0xff]   ;;  %v10703_v14 = vld [vmem:[%s11584_s24 + $0x20] sm:$0xff]   ;;  %v10704_v18 = vld [vmem:[%s11584_s24 + $0x28] sm:$0xff]  }
  0x15   : > { %10452 = vmatpush1.bf16.msra.mxu1 %v10718_v8  ;;  %v10705_v19 = vld [vmem:[%s11584_s24 + $0x30] sm:$0xff]   ;;  %v10706_v24 = vld [vmem:[%s11584_s24 + $0x38] sm:$0xff]   ;;  %v10707_v25 = vld [vmem:[%s11584_s24 + $0x40] sm:$0xff]  }
  0x16   : > { %10445 = vmatprep.subr.bf16.mxu1 %v10723_v9  ;;  %v10735_v23 = vld [vmem:[%s15676_s3 + $0x94] ss:$12 sps:$4 sm:$0xff]   ;;  %v10733_v26 = vld [vmem:[%s15676_s3 + $0x90] ss:$12 sps:$4 sm:$0xff]   ;;  %v10708_v27 = vld [vmem:[%s11584_s24 + $0x48] sm:$0xff]  }
  0x17   : > { %9918 = vmatpush3.bf16.msra.mxu0 %v605_v6  ;;  %v10709_v28 = vld [vmem:[%s11584_s24 + $0x50] sm:$0xff]   ;;  %v10710_v29 = vld [vmem:[%s11584_s24 + $0x58] sm:$0xff]   ;;  %v10711_v30 = vld [vmem:[%s11584_s24 + $0x60] sm:$0xff]  }
  0x18   : > { %961 = vmatprep.subr.bf16.mxu0 %v10717_v3  ;;  %v10712_v31 = vld [vmem:[%s11584_s24 + $0x68] sm:$0xff]   ;;  %v10713_v32 = vld [vmem:[%s11584_s24 + $0x70] sm:$0xff]   ;;  %v10714_v33 = vld [vmem:[%s11584_s24 + $0x78] sm:$0xff]  }
  0x19   : > { %10453 = vmatpush1.bf16.msra.mxu1 %v10721_v12  ;;  %v10736_v34 = vld [vmem:[%s15676_s3 + $0xa8] ss:$12 sps:$4 sm:$0xff]   ;;  %v10738_v35 = vld [vmem:[%s15676_s3 + $0xac] ss:$12 sps:$4 sm:$0xff]   ;;  %v11670_v39 = vld [vmem:[%s15675_s2] ss:$0 sm:$0xff] }
  0x1a   : > { %9920 = vmatmul.mubr.msk.bf16.vlgmr.msra.gmra.mrb[0].mxu0 %vm554_vm1, %v10700_v10  ;;  %10446 = vmatprep.subr.bf16.mxu1 %v10726_v16  ;;  %v10739_v37 = vld [vmem:[%s15676_s3 + $0x8] ss:$12 sps:$4 sm:$0xff]   ;;  %v10740_v46 = vld [vmem:[%s15676_s3 + $0x20] ss:$12 sps:$4 sm:$0xff]   ;;  %v10741_v51 = vld [vmem:[%s15676_s3 + $0x38] ss:$12 sps:$4 sm:$0xff]  }
  0x1b   : > { %9923 = vmatprep.mubr.msk.bf16.mxu0 %vm554_vm1, %v10701_v11  ;;  %962 = vmatpush1.bf16.msra.mxu0 %v10715_v4  ;;  %v10742_v55 = vld [vmem:[%s15676_s3 + $0x50] ss:$12 sps:$4 sm:$0xff]   ;;  %v10743_v61 = vld [vmem:[%s15676_s3 + $0x68] ss:$12 sps:$4 sm:$0xff]   ;;  %v10744_v0 = vld [vmem:[%s15676_s3 + $0x80] ss:$12 sps:$4 sm:$0xff]  }
  0x1c   : > { %963 = vmatprep.subr.bf16.mxu0 %v10720_v5  ;;  %v10745_v6 = vld [vmem:[%s15676_s3 + $0x98] ss:$12 sps:$4 sm:$0xff]  }
  0x1d   : > { %10454 = vmatpush1.bf16.msra.mxu1 %v10724_v15 }
  0x1e   : > { %10447 = vmatprep.subr.bf16.mxu1 %v10729_v17 }
  0x1f   : > { %964 = vmatpush1.bf16.msra.mxu0 %v10718_v8 }
  0x20   : > { %965 = vmatprep.subr.bf16.mxu0 %v10723_v9  ;;  %v10746_v9 = vld [vmem:[%s15676_s3 + $0xb0] ss:$12 sps:$4 sm:$0xff]  }
  0x21   : > { %10455 = vmatpush1.bf16.msra.mxu1 %v10727_v20 }
  0x22   : > { %9924 = vmatmul.mubr.msk.bf16.gmra.mrb[4].mxu0 %vm554_vm1, %v10702_v13  ;;  %10448 = vmatprep.subr.bf16.mxu1 %v10732_v21 }
  0x23   : > { %9927 = vmatprep.mubr.msk.bf16.mxu0 %vm554_vm1, %v10703_v14  ;;  %966 = vmatpush1.bf16.msra.mxu0 %v10721_v12 }
  0x24   : > { %967 = vmatprep.subr.bf16.mxu0 %v10726_v16 }
  0x25   : > { %10456 = vmatpush1.bf16.msra.mxu1 %v10730_v22 }
  0x26   : > { %10449 = vmatprep.subr.bf16.mxu1 %v10735_v23 }
  0x27   : > { %968 = vmatpush1.bf16.msra.mxu0 %v10724_v15 }
  0x28   : > { %969 = vmatprep.subr.bf16.mxu0 %v10729_v17 }
  0x29   : > { %10457 = vmatpush1.bf16.msra.mxu1 %v10733_v26 }
  0x2a   : > { %9928 = vmatmul.mubr.msk.bf16.gmra.mrb[8].mxu0 %vm554_vm1, %v10704_v18  ;;  %10450 = vmatprep.subr.bf16.mxu1 %v10738_v35 }
  0x2b   : > { %9931 = vmatprep.mubr.msk.bf16.mxu0 %vm554_vm1, %v10705_v19  ;;  %970 = vmatpush1.bf16.msra.mxu0 %v10727_v20 }
  0x2c   : > { %971 = vmatprep.subr.bf16.mxu0 %v10732_v21 }
  0x2d   : > { %10458 = vmatpush1.bf16.msra.mxu1 %v10736_v34 }
  0x2f   : > { %972 = vmatpush1.bf16.msra.mxu0 %v10730_v22 }
  0x30   : > { %973 = vmatprep.subr.bf16.mxu0 %v10735_v23 }
  0x32   : > { %9932 = vmatmul.mubr.msk.bf16.gmra.mrb[12].mxu0 %vm554_vm1, %v10706_v24 }
  0x33   : > { %9935 = vmatprep.mubr.msk.bf16.mxu0 %vm554_vm1, %v10707_v25  ;;  %974 = vmatpush1.bf16.msra.mxu0 %v10733_v26 }
  0x34   : > { %975 = vmatprep.subr.bf16.mxu0 %v10738_v35 }
  0x37   : > { %976 = vmatpush1.bf16.msra.mxu0 %v10736_v34 }
  0x38   : > { %9951 = vmatprep.subr.bf16.mxu0 %v10739_v37 }
  0x3a   : > { %9936 = vmatmul.mubr.msk.bf16.gmra.mrb[16].mxu0 %vm554_vm1, %v10708_v27 }
  0x3b   : > { %9939 = vmatprep.mubr.msk.bf16.mxu0 %vm554_vm1, %v10709_v28 }
  0x42   : > { %9940 = vmatmul.mubr.msk.bf16.gmra.mrb[20].mxu0 %vm554_vm1, %v10710_v29 }
  0x43   : > { %9943 = vmatprep.mubr.msk.bf16.mxu0 %vm554_vm1, %v10711_v30 }
  0x4a   : > { %9944 = vmatmul.mubr.msk.bf16.gmra.mrb[24].mxu0 %vm554_vm1, %v10712_v31 }
  0x4b   : > { %9947 = vmatprep.mubr.msk.bf16.mxu0 %vm554_vm1, %v10713_v32 }
  0x52   : > { %9948 = vmatmul.mubr.msk.bf16.gmra.mrb[28].mxu0 %vm554_vm1, %v10714_v33 }
  0x53   : > { %993 = vmatprep.mubr.bf16.mxu0 %v11483_v36 }
  0xed   : > { %v9921_v38 = vpop.f32.mrb[0].mxu0 }
  0xee   : > { %v641_v40 = vpop.f32.mrb[1].mxu0  ;;  %v11694_v53 = vadd.f32 %v9921_v38, %v11670_v39 }
  0xef   : > { %v9922_v41 = vpop.f32.mrb[2].mxu0  ;;  %v11673_v43 = vadd.f32 %v11670_v39, %v641_v40 }
  0xf0   : > { %v644_v42 = vpop.f32.mrb[3].mxu0  ;;  %v11688_v49 = vadd.f32 %v9922_v41, %v11670_v39  ;;  %15931 = vst [vmem:[#allocation6_spill] sm:$0xff] %v11694_v53 }
  0xf1   : > { %15928 = vst [vmem:[#allocation3_spill] sm:$0xff] %v11673_v43  ;;  %v11676_v44 = vadd.f32 %v11670_v39, %v644_v42 }
  0xf2   : > { %15930 = vst [vmem:[#allocation5_spill] sm:$0xff] %v11688_v49  ;;  %v11698_v54 = vpack.c.bf16 %v11688_v49, %v11694_v53 }
  0xf3   : > { %15929 = vst [vmem:[#allocation4_spill] sm:$0xff] %v11676_v44  ;;  %v11680_v45 = vpack.c.bf16 %v11676_v44, %v11673_v43 }
  0xf5   : > { %994 = vmatmul.mubr.bf16.vlgmr.msra.gmra.mrb[32].mxu0 %v11680_v45  ;;  %v9925_v47 = vpop.f32.mrb[4].mxu0 }
  0xf6   : > { %v657_v48 = vpop.f32.mrb[5].mxu0  ;;  %1003 = vmatprep.mubr.bf16.mxu0 %v11483_v36  ;;  %9952 = vmatpush3.bf16.msra.mxu0 %v10739_v37  ;;  %v11726_v3 = vadd.f32 %v9925_v47, %v11670_v39 }
  0xf7   : > { %v9926_v50 = vpop.f32.mrb[6].mxu0  ;;  %9953 = vmatprep.subr.bf16.mxu0 %v10740_v46  ;;  %v11706_v58 = vadd.f32 %v11670_v39, %v657_v48 }
  0xf8   : > { %v660_v52 = vpop.f32.mrb[7].mxu0  ;;  %15934 = vst [vmem:[#allocation9_spill] sm:$0xff] %v11726_v3  ;;  %v11729_v4 = vadd.f32 %v9926_v50, %v11670_v39 }
  0xf9   : > { %15932 = vst [vmem:[#allocation7_spill] sm:$0xff] %v11706_v58  ;;  %v11709_v59 = vadd.f32 %v11670_v39, %v660_v52 }
  0xfa   : > { %9954 = vmatpush3.bf16.msra.mxu0 %v10740_v46  ;;  %15935 = vst [vmem:[#allocation10_spill] sm:$0xff] %v11729_v4  ;;  %v11736_v8 = vpack.c.bf16 %v11729_v4, %v11726_v3 }
  0xfb   : > { %9955 = vmatprep.subr.bf16.mxu0 %v10741_v51  ;;  %15933 = vst [vmem:[#allocation8_spill] sm:$0xff] %v11709_v59  ;;  %v11716_v63 = vpack.c.bf16 %v11709_v59, %v11706_v58 }
  0xfd   : > { %1004 = vmatmul.mubr.bf16.gmra.mrb[36].mxu0 %v11698_v54  ;;  %v9929_v56 = vpop.f32.mrb[8].mxu0 }
  0xfe   : > { %1013 = vmatprep.mubr.bf16.mxu0 %v11483_v36  ;;  %v673_v57 = vpop.f32.mrb[9].mxu0  ;;  %9956 = vmatpush3.bf16.msra.mxu0 %v10741_v51  ;;  %v11771_v24 = vadd.f32 %v9929_v56, %v11670_v39 }
  0xff   : > { %v9930_v60 = vpop.f32.mrb[10].mxu0  ;;  %9957 = vmatprep.subr.bf16.mxu0 %v10742_v55  ;;  %v11747_v13 = vadd.f32 %v11670_v39, %v673_v57 }
 0x100   : > { %v676_v62 = vpop.f32.mrb[11].mxu0  ;;  %15943 = vst [vmem:[#allocation18_spill] sm:$0xff] %v11771_v24  ;;  %v11774_v25 = vadd.f32 %v9930_v60, %v11670_v39 }
 0x101   : > { %15937 = vst [vmem:[#allocation12_spill] sm:$0xff] %v11747_v13  ;;  %v11750_v14 = vadd.f32 %v11670_v39, %v676_v62 }
 0x102   : > { %9958 = vmatpush3.bf16.msra.mxu0 %v10742_v55  ;;  %15944 = vst [vmem:[#allocation19_spill] sm:$0xff] %v11774_v25  ;;  %v773_v31 = vpack.c.bf16 %v11774_v25, %v11771_v24 }
 0x103   : > { %9959 = vmatprep.subr.bf16.mxu0 %v10743_v61  ;;  %15938 = vst [vmem:[#allocation13_spill] sm:$0xff] %v11750_v14  ;;  %v11763_v20 = vpack.c.bf16 %v11750_v14, %v11747_v13 }
 0x105   : > { %1014 = vmatmul.mubr.bf16.gmra.mrb[40].mxu0 %v11716_v63  ;;  %v11722_v1 = vpop.f32.mrb[12].mxu0 }
 0x106   : > { %1023 = vmatprep.mubr.bf16.mxu0 %v11483_v36  ;;  %v689_v2 = vpop.f32.mrb[13].mxu0  ;;  %9960 = vmatpush3.bf16.msra.mxu0 %v10743_v61  ;;  %v11817_v55 = vadd.f32 %v11722_v1, %v11670_v39 }
 0x107   : > { %v9934_v5 = vpop.f32.mrb[14].mxu0  ;;  %9961 = vmatprep.subr.bf16.mxu0 %v10744_v0  ;;  %v11789_v34 = vadd.f32 %v11670_v39, %v689_v2 }
 0x108   : > { %v692_v7 = vpop.f32.mrb[15].mxu0  ;;  %15955 = vst [vmem:[#allocation30_spill] sm:$0xff] %v11817_v55  ;;  %v11820_v56 = vadd.f32 %v9934_v5, %v11670_v39 }
 0x109   : > { %15948 = vst [vmem:[#allocation23_spill] sm:$0xff] %v11789_v34  ;;  %v11792_v35 = vadd.f32 %v11670_v39, %v692_v7 }
 0x10a   : > { %9962 = vmatpush3.bf16.msra.mxu0 %v10744_v0  ;;  %15956 = vst [vmem:[#allocation31_spill] sm:$0xff] %v11820_v56  ;;  %v775_v1 = vpack.c.bf16 %v11820_v56, %v11817_v55 }
 0x10b   : > { %9963 = vmatprep.subr.bf16.mxu0 %v10745_v6  ;;  %15949 = vst [vmem:[#allocation24_spill] sm:$0xff] %v11792_v35  ;;  %v774_v42 = vpack.c.bf16 %v11792_v35, %v11789_v34 }
 0x10d   : > { %1024 = vmatmul.mubr.bf16.gmra.mrb[44].mxu0 %v11736_v8  ;;  %v9937_v10 = vpop.f32.mrb[16].mxu0 }
 0x10e   : > { %1033 = vmatprep.mubr.bf16.mxu0 %v11483_v36  ;;  %v11744_v11 = vadd.f32 %v9937_v10, %v11670_v39  ;;  %v705_v12 = vpop.f32.mrb[17].mxu0  ;;  %9964 = vmatpush3.bf16.msra.mxu0 %v10745_v6 }
 0x10f   : > { %v11753_v15 = vadd.f32 %v11670_v39, %v705_v12  ;;  %v9938_v16 = vpop.f32.mrb[18].mxu0  ;;  %9965 = vmatprep.subr.bf16.mxu0 %v10746_v9 }
 0x110   : > { %15936 = vst [vmem:[#allocation11_spill] sm:$0xff] %v11744_v11  ;;  %v11756_v17 = vadd.f32 %v9938_v16, %v11670_v39  ;;  %v708_v18 = vpop.f32.mrb[19].mxu0 }
 0x111   : > { %15939 = vst [vmem:[#allocation14_spill] sm:$0xff] %v11753_v15  ;;  %v11759_v19 = vadd.f32 %v11670_v39, %v708_v18 }
 0x112   : > { %15940 = vst [vmem:[#allocation15_spill] sm:$0xff] %v11756_v17  ;;  %9966 = vmatpush3.bf16.msra.mxu0 %v10746_v9  ;;  %v777_v7 = vpack.c.bf16 %v11756_v17, %v11744_v11 }
 0x113   : > { %15941 = vst [vmem:[#allocation16_spill] sm:$0xff] %v11759_v19  ;;  %v776_v6 = vpack.c.bf16 %v11759_v19, %v11753_v15 }
 0x115   : > { %1034 = vmatmul.mubr.bf16.gmra.mrb[48].mxu0 %v11763_v20  ;;  %v9941_v21 = vpop.f32.mrb[20].mxu0 }
 0x116   : > { %1043 = vmatprep.mubr.bf16.mxu0 %v11483_v36  ;;  %v11768_v22 = vadd.f32 %v9941_v21, %v11670_v39  ;;  %v721_v23 = vpop.f32.mrb[21].mxu0 }
 0x117   : > { %v11777_v26 = vadd.f32 %v11670_v39, %v721_v23  ;;  %v9942_v27 = vpop.f32.mrb[22].mxu0 }
 0x118   : > { %15942 = vst [vmem:[#allocation17_spill] sm:$0xff] %v11768_v22  ;;  %v11780_v28 = vadd.f32 %v9942_v27, %v11670_v39  ;;  %v724_v29 = vpop.f32.mrb[23].mxu0 }
 0x119   : > { %15945 = vst [vmem:[#allocation20_spill] sm:$0xff] %v11777_v26  ;;  %v11783_v30 = vadd.f32 %v11670_v39, %v724_v29 }
 0x11a   : > { %15946 = vst [vmem:[#allocation21_spill] sm:$0xff] %v11780_v28  ;;  %v779_v10 = vpack.c.bf16 %v11780_v28, %v11768_v22 }
 0x11b   : > { %15947 = vst [vmem:[#allocation22_spill] sm:$0xff] %v11783_v30  ;;  %v778_v9 = vpack.c.bf16 %v11783_v30, %v11777_v26 }
 0x11d   : > { %1044 = vmatmul.mubr.bf16.gmra.mrb[52].mxu0 %v773_v31  ;;  %v9945_v32 = vpop.f32.mrb[24].mxu0 }
 0x11e   : > { %1053 = vmatprep.mubr.bf16.mxu0 %v11483_v36  ;;  %v737_v33 = vpop.f32.mrb[25].mxu0  ;;  %v11805_v47 = vadd.f32 %v9945_v32, %v11670_v39 }
 0x11f   : > { %v11795_v37 = vadd.f32 %v11670_v39, %v737_v33  ;;  %v9946_v38 = vpop.f32.mrb[26].mxu0 }
 0x120   : > { %v740_v40 = vpop.f32.mrb[27].mxu0  ;;  %15952 = vst [vmem:[#allocation27_spill] sm:$0xff] %v11805_v47  ;;  %v11808_v48 = vadd.f32 %v9946_v38, %v11670_v39 }
 0x121   : > { %15950 = vst [vmem:[#allocation25_spill] sm:$0xff] %v11795_v37  ;;  %v11798_v41 = vadd.f32 %v11670_v39, %v740_v40 }
 0x122   : > { %15953 = vst [vmem:[#allocation28_spill] sm:$0xff] %v11808_v48  ;;  %v781_v0 = vpack.c.bf16 %v11808_v48, %v11805_v47 }
 0x123   : > { %15951 = vst [vmem:[#allocation26_spill] sm:$0xff] %v11798_v41  ;;  %v780_v46 = vpack.c.bf16 %v11798_v41, %v11795_v37 }
 0x125   : > { %1054 = vmatmul.mubr.bf16.gmra.mrb[56].mxu0 %v774_v42  ;;  %1114 = vmatmul.mubr.bf16.vlgmr.msra.gmra.mrb[0].mxu1 %v780_v46  ;;  %v9949_v50 = vpop.f32.mrb[28].mxu0 }
 0x126   : > { %1063 = vmatprep.mubr.bf16.mxu0 %v11483_v36  ;;  %1123 = vmatprep.mubr.bf16.mxu1 %v11483_v36  ;;  %v11813_v51 = vadd.f32 %v9949_v50, %v11670_v39  ;;  %v753_v52 = vpop.f32.mrb[29].mxu0 }
 0x127   : > { %v11823_v57 = vadd.f32 %v11670_v39, %v753_v52  ;;  %v9950_v60 = vpop.f32.mrb[30].mxu0 }
 0x128   : > { %15954 = vst [vmem:[#allocation29_spill] sm:$0xff] %v11813_v51  ;;  %v11826_v61 = vadd.f32 %v9950_v60, %v11670_v39  ;;  %v756_v62 = vpop.f32.mrb[31].mxu0 }
 0x129   : > { %15957 = vst [vmem:[#allocation32_spill] sm:$0xff] %v11823_v57  ;;  %v11831_v2 = vadd.f32 %v11670_v39, %v756_v62 }
 0x12a   : > { %15958 = vst [vmem:[#allocation33_spill] sm:$0xff] %v11826_v61  ;;  %v783_v39 = vpack.c.bf16 %v11826_v61, %v11813_v51 }
 0x12b   : > { %15959 = vst [vmem:[#allocation34_spill] sm:$0xff] %v11831_v2  ;;  %v782_v5 = vpack.c.bf16 %v11831_v2, %v11823_v57 }
 0x12d   : > { %1064 = vmatmul.mubr.bf16.gmra.mrb[60].mxu0 %v775_v1  ;;  %1124 = vmatmul.mubr.bf16.gmra.mrb[4].mxu1 %v781_v0 }
 0x12e   : > { %1073 = vmatprep.mubr.bf16.mxu0 %v11483_v36  ;;  %1133 = vmatprep.mubr.bf16.mxu1 %v11483_v36 }
 0x135   : > { %1074 = vmatmul.mubr.bf16.gmra.mrb[64].mxu0 %v776_v6  ;;  %1134 = vmatmul.mubr.bf16.gmra.mrb[8].mxu1 %v782_v5 }
 0x136   : > { %1083 = vmatprep.mubr.bf16.mxu0 %v11483_v36  ;;  %1143 = vmatprep.mubr.bf16.mxu1 %v11483_v36 }
 0x13d   : > { %1084 = vmatmul.mubr.bf16.gmra.mrb[68].mxu0 %v777_v7  ;;  %1144 = vmatmul.mubr.bf16.gmra.mrb[12].mxu1 %v783_v39 }
 0x13e   : > { %1093 = vmatprep.mubr.bf16.mxu0 %v11483_v36 }
 0x145   : > { %1094 = vmatmul.mubr.bf16.gmra.mrb[72].mxu0 %v778_v9 }
 0x146   : > { %1103 = vmatprep.mubr.bf16.mxu0 %v11483_v36  ;;  %v15686_v36 = vlaneseq }
 0x14d   : > { %1104 = vmatmul.mubr.bf16.gmra.mrb[76].mxu0 %v779_v10 }
 0x14e   : > { %9967 = vmatprep.mubr.bf16.mxu0 %v11680_v45  ;;  %v11859_v45 = vshrl.u32 %v15686_v36, 7 }
 0x155   : > { %9968 = vmatmul.mubr.bf16.vlgmr.msra.gmra.mrb[80].mxu0 %v11698_v54  ;;  %v820_v54 = vsub.s32 0, %v11859_v45 }
 0x156   : > { %9971 = vmatprep.mubr.bf16.mxu0 %v11716_v63  ;;  %v11865_v63 = vld [vmem:[%s15677_s4] sm:$0x7] }
 0x157   : > { %v11869_v12 = vrot.slane %v11865_v63, %v820_v54 }
 0x15d   : > { %9972 = vmatmul.mubr.bf16.gmra.mrb[84].mxu0 %v11736_v8  ;;  %v824_v8 = vsub.s32 1, %v11859_v45 }
 0x15e   : > { %9975 = vmatprep.mubr.bf16.mxu0 %v11763_v20 }
 0x15f   : > { %v11872_v18 = vrot.slane %v11865_v63, %v824_v8 }
 0x165   : > { %9976 = vmatmul.mubr.bf16.gmra.mrb[88].mxu0 %v773_v31 }
 0x166   : > { %9979 = vmatprep.mubr.bf16.mxu0 %v774_v42 }
 0x16d   : > { %9980 = vmatmul.mubr.bf16.gmra.mrb[92].mxu0 %v775_v1 }
 0x16e   : > { %9983 = vmatprep.mubr.bf16.mxu0 %v776_v6 }
 0x175   : > { %9984 = vmatmul.mubr.bf16.gmra.mrb[96].mxu0 %v777_v7 }
 0x176   : > { %9987 = vmatprep.mubr.bf16.mxu0 %v778_v9 }
 0x17d   : > { %9988 = vmatmul.mubr.bf16.gmra.mrb[100].mxu0 %v779_v10 }
 0x17e   : > { %9991 = vmatprep.mubr.bf16.mxu0 %v780_v46 }
 0x185   : > { %9992 = vmatmul.mubr.bf16.gmra.mrb[104].mxu0 %v781_v0 }
 0x186   : > { %9995 = vmatprep.mubr.bf16.mxu0 %v782_v5 }
 0x18d   : > { %9996 = vmatmul.mubr.bf16.gmra.mrb[108].mxu0 %v783_v39 }
 0x1c8   : > { %v995_v16 = vpop.f32.mrb[32].mxu0 }
 0x1c9   : > { %v997_v20 = vpop.f32.mrb[33].mxu0  ;;  %v996_v23 = vadd.f32 %v995_v16, %v11869_v12 }
 0x1ca   : > { %v999_v21 = vpop.f32.mrb[34].mxu0  ;;  %v998_v31 = vadd.f32 %v997_v20, %v11872_v18 }
 0x1cb   : > { %v1000_v27 = vadd.f32 %v999_v21, %v11869_v12  ;;  %v1001_v29 = vpop.f32.mrb[35].mxu0 }
 0x1cc   : > { %v1002_v32 = vadd.f32 %v1001_v29, %v11872_v18 }
 0x1cd   : > { %v11878_v33 = vpack.c.bf16 %v1000_v27, %v996_v23 }
 0x1ce   : > { %v11880_v38 = vpack.c.bf16 %v1002_v32, %v998_v31 }
 0x1cf   : > { %9387 = vmatprep.mubr.bf16.mxu0 %v11878_v33 }
 0x1d0   : > { %v1005_v40 = vpop.f32.mrb[36].mxu0 }
 0x1d1   : > { %v1007_v42 = vpop.f32.mrb[37].mxu0  ;;  %v1006_v50 = vadd.f32 %v1005_v40, %v11869_v12 }
 0x1d2   : > { %v1009_v46 = vpop.f32.mrb[38].mxu0  ;;  %v1008_v62 = vadd.f32 %v1007_v42, %v11872_v18 }
 0x1d3   : > { %v1010_v52 = vadd.f32 %v1009_v46, %v11869_v12  ;;  %v1011_v60 = vpop.f32.mrb[39].mxu0 }
 0x1d4   : > { %v1012_v0 = vadd.f32 %v1011_v60, %v11872_v18 }
 0x1d5   : > { %v11887_v1 = vpack.c.bf16 %v1010_v52, %v1006_v50 }
 0x1d6   : > { %v11889_v5 = vpack.c.bf16 %v1012_v0, %v1008_v62 }
 0x1d8   : > { %v1015_v6 = vpop.f32.mrb[40].mxu0 }
 0x1d9   : > { %v1017_v39 = vpop.f32.mrb[41].mxu0  ;;  %v1016_v9 = vadd.f32 %v1015_v6, %v11869_v12 }
 0x1da   : > { %v1019_v7 = vpop.f32.mrb[42].mxu0  ;;  %v1018_v8 = vadd.f32 %v1017_v39, %v11872_v18 }
 0x1db   : > { %v1020_v10 = vadd.f32 %v1019_v7, %v11869_v12  ;;  %v1021_v54 = vpop.f32.mrb[43].mxu0 }
 0x1dc   : > { %v1022_v16 = vadd.f32 %v1021_v54, %v11872_v18 }
 0x1dd   : > { %v11895_v20 = vpack.c.bf16 %v1020_v10, %v1016_v9 }
 0x1de   : > { %v11897_v21 = vpack.c.bf16 %v1022_v16, %v1018_v8 }
 0x1e0   : > { %v1025_v23 = vpop.f32.mrb[44].mxu0 }
 0x1e1   : > { %v1027_v27 = vpop.f32.mrb[45].mxu0  ;;  %v1026_v31 = vadd.f32 %v1025_v23, %v11869_v12 }
 0x1e2   : > { %v1029_v29 = vpop.f32.mrb[46].mxu0  ;;  %v1028_v42 = vadd.f32 %v1027_v27, %v11872_v18 }
 0x1e3   : > { %v1030_v32 = vadd.f32 %v1029_v29, %v11869_v12  ;;  %v1031_v40 = vpop.f32.mrb[47].mxu0 }
 0x1e4   : > { %v1032_v46 = vadd.f32 %v1031_v40, %v11872_v18 }
 0x1e5   : > { %v11903_v50 = vpack.c.bf16 %v1030_v32, %v1026_v31 }
 0x1e6   : > { %v11905_v52 = vpack.c.bf16 %v1032_v46, %v1028_v42 }
 0x1e8   : > { %v1035_v60 = vpop.f32.mrb[48].mxu0 }
 0x1e9   : > { %v1037_v62 = vpop.f32.mrb[49].mxu0  ;;  %v1036_v6 = vadd.f32 %v1035_v60, %v11869_v12 }
 0x1ea   : > { %v1039_v0 = vpop.f32.mrb[50].mxu0  ;;  %v1038_v9 = vadd.f32 %v1037_v62, %v11872_v18 }
 0x1eb   : > { %v1040_v39 = vadd.f32 %v1039_v0, %v11869_v12  ;;  %v1041_v7 = vpop.f32.mrb[51].mxu0 }
 0x1ec   : > { %v1042_v10 = vadd.f32 %v1041_v7, %v11872_v18 }
 0x1ed   : > { %v11911_v54 = vpack.c.bf16 %v1040_v39, %v1036_v6 }
 0x1ee   : > { %v11913_v8 = vpack.c.bf16 %v1042_v10, %v1038_v9 }
 0x1f0   : > { %v1045_v16 = vpop.f32.mrb[52].mxu0 }
 0x1f1   : > { %v1047_v23 = vpop.f32.mrb[53].mxu0  ;;  %v1046_v29 = vadd.f32 %v1045_v16, %v11869_v12 }
 0x1f2   : > { %v1049_v27 = vpop.f32.mrb[54].mxu0  ;;  %v1048_v40 = vadd.f32 %v1047_v23, %v11872_v18 }
 0x1f3   : > { %v1050_v31 = vadd.f32 %v1049_v27, %v11869_v12  ;;  %v1051_v32 = vpop.f32.mrb[55].mxu0 }
 0x1f4   : > { %v1052_v42 = vadd.f32 %v1051_v32, %v11872_v18 }
 0x1f5   : > { %v11919_v46 = vpack.c.bf16 %v1050_v31, %v1046_v29 }
 0x1f6   : > { %v11921_v60 = vpack.c.bf16 %v1052_v42, %v1048_v40 }
 0x1f8   : > { %v1055_v62 = vpop.f32.mrb[56].mxu0  ;;  %v1115_v0 = vpop.f32.mrb[0].mxu1 }
 0x1f9   : > { %v1057_v6 = vpop.f32.mrb[57].mxu0  ;;  %v1116_v39 = vadd.f32 %v1115_v0, %v11869_v12  ;;  %v1117_v7 = vpop.f32.mrb[1].mxu1  ;;  %v1056_v27 = vadd.f32 %v1055_v62, %v11869_v12 }
 0x1fa   : > { %v1059_v9 = vpop.f32.mrb[58].mxu0  ;;  %v1118_v10 = vadd.f32 %v1117_v7, %v11872_v18  ;;  %v1119_v16 = vpop.f32.mrb[2].mxu1  ;;  %v1058_v32 = vadd.f32 %v1057_v6, %v11872_v18 }
 0x1fb   : > { %v1060_v23 = vadd.f32 %v1059_v9, %v11869_v12  ;;  %v1061_v36 = vpop.f32.mrb[59].mxu0  ;;  %v1120_v29 = vadd.f32 %v1119_v16, %v11869_v12  ;;  %v1121_v31 = vpop.f32.mrb[3].mxu1 }
 0x1fc   : > { %v1062_v40 = vadd.f32 %v1061_v36, %v11872_v18  ;;  %v1122_v42 = vadd.f32 %v1121_v31, %v11872_v18 }
 0x1fd   : > { %v11931_v0 = vpack.c.bf16 %v1060_v23, %v1056_v27  ;;  %v11933_v2 = vpack.c.bf16 %v1120_v29, %v1116_v39  ;;  %v15960_v23 = vlaneseq }
 0x1fe   : > { %v11935_v7 = vpack.c.bf16 %v1062_v40, %v1058_v32  ;;  %v11937_v57 = vpack.c.bf16 %v1122_v42, %v1118_v10 }
 0x1ff   : > { %v11944_v29 = vand.u32 127, %v15960_v23 }
 0x200   : > { %v1065_v62 = vpop.f32.mrb[60].mxu0  ;;  %v1125_v9 = vpop.f32.mrb[4].mxu1 }
 0x201   : > { %v1067_v61 = vpop.f32.mrb[61].mxu0  ;;  %v1126_v16 = vadd.f32 %v1125_v9, %v11869_v12  ;;  %v1127_v51 = vpop.f32.mrb[5].mxu1  ;;  %v1066_v31 = vadd.f32 %v1065_v62, %v11869_v12  ;;  %vm1366_vm2 = vcmp.lt.s32.totalorder %v11944_v29, 4  ;;  %vm2108_vm3 = vcmp.ge.s32.totalorder %v11944_v29, 4 }
 0x202   : > { %v1069_v41 = vpop.f32.mrb[62].mxu0  ;;  %v1128_v6 = vadd.f32 %v1127_v51, %v11872_v18  ;;  %v1129_v36 = vpop.f32.mrb[6].mxu1  ;;  %v1068_v40 = vadd.f32 %v1067_v61, %v11872_v18  ;;  %vm2109_vm4 = vcmp.lt.s32.totalorder %v11944_v29, 8 }
 0x203   : > { %v1070_v27 = vadd.f32 %v1069_v41, %v11869_v12  ;;  %v1071_v39 = vpop.f32.mrb[63].mxu0  ;;  %v1130_v10 = vadd.f32 %v1129_v36, %v11869_v12  ;;  %v1131_v32 = vpop.f32.mrb[7].mxu1  ;;  %vm2110_vm5 = vmand %vm2108_vm3, %vm2109_vm4 }
 0x204   : > { %v1072_v42 = vadd.f32 %v1071_v39, %v11872_v18  ;;  %v1132_v9 = vadd.f32 %v1131_v32, %v11872_v18  ;;  %v15698_v39 = vmov 0.0  }
 0x205   : > { %v11950_v37 = vpack.c.bf16 %v1070_v27, %v1066_v31  ;;  %v11952_v51 = vpack.c.bf16 %v1130_v10, %v1126_v16  ;;  %v8680_v32 = vsel %vm1366_vm2, 1.0, %v15698_v39 }
 0x206   : > { %v11954_v62 = vpack.c.bf16 %v1072_v42, %v1068_v40  ;;  %v11956_v41 = vpack.c.bf16 %v1132_v9, %v1128_v6  ;;  %v11970_v39 = vpack.c.bf16 %v8680_v32, %v8680_v32 }
 0x208   : > { %v1075_v23 = vpop.f32.mrb[64].mxu0  ;;  %v1135_v48 = vpop.f32.mrb[8].mxu1 }
 0x209   : > { %v1077_v36 = vpop.f32.mrb[65].mxu0  ;;  %v1136_v47 = vadd.f32 %v1135_v48, %v11869_v12  ;;  %v1137_v61 = vpop.f32.mrb[9].mxu1  ;;  %v1076_v27 = vadd.f32 %v1075_v23, %v11869_v12 }
 0x20a   : > { %v1079_v30 = vpop.f32.mrb[66].mxu0  ;;  %v1138_v31 = vadd.f32 %v1137_v61, %v11872_v18  ;;  %v1139_v16 = vpop.f32.mrb[10].mxu1  ;;  %v1078_v9 = vadd.f32 %v1077_v36, %v11872_v18 }
 0x20b   : > { %v1080_v6 = vadd.f32 %v1079_v30, %v11869_v12  ;;  %v1081_v10 = vpop.f32.mrb[67].mxu0  ;;  %v1140_v40 = vadd.f32 %v1139_v16, %v11869_v12  ;;  %v1141_v42 = vpop.f32.mrb[11].mxu1 }
 0x20c   : > { %v1082_v48 = vadd.f32 %v1081_v10, %v11872_v18  ;;  %v1142_v26 = vadd.f32 %v1141_v42, %v11872_v18  ;;  %v1371_v10 = vmul.bf16 %v11970_v39, %v11880_v38 }
 0x20d   : > { %v11968_v28 = vpack.c.bf16 %v1080_v6, %v1076_v27  ;;  %v11972_v61 = vpack.c.bf16 %v1140_v40, %v1136_v47 }
 0x20e   : > { %v11974_v22 = vpack.c.bf16 %v1082_v48, %v1078_v9  ;;  %v11976_v23 = vpack.c.bf16 %v1142_v26, %v1138_v31 }
 0x210   : > { %v1085_v30 = vpop.f32.mrb[68].mxu0  ;;  %v1379_v16 = vmul.bf16 %v11970_v39, %v11974_v22  ;;  %v1145_v19 = vpop.f32.mrb[12].mxu1 }
 0x211   : > { %v1087_v36 = vpop.f32.mrb[69].mxu0  ;;  %v1146_v27 = vadd.f32 %v1145_v19, %v11869_v12  ;;  %v1147_v6 = vpop.f32.mrb[13].mxu1  ;;  %v1086_v26 = vadd.f32 %v1085_v30, %v11869_v12 }
 0x212   : > { %v1089_v32 = vpop.f32.mrb[70].mxu0  ;;  %9371 = vmatprep.subr.bf16.mxu0 %v1379_v16  ;;  %v1148_v47 = vadd.f32 %v1147_v6, %v11872_v18  ;;  %v1149_v40 = vpop.f32.mrb[14].mxu1  ;;  %v1088_v15 = vadd.f32 %v1087_v36, %v11872_v18  ;;  %v1372_v36 = vmul.bf16 %v11970_v39, %v11889_v5 }
 0x213   : > { %v1090_v31 = vadd.f32 %v1089_v32, %v11869_v12  ;;  %v1091_v42 = vpop.f32.mrb[71].mxu0  ;;  %9372 = vmatpush3.bf16.xpose.msra.mxu0 %v1371_v10  ;;  %v1150_v9 = vadd.f32 %v1149_v40, %v11869_v12  ;;  %v1151_v48 = vpop.f32.mrb[15].mxu1 }
 0x214   : > { %v1092_v17 = vadd.f32 %v1091_v42, %v11872_v18  ;;  %v1152_v19 = vadd.f32 %v1151_v48, %v11872_v18 }
 0x215   : > { %v11990_v11 = vpack.c.bf16 %v1090_v31, %v1086_v26  ;;  %v11992_v16 = vpack.c.bf16 %v1150_v9, %v1146_v27 }
 0x216   : > { %v11994_v6 = vpack.c.bf16 %v1092_v17, %v1088_v15  ;;  %v11996_v30 = vpack.c.bf16 %v1152_v19, %v1148_v47 }
 0x218   : > { %v1095_v32 = vpop.f32.mrb[72].mxu0  ;;  %v1380_v10 = vmul.bf16 %v11970_v39, %v11994_v6 }
 0x219   : > { %v1097_v40 = vpop.f32.mrb[73].mxu0  ;;  %v1096_v42 = vadd.f32 %v1095_v32, %v11869_v12  ;;  %v1373_v32 = vmul.bf16 %v11970_v39, %v11897_v21 }
 0x21a   : > { %v1099_v35 = vpop.f32.mrb[74].mxu0  ;;  %9373 = vmatprep.subr.bf16.mxu0 %v1380_v10  ;;  %v1098_v15 = vadd.f32 %v1097_v40, %v11872_v18 }
 0x21b   : > { %v1100_v26 = vadd.f32 %v1099_v35, %v11869_v12  ;;  %v1101_v27 = vpop.f32.mrb[75].mxu0  ;;  %9374 = vmatpush3.bf16.xpose.msra.mxu0 %v1372_v36 }
 0x21c   : > { %v1102_v17 = vadd.f32 %v1101_v27, %v11872_v18 }
 0x21d   : > { %v12006_v47 = vpack.c.bf16 %v1100_v26, %v1096_v42  ;;  %v828_v42 = vsub.s32 2, %v11859_v45  ;;  %v1374_v45 = vmul.bf16 %v11970_v39, %v11905_v52 }
 0x21e   : > { %v12008_v31 = vpack.c.bf16 %v1102_v17, %v1098_v15 }
 0x21f   : > { %v12024_v34 = vrot.slane %v11865_v63, %v828_v42 }
 0x220   : > { %v1105_v9 = vpop.f32.mrb[76].mxu0  ;;  %v1381_v48 = vmul.bf16 %v11970_v39, %v12008_v31 }
 0x221   : > { %v1107_v19 = vpop.f32.mrb[77].mxu0  ;;  %v1106_v35 = vadd.f32 %v1105_v9, %v11869_v12 }
 0x222   : > { %v1109_v10 = vpop.f32.mrb[78].mxu0  ;;  %9375 = vmatprep.subr.bf16.mxu0 %v1381_v48  ;;  %v1108_v26 = vadd.f32 %v1107_v19, %v11872_v18 }
 0x223   : > { %v1110_v40 = vadd.f32 %v1109_v10, %v11869_v12  ;;  %v1111_v36 = vpop.f32.mrb[79].mxu0  ;;  %9376 = vmatpush3.bf16.xpose.msra.mxu0 %v1373_v32  ;;  %v1383_v12 = vmul.bf16 %v11970_v39, %v11937_v57 }
 0x224   : > { %v1112_v27 = vadd.f32 %v1111_v36, %v11872_v18 }
 0x225   : > { %v12019_v15 = vpack.c.bf16 %v1110_v40, %v1106_v35 }
 0x226   : > { %v12021_v17 = vpack.c.bf16 %v1112_v27, %v1108_v26 }
 0x228   : > { %v9969_v48 = vpop.f32.mrb[80].mxu0  ;;  %v1382_v9 = vmul.bf16 %v11970_v39, %v12021_v17 }
 0x229   : > { %v1188_v32 = vpop.f32.mrb[81].mxu0  ;;  %v1197_v18 = vadd.f32 %v9969_v48, %v12024_v34  ;;  %v1384_v48 = vmul.bf16 %v11970_v39, %v11956_v41 }
 0x22a   : > { %v9970_v19 = vpop.f32.mrb[82].mxu0  ;;  %9377 = vmatprep.subr.bf16.mxu0 %v1382_v9  ;;  %v1189_v63 = vadd.f32 %v1188_v32, %v12024_v34  ;;  %v1375_v9 = vmul.bf16 %v11970_v39, %v11913_v8 }
 0x22b   : > { %v1200_v10 = vadd.f32 %v9970_v19, %v12024_v34  ;;  %v1191_v35 = vpop.f32.mrb[83].mxu0  ;;  %9378 = vmatpush3.bf16.xpose.msra.mxu0 %v1374_v45 }
 0x22c   : > { %v1192_v40 = vadd.f32 %v1191_v35, %v12024_v34  ;;  %9379 = vmatprep.subr.bf16.mxu0 %v1383_v12 }
 0x22d   : > { %v12036_v36 = vpack.c.bf16 %v1200_v10, %v1197_v18 }
 0x22e   : > { %v12038_v42 = vpack.c.bf16 %v1192_v40, %v1189_v63  ;;  %v1385_v40 = vmul.bf16 %v11970_v39, %v11976_v23 }
 0x230   : > { %v9973_v26 = vpop.f32.mrb[84].mxu0 }
 0x231   : > { %v1204_v27 = vpop.f32.mrb[85].mxu0  ;;  %v1213_v45 = vadd.f32 %v9973_v26, %v12024_v34  ;;  %v1376_v26 = vmul.bf16 %v11970_v39, %v11921_v60 }
 0x232   : > { %v9974_v56 = vpop.f32.mrb[86].mxu0  ;;  %v1205_v12 = vadd.f32 %v1204_v27, %v12024_v34 }
 0x233   : > { %v1216_v32 = vadd.f32 %v9974_v56, %v12024_v34  ;;  %v1207_v19 = vpop.f32.mrb[87].mxu0  ;;  %9380 = vmatpush3.bf16.xpose.msra.mxu0 %v1375_v9 }
 0x234   : > { %v1208_v18 = vadd.f32 %v1207_v19, %v12024_v34  ;;  %9381 = vmatprep.subr.bf16.mxu0 %v1384_v48 }
 0x235   : > { %v12048_v10 = vpack.c.bf16 %v1216_v32, %v1213_v45 }
 0x236   : > { %v12050_v35 = vpack.c.bf16 %v1208_v18, %v1205_v12 }
 0x238   : > { %v9977_v63 = vpop.f32.mrb[88].mxu0 }
 0x239   : > { %v1220_v55 = vpop.f32.mrb[89].mxu0  ;;  %v1229_v9 = vadd.f32 %v9977_v63, %v12024_v34  ;;  %v1377_v63 = vmul.bf16 %v11970_v39, %v11935_v7 }
 0x23a   : > { %v9978_v56 = vpop.f32.mrb[90].mxu0  ;;  %v1221_v48 = vadd.f32 %v1220_v55, %v12024_v34  ;;  %v1386_v55 = vmul.bf16 %v11970_v39, %v11996_v30 }
 0x23b   : > { %v1232_v27 = vadd.f32 %v9978_v56, %v12024_v34  ;;  %v1223_v14 = vpop.f32.mrb[91].mxu0  ;;  %9382 = vmatpush3.bf16.xpose.msra.mxu0 %v1376_v26 }
 0x23c   : > { %v1224_v45 = vadd.f32 %v1223_v14, %v12024_v34  ;;  %9383 = vmatprep.subr.bf16.mxu0 %v1385_v40 }
 0x23d   : > { %v12060_v32 = vpack.c.bf16 %v1232_v27, %v1229_v9  ;;  %v15961_v27 = vmov 0.0  }
 0x23e   : > { %v12062_v19 = vpack.c.bf16 %v1224_v45, %v1221_v48  ;;  %v8681_v48 = vsel %vm2110_vm5, 1.0, %v15961_v27 }
 0x23f   : > { %v12079_v25 = vpack.c.bf16 %v8681_v48, %v8681_v48 }
 0x240   : > { %v9981_v12 = vpop.f32.mrb[92].mxu0 }
 0x241   : > { %v1236_v18 = vpop.f32.mrb[93].mxu0  ;;  %v1245_v14 = vadd.f32 %v9981_v12, %v12024_v34  ;;  %v1378_v12 = vmul.bf16 %v11970_v39, %v11954_v62 }
 0x242   : > { %v9982_v26 = vpop.f32.mrb[94].mxu0  ;;  %v1237_v9 = vadd.f32 %v1236_v18, %v12024_v34  ;;  %v2122_v18 = vmul.bf16 %v12079_v25, %v11974_v22 }
 0x243   : > { %v1248_v40 = vadd.f32 %v9982_v26, %v12024_v34  ;;  %v1239_v56 = vpop.f32.mrb[95].mxu0  ;;  %9384 = vmatpush3.bf16.xpose.msra.mxu0 %v1377_v63 }
 0x244   : > { %v1240_v29 = vadd.f32 %v1239_v56, %v12024_v34  ;;  %9385 = vmatprep.subr.bf16.mxu0 %v1386_v55 }
 0x245   : > { %v12075_v45 = vpack.c.bf16 %v1248_v40, %v1245_v14 }
 0x246   : > { %v12077_v13 = vpack.c.bf16 %v1240_v29, %v1237_v9 }
 0x248   : > { %v9985_v24 = vpop.f32.mrb[96].mxu0 }
 0x249   : > { %v1252_v59 = vpop.f32.mrb[97].mxu0  ;;  %v1261_v63 = vadd.f32 %v9985_v24, %v12024_v34  ;;  %v2114_v24 = vmul.bf16 %v12079_v25, %v11880_v38 }
 0x24a   : > { %v9986_v26 = vpop.f32.mrb[98].mxu0  ;;  %v1253_v14 = vadd.f32 %v1252_v59, %v12024_v34  ;;  %v2123_v59 = vmul.bf16 %v12079_v25, %v11994_v6  ;;  %v1388_v6 = vmul.bf16 %v11970_v39, %v12036_v36 }
 0x24b   : > { %v1264_v55 = vadd.f32 %v9986_v26, %v12024_v34  ;;  %v1255_v56 = vpop.f32.mrb[99].mxu0  ;;  %9386 = vmatpush3.bf16.xpose.msra.mxu0 %v1378_v12  ;;  %v1387_v12 = vmul.bf16 %v11970_v39, %v12038_v42 }
 0x24c   : > { %v1256_v40 = vadd.f32 %v1255_v56, %v12024_v34  ;;  %9419 = vmatprep.subr.bf16.mxu0 %v2122_v18 }
 0x24d   : > { %v12089_v9 = vpack.c.bf16 %v1264_v55, %v1261_v63 }
 0x24e   : > { %v12091_v29 = vpack.c.bf16 %v1256_v40, %v1253_v14 }
 0x24f   : > { %v1396_v38 = vmul.bf16 %v11970_v39, %v12089_v9 }
 0x250   : > { %v9989_v27 = vpop.f32.mrb[100].mxu0  ;;  %v1395_v48 = vmul.bf16 %v11970_v39, %v12091_v29 }
 0x251   : > { %v1268_v22 = vpop.f32.mrb[101].mxu0  ;;  %v1277_v18 = vadd.f32 %v9989_v27, %v12024_v34 }
 0x252   : > { %v9990_v26 = vpop.f32.mrb[102].mxu0  ;;  %9388 = vmatmul.mubr.bf16.vlgmr.msra.gmra.mrb[112].mxu0 %v11878_v33  ;;  %9579 = vmatprep.subr.bf16.mxu1 %v1395_v48  ;;  %v1269_v56 = vadd.f32 %v1268_v22, %v12024_v34  ;;  %v2115_v22 = vmul.bf16 %v12079_v25, %v11889_v5 }
 0x253   : > { %v1280_v63 = vadd.f32 %v9990_v26, %v12024_v34  ;;  %v1271_v55 = vpop.f32.mrb[103].mxu0  ;;  %9389 = vmatprep.mubr.bf16.mxu0 %v11887_v1  ;;  %9420 = vmatpush3.bf16.xpose.msra.mxu0 %v2114_v24 }
 0x254   : > { %v1272_v14 = vadd.f32 %v1271_v55, %v12024_v34  ;;  %9580 = vmatpush3.bf16.msra.mxu1 %v1387_v12  ;;  %9421 = vmatprep.subr.bf16.mxu0 %v2123_v59  ;;  %v1389_v12 = vmul.bf16 %v11970_v39, %v12050_v35 }
 0x255   : > { %v12109_v40 = vpack.c.bf16 %v1280_v63, %v1277_v18  ;;  %9581 = vmatprep.subr.bf16.mxu1 %v1396_v38  ;;  %v2124_v18 = vmul.bf16 %v12079_v25, %v12008_v31  ;;  %v1390_v31 = vmul.bf16 %v11970_v39, %v12048_v10 }
 0x256   : > { %v12113_v27 = vpack.c.bf16 %v1272_v14, %v1269_v56 }
 0x257   : > { %v1398_v5 = vmul.bf16 %v11970_v39, %v12109_v40 }
 0x258   : > { %9582 = vmatpush3.bf16.msra.mxu1 %v1388_v6  ;;  %v9993_v48 = vpop.f32.mrb[104].mxu0  ;;  %v1397_v24 = vmul.bf16 %v11970_v39, %v12113_v27 }
 0x259   : > { %v1284_v26 = vpop.f32.mrb[105].mxu0  ;;  %v1293_v63 = vadd.f32 %v9993_v48, %v12024_v34 }
 0x25a   : > { %v9994_v59 = vpop.f32.mrb[106].mxu0  ;;  %9390 = vmatmul.mubr.bf16.gmra.mrb[116].mxu0 %v11887_v1  ;;  %9583 = vmatprep.subr.bf16.mxu1 %v1397_v24  ;;  %v1285_v56 = vadd.f32 %v1284_v26, %v12024_v34  ;;  %v2116_v26 = vmul.bf16 %v12079_v25, %v11897_v21 }
 0x25b   : > { %v1296_v55 = vadd.f32 %v9994_v59, %v12024_v34  ;;  %v1287_v38 = vpop.f32.mrb[107].mxu0  ;;  %9391 = vmatprep.mubr.bf16.mxu0 %v11895_v20  ;;  %9422 = vmatpush3.bf16.xpose.msra.mxu0 %v2115_v22 }
 0x25c   : > { %v1288_v14 = vadd.f32 %v1287_v38, %v12024_v34  ;;  %9584 = vmatpush3.bf16.msra.mxu1 %v1389_v12  ;;  %9423 = vmatprep.subr.bf16.mxu0 %v2124_v18  ;;  %v1391_v12 = vmul.bf16 %v11970_v39, %v12062_v19 }
 0x25d   : > { %v12131_v6 = vpack.c.bf16 %v1296_v55, %v1293_v63  ;;  %9585 = vmatprep.subr.bf16.mxu1 %v1398_v5  ;;  %v2125_v63 = vmul.bf16 %v12079_v25, %v12021_v17  ;;  %v1392_v17 = vmul.bf16 %v11970_v39, %v12060_v32 }
 0x25e   : > { %v12135_v48 = vpack.c.bf16 %v1288_v14, %v1285_v56 }
 0x25f   : > { %v1400_v21 = vmul.bf16 %v11970_v39, %v12131_v6 }
 0x260   : > { %9586 = vmatpush3.bf16.msra.mxu1 %v1390_v31  ;;  %v9997_v24 = vpop.f32.mrb[108].mxu0  ;;  %v1399_v22 = vmul.bf16 %v11970_v39, %v12135_v48 }
 0x261   : > { %v1300_v59 = vpop.f32.mrb[109].mxu0  ;;  %v1309_v55 = vadd.f32 %v9997_v24, %v12024_v34 }
 0x262   : > { %v9998_v18 = vpop.f32.mrb[110].mxu0  ;;  %9392 = vmatmul.mubr.bf16.gmra.mrb[120].mxu0 %v11895_v20  ;;  %9587 = vmatprep.subr.bf16.mxu1 %v1399_v22  ;;  %v1301_v56 = vadd.f32 %v1300_v59, %v12024_v34  ;;  %v2126_v59 = vmul.bf16 %v12079_v25, %v11937_v57  ;;  %v2127_v57 = vmul.bf16 %v12079_v25, %v11956_v41 }
 0x263   : > { %v1312_v38 = vadd.f32 %v9998_v18, %v12024_v34  ;;  %v1303_v5 = vpop.f32.mrb[111].mxu0  ;;  %9393 = vmatprep.mubr.bf16.mxu0 %v11903_v50  ;;  %9424 = vmatpush3.bf16.xpose.msra.mxu0 %v2116_v26  ;;  %v2117_v26 = vmul.bf16 %v12079_v25, %v11905_v52  ;;  %v1394_v52 = vmul.bf16 %v11970_v39, %v12075_v45 }
 0x264   : > { %v1304_v14 = vadd.f32 %v1303_v5, %v12024_v34  ;;  %9588 = vmatpush3.bf16.msra.mxu1 %v1391_v12  ;;  %9425 = vmatprep.subr.bf16.mxu0 %v2125_v63  ;;  %v1393_v34 = vmul.bf16 %v11970_v39, %v12077_v13  ;;  %v2118_v18 = vmul.bf16 %v12079_v25, %v11913_v8 }
 0x265   : > { %v12153_v31 = vpack.c.bf16 %v1312_v38, %v1309_v55  ;;  %9589 = vmatprep.subr.bf16.mxu1 %v1400_v21  ;;  %v2119_v63 = vmul.bf16 %v12079_v25, %v11921_v60  ;;  %v2120_v8 = vmul.bf16 %v12079_v25, %v11935_v7  ;;  %v2129_v41 = vmul.bf16 %v12079_v25, %v11996_v30 }
 0x266   : > { %v12157_v24 = vpack.c.bf16 %v1304_v14, %v1301_v56  ;;  %v2121_v60 = vmul.bf16 %v12079_v25, %v11954_v62  ;;  %v2130_v7 = vmul.bf16 %v12079_v25, %v12038_v42  ;;  %v2139_v62 = vmul.bf16 %v12079_v25, %v12089_v9 }
 0x267   : > { %v1402_v12 = vmul.bf16 %v11970_v39, %v12153_v31  ;;  %v2131_v30 = vmul.bf16 %v12079_v25, %v12036_v36  ;;  %v2132_v42 = vmul.bf16 %v12079_v25, %v12050_v35  ;;  %v2133_v36 = vmul.bf16 %v12079_v25, %v12048_v10 }
 0x268   : > { %9590 = vmatpush3.bf16.msra.mxu1 %v1392_v17  ;;  %v1401_v22 = vmul.bf16 %v11970_v39, %v12157_v24  ;;  %v2128_v39 = vmul.bf16 %v12079_v25, %v11976_v23  ;;  %v2138_v23 = vmul.bf16 %v12079_v25, %v12091_v29  ;;  %v2140_v29 = vmul.bf16 %v12079_v25, %v12113_v27 }
 0x269   : > { %v2142_v9 = vmul.bf16 %v12079_v25, %v12135_v48  ;;  %v2134_v35 = vmul.bf16 %v12079_v25, %v12062_v19  ;;  %v2135_v10 = vmul.bf16 %v12079_v25, %v12060_v32  ;;  %v2136_v19 = vmul.bf16 %v12079_v25, %v12077_v13 }
 0x26a   : > { %9394 = vmatmul.mubr.bf16.gmra.mrb[124].mxu0 %v11903_v50  ;;  %9591 = vmatprep.subr.bf16.mxu1 %v1401_v22  ;;  %v2137_v32 = vmul.bf16 %v12079_v25, %v12075_v45 }
 0x26b   : > { %9395 = vmatprep.mubr.bf16.mxu0 %v11911_v54  ;;  %9426 = vmatpush3.bf16.xpose.msra.mxu0 %v2117_v26 }
 0x26c   : > { %9592 = vmatpush3.bf16.msra.mxu1 %v1393_v34  ;;  %9427 = vmatprep.subr.bf16.mxu0 %v2126_v59 }
 0x26d   : > { %9593 = vmatprep.subr.bf16.mxu1 %v1402_v12 }
 0x270   : > { %9594 = vmatpush3.bf16.msra.mxu1 %v1394_v52 }
 0x272   : > { %9396 = vmatmul.mubr.bf16.gmra.mrb[128].mxu0 %v11911_v54 }
 0x273   : > { %9397 = vmatprep.mubr.bf16.mxu0 %v11919_v46  ;;  %9428 = vmatpush3.bf16.xpose.msra.mxu0 %v2118_v18 }
 0x274   : > { %9429 = vmatprep.subr.bf16.mxu0 %v2127_v57 }
 0x27a   : > { %9398 = vmatmul.mubr.bf16.gmra.mrb[132].mxu0 %v11919_v46 }
 0x27b   : > { %9399 = vmatprep.mubr.bf16.mxu0 %v11931_v0  ;;  %9430 = vmatpush3.bf16.xpose.msra.mxu0 %v2119_v63 }
 0x27c   : > { %9431 = vmatprep.subr.bf16.mxu0 %v2128_v39 }
 0x282   : > { %9400 = vmatmul.mubr.bf16.gmra.mrb[136].mxu0 %v11931_v0 }
 0x283   : > { %9401 = vmatprep.mubr.bf16.mxu0 %v11950_v37  ;;  %9432 = vmatpush3.bf16.xpose.msra.mxu0 %v2120_v8 }
 0x284   : > { %9433 = vmatprep.subr.bf16.mxu0 %v2129_v41 }
 0x28a   : > { %9402 = vmatmul.mubr.bf16.gmra.mrb[140].mxu0 %v11950_v37 }
 0x28b   : > { %9403 = vmatprep.mubr.bf16.mxu0 %v11968_v28  ;;  %9434 = vmatpush3.bf16.xpose.msra.mxu0 %v2121_v60 }
 0x28c   : > { %9467 = vmatprep.subr.bf16.mxu0 %v2138_v23 }
 0x292   : > { %9404 = vmatmul.mubr.bf16.gmra.mrb[144].mxu0 %v11968_v28 }
 0x293   : > { %9405 = vmatprep.mubr.bf16.mxu0 %v11990_v11 }
 0x29a   : > { %9406 = vmatmul.mubr.bf16.gmra.mrb[148].mxu0 %v11990_v11 }
 0x29b   : > { %9407 = vmatprep.mubr.bf16.mxu0 %v12006_v47 }
 0x2a2   : > { %9408 = vmatmul.mubr.bf16.gmra.mrb[152].mxu0 %v12006_v47 }
 0x2a3   : > { %9409 = vmatprep.mubr.bf16.mxu0 %v12019_v15 }
 0x2aa   : > { %9410 = vmatmul.mubr.bf16.gmra.mrb[156].mxu0 %v12019_v15 }
 0x2ab   : > { %9411 = vmatprep.mubr.bf16.mxu0 %v11933_v2 }
 0x2b2   : > { %9412 = vmatmul.mubr.bf16.gmra.mrb[160].mxu0 %v11933_v2 }
 0x2b3   : > { %9413 = vmatprep.mubr.bf16.mxu0 %v11952_v51 }
 0x2ba   : > { %9414 = vmatmul.mubr.bf16.gmra.mrb[164].mxu0 %v11952_v51 }
 0x2bb   : > { %9415 = vmatprep.mubr.bf16.mxu0 %v11972_v61 }
 0x2c2   : > { %9416 = vmatmul.mubr.bf16.gmra.mrb[168].mxu0 %v11972_v61 }
 0x2c3   : > { %9417 = vmatprep.mubr.bf16.mxu0 %v11992_v16 }
 0x2ca   : > { %9418 = vmatmul.mubr.bf16.gmra.mrb[172].mxu0 %v11992_v16 }
 0x2cb   : > { %9435 = vmatprep.mubr.bf16.mxu0 %v11878_v33 }
 0x2d2   : > { %9436 = vmatmul.mubr.bf16.vlgmr.msra.gmra.mrb[176].mxu0 %v11878_v33  ;;  %v2141_v33 = vmul.bf16 %v12079_v25, %v12109_v40  ;;  %v2144_v40 = vmul.bf16 %v12079_v25, %v12157_v24 }
 0x2d3   : > { %9468 = vmatpush3.bf16.msra.mxu0 %v2130_v7  ;;  %9437 = vmatprep.mubr.bf16.mxu0 %v11887_v1 }
 0x2d4   : > { %9469 = vmatprep.subr.bf16.mxu0 %v2139_v62 }
 0x2d7   : > { %9470 = vmatpush3.bf16.msra.mxu0 %v2131_v30 }
 0x2d8   : > { %9471 = vmatprep.subr.bf16.mxu0 %v2140_v29 }
 0x2da   : > { %9438 = vmatmul.mubr.bf16.gmra.mrb[180].mxu0 %v11887_v1  ;;  %v2143_v1 = vmul.bf16 %v12079_v25, %v12131_v6 }
 0x2db   : > { %9472 = vmatpush3.bf16.msra.mxu0 %v2132_v42  ;;  %9439 = vmatprep.mubr.bf16.mxu0 %v11895_v20 }
 0x2dc   : > { %9473 = vmatprep.subr.bf16.mxu0 %v2141_v33 }
 0x2df   : > { %9474 = vmatpush3.bf16.msra.mxu0 %v2133_v36 }
 0x2e0   : > { %9475 = vmatprep.subr.bf16.mxu0 %v2142_v9 }
 0x2e2   : > { %9440 = vmatmul.mubr.bf16.gmra.mrb[184].mxu0 %v11895_v20  ;;  %v2145_v20 = vmul.bf16 %v12079_v25, %v12153_v31 }
 0x2e3   : > { %9476 = vmatpush3.bf16.msra.mxu0 %v2134_v35  ;;  %9441 = vmatprep.mubr.bf16.mxu0 %v11903_v50 }
 0x2e4   : > { %9477 = vmatprep.subr.bf16.mxu0 %v2143_v1 }
 0x2e7   : > { %9478 = vmatpush3.bf16.msra.mxu0 %v2135_v10 }
 0x2e8   : > { %9479 = vmatprep.subr.bf16.mxu0 %v2144_v40 }
 0x2ea   : > { %9442 = vmatmul.mubr.bf16.gmra.mrb[188].mxu0 %v11903_v50 }
 0x2eb   : > { %9480 = vmatpush3.bf16.msra.mxu0 %v2136_v19  ;;  %9443 = vmatprep.mubr.bf16.mxu0 %v11911_v54 }
 0x2ec   : > { %9481 = vmatprep.subr.bf16.mxu0 %v2145_v20 }
 0x2ef   : > { %9482 = vmatpush3.bf16.msra.mxu0 %v2137_v32 }
 0x2f2   : > { %9444 = vmatmul.mubr.bf16.gmra.mrb[192].mxu0 %v11911_v54 }
 0x2f3   : > { %9445 = vmatprep.mubr.bf16.mxu0 %v11919_v46 }
 0x2fa   : > { %9446 = vmatmul.mubr.bf16.gmra.mrb[196].mxu0 %v11919_v46 }
 0x2fb   : > { %9447 = vmatprep.mubr.bf16.mxu0 %v11931_v0 }
 0x302   : > { %9448 = vmatmul.mubr.bf16.gmra.mrb[200].mxu0 %v11931_v0 }
 0x303   : > { %9449 = vmatprep.mubr.bf16.mxu0 %v11950_v37 }
 0x30a   : > { %9450 = vmatmul.mubr.bf16.gmra.mrb[204].mxu0 %v11950_v37 }
 0x30b   : > { %9451 = vmatprep.mubr.bf16.mxu0 %v11968_v28 }
 0x312   : > { %9452 = vmatmul.mubr.bf16.gmra.mrb[208].mxu0 %v11968_v28 }
 0x313   : > { %9453 = vmatprep.mubr.bf16.mxu0 %v11990_v11 }
 0x31a   : > { %9454 = vmatmul.mubr.bf16.gmra.mrb[212].mxu0 %v11990_v11 }
 0x31b   : > { %9455 = vmatprep.mubr.bf16.mxu0 %v12006_v47 }
 0x322   : > { %9456 = vmatmul.mubr.bf16.gmra.mrb[216].mxu0 %v12006_v47 }
 0x323   : > { %9457 = vmatprep.mubr.bf16.mxu0 %v12019_v15 }
 0x325   : > { %v12265_v13 = vpop.f32.mrb[112].mxu0 }
 0x326   : > { %v12267_v25 = vpop.f32.mrb[113].mxu0 }
 0x327   : > { %v12269_v50 = vpop.f32.mrb[114].mxu0  ;;  %v1596_v37 = vmax.f32 %v12265_v13, %v12267_v25 }
 0x328   : > { %v12273_v28 = vpop.f32.mrb[115].mxu0 }
 0x329   : > { %1597 = vmax.xlane.f32.xlu0 %v1596_v37  ;;  %v1599_v11 = vmax.f32 %v12269_v50, %v12273_v28 }
 0x32a   : > { %9458 = vmatmul.mubr.bf16.gmra.mrb[220].mxu0 %v12019_v15 }
 0x32b   : > { %9459 = vmatprep.mubr.bf16.mxu0 %v11933_v2 }
 0x32d   : > { %1600 = vmax.xlane.f32.xlu0 %v1599_v11  ;;  %v12279_v54 = vpop.f32.mrb[116].mxu0 }
 0x32e   : > { %v12281_v46 = vpop.f32.mrb[117].mxu0 }
 0x32f   : > { %v12283_v0 = vpop.f32.mrb[118].mxu0  ;;  %v1602_v47 = vmax.f32 %v12279_v54, %v12281_v46 }
 0x330   : > { %v12287_v45 = vpop.f32.mrb[119].mxu0 }
 0x331   : > { %1603 = vmax.xlane.f32.xlu0 %v1602_v47  ;;  %v1605_v27 = vmax.f32 %v12283_v0, %v12287_v45 }
 0x332   : > { %9460 = vmatmul.mubr.bf16.gmra.mrb[224].mxu0 %v11933_v2 }
 0x333   : > { %9461 = vmatprep.mubr.bf16.mxu0 %v11952_v51  ;;  %1606 = vmax.xlane.f32.xlu1 %v1605_v27 }
 0x335   : > { %v12293_v15 = vpop.f32.mrb[120].mxu0 }
 0x336   : > { %v12295_v6 = vpop.f32.mrb[121].mxu0 }
 0x337   : > { %v12297_v48 = vpop.f32.mrb[122].mxu0  ;;  %v1608_v55 = vmax.f32 %v12293_v15, %v12295_v6 }
 0x338   : > { %v12301_v38 = vpop.f32.mrb[123].mxu0 }
 0x339   : > { %1609 = vmax.xlane.f32.xlu0 %v1608_v55  ;;  %v1611_v5 = vmax.f32 %v12297_v48, %v12301_v38 }
 0x33a   : > { %9462 = vmatmul.mubr.bf16.gmra.mrb[228].mxu0 %v11952_v51 }
 0x33b   : > { %9463 = vmatprep.mubr.bf16.mxu0 %v11972_v61  ;;  %1612 = vmax.xlane.f32.xlu1 %v1611_v5 }
 0x33d   : > { %v12307_v2 = vpop.f32.mrb[124].mxu0 }
 0x33e   : > { %v12309_v21 = vpop.f32.mrb[125].mxu0 }
 0x33f   : > { %v12311_v56 = vpop.f32.mrb[126].mxu0  ;;  %v1614_v14 = vmax.f32 %v12307_v2, %v12309_v21 }
 0x340   : > { %v12315_v31 = vpop.f32.mrb[127].mxu0 }
 0x341   : > { %1615 = vmax.xlane.f32.xlu0 %v1614_v14  ;;  %v1617_v17 = vmax.f32 %v12311_v56, %v12315_v31 }
 0x342   : > { %9464 = vmatmul.mubr.bf16.gmra.mrb[232].mxu0 %v11972_v61 }
 0x343   : > { %9465 = vmatprep.mubr.bf16.mxu0 %v11992_v16  ;;  %1618 = vmax.xlane.f32.xlu1 %v1617_v17 }
 0x345   : > { %v12321_v51 = vpop.f32.mrb[128].mxu0 }
 0x346   : > { %v12323_v24 = vpop.f32.mrb[129].mxu0 }
 0x347   : > { %v12325_v22 = vpop.f32.mrb[130].mxu0  ;;  %v1620_v26 = vmax.f32 %v12321_v51, %v12323_v24 }
 0x348   : > { %v12329_v34 = vpop.f32.mrb[131].mxu0 }
 0x349   : > { %1621 = vmax.xlane.f32.xlu0 %v1620_v26  ;;  %v1623_v59 = vmax.f32 %v12325_v22, %v12329_v34 }
 0x34a   : > { %9466 = vmatmul.mubr.bf16.gmra.mrb[236].mxu0 %v11992_v16 }
 0x34b   : > { %1624 = vmax.xlane.f32.xlu1 %v1623_v59 }
 0x34d   : > { %v12334_v61 = vpop.f32.mrb[132].mxu0 }
 0x34e   : > { %v12336_v12 = vpop.f32.mrb[133].mxu0 }
 0x34f   : > { %v12338_v52 = vpop.f32.mrb[134].mxu0  ;;  %v1626_v18 = vmax.f32 %v12334_v61, %v12336_v12 }
 0x350   : > { %v12342_v57 = vpop.f32.mrb[135].mxu0 }
 0x351   : > { %1627 = vmax.xlane.f32.xlu0 %v1626_v18  ;;  %v1629_v63 = vmax.f32 %v12338_v52, %v12342_v57 }
 0x353   : > { %1630 = vmax.xlane.f32.xlu1 %v1629_v63 }
 0x355   : > { %v12346_v39 = vpop.f32.mrb[136].mxu0 }
 0x356   : > { %v12348_v16 = vpop.f32.mrb[137].mxu0 }
 0x357   : > { %v12350_v8 = vpop.f32.mrb[138].mxu0  ;;  %v1632_v41 = vmax.f32 %v12346_v39, %v12348_v16 }
 0x358   : > { %v12354_v60 = vpop.f32.mrb[139].mxu0 }
 0x359   : > { %1633 = vmax.xlane.f32.xlu0 %v1632_v41  ;;  %v1635_v23 = vmax.f32 %v12350_v8, %v12354_v60 }
 0x35b   : > { %1636 = vmax.xlane.f32.xlu1 %v1635_v23 }
 0x35d   : > { %v12358_v7 = vpop.f32.mrb[140].mxu0 }
 0x35e   : > { %15962 = vst [vmem:[#allocation35_spill] sm:$0xff] %v12358_v7  ;;  %v12360_v62 = vpop.f32.mrb[141].mxu0 }
 0x35f   : > { %15963 = vst [vmem:[#allocation36_spill] sm:$0xff] %v12360_v62  ;;  %v12362_v30 = vpop.f32.mrb[142].mxu0  ;;  %v1638_v29 = vmax.f32 %v12358_v7, %v12360_v62 }
 0x360   : > { %15964 = vst [vmem:[#allocation37_spill] sm:$0xff] %v12362_v30  ;;  %v12366_v42 = vpop.f32.mrb[143].mxu0 }
 0x361   : > { %15965 = vst [vmem:[#allocation38_spill] sm:$0xff] %v12366_v42  ;;  %1639 = vmax.xlane.f32.xlu0 %v1638_v29  ;;  %v1641_v33 = vmax.f32 %v12362_v30, %v12366_v42 }
 0x363   : > { %1642 = vmax.xlane.f32.xlu1 %v1641_v33 }
 0x365   : > { %v12370_v36 = vpop.f32.mrb[144].mxu0 }
 0x366   : > { %15966 = vst [vmem:[#allocation39_spill] sm:$0xff] %v12370_v36  ;;  %v12372_v9 = vpop.f32.mrb[145].mxu0 }
 0x367   : > { %15967 = vst [vmem:[#allocation40_spill] sm:$0xff] %v12372_v9  ;;  %v12374_v35 = vpop.f32.mrb[146].mxu0  ;;  %v1644_v1 = vmax.f32 %v12370_v36, %v12372_v9 }
 0x368   : > { %15968 = vst [vmem:[#allocation41_spill] sm:$0xff] %v12374_v35  ;;  %v12378_v10 = vpop.f32.mrb[147].mxu0 }
 0x369   : > { %15969 = vst [vmem:[#allocation42_spill] sm:$0xff] %v12378_v10  ;;  %1645 = vmax.xlane.f32.xlu0 %v1644_v1  ;;  %v1647_v40 = vmax.f32 %v12374_v35, %v12378_v10 }
 0x36b   : > { %1648 = vmax.xlane.f32.xlu1 %v1647_v40 }
 0x36d   : > { %v12382_v19 = vpop.f32.mrb[148].mxu0 }
 0x36e   : > { %15970 = vst [vmem:[#allocation43_spill] sm:$0xff] %v12382_v19  ;;  %v12384_v20 = vpop.f32.mrb[149].mxu0 }
 0x36f   : > { %15971 = vst [vmem:[#allocation44_spill] sm:$0xff] %v12384_v20  ;;  %v12386_v32 = vpop.f32.mrb[150].mxu0  ;;  %v1650_v37 = vmax.f32 %v12382_v19, %v12384_v20 }
 0x370   : > { %15972 = vst [vmem:[#allocation45_spill] sm:$0xff] %v12386_v32  ;;  %v12390_v11 = vpop.f32.mrb[151].mxu0 }
 0x371   : > { %15973 = vst [vmem:[#allocation46_spill] sm:$0xff] %v12390_v11  ;;  %1651 = vmax.xlane.f32.xlu0 %v1650_v37  ;;  %v1653_v47 = vmax.f32 %v12386_v32, %v12390_v11 }
 0x373   : > { %1654 = vmax.xlane.f32.xlu1 %v1653_v47 }
 0x375   : > { %v12394_v27 = vpop.f32.mrb[152].mxu0 }
 0x376   : > { %15974 = vst [vmem:[#allocation47_spill] sm:$0xff] %v12394_v27  ;;  %v12396_v55 = vpop.f32.mrb[153].mxu0 }
 0x377   : > { %15975 = vst [vmem:[#allocation48_spill] sm:$0xff] %v12396_v55  ;;  %v12398_v5 = vpop.f32.mrb[154].mxu0  ;;  %v1656_v14 = vmax.f32 %v12394_v27, %v12396_v55 }
 0x378   : > { %15976 = vst [vmem:[#allocation49_spill] sm:$0xff] %v12398_v5  ;;  %v12402_v17 = vpop.f32.mrb[155].mxu0 }
 0x379   : > { %15977 = vst [vmem:[#allocation50_spill] sm:$0xff] %v12402_v17  ;;  %1657 = vmax.xlane.f32.xlu0 %v1656_v14  ;;  %v1659_v26 = vmax.f32 %v12398_v5, %v12402_v17 }
 0x37d   : > { %v12406_v59 = vpop.f32.mrb[156].mxu0 }
 0x37e   : > { %15978 = vst [vmem:[#allocation51_spill] sm:$0xff] %v12406_v59  ;;  %v12408_v18 = vpop.f32.mrb[157].mxu0 }
 0x37f   : > { %15979 = vst [vmem:[#allocation52_spill] sm:$0xff] %v12408_v18  ;;  %v12410_v63 = vpop.f32.mrb[158].mxu0  ;;  %v1662_v41 = vmax.f32 %v12406_v59, %v12408_v18 }
 0x380   : > { %15980 = vst [vmem:[#allocation53_spill] sm:$0xff] %v12410_v63  ;;  %v12414_v23 = vpop.f32.mrb[159].mxu0 }
 0x381   : > { %15981 = vst [vmem:[#allocation54_spill] sm:$0xff] %v12414_v23  ;;  %v1665_v29 = vmax.f32 %v12410_v63, %v12414_v23 }
 0x385   : > { %v12418_v33 = vpop.f32.mrb[160].mxu0 }
 0x386   : > { %15982 = vst [vmem:[#allocation55_spill] sm:$0xff] %v12418_v33  ;;  %v12420_v1 = vpop.f32.mrb[161].mxu0 }
 0x387   : > { %15983 = vst [vmem:[#allocation56_spill] sm:$0xff] %v12420_v1  ;;  %v12422_v40 = vpop.f32.mrb[162].mxu0  ;;  %v1668_v37 = vmax.f32 %v12418_v33, %v12420_v1 }
 0x388   : > { %15984 = vst [vmem:[#allocation57_spill] sm:$0xff] %v12422_v40  ;;  %v12426_v47 = vpop.f32.mrb[163].mxu0 }
 0x389   : > { %15985 = vst [vmem:[#allocation58_spill] sm:$0xff] %v12426_v47 }
 0x38d   : > { %v12430_v58 = vpop.f32.mrb[164].mxu0 }
 0x38e   : > { %15986 = vst [vmem:[#allocation59_spill] sm:$0xff] %v12430_v58  ;;  %v12432_v4 = vpop.f32.mrb[165].mxu0 }
 0x38f   : > { %15987 = vst [vmem:[#allocation60_spill] sm:$0xff] %v12432_v4  ;;  %v12434_v3 = vpop.f32.mrb[166].mxu0 }
 0x390   : > { %15988 = vst [vmem:[#allocation61_spill] sm:$0xff] %v12434_v3  ;;  %v12438_v43 = vpop.f32.mrb[167].mxu0 }
 0x391   : > { %15989 = vst [vmem:[#allocation62_spill] sm:$0xff] %v12438_v43 }
 0x395   : > { %v12442_v53 = vpop.f32.mrb[168].mxu0 }
 0x396   : > { %15990 = vst [vmem:[#allocation63_spill] sm:$0xff] %v12442_v53  ;;  %v12444_v1 = vpop.f32.mrb[169].mxu0 }
 0x397   : > { %15991 = vst [vmem:[#allocation64_spill] sm:$0xff] %v12444_v1  ;;  %v12446_v33 = vpop.f32.mrb[170].mxu0 }
 0x398   : > { %15992 = vst [vmem:[#allocation65_spill] sm:$0xff] %v12446_v33  ;;  %v12450_v23 = vpop.f32.mrb[171].mxu0 }
 0x399   : > { %15993 = vst [vmem:[#allocation66_spill] sm:$0xff] %v12450_v23 }
 0x39d   : > { %v12454_v44 = vpop.f32.mrb[172].mxu0 }
 0x39e   : > { %v12456_v18 = vpop.f32.mrb[173].mxu0 }
 0x39f   : > { %v12458_v59 = vpop.f32.mrb[174].mxu0 }
 0x3a0   : > { %15994 = vst [vmem:[#allocation67_spill] sm:$0xff] %v12458_v59  ;;  %v12462_v17 = vpop.f32.mrb[175].mxu0 }
 0x3a1   : > { %15995 = vst [vmem:[#allocation68_spill] sm:$0xff] %v12462_v17 }
 0x3a5   : > { %v12466_v14 = vpop.f32.mrb[176].mxu0 }
 0x3a6   : > { %v12468_v55 = vpop.f32.mrb[177].mxu0 }
 0x3a7   : > { %v12470_v27 = vpop.f32.mrb[178].mxu0  ;;  %v2339_v63 = vmax.f32 %v12466_v14, %v12468_v55 }
 0x3a8   : > { %v12474_v11 = vpop.f32.mrb[179].mxu0 }
 0x3a9   : > { %2340 = vmax.xlane.f32.xlu1 %v2339_v63  ;;  %v2342_v49 = vmax.f32 %v12470_v27, %v12474_v11 }
 0x3ad   : > { %2343 = vmax.xlane.f32.xlu1 %v2342_v49  ;;  %v12478_v32 = vpop.f32.mrb[180].mxu0 }
 0x3ae   : > { %v12480_v20 = vpop.f32.mrb[181].mxu0 }
 0x3af   : > { %v12482_v5 = vpop.f32.mrb[182].mxu0  ;;  %v2345_v19 = vmax.f32 %v12478_v32, %v12480_v20 }
 0x3b0   : > { %v12486_v10 = vpop.f32.mrb[183].mxu0 }
 0x3b1   : > { %1660 = vmax.xlane.f32.xlu1 %v1659_v26  ;;  %2346 = vmax.xlane.f32.xlu0 %v2345_v19  ;;  %v2348_v63 = vmax.f32 %v12482_v5, %v12486_v10 }
 0x3b5   : > { %1663 = vmax.xlane.f32.xlu0 %v1662_v41  ;;  %2349 = vmax.xlane.f32.xlu1 %v2348_v63  ;;  %v12490_v35 = vpop.f32.mrb[184].mxu0 }
 0x3b6   : > { %v1598_v49 = vpop.xlane.xlu0 %1597  ;;  %v12492_v9 = vpop.f32.mrb[185].mxu0 }
 0x3b7   : > { %v1692_v36 = vsub.f32 %v12265_v13, %v1598_v49  ;;  %v1693_v42 = vsub.f32 %v12267_v25, %v1598_v49  ;;  %v12496_v30 = vpop.f32.mrb[186].mxu0  ;;  %v2351_v26 = vmax.f32 %v12490_v35, %v12492_v9 }
 0x3b8   : > { %v12500_v19 = vpop.f32.mrb[187].mxu0 }
 0x3b9   : > { %v1756_v62 = vmul.f32 1.442695, %v1692_v36  ;;  %v1758_v7 = vmul.f32 1.442695, %v1693_v42  ;;  %1666 = vmax.xlane.f32.xlu1 %v1665_v29  ;;  %2352 = vmax.xlane.f32.xlu0 %v2351_v26  ;;  %v2354_v41 = vmax.f32 %v12496_v30, %v12500_v19 }
 0x3ba   : > { %v1601_v63 = vpop.xlane.xlu0 %1600 }
 0x3bb   : > { %10755 = vpow2.f32 %v1756_v62  ;;  %v1694_v13 = vsub.f32 %v12269_v50, %v1601_v63  ;;  %v1695_v25 = vsub.f32 %v12273_v28, %v1601_v63 }
 0x3bc   : > { %10757 = vpow2.f32 %v1758_v7 }
 0x3bd   : > { %v1760_v49 = vmul.f32 1.442695, %v1694_v13  ;;  %v1762_v17 = vmul.f32 1.442695, %v1695_v25  ;;  %1669 = vmax.xlane.f32.xlu0 %v1668_v37  ;;  %2355 = vmax.xlane.f32.xlu1 %v2354_v41  ;;  %v12506_v59 = vpop.f32.mrb[188].mxu0 }
 0x3be   : > { %v1604_v36 = vpop.xlane.xlu0 %1603  ;;  %v12508_v42 = vpop.f32.mrb[189].mxu0 }
 0x3bf   : > { %10759 = vpow2.f32 %v1760_v49  ;;  %v1696_v29 = vsub.f32 %v12279_v54, %v1604_v36  ;;  %v1697_v26 = vsub.f32 %v12281_v46, %v1604_v36  ;;  %v12512_v62 = vpop.f32.mrb[190].mxu0  ;;  %v2357_v50 = vmax.f32 %v12506_v59, %v12508_v42 }
 0x3c0   : > { %10761 = vpow2.f32 %v1762_v17  ;;  %v1607_v28 = vpop.xlane.xlu1 %1606  ;;  %v12516_v7 = vpop.f32.mrb[191].mxu0  ;;  %v15996_v54 = vmax.f32 %v12422_v40, %v12426_v47 }
 0x3c1   : > { %v1764_v37 = vmul.f32 1.442695, %v1696_v29  ;;  %v1766_v41 = vmul.f32 1.442695, %v1697_v26  ;;  %v1698_v63 = vsub.f32 %v12283_v0, %v1607_v28  ;;  %v1699_v13 = vsub.f32 %v12287_v45, %v1607_v28  ;;  %2358 = vmax.xlane.f32.xlu0 %v2357_v50 }
 0x3c2   : > { %1672 = vmax.xlane.f32.xlu1 %v15996_v54  ;;  %v2360_v46 = vmax.f32 %v12512_v62, %v12516_v7 }
 0x3c3   : > { %10763 = vpow2.f32 %v1764_v37  ;;  %v1768_v25 = vmul.f32 1.442695, %v1698_v63  ;;  %v1770_v17 = vmul.f32 1.442695, %v1699_v13 }
 0x3c4   : > { %10765 = vpow2.f32 %v1766_v41 }
 0x3c5   : > { %v12525_v49 = vpop.eup %10755  ;;  %10767 = vpow2.f32 %v1768_v25  ;;  %v12527_v36 = vpop.f32.mrb[192].mxu0 }
 0x3c6   : > { %15997 = vst [vmem:[#allocation69_spill] sm:$0xff] %v12525_v49  ;;  %2361 = vmax.xlane.f32.xlu1 %v2360_v46  ;;  %v12529_v0 = vpop.eup %10757  ;;  %10769 = vpow2.f32 %v1770_v17  ;;  %v1610_v45 = vpop.xlane.xlu0 %1609 }
 0x3c7   : > { %15998 = vst [vmem:[#allocation70_spill] sm:$0xff] %v12529_v0  ;;  %v12531_v29 = vpop.f32.mrb[193].mxu0  ;;  %v1884_v50 = vadd.f32 %v12529_v0, %v12525_v49  ;;  %v1700_v63 = vsub.f32 %v12293_v15, %v1610_v45  ;;  %v1701_v54 = vsub.f32 %v12295_v6, %v1610_v45 }
 0x3c8   : > { %v12533_v26 = vpop.f32.mrb[194].mxu0  ;;  %v2363_v28 = vmax.f32 %v12527_v36, %v12531_v29  ;;  %v1613_v46 = vpop.xlane.xlu1 %1612 }
 0x3c9   : > { %15999 = vst [vmem:[#allocation71_spill] sm:$0xff] %v12533_v26  ;;  %v12539_v37 = vpop.f32.mrb[195].mxu0  ;;  %v12541_v41 = vpop.eup %10759  ;;  %1885 = vadd.xlane.f32.xlu0 %v1884_v50  ;;  %v1772_v40 = vmul.f32 1.442695, %v1700_v63  ;;  %v1702_v0 = vsub.f32 %v12297_v48, %v1613_v46  ;;  %v1774_v49 = vmul.f32 1.442695, %v1701_v54  ;;  %v1703_v6 = vsub.f32 %v12301_v38, %v1613_v46 }
 0x3ca   : > { %16000 = vst [vmem:[#allocation72_spill] sm:$0xff] %v12539_v37  ;;  %16001 = vst [vmem:[#allocation73_spill] sm:$0xff] %v12541_v41  ;;  %v12544_v13 = vpop.eup %10761  ;;  %v2366_v25 = vmax.f32 %v12533_v26, %v12539_v37 }
 0x3cb   : > { %16002 = vst [vmem:[#allocation74_spill] sm:$0xff] %v12544_v13  ;;  %v1887_v17 = vadd.f32 %v12544_v13, %v12541_v41  ;;  %10771 = vpow2.f32 %v1772_v40  ;;  %v1776_v54 = vmul.f32 1.442695, %v1702_v0  ;;  %v1778_v38 = vmul.f32 1.442695, %v1703_v6 }
 0x3cc   : > { %10773 = vpow2.f32 %v1774_v49 }
 0x3cd   : > { %v12551_v47 = vpop.eup %10763  ;;  %1888 = vadd.xlane.f32.xlu1 %v1887_v17  ;;  %2364 = vmax.xlane.f32.xlu0 %v2363_v28  ;;  %v12554_v15 = vpop.f32.mrb[196].mxu0  ;;  %10775 = vpow2.f32 %v1776_v54 }
 0x3ce   : > { %16003 = vst [vmem:[#allocation75_spill] sm:$0xff] %v12551_v47  ;;  %v12556_v50 = vpop.eup %10765  ;;  %v12559_v45 = vpop.f32.mrb[197].mxu0  ;;  %10777 = vpow2.f32 %v1778_v38 }
 0x3cf   : > { %16004 = vst [vmem:[#allocation76_spill] sm:$0xff] %v12556_v50  ;;  %16005 = vst [vmem:[#allocation77_spill] sm:$0xff] %v12559_v45  ;;  %v12561_v37 = vpop.eup %10767  ;;  %v12563_v26 = vpop.f32.mrb[198].mxu0  ;;  %v1890_v63 = vadd.f32 %v12556_v50, %v12551_v47  ;;  %v2369_v48 = vmax.f32 %v12554_v15, %v12559_v45 }
 0x3d0   : > { %16006 = vst [vmem:[#allocation78_spill] sm:$0xff] %v12561_v37  ;;  %16007 = vst [vmem:[#allocation79_spill] sm:$0xff] %v12563_v26  ;;  %v12569_v28 = vpop.eup %10769  ;;  %v12571_v17 = vpop.f32.mrb[199].mxu0 }
 0x3d1   : > { %16008 = vst [vmem:[#allocation80_spill] sm:$0xff] %v12569_v28  ;;  %16009 = vst [vmem:[#allocation81_spill] sm:$0xff] %v12571_v17  ;;  %1891 = vadd.xlane.f32.xlu0 %v1890_v63  ;;  %2367 = vmax.xlane.f32.xlu1 %v2366_v25  ;;  %v2372_v46 = vmax.f32 %v12563_v26, %v12571_v17  ;;  %v1893_v13 = vadd.f32 %v12569_v28, %v12561_v37 }
 0x3d2   : > { %v16014_v25 = vmax.f32 %v12430_v58, %v12432_v4 }
 0x3d5   : > { %1894 = vadd.xlane.f32.xlu1 %v1893_v13  ;;  %2370 = vmax.xlane.f32.xlu0 %v2369_v48  ;;  %v12577_v47 = vpop.f32.mrb[200].mxu0  ;;  %v12592_v6 = vpop.eup %10771  ;;  %v16017_v48 = vmax.f32 %v12434_v3, %v12438_v43 }
 0x3d6   : > { %16010 = vst [vmem:[#allocation82_spill] sm:$0xff] %v12577_v47  ;;  %v12579_v50 = vpop.f32.mrb[201].mxu0  ;;  %16015 = vst [vmem:[#allocation86_spill] sm:$0xff] %v12592_v6  ;;  %v12594_v63 = vpop.eup %10773 }
 0x3d7   : > { %16011 = vst [vmem:[#allocation83_spill] sm:$0xff] %v12579_v50  ;;  %v12581_v40 = vpop.f32.mrb[202].mxu0  ;;  %v2375_v49 = vmax.f32 %v12577_v47, %v12579_v50  ;;  %16016 = vst [vmem:[#allocation87_spill] sm:$0xff] %v12594_v63  ;;  %v12603_v37 = vpop.eup %10775 }
 0x3d8   : > { %16012 = vst [vmem:[#allocation84_spill] sm:$0xff] %v12581_v40  ;;  %v12585_v0 = vpop.f32.mrb[203].mxu0  ;;  %16020 = vst [vmem:[#allocation90_spill] sm:$0xff] %v12603_v37  ;;  %v12611_v58 = vpop.eup %10777 }
 0x3d9   : > { %16013 = vst [vmem:[#allocation85_spill] sm:$0xff] %v12585_v0  ;;  %1675 = vmax.xlane.f32.xlu0 %v16014_v25  ;;  %2373 = vmax.xlane.f32.xlu1 %v2372_v46  ;;  %v2378_v13 = vmax.f32 %v12581_v40, %v12585_v0  ;;  %v1896_v46 = vadd.f32 %v12594_v63, %v12592_v6  ;;  %16022 = vst [vmem:[#allocation92_spill] sm:$0xff] %v12611_v58 }
 0x3dd   : > { %1678 = vmax.xlane.f32.xlu1 %v16017_v48  ;;  %2376 = vmax.xlane.f32.xlu0 %v2375_v49  ;;  %v12599_v54 = vpop.f32.mrb[204].mxu0  ;;  %v1899_v48 = vadd.f32 %v12611_v58, %v12603_v37 }
 0x3de   : > { %16018 = vst [vmem:[#allocation88_spill] sm:$0xff] %v12599_v54  ;;  %v12601_v38 = vpop.f32.mrb[205].mxu0 }
 0x3df   : > { %16019 = vst [vmem:[#allocation89_spill] sm:$0xff] %v12601_v38  ;;  %v12605_v25 = vpop.f32.mrb[206].mxu0  ;;  %v2381_v4 = vmax.f32 %v12599_v54, %v12601_v38 }
 0x3e0   : > { %16021 = vst [vmem:[#allocation91_spill] sm:$0xff] %v12605_v25  ;;  %v12613_v28 = vpop.f32.mrb[207].mxu0 }
 0x3e1   : > { %16023 = vst [vmem:[#allocation93_spill] sm:$0xff] %v12613_v28  ;;  %1897 = vadd.xlane.f32.xlu0 %v1896_v46  ;;  %2379 = vmax.xlane.f32.xlu1 %v2378_v13  ;;  %v2384_v49 = vmax.f32 %v12605_v25, %v12613_v28  ;;  %v16028_v13 = vmax.f32 %v12442_v53, %v12444_v1 }
 0x3e5   : > { %1900 = vadd.xlane.f32.xlu1 %v1899_v48  ;;  %2382 = vmax.xlane.f32.xlu0 %v2381_v4  ;;  %v12619_v43 = vpop.f32.mrb[208].mxu0  ;;  %v16029_v4 = vmax.f32 %v12446_v33, %v12450_v23 }
 0x3e6   : > { %16024 = vst [vmem:[#allocation94_spill] sm:$0xff] %v12619_v43  ;;  %v12621_v3 = vpop.f32.mrb[209].mxu0 }
 0x3e7   : > { %16025 = vst [vmem:[#allocation95_spill] sm:$0xff] %v12621_v3  ;;  %v12623_v6 = vpop.f32.mrb[210].mxu0  ;;  %v2387_v63 = vmax.f32 %v12619_v43, %v12621_v3 }
 0x3e8   : > { %16026 = vst [vmem:[#allocation96_spill] sm:$0xff] %v12623_v6  ;;  %v12627_v38 = vpop.f32.mrb[211].mxu0 }
 0x3e9   : > { %16027 = vst [vmem:[#allocation97_spill] sm:$0xff] %v12627_v38  ;;  %1681 = vmax.xlane.f32.xlu0 %v16028_v13  ;;  %2385 = vmax.xlane.f32.xlu1 %v2384_v49  ;;  %v2390_v46 = vmax.f32 %v12623_v6, %v12627_v38 }
 0x3ed   : > { %1684 = vmax.xlane.f32.xlu1 %v16029_v4  ;;  %2388 = vmax.xlane.f32.xlu0 %v2387_v63  ;;  %v12637_v48 = vpop.f32.mrb[212].mxu0 }
 0x3ee   : > { %16030 = vst [vmem:[#allocation98_spill] sm:$0xff] %v12637_v48  ;;  %v12639_v37 = vpop.f32.mrb[213].mxu0 }
 0x3ef   : > { %16031 = vst [vmem:[#allocation99_spill] sm:$0xff] %v12639_v37  ;;  %v12641_v58 = vpop.f32.mrb[214].mxu0  ;;  %v2393_v3 = vmax.f32 %v12637_v48, %v12639_v37 }
 0x3f0   : > { %16032 = vst [vmem:[#allocation100_spill] sm:$0xff] %v12641_v58  ;;  %v12645_v1 = vpop.f32.mrb[215].mxu0 }
 0x3f1   : > { %16033 = vst [vmem:[#allocation101_spill] sm:$0xff] %v12645_v1  ;;  %2391 = vmax.xlane.f32.xlu1 %v2390_v46  ;;  %2394 = vmax.xlane.f32.xlu0 %v2393_v3  ;;  %v2396_v49 = vmax.f32 %v12641_v58, %v12645_v1 }
 0x3f5   : > { %2397 = vmax.xlane.f32.xlu1 %v2396_v49  ;;  %v12649_v13 = vpop.f32.mrb[216].mxu0 }
 0x3f6   : > { %16034 = vst [vmem:[#allocation102_spill] sm:$0xff] %v12649_v13  ;;  %v12651_v63 = vpop.f32.mrb[217].mxu0 }
 0x3f7   : > { %16035 = vst [vmem:[#allocation103_spill] sm:$0xff] %v12651_v63  ;;  %v12653_v4 = vpop.f32.mrb[218].mxu0  ;;  %v2399_v23 = vmax.f32 %v12649_v13, %v12651_v63 }
 0x3f8   : > { %16036 = vst [vmem:[#allocation104_spill] sm:$0xff] %v12653_v4  ;;  %v12657_v33 = vpop.f32.mrb[219].mxu0 }
 0x3f9   : > { %16037 = vst [vmem:[#allocation105_spill] sm:$0xff] %v12657_v33  ;;  %2400 = vmax.xlane.f32.xlu0 %v2399_v23  ;;  %v2402_v46 = vmax.f32 %v12653_v4, %v12657_v33 }
 0x3fb   : > { %2403 = vmax.xlane.f32.xlu1 %v2402_v46 }
 0x3fd   : > { %v12661_v3 = vpop.f32.mrb[220].mxu0 }
 0x3fe   : > { %16038 = vst [vmem:[#allocation106_spill] sm:$0xff] %v12661_v3  ;;  %v12663_v53 = vpop.f32.mrb[221].mxu0 }
 0x3ff   : > { %16039 = vst [vmem:[#allocation107_spill] sm:$0xff] %v12663_v53  ;;  %v12665_v49 = vpop.f32.mrb[222].mxu0  ;;  %v2405_v1 = vmax.f32 %v12661_v3, %v12663_v53 }
 0x400   : > { %16040 = vst [vmem:[#allocation108_spill] sm:$0xff] %v12665_v49  ;;  %v12669_v58 = vpop.f32.mrb[223].mxu0 }
 0x401   : > { %16041 = vst [vmem:[#allocation109_spill] sm:$0xff] %v12669_v58  ;;  %2406 = vmax.xlane.f32.xlu0 %v2405_v1  ;;  %v2408_v63 = vmax.f32 %v12665_v49, %v12669_v58 }
 0x403   : > { %2409 = vmax.xlane.f32.xlu1 %v2408_v63 }
 0x405   : > { %v12673_v23 = vpop.f32.mrb[224].mxu0 }
 0x406   : > { %16042 = vst [vmem:[#allocation110_spill] sm:$0xff] %v12673_v23  ;;  %v12675_v33 = vpop.f32.mrb[225].mxu0 }
 0x407   : > { %16043 = vst [vmem:[#allocation111_spill] sm:$0xff] %v12675_v33  ;;  %v12677_v46 = vpop.f32.mrb[226].mxu0  ;;  %v2411_v4 = vmax.f32 %v12673_v23, %v12675_v33 }
 0x408   : > { %16044 = vst [vmem:[#allocation112_spill] sm:$0xff] %v12677_v46  ;;  %v12681_v13 = vpop.f32.mrb[227].mxu0 }
 0x409   : > { %16045 = vst [vmem:[#allocation113_spill] sm:$0xff] %v12681_v13  ;;  %2412 = vmax.xlane.f32.xlu0 %v2411_v4  ;;  %v2414_v53 = vmax.f32 %v12677_v46, %v12681_v13 }
 0x40b   : > { %2415 = vmax.xlane.f32.xlu1 %v2414_v53 }
 0x40d   : > { %v12685_v1 = vpop.f32.mrb[228].mxu0 }
 0x40e   : > { %16046 = vst [vmem:[#allocation114_spill] sm:$0xff] %v12685_v1  ;;  %v12687_v58 = vpop.f32.mrb[229].mxu0 }
 0x40f   : > { %16047 = vst [vmem:[#allocation115_spill] sm:$0xff] %v12687_v58  ;;  %v12689_v63 = vpop.f32.mrb[230].mxu0  ;;  %v2417_v49 = vmax.f32 %v12685_v1, %v12687_v58  ;;  %v1616_v1 = vpop.xlane.xlu0 %1615 }
 0x410   : > { %16048 = vst [vmem:[#allocation116_spill] sm:$0xff] %v12689_v63  ;;  %v12693_v3 = vpop.f32.mrb[231].mxu0  ;;  %v1705_v54 = vsub.f32 %v12309_v21, %v1616_v1 }
 0x411   : > { %16049 = vst [vmem:[#allocation117_spill] sm:$0xff] %v12693_v3  ;;  %2418 = vmax.xlane.f32.xlu0 %v2417_v49  ;;  %v2420_v33 = vmax.f32 %v12689_v63, %v12693_v3  ;;  %v1619_v49 = vpop.xlane.xlu1 %1618 }
 0x412   : > { %v1706_v26 = vsub.f32 %v12311_v56, %v1619_v49  ;;  %v1782_v45 = vmul.f32 1.442695, %v1705_v54 }
 0x413   : > { %2421 = vmax.xlane.f32.xlu1 %v2420_v33 }
 0x414   : > { %v1784_v56 = vmul.f32 1.442695, %v1706_v26 }
 0x415   : > { %v12697_v4 = vpop.f32.mrb[232].mxu0  ;;  %v1625_v33 = vpop.xlane.xlu1 %1624 }
 0x416   : > { %16050 = vst [vmem:[#allocation118_spill] sm:$0xff] %v12697_v4  ;;  %v12699_v13 = vpop.f32.mrb[233].mxu0 }
 0x417   : > { %16051 = vst [vmem:[#allocation119_spill] sm:$0xff] %v12699_v13  ;;  %v12701_v53 = vpop.f32.mrb[234].mxu0  ;;  %v2423_v46 = vmax.f32 %v12697_v4, %v12699_v13  ;;  %v1622_v4 = vpop.xlane.xlu0 %1621 }
 0x418   : > { %16052 = vst [vmem:[#allocation120_spill] sm:$0xff] %v12701_v53  ;;  %v12705_v23 = vpop.f32.mrb[235].mxu0  ;;  %v1708_v21 = vsub.f32 %v12321_v51, %v1622_v4  ;;  %v1710_v51 = vsub.f32 %v12325_v22, %v1625_v33 }
 0x419   : > { %16053 = vst [vmem:[#allocation121_spill] sm:$0xff] %v12705_v23  ;;  %2424 = vmax.xlane.f32.xlu0 %v2423_v46  ;;  %v2426_v58 = vmax.f32 %v12701_v53, %v12705_v23  ;;  %v12721_v23 = vpop.xlane.xlu1 %1630  ;;  %v1704_v46 = vsub.f32 %v12307_v2, %v1616_v1 }
 0x41b   : > { %2427 = vmax.xlane.f32.xlu1 %v2426_v58  ;;  %v12723_v58 = vpop.xlane.xlu0 %1627  ;;  %v1780_v17 = vmul.f32 1.442695, %v1704_v46 }
 0x41d   : > { %v12709_v3 = vpop.f32.mrb[236].mxu0  ;;  %v12725_v53 = vpop.xlane.xlu1 %1636 }
 0x41e   : > { %v12711_v63 = vpop.f32.mrb[237].mxu0 }
 0x41f   : > { %v12713_v37 = vpop.f32.mrb[238].mxu0  ;;  %v12727_v38 = vpop.xlane.xlu0 %1633 }
 0x420   : > { %v12717_v13 = vpop.f32.mrb[239].mxu0 }
 0x421   : > { %v12729_v6 = vpop.xlane.xlu1 %1642 }
 0x423   : > { %v12731_v43 = vpop.xlane.xlu0 %1639 }
 0x425   : > { %v12733_v28 = vpop.xlane.xlu1 %1648 }
 0x426   : > { %16054 = vst [vmem:[#allocation122_spill] sm:$0xff] %v12733_v28 }
 0x427   : > { %v12735_v48 = vpop.xlane.xlu0 %1645 }
 0x428   : > { %16055 = vst [vmem:[#allocation123_spill] sm:$0xff] %v12735_v48  ;;  %v1707_v48 = vsub.f32 %v12315_v31, %v1619_v49  ;;  %v1788_v49 = vmul.f32 1.442695, %v1708_v21 }
 0x429   : > { %v12737_v25 = vpop.xlane.xlu1 %1654 }
 0x42a   : > { %16056 = vst [vmem:[#allocation124_spill] sm:$0xff] %v12737_v25 }
 0x42b   : > { %v12741_v0 = vpop.xlane.xlu0 %1651 }
 0x42f   : > { %v12747_v25 = vpop.xlane.xlu0 %1657 }
 0x436   : > { %v2341_v40 = vpop.xlane.xlu1 %2340 }
 0x437   : > { %v2435_v50 = vsub.f32 %v12466_v14, %v2341_v40  ;;  %v2436_v47 = vsub.f32 %v12468_v55, %v2341_v40  ;;  %v1709_v55 = vsub.f32 %v12323_v24, %v1622_v4  ;;  %v1786_v40 = vmul.f32 1.442695, %v1707_v48 }
 0x438   : > { %v1792_v48 = vmul.f32 1.442695, %v1710_v51 }
 0x439   : > { %v2499_v41 = vmul.f32 1.442695, %v2435_v50  ;;  %v2501_v28 = vmul.f32 1.442695, %v2436_v47 }
 0x43a   : > { %v2344_v2 = vpop.xlane.xlu1 %2343 }
 0x43b   : > { %10779 = vpow2.f32 %v2499_v41  ;;  %v2437_v1 = vsub.f32 %v12470_v27, %v2344_v2  ;;  %v2438_v14 = vsub.f32 %v12474_v11, %v2344_v2  ;;  %v1790_v41 = vmul.f32 1.442695, %v1709_v55 }
 0x43c   : > { %10781 = vpow2.f32 %v2501_v28  ;;  %v1711_v11 = vsub.f32 %v12329_v34, %v1625_v33  ;;  %v1713_v55 = vsub.f32 %v12336_v12, %v12723_v58 }
 0x43d   : > { %10783 = vpow2.f32 %v1780_v17  ;;  %v2503_v50 = vmul.f32 1.442695, %v2437_v1  ;;  %v2505_v47 = vmul.f32 1.442695, %v2438_v14 }
 0x43e   : > { %10785 = vpow2.f32 %v1782_v45  ;;  %v12753_v31 = vpop.xlane.xlu1 %1660  ;;  %v2347_v54 = vpop.xlane.xlu0 %2346  ;;  %v1794_v4 = vmul.f32 1.442695, %v1711_v11  ;;  %v1798_v11 = vmul.f32 1.442695, %v1713_v55 }
 0x43f   : > { %10787 = vpow2.f32 %v2503_v50  ;;  %v2439_v27 = vsub.f32 %v12478_v32, %v2347_v54  ;;  %v2440_v24 = vsub.f32 %v12480_v20, %v2347_v54 }
 0x440   : > { %10789 = vpow2.f32 %v2505_v47 }
 0x441   : > { %10791 = vpow2.f32 %v1784_v56  ;;  %v2507_v26 = vmul.f32 1.442695, %v2439_v27  ;;  %v2509_v45 = vmul.f32 1.442695, %v2440_v24  ;;  %v1715_v24 = vsub.f32 %v12342_v57, %v12721_v23 }
 0x442   : > { %10793 = vpow2.f32 %v1786_v40  ;;  %v12759_v28 = vpop.xlane.xlu0 %1663  ;;  %v2350_v17 = vpop.xlane.xlu1 %2349 }
 0x443   : > { %10795 = vpow2.f32 %v1788_v49  ;;  %v2441_v22 = vsub.f32 %v12482_v5, %v2350_v17  ;;  %v2442_v32 = vsub.f32 %v12486_v10, %v2350_v17  ;;  %v1712_v5 = vsub.f32 %v12334_v61, %v12723_v58 }
 0x444   : > { %10797 = vpow2.f32 %v1790_v41 }
 0x445   : > { %v12763_v46 = vpop.eup %10779  ;;  %10799 = vpow2.f32 %v2507_v26  ;;  %v2511_v34 = vmul.f32 1.442695, %v2441_v22  ;;  %v2513_v33 = vmul.f32 1.442695, %v2442_v32  ;;  %v1796_v12 = vmul.f32 1.442695, %v1712_v5 }
 0x446   : > { %v12765_v20 = vpop.eup %10781  ;;  %10801 = vpow2.f32 %v2509_v45  ;;  %v12767_v2 = vpop.xlane.xlu1 %1666 }
 0x447   : > { %v2353_v21 = vpop.xlane.xlu0 %2352  ;;  %v12769_v1 = vpop.eup %10783  ;;  %10803 = vpow2.f32 %v1792_v48  ;;  %v2627_v50 = vadd.f32 %v12765_v20, %v12763_v46 }
 0x448   : > { %v2443_v14 = vsub.f32 %v12490_v35, %v2353_v21  ;;  %v12774_v10 = vpop.eup %10785  ;;  %10805 = vpow2.f32 %v1794_v4  ;;  %v2444_v56 = vsub.f32 %v12492_v9, %v2353_v21  ;;  %v1714_v9 = vsub.f32 %v12338_v52, %v12721_v23 }
 0x449   : > { %v12781_v47 = vpop.eup %10787  ;;  %10807 = vpow2.f32 %v2511_v34  ;;  %2628 = vadd.xlane.f32.xlu0 %v2627_v50  ;;  %v1902_v27 = vadd.f32 %v12774_v10, %v12769_v1  ;;  %v1802_v34 = vmul.f32 1.442695, %v1715_v24 }
 0x44a   : > { %v2515_v40 = vmul.f32 1.442695, %v2443_v14  ;;  %v12783_v54 = vpop.eup %10789  ;;  %10809 = vpow2.f32 %v2513_v33  ;;  %v2517_v61 = vmul.f32 1.442695, %v2444_v56  ;;  %v2356_v49 = vpop.xlane.xlu1 %2355  ;;  %v1800_v57 = vmul.f32 1.442695, %v1714_v9 }
 0x44b   : > { %v12785_v35 = vpop.xlane.xlu0 %1669  ;;  %v12787_v51 = vpop.eup %10791  ;;  %v2445_v58 = vsub.f32 %v12496_v30, %v2356_v49  ;;  %v2446_v26 = vsub.f32 %v12500_v19, %v2356_v49  ;;  %v2630_v45 = vadd.f32 %v12783_v54, %v12781_v47  ;;  %v1716_v56 = vsub.f32 %v12346_v39, %v12727_v38 }
 0x44c   : > { %v12794_v41 = vpop.eup %10793  ;;  %10811 = vpow2.f32 %v2515_v40  ;;  %v1717_v39 = vsub.f32 %v12348_v16, %v12727_v38  ;;  %v1718_v9 = vsub.f32 %v12350_v8, %v12725_v53  ;;  %v16063_v38 = vmax.f32 %v12454_v44, %v12456_v18 }
 0x44d   : > { %v12801_v17 = vpop.eup %10795  ;;  %v2519_v52 = vmul.f32 1.442695, %v2445_v58  ;;  %10813 = vpow2.f32 %v2517_v61  ;;  %v2521_v30 = vmul.f32 1.442695, %v2446_v26  ;;  %1903 = vadd.xlane.f32.xlu0 %v1902_v27  ;;  %2631 = vadd.xlane.f32.xlu1 %v2630_v45  ;;  %v1905_v21 = vadd.f32 %v12794_v41, %v12787_v51 }
 0x44e   : > { %16057 = vst [vmem:[#allocation125_spill] sm:$0xff] %v12801_v17  ;;  %v12803_v48 = vpop.eup %10797  ;;  %10815 = vpow2.f32 %v1796_v12  ;;  %v1804_v24 = vmul.f32 1.442695, %v1716_v56  ;;  %v1806_v8 = vmul.f32 1.442695, %v1717_v39 }
 0x44f   : > { %16058 = vst [vmem:[#allocation126_spill] sm:$0xff] %v12803_v48  ;;  %v12805_v22 = vpop.xlane.xlu1 %1672  ;;  %v2359_v4 = vpop.xlane.xlu0 %2358  ;;  %10817 = vpow2.f32 %v1798_v11 }
 0x450   : > { %v12807_v32 = vpop.eup %10799  ;;  %v2447_v19 = vsub.f32 %v12506_v59, %v2359_v4  ;;  %v2448_v33 = vsub.f32 %v12508_v42, %v2359_v4  ;;  %10819 = vpow2.f32 %v2519_v52  ;;  %v1808_v52 = vmul.f32 1.442695, %v1718_v9 }
 0x451   : > { %v12810_v23 = vpop.eup %10801  ;;  %10821 = vpow2.f32 %v2521_v30  ;;  %1906 = vadd.xlane.f32.xlu1 %v1905_v21 }
 0x452   : > { %v12815_v5 = vpop.eup %10803  ;;  %v2523_v14 = vmul.f32 1.442695, %v2447_v19  ;;  %v2525_v59 = vmul.f32 1.442695, %v2448_v33  ;;  %v2633_v50 = vadd.f32 %v12810_v23, %v12807_v32  ;;  %10823 = vpow2.f32 %v1800_v57  ;;  %v16068_v33 = vld [vmem:[#allocation68_spill] sm:$0xff] }
 0x453   : > { %16059 = vst [vmem:[#allocation127_spill] sm:$0xff] %v12815_v5  ;;  %v12817_v55 = vpop.eup %10805  ;;  %v2362_v40 = vpop.xlane.xlu1 %2361  ;;  %10825 = vpow2.f32 %v1802_v34  ;;  %v16067_v34 = vld [vmem:[#allocation67_spill] sm:$0xff] }
 0x454   : > { %16060 = vst [vmem:[#allocation128_spill] sm:$0xff] %v12817_v55  ;;  %v12823_v42 = vpop.eup %10807  ;;  %v2449_v61 = vsub.f32 %v12512_v62, %v2362_v40  ;;  %v2450_v49 = vsub.f32 %v12516_v7, %v2362_v40  ;;  %2634 = vadd.xlane.f32.xlu0 %v2633_v50  ;;  %10827 = vpow2.f32 %v2523_v14  ;;  %v1719_v62 = vsub.f32 %v12354_v60, %v12725_v53 }
 0x455   : > { %v12827_v12 = vpop.eup %10809  ;;  %10829 = vpow2.f32 %v2525_v59  ;;  %v16069_v21 = vmax.f32 %v16067_v34, %v16068_v33 }
 0x456   : > { %v2527_v58 = vmul.f32 1.442695, %v2449_v61  ;;  %v2529_v27 = vmul.f32 1.442695, %v2450_v49  ;;  %v2636_v11 = vadd.f32 %v12827_v12, %v12823_v42  ;;  %v1886_v7 = vpop.xlane.xlu0 %1885  ;;  %v12837_v26 = vpop.eup %10811  ;;  %v1810_v30 = vmul.f32 1.442695, %v1719_v62 }
 0x457   : > { %16061 = vst [vmem:[#allocation129_spill] sm:$0xff] %v12837_v26  ;;  %v12839_v16 = vpop.eup %10813 }
 0x458   : > { %10831 = vpow2.f32 %v2527_v58  ;;  %2637 = vadd.xlane.f32.xlu1 %v2636_v11  ;;  %16062 = vst [vmem:[#allocation130_spill] sm:$0xff] %v12839_v16  ;;  %1687 = vmax.xlane.f32.xlu0 %v16063_v38  ;;  %v12844_v45 = vpop.eup %10815  ;;  %v2639_v60 = vadd.f32 %v12839_v16, %v12837_v26  ;;  %v16075_v11 = vld [vmem:[#allocation72_spill] sm:$0xff] }
 0x459   : > { %10833 = vpow2.f32 %v2529_v27  ;;  %16064 = vst [vmem:[#allocation131_spill] sm:$0xff] %v12844_v45  ;;  %v12848_v53 = vpop.eup %10817  ;;  %v16078_v38 = vld [vmem:[#allocation36_spill] sm:$0xff] }
 0x45a   : > { %10835 = vrcp.f32 %v1886_v7  ;;  %16065 = vst [vmem:[#allocation132_spill] sm:$0xff] %v12848_v53  ;;  %v1889_v4 = vpop.xlane.xlu1 %1888  ;;  %v2365_v57 = vpop.xlane.xlu0 %2364  ;;  %v16077_v7 = vld [vmem:[#allocation35_spill] sm:$0xff] }
 0x45b   : > { %10837 = vpow2.f32 %v1804_v24  ;;  %v12850_v19 = vpop.eup %10819  ;;  %v2451_v14 = vsub.f32 %v12527_v36, %v2365_v57  ;;  %v2452_v56 = vsub.f32 %v12531_v29, %v2365_v57  ;;  %v16074_v29 = vld [vmem:[#allocation71_spill] sm:$0xff] }
 0x45c   : > { %16066 = vst [vmem:[#allocation133_spill] sm:$0xff] %v12850_v19  ;;  %1690 = vmax.xlane.f32.xlu1 %v16069_v21  ;;  %10839 = vrcp.f32 %v1889_v4  ;;  %v12857_v59 = vpop.eup %10821  ;;  %2640 = vadd.xlane.f32.xlu0 %v2639_v60  ;;  %v16079_v60 = vmax.f32 %v12709_v3, %v12711_v63  ;;  %v16081_v4 = vld [vmem:[#allocation37_spill] sm:$0xff] }
 0x45d   : > { %16070 = vst [vmem:[#allocation67_spill] sm:$0xff] %v12857_v59  ;;  %10841 = vpow2.f32 %v1806_v8  ;;  %v12859_v50 = vpop.eup %10823  ;;  %v2531_v40 = vmul.f32 1.442695, %v2451_v14  ;;  %v2533_v61 = vmul.f32 1.442695, %v2452_v56  ;;  %v2642_v49 = vadd.f32 %v12857_v59, %v12850_v19 }
 0x45e   : > { %16071 = vst [vmem:[#allocation68_spill] sm:$0xff] %v12859_v50  ;;  %10843 = vpow2.f32 %v1808_v52  ;;  %v12863_v39 = vpop.eup %10825  ;;  %v1892_v9 = vpop.xlane.xlu0 %1891  ;;  %v1720_v8 = vsub.f32 %v16077_v7, %v12731_v43  ;;  %v1721_v52 = vsub.f32 %v16078_v38, %v12731_v43  ;;  %v1722_v57 = vsub.f32 %v16081_v4, %v12729_v6 }
 0x45f   : > { %16072 = vst [vmem:[#allocation134_spill] sm:$0xff] %v12863_v39  ;;  %10845 = vpow2.f32 %v1810_v30  ;;  %v2368_v58 = vpop.xlane.xlu1 %2367  ;;  %v12865_v36 = vpop.eup %10827 }
 0x460   : > { %16073 = vst [vmem:[#allocation135_spill] sm:$0xff] %v12865_v36  ;;  %10847 = vpow2.f32 %v2531_v40  ;;  %2643 = vadd.xlane.f32.xlu1 %v2642_v49  ;;  %v2453_v27 = vsub.f32 %v16074_v29, %v2368_v58  ;;  %v2454_v24 = vsub.f32 %v16075_v11, %v2368_v58  ;;  %v12869_v62 = vpop.eup %10829  ;;  %2430 = vmax.xlane.f32.xlu0 %v16079_v60  ;;  %v16083_v49 = vld [vmem:[#allocation38_spill] sm:$0xff]  ;;  %v1812_v4 = vmul.f32 1.442695, %v1720_v8 }
 0x461   : > { %16076 = vst [vmem:[#allocation71_spill] sm:$0xff] %v12869_v62  ;;  %10849 = vpow2.f32 %v2533_v61  ;;  %v2645_v56 = vadd.f32 %v12869_v62, %v12865_v36  ;;  %v1723_v43 = vsub.f32 %v16083_v49, %v12729_v6  ;;  %v16084_v11 = vmax.f32 %v12713_v37, %v12717_v13  ;;  %v16089_v62 = vld [vmem:[#allocation73_spill] sm:$0xff] }
 0x462   : > { %v12878_v30 = vpop.eup %10831  ;;  %v2535_v21 = vmul.f32 1.442695, %v2453_v27  ;;  %v2537_v14 = vmul.f32 1.442695, %v2454_v24  ;;  %10851 = vrcp.f32 %v1892_v9  ;;  %v2371_v58 = vpop.xlane.xlu0 %2370  ;;  %v16085_v24 = vld [vmem:[#allocation77_spill] sm:$0xff]  ;;  %v1908_v9 = vadd.f32 %v12803_v48, %v12801_v17 }
 0x463   : > { %16080 = vst [vmem:[#allocation72_spill] sm:$0xff] %v12878_v30  ;;  %v12884_v40 = vpop.eup %10833  ;;  %v1895_v61 = vpop.xlane.xlu1 %1894  ;;  %v2455_v27 = vsub.f32 %v12554_v15, %v2371_v58  ;;  %v2456_v7 = vsub.f32 %v16085_v24, %v2371_v58  ;;  %v1814_v6 = vmul.f32 1.442695, %v1721_v52  ;;  %v1816_v49 = vmul.f32 1.442695, %v1722_v57  ;;  %v16088_v58 = vld [vmem:[#allocation69_spill] sm:$0xff] }
 0x464   : > { %16082 = vst [vmem:[#allocation35_spill] sm:$0xff] %v12884_v40  ;;  %v10836_v29 = vpop.eup %10835  ;;  %10853 = vpow2.f32 %v2535_v21  ;;  %2433 = vmax.xlane.f32.xlu1 %v16084_v11  ;;  %v2648_v38 = vadd.f32 %v12884_v40, %v12878_v30  ;;  %2646 = vadd.xlane.f32.xlu0 %v2645_v56  ;;  %v16090_v52 = vld [vmem:[#allocation70_spill] sm:$0xff]  ;;  %v1818_v17 = vmul.f32 1.442695, %v1723_v43  ;;  %v16093_v57 = vld [vmem:[#allocation123_spill] sm:$0xff]  ;;  %v1911_v43 = vadd.f32 %v12817_v55, %v12815_v5 }
 0x465   : > { %v12895_v60 = vpop.eup %10837  ;;  %10855 = vpow2.f32 %v2537_v14  ;;  %v2539_v11 = vmul.f32 1.442695, %v2455_v27  ;;  %v2541_v36 = vmul.f32 1.442695, %v2456_v7  ;;  %v2012_v24 = vmul.f32 %v10836_v29, %v16088_v58  ;;  %v16091_v56 = vld [vmem:[#allocation74_spill] sm:$0xff]  ;;  %v16095_v7 = vld [vmem:[#allocation79_spill] sm:$0xff] }
 0x466   : > { %16086 = vst [vmem:[#allocation36_spill] sm:$0xff] %v12895_v60  ;;  %v10840_v21 = vpop.eup %10839  ;;  %10857 = vrcp.f32 %v1895_v61  ;;  %v12903_v40 = vpop.xlane.xlu0 %1675  ;;  %v2013_v14 = vmul.f32 %v10836_v29, %v16090_v52  ;;  %v16094_v61 = vld [vmem:[#allocation39_spill] sm:$0xff]  ;;  %v16143_v5 = vld [vmem:[#allocation90_spill] sm:$0xff] }
 0x467   : > { %v12899_v15 = vpop.eup %10841  ;;  %v2014_v30 = vmul.f32 %v10840_v21, %v16089_v62  ;;  %v2374_v8 = vpop.xlane.xlu1 %2373  ;;  %v2015_v19 = vmul.f32 %v10840_v21, %v16091_v56  ;;  %v1724_v27 = vsub.f32 %v16094_v61, %v16093_v57  ;;  %10859 = vpow2.f32 %v2539_v11  ;;  %v16097_v62 = vld [vmem:[#allocation81_spill] sm:$0xff] }
 0x468   : > { %16087 = vst [vmem:[#allocation37_spill] sm:$0xff] %v12899_v15  ;;  %v12907_v26 = vpop.eup %10843  ;;  %2649 = vadd.xlane.f32.xlu1 %v2648_v38  ;;  %v2457_v48 = vsub.f32 %v16095_v7, %v2374_v8  ;;  %10861 = vpow2.f32 %v2541_v36  ;;  %1909 = vadd.xlane.f32.xlu0 %v1908_v9  ;;  %v2458_v59 = vsub.f32 %v16097_v62, %v2374_v8 }
 0x469   : > { %16092 = vst [vmem:[#allocation38_spill] sm:$0xff] %v12907_v26  ;;  %v12912_v58 = vpop.eup %10845  ;;  %v2077_v16 = vpack.c.bf16 %v2015_v19, %v2013_v14  ;;  %v2076_v29 = vpack.c.bf16 %v2014_v30, %v2012_v24  ;;  %10863 = vpow2.f32 %v1812_v4  ;;  %v1820_v9 = vmul.f32 1.442695, %v1724_v27  ;;  %v16100_v19 = vld [vmem:[#allocation82_spill] sm:$0xff] }
 0x46a   : > { %16096 = vst [vmem:[#allocation77_spill] sm:$0xff] %v12912_v58  ;;  %v12915_v52 = vpop.eup %10847  ;;  %v2543_v21 = vmul.f32 1.442695, %v2457_v48  ;;  %10865 = vpow2.f32 %v1814_v6  ;;  %v2545_v38 = vmul.f32 1.442695, %v2458_v59  ;;  %v2377_v36 = vpop.xlane.xlu0 %2376  ;;  %v16101_v48 = vld [vmem:[#allocation83_spill] sm:$0xff]  ;;  %v1914_v59 = vadd.f32 %v12848_v53, %v12844_v45 }
 0x46b   : > { %16098 = vst [vmem:[#allocation69_spill] sm:$0xff] %v12915_v52  ;;  %v12919_v56 = vpop.eup %10849  ;;  %3044 = vmatprep.mubr.bf16.mxu1 %v2077_v16  ;;  %v12921_v11 = vpop.xlane.xlu1 %1678  ;;  %10867 = vpow2.f32 %v1816_v49  ;;  %v2459_v30 = vsub.f32 %v16100_v19, %v2377_v36  ;;  %v2460_v4 = vsub.f32 %v16101_v48, %v2377_v36  ;;  %v16104_v49 = vld [vmem:[#allocation40_spill] sm:$0xff]  ;;  %v1917_v62 = vadd.f32 %v12863_v39, %v12859_v50  ;;  %v16106_v36 = vld [vmem:[#allocation85_spill] sm:$0xff]  ;;  %v16112_v50 = vld [vmem:[#allocation122_spill] sm:$0xff] }
 0x46c   : > { %16099 = vst [vmem:[#allocation73_spill] sm:$0xff] %v12919_v56  ;;  %1912 = vadd.xlane.f32.xlu1 %v1911_v43  ;;  %3045 = vmatmul.mubr.bf16.vlgmr.msra.gmra.mrb[16].mxu1 %v2076_v29  ;;  %v10852_v24 = vpop.eup %10851  ;;  %10869 = vpow2.f32 %v1818_v17  ;;  %v2651_v8 = vadd.f32 %v12919_v56, %v12915_v52  ;;  %v1725_v61 = vsub.f32 %v16104_v49, %v16093_v57  ;;  %v16107_v48 = vld [vmem:[#allocation76_spill] sm:$0xff]  ;;  %v16110_v49 = vld [vmem:[#allocation78_spill] sm:$0xff]  ;;  %v16113_v39 = vld [vmem:[#allocation41_spill] sm:$0xff] }
 0x46d   : > { %10871 = vpow2.f32 %v2543_v21  ;;  %v2547_v16 = vmul.f32 1.442695, %v2459_v30  ;;  %v2549_v27 = vmul.f32 1.442695, %v2460_v4  ;;  %v16105_v21 = vld [vmem:[#allocation84_spill] sm:$0xff]  ;;  %v2017_v45 = vmul.f32 %v10852_v24, %v16107_v48  ;;  %v16109_v4 = vld [vmem:[#allocation75_spill] sm:$0xff] }
 0x46e   : > { %v12927_v14 = vpop.eup %10853  ;;  %10873 = vpow2.f32 %v2545_v38  ;;  %2652 = vadd.xlane.f32.xlu0 %v2651_v8  ;;  %v1898_v17 = vpop.xlane.xlu0 %1897  ;;  %v16108_v57 = vld [vmem:[#allocation80_spill] sm:$0xff]  ;;  %v2016_v8 = vmul.f32 %v10852_v24, %v16109_v4 }
 0x46f   : > { %16102 = vst [vmem:[#allocation70_spill] sm:$0xff] %v12927_v14  ;;  %v12931_v6 = vpop.eup %10855  ;;  %v2380_v7 = vpop.xlane.xlu1 %2379  ;;  %10875 = vpow2.f32 %v1820_v9  ;;  %v1726_v9 = vsub.f32 %v16113_v39, %v16112_v50 }
 0x470   : > { %16103 = vst [vmem:[#allocation74_spill] sm:$0xff] %v12931_v6  ;;  %v10858_v29 = vpop.eup %10857  ;;  %v2461_v43 = vsub.f32 %v16105_v21, %v2380_v7  ;;  %v2462_v19 = vsub.f32 %v16106_v36, %v2380_v7  ;;  %v2654_v30 = vadd.f32 %v12931_v6, %v12927_v14  ;;  %10877 = vpow2.f32 %v2547_v16  ;;  %v16115_v36 = vld [vmem:[#allocation42_spill] sm:$0xff]  ;;  %v16117_v6 = vld [vmem:[#allocation88_spill] sm:$0xff]  ;;  %v16118_v16 = vld [vmem:[#allocation89_spill] sm:$0xff] }
 0x471   : > { %v2019_v38 = vmul.f32 %v10858_v29, %v16108_v57  ;;  %v2018_v53 = vmul.f32 %v10858_v29, %v16110_v49  ;;  %v12945_v56 = vpop.eup %10859  ;;  %v1727_v48 = vsub.f32 %v16115_v36, %v16112_v50  ;;  %10879 = vpow2.f32 %v2549_v27  ;;  %v16120_v50 = vld [vmem:[#allocation43_spill] sm:$0xff] }
 0x472   : > { %16111 = vst [vmem:[#allocation123_spill] sm:$0xff] %v12945_v56  ;;  %v2551_v21 = vmul.f32 1.442695, %v2461_v43  ;;  %v2553_v52 = vmul.f32 1.442695, %v2462_v19  ;;  %2655 = vadd.xlane.f32.xlu1 %v2654_v30  ;;  %v12949_v7 = vpop.eup %10861  ;;  %1915 = vadd.xlane.f32.xlu0 %v1914_v59  ;;  %v2383_v4 = vpop.xlane.xlu0 %2382  ;;  %10881 = vrcp.f32 %v1898_v17  ;;  %v1728_v27 = vsub.f32 %v16120_v50, %v12741_v0 }
 0x473   : > { %16114 = vst [vmem:[#allocation39_spill] sm:$0xff] %v12949_v7  ;;  %v2079_v57 = vpack.c.bf16 %v2019_v38, %v2017_v45  ;;  %v1901_v24 = vpop.xlane.xlu1 %1900  ;;  %v2078_v29 = vpack.c.bf16 %v2018_v53, %v2016_v8  ;;  %v12953_v49 = vpop.eup %10863  ;;  %v2463_v39 = vsub.f32 %v16117_v6, %v2383_v4  ;;  %v2464_v43 = vsub.f32 %v16118_v16, %v2383_v4 }
 0x474   : > { %16116 = vst [vmem:[#allocation79_spill] sm:$0xff] %v12953_v49  ;;  %v2657_v19 = vadd.f32 %v12949_v7, %v12945_v56  ;;  %v12959_v30 = vpop.eup %10865  ;;  %10883 = vpow2.f32 %v2551_v21  ;;  %v1822_v53 = vmul.f32 1.442695, %v1725_v61  ;;  %v1824_v38 = vmul.f32 1.442695, %v1726_v9  ;;  %v16137_v7 = vld [vmem:[#allocation98_spill] sm:$0xff] }
 0x475   : > { %16119 = vst [vmem:[#allocation81_spill] sm:$0xff] %v12959_v30  ;;  %3052 = vmatprep.mubr.bf16.mxu1 %v2079_v57  ;;  %v12963_v45 = vpop.eup %10867  ;;  %10885 = vpow2.f32 %v2553_v52  ;;  %v2555_v59 = vmul.f32 1.442695, %v2463_v39  ;;  %v2557_v17 = vmul.f32 1.442695, %v2464_v43  ;;  %v16122_v57 = vld [vmem:[#allocation91_spill] sm:$0xff]  ;;  %v1920_v9 = vadd.f32 %v12899_v15, %v12895_v60 }
 0x476   : > { %3053 = vmatmul.mubr.bf16.gmra.mrb[20].mxu1 %v2078_v29  ;;  %1918 = vadd.xlane.f32.xlu1 %v1917_v62  ;;  %v12965_v6 = vpop.eup %10869  ;;  %10887 = vrcp.f32 %v1901_v24  ;;  %v12967_v8 = vpop.xlane.xlu0 %1681  ;;  %v1826_v21 = vmul.f32 1.442695, %v1727_v48  ;;  %v1828_v52 = vmul.f32 1.442695, %v1728_v27  ;;  %v16124_v29 = vld [vmem:[#allocation93_spill] sm:$0xff]  ;;  %v16125_v48 = vld [vmem:[#allocation44_spill] sm:$0xff] }
 0x477   : > { %2658 = vadd.xlane.f32.xlu0 %v2657_v19  ;;  %v2386_v36 = vpop.xlane.xlu1 %2385  ;;  %v12969_v4 = vpop.eup %10871  ;;  %10889 = vpow2.f32 %v2555_v59  ;;  %v1729_v19 = vsub.f32 %v16125_v48, %v12741_v0 }
 0x478   : > { %16121 = vst [vmem:[#allocation82_spill] sm:$0xff] %v12969_v4  ;;  %v2465_v16 = vsub.f32 %v16122_v57, %v2386_v36  ;;  %v12972_v61 = vpop.eup %10873  ;;  %10891 = vpow2.f32 %v2557_v17  ;;  %v2466_v62 = vsub.f32 %v16124_v29, %v2386_v36  ;;  %v16127_v36 = vld [vmem:[#allocation124_spill] sm:$0xff]  ;;  %v16128_v57 = vld [vmem:[#allocation45_spill] sm:$0xff] }
 0x479   : > { %16123 = vst [vmem:[#allocation83_spill] sm:$0xff] %v12972_v61  ;;  %v12977_v24 = vpop.eup %10875  ;;  %10893 = vpow2.f32 %v1822_v53  ;;  %v2660_v43 = vadd.f32 %v12972_v61, %v12969_v4  ;;  %v1730_v29 = vsub.f32 %v16128_v57, %v16127_v36  ;;  %v16129_v53 = vld [vmem:[#allocation94_spill] sm:$0xff]  ;;  %v1926_v57 = vadd.f32 %v12959_v30, %v12953_v49 }
 0x47a   : > { %v2559_v39 = vmul.f32 1.442695, %v2465_v16  ;;  %10895 = vpow2.f32 %v1824_v38  ;;  %v2561_v50 = vmul.f32 1.442695, %v2466_v62  ;;  %v2389_v59 = vpop.xlane.xlu0 %2388  ;;  %v12985_v17 = vpop.eup %10877  ;;  %v16131_v38 = vld [vmem:[#allocation46_spill] sm:$0xff]  ;;  %v16132_v62 = vld [vmem:[#allocation95_spill] sm:$0xff] }
 0x47b   : > { %1921 = vadd.xlane.f32.xlu0 %v1920_v9  ;;  %v12983_v27 = vpop.xlane.xlu1 %1684  ;;  %16126 = vst [vmem:[#allocation40_spill] sm:$0xff] %v12985_v17  ;;  %10897 = vpow2.f32 %v1826_v21  ;;  %2661 = vadd.xlane.f32.xlu1 %v2660_v43  ;;  %v2467_v16 = vsub.f32 %v16129_v53, %v2389_v59  ;;  %v12990_v60 = vpop.eup %10879  ;;  %v1731_v0 = vsub.f32 %v16131_v38, %v16127_v36  ;;  %v1830_v53 = vmul.f32 1.442695, %v1729_v19  ;;  %v16138_v19 = vld [vmem:[#allocation47_spill] sm:$0xff] }
 0x47c   : > { %16130 = vst [vmem:[#allocation84_spill] sm:$0xff] %v12990_v60  ;;  %10899 = vpow2.f32 %v1828_v52  ;;  %v2468_v9 = vsub.f32 %v16132_v62, %v2389_v59  ;;  %v10882_v48 = vpop.eup %10881  ;;  %v1923_v21 = vadd.f32 %v12912_v58, %v12907_v26  ;;  %v2663_v52 = vadd.f32 %v12990_v60, %v12985_v17  ;;  %v16136_v26 = vld [vmem:[#allocation97_spill] sm:$0xff]  ;;  %v16139_v60 = vld [vmem:[#allocation87_spill] sm:$0xff] }
 0x47d   : > { %10901 = vpow2.f32 %v2559_v39  ;;  %v2563_v15 = vmul.f32 1.442695, %v2467_v16  ;;  %v1832_v39 = vmul.f32 1.442695, %v1730_v29  ;;  %v16135_v16 = vld [vmem:[#allocation96_spill] sm:$0xff]  ;;  %v2021_v17 = vmul.f32 %v10882_v48, %v16139_v60 }
 0x47e   : > { %v12999_v43 = vpop.eup %10883  ;;  %10903 = vpow2.f32 %v2561_v50  ;;  %v2565_v61 = vmul.f32 1.442695, %v2468_v9  ;;  %v2395_v38 = vpop.xlane.xlu0 %2394  ;;  %v1834_v4 = vmul.f32 1.442695, %v1731_v0  ;;  %v1732_v50 = vsub.f32 %v16138_v19, %v12747_v25  ;;  %v16142_v19 = vld [vmem:[#allocation86_spill] sm:$0xff] }
 0x47f   : > { %16133 = vst [vmem:[#allocation85_spill] sm:$0xff] %v12999_v43  ;;  %v2392_v36 = vpop.xlane.xlu1 %2391  ;;  %v13003_v59 = vpop.eup %10885  ;;  %1924 = vadd.xlane.f32.xlu1 %v1923_v21  ;;  %v2471_v49 = vsub.f32 %v16137_v7, %v2395_v38  ;;  %2664 = vadd.xlane.f32.xlu0 %v2663_v52  ;;  %10905 = vpow2.f32 %v2563_v15  ;;  %v16141_v7 = vld [vmem:[#allocation92_spill] sm:$0xff]  ;;  %v2020_v52 = vmul.f32 %v10882_v48, %v16142_v19 }
 0x480   : > { %16134 = vst [vmem:[#allocation76_spill] sm:$0xff] %v13003_v59  ;;  %v2469_v62 = vsub.f32 %v16135_v16, %v2392_v36  ;;  %v2470_v58 = vsub.f32 %v16136_v26, %v2392_v36  ;;  %v10888_v30 = vpop.eup %10887  ;;  %v2666_v9 = vadd.f32 %v13003_v59, %v12999_v43  ;;  %v16140_v16 = vld [vmem:[#allocation99_spill] sm:$0xff]  ;;  %10907 = vpow2.f32 %v2565_v61  ;;  %v16144_v15 = vld [vmem:[#allocation100_spill] sm:$0xff] }
 0x481   : > { %v13013_v56 = vpop.eup %10889  ;;  %v2472_v26 = vsub.f32 %v16140_v16, %v2395_v38  ;;  %v2023_v0 = vmul.f32 %v10888_v30, %v16141_v7  ;;  %v2022_v55 = vmul.f32 %v10888_v30, %v16143_v5  ;;  %v2571_v60 = vmul.f32 1.442695, %v2471_v49  ;;  %v16146_v5 = vld [vmem:[#allocation48_spill] sm:$0xff] }
 0x482   : > { %v2567_v29 = vmul.f32 1.442695, %v2469_v62  ;;  %v2569_v21 = vmul.f32 1.442695, %v2470_v58  ;;  %v13016_v36 = vpop.eup %10891  ;;  %v16145_v58 = vld [vmem:[#allocation101_spill] sm:$0xff]  ;;  %v1733_v49 = vsub.f32 %v16146_v5, %v12747_v25  ;;  %v16154_v5 = vld [vmem:[#allocation104_spill] sm:$0xff] }
 0x483   : > { %v2398_v14 = vpop.xlane.xlu1 %2397  ;;  %v13021_v59 = vpop.eup %10893  ;;  %2667 = vadd.xlane.f32.xlu1 %v2666_v9  ;;  %1927 = vadd.xlane.f32.xlu0 %v1926_v57  ;;  %v2081_v61 = vpack.c.bf16 %v2023_v0, %v2021_v17  ;;  %v2080_v16 = vpack.c.bf16 %v2022_v55, %v2020_v52  ;;  %v2669_v48 = vadd.f32 %v13016_v36, %v13013_v56  ;;  %v2573_v30 = vmul.f32 1.442695, %v2472_v26  ;;  %v16148_v17 = vld [vmem:[#allocation49_spill] sm:$0xff] }
 0x484   : > { %10909 = vpow2.f32 %v2567_v29  ;;  %v2473_v62 = vsub.f32 %v16144_v15, %v2398_v14  ;;  %v2474_v43 = vsub.f32 %v16145_v58, %v2398_v14  ;;  %v13025_v38 = vpop.eup %10895  ;;  %v1929_v9 = vadd.f32 %v12965_v6, %v12963_v45  ;;  %v16151_v15 = vld [vmem:[#allocation103_spill] sm:$0xff] }
 0x485   : > { %10911 = vpow2.f32 %v2569_v21  ;;  %v13029_v7 = vpop.eup %10897  ;;  %v1836_v29 = vmul.f32 1.442695, %v1732_v50  ;;  %v1734_v55 = vsub.f32 %v16148_v17, %v12753_v31  ;;  %3060 = vmatprep.mubr.bf16.mxu1 %v2081_v61  ;;  %v1838_v52 = vmul.f32 1.442695, %v1733_v49 }
 0x486   : > { %10913 = vpow2.f32 %v1830_v53  ;;  %v13035_v14 = vpop.eup %10899  ;;  %v2401_v57 = vpop.xlane.xlu0 %2400  ;;  %v16149_v53 = vld [vmem:[#allocation50_spill] sm:$0xff]  ;;  %v2575_v25 = vmul.f32 1.442695, %v2473_v62  ;;  %3061 = vmatmul.mubr.bf16.gmra.mrb[24].mxu1 %v2080_v16  ;;  %v2577_v19 = vmul.f32 1.442695, %v2474_v43  ;;  %v16152_v62 = vld [vmem:[#allocation51_spill] sm:$0xff] }
 0x487   : > { %16147 = vst [vmem:[#allocation80_spill] sm:$0xff] %v13035_v14  ;;  %10915 = vpow2.f32 %v1832_v39  ;;  %v13039_v21 = vpop.eup %10901  ;;  %v1735_v0 = vsub.f32 %v16149_v53, %v12753_v31  ;;  %1930 = vadd.xlane.f32.xlu1 %v1929_v9  ;;  %2670 = vadd.xlane.f32.xlu0 %v2669_v48  ;;  %v16150_v39 = vld [vmem:[#allocation102_spill] sm:$0xff]  ;;  %v2476_v58 = vsub.f32 %v16151_v15, %v2401_v57  ;;  %v1840_v31 = vmul.f32 1.442695, %v1734_v55  ;;  %v16157_v53 = vld [vmem:[#allocation52_spill] sm:$0xff] }
 0x488   : > { %10917 = vpow2.f32 %v1834_v4  ;;  %v13043_v26 = vpop.eup %10903  ;;  %v2475_v50 = vsub.f32 %v16150_v39, %v2401_v57  ;;  %v2404_v61 = vpop.xlane.xlu1 %2403  ;;  %v1736_v16 = vsub.f32 %v16152_v62, %v12759_v28  ;;  %v1935_v55 = vadd.f32 %v13029_v7, %v13025_v38 }
 0x489   : > { %10919 = vpow2.f32 %v2571_v60  ;;  %v2672_v4 = vadd.f32 %v13043_v26, %v13039_v21  ;;  %v1932_v60 = vadd.f32 %v13021_v59, %v12977_v24  ;;  %v13053_v43 = vpop.eup %10905  ;;  %v1842_v48 = vmul.f32 1.442695, %v1735_v0 }
 0x48a   : > { %10921 = vpow2.f32 %v2573_v30  ;;  %16153 = vst [vmem:[#allocation75_spill] sm:$0xff] %v13053_v43  ;;  %v2477_v49 = vsub.f32 %v16154_v5, %v2404_v61  ;;  %v13056_v30 = vpop.eup %10907  ;;  %v2579_v9 = vmul.f32 1.442695, %v2475_v50  ;;  %v1737_v0 = vsub.f32 %v16157_v53, %v12759_v28  ;;  %v16158_v50 = vld [vmem:[#allocation53_spill] sm:$0xff] }
 0x48b   : > { %10923 = vpow2.f32 %v1836_v29  ;;  %2673 = vadd.xlane.f32.xlu1 %v2672_v4  ;;  %16155 = vst [vmem:[#allocation78_spill] sm:$0xff] %v13056_v30  ;;  %1933 = vadd.xlane.f32.xlu0 %v1932_v60  ;;  %v16156_v29 = vld [vmem:[#allocation105_spill] sm:$0xff]  ;;  %v2675_v39 = vadd.f32 %v13056_v30, %v13053_v43  ;;  %v1738_v4 = vsub.f32 %v16158_v50, %v12767_v2 }
 0x48c   : > { %10925 = vpow2.f32 %v2575_v25  ;;  %v2478_v17 = vsub.f32 %v16156_v29, %v2404_v61  ;;  %v2581_v25 = vmul.f32 1.442695, %v2476_v58  ;;  %v2583_v5 = vmul.f32 1.442695, %v2477_v49 }
 0x48d   : > { %10927 = vpow2.f32 %v2577_v19  ;;  %v1844_v19 = vmul.f32 1.442695, %v1736_v16  ;;  %v16162_v16 = vld [vmem:[#allocation106_spill] sm:$0xff]  ;;  %v1846_v50 = vmul.f32 1.442695, %v1737_v0  ;;  %v16168_v0 = vld [vmem:[#allocation108_spill] sm:$0xff] }
 0x48e   : > { %v13061_v57 = vpop.eup %10909  ;;  %10929 = vpow2.f32 %v1838_v52  ;;  %v2407_v61 = vpop.xlane.xlu0 %2406  ;;  %v16160_v52 = vld [vmem:[#allocation54_spill] sm:$0xff]  ;;  %v1848_v49 = vmul.f32 1.442695, %v1738_v4 }
 0x48f   : > { %v13067_v15 = vpop.eup %10911  ;;  %10931 = vpow2.f32 %v1840_v31  ;;  %v1739_v60 = vsub.f32 %v16160_v52, %v12767_v2  ;;  %1936 = vadd.xlane.f32.xlu1 %v1935_v55  ;;  %v2585_v31 = vmul.f32 1.442695, %v2478_v17  ;;  %2676 = vadd.xlane.f32.xlu0 %v2675_v39  ;;  %v2479_v29 = vsub.f32 %v16162_v16, %v2407_v61  ;;  %v16166_v55 = vld [vmem:[#allocation55_spill] sm:$0xff] }
 0x490   : > { %v13071_v62 = vpop.eup %10913  ;;  %10933 = vpow2.f32 %v1842_v48  ;;  %v2678_v28 = vadd.f32 %v13067_v15, %v13061_v57  ;;  %v16164_v48 = vld [vmem:[#allocation107_spill] sm:$0xff]  ;;  %v2410_v43 = vpop.xlane.xlu1 %2409  ;;  %v1740_v52 = vsub.f32 %v16166_v55, %v12785_v35  ;;  %v16171_v55 = vld [vmem:[#allocation56_spill] sm:$0xff] }
 0x491   : > { %16159 = vst [vmem:[#allocation122_spill] sm:$0xff] %v13071_v62  ;;  %v13077_v58 = vpop.eup %10915  ;;  %10935 = vpow2.f32 %v2579_v9  ;;  %v2480_v30 = vsub.f32 %v16164_v48, %v2407_v61  ;;  %v1938_v9 = vadd.f32 %v13071_v62, %v13035_v14  ;;  %v1850_v39 = vmul.f32 1.442695, %v1739_v60 }
 0x492   : > { %16161 = vst [vmem:[#allocation41_spill] sm:$0xff] %v13077_v58  ;;  %v13080_v53 = vpop.eup %10917  ;;  %10937 = vpow2.f32 %v2581_v25  ;;  %v2481_v25 = vsub.f32 %v16168_v0, %v2410_v43  ;;  %v2587_v61 = vmul.f32 1.442695, %v2479_v29  ;;  %v1741_v14 = vsub.f32 %v16171_v55, %v12785_v35  ;;  %v16174_v35 = vld [vmem:[#allocation58_spill] sm:$0xff] }
 0x493   : > { %16163 = vst [vmem:[#allocation42_spill] sm:$0xff] %v13080_v53  ;;  %v13083_v2 = vpop.eup %10919  ;;  %10939 = vpow2.f32 %v1844_v19  ;;  %2679 = vadd.xlane.f32.xlu1 %v2678_v28  ;;  %1939 = vadd.xlane.f32.xlu0 %v1938_v9  ;;  %v16170_v19 = vld [vmem:[#allocation109_spill] sm:$0xff]  ;;  %v2589_v62 = vmul.f32 1.442695, %v2480_v30  ;;  %v1941_v60 = vadd.f32 %v13080_v53, %v13077_v58  ;;  %v1852_v28 = vmul.f32 1.442695, %v1740_v52 }
 0x494   : > { %16165 = vst [vmem:[#allocation88_spill] sm:$0xff] %v13083_v2  ;;  %v13089_v17 = vpop.eup %10921  ;;  %10941 = vpow2.f32 %v2583_v5  ;;  %v2482_v4 = vsub.f32 %v16170_v19, %v2410_v43  ;;  %v1743_v30 = vsub.f32 %v16174_v35, %v12805_v22  ;;  %v16176_v52 = vld [vmem:[#allocation110_spill] sm:$0xff] }
 0x495   : > { %16167 = vst [vmem:[#allocation89_spill] sm:$0xff] %v13089_v17  ;;  %v13092_v16 = vpop.eup %10923  ;;  %10943 = vpow2.f32 %v2585_v31  ;;  %v16172_v31 = vld [vmem:[#allocation57_spill] sm:$0xff]  ;;  %v2681_v43 = vadd.f32 %v13089_v17, %v13083_v2  ;;  %v1854_v17 = vmul.f32 1.442695, %v1741_v14  ;;  %v16178_v2 = vld [vmem:[#allocation111_spill] sm:$0xff]  ;;  %v16182_v14 = vld [vmem:[#allocation112_spill] sm:$0xff] }
 0x496   : > { %16169 = vst [vmem:[#allocation43_spill] sm:$0xff] %v13092_v16  ;;  %v13095_v48 = vpop.eup %10925  ;;  %10945 = vpow2.f32 %v1846_v50  ;;  %v1742_v29 = vsub.f32 %v16172_v31, %v12805_v22  ;;  %v2413_v9 = vpop.xlane.xlu0 %2412  ;;  %v2591_v50 = vmul.f32 1.442695, %v2481_v25  ;;  %v1858_v35 = vmul.f32 1.442695, %v1743_v30 }
 0x497   : > { %v13101_v5 = vpop.eup %10927  ;;  %10947 = vpow2.f32 %v1848_v49  ;;  %1942 = vadd.xlane.f32.xlu1 %v1941_v60  ;;  %v2593_v49 = vmul.f32 1.442695, %v2482_v4  ;;  %2682 = vadd.xlane.f32.xlu0 %v2681_v43  ;;  %v2483_v55 = vsub.f32 %v16176_v52, %v2413_v9  ;;  %v2484_v53 = vsub.f32 %v16178_v2, %v2413_v9 }
 0x498   : > { %v13107_v0 = vpop.eup %10929  ;;  %10949 = vpow2.f32 %v1850_v39  ;;  %v2416_v31 = vpop.xlane.xlu1 %2415  ;;  %v2684_v39 = vadd.f32 %v13101_v5, %v13095_v48  ;;  %v1856_v25 = vmul.f32 1.442695, %v1742_v29 }
 0x499   : > { %16173 = vst [vmem:[#allocation91_spill] sm:$0xff] %v13107_v0  ;;  %v13111_v19 = vpop.eup %10931  ;;  %10951 = vpow2.f32 %v2587_v61  ;;  %v16180_v61 = vld [vmem:[#allocation59_spill] sm:$0xff]  ;;  %v1944_v60 = vadd.f32 %v13107_v0, %v13092_v16  ;;  %v2595_v9 = vmul.f32 1.442695, %v2483_v55  ;;  %v2597_v0 = vmul.f32 1.442695, %v2484_v53 }
 0x49a   : > { %16175 = vst [vmem:[#allocation93_spill] sm:$0xff] %v13111_v19  ;;  %v13114_v58 = vpop.eup %10933  ;;  %10953 = vpow2.f32 %v2589_v62  ;;  %v1744_v4 = vsub.f32 %v16180_v61, %v12903_v40  ;;  %v2485_v62 = vsub.f32 %v16182_v14, %v2416_v31  ;;  %v16185_v61 = vld [vmem:[#allocation60_spill] sm:$0xff] }
 0x49b   : > { %16177 = vst [vmem:[#allocation44_spill] sm:$0xff] %v13114_v58  ;;  %v13119_v22 = vpop.eup %10935  ;;  %10955 = vpow2.f32 %v1852_v28  ;;  %2685 = vadd.xlane.f32.xlu1 %v2684_v39  ;;  %1945 = vadd.xlane.f32.xlu0 %v1944_v60  ;;  %v16184_v28 = vld [vmem:[#allocation113_spill] sm:$0xff]  ;;  %v1745_v16 = vsub.f32 %v16185_v61, %v12903_v40  ;;  %v1947_v30 = vadd.f32 %v13114_v58, %v13111_v19  ;;  %v16188_v40 = vld [vmem:[#allocation62_spill] sm:$0xff] }
 0x49c   : > { %16179 = vst [vmem:[#allocation124_spill] sm:$0xff] %v13119_v22  ;;  %v13125_v43 = vpop.eup %10937  ;;  %10957 = vpow2.f32 %v2591_v50  ;;  %v2486_v29 = vsub.f32 %v16184_v28, %v2416_v31  ;;  %v1860_v39 = vmul.f32 1.442695, %v1744_v4  ;;  %v1747_v53 = vsub.f32 %v16188_v40, %v12921_v11  ;;  %v16190_v4 = vld [vmem:[#allocation114_spill] sm:$0xff] }
 0x49d   : > { %16181 = vst [vmem:[#allocation45_spill] sm:$0xff] %v13125_v43  ;;  %v13128_v2 = vpop.eup %10939  ;;  %10959 = vpow2.f32 %v2593_v49  ;;  %v16186_v49 = vld [vmem:[#allocation61_spill] sm:$0xff]  ;;  %v2687_v31 = vadd.f32 %v13125_v43, %v13119_v22  ;;  %v1862_v43 = vmul.f32 1.442695, %v1745_v16  ;;  %v16192_v22 = vld [vmem:[#allocation115_spill] sm:$0xff]  ;;  %v16196_v16 = vld [vmem:[#allocation116_spill] sm:$0xff] }
 0x49e   : > { %16183 = vst [vmem:[#allocation94_spill] sm:$0xff] %v13128_v2  ;;  %v13131_v52 = vpop.eup %10941  ;;  %10961 = vpow2.f32 %v1854_v17  ;;  %v1746_v55 = vsub.f32 %v16186_v49, %v12921_v11  ;;  %v2419_v60 = vpop.xlane.xlu0 %2418  ;;  %v2599_v17 = vmul.f32 1.442695, %v2485_v62  ;;  %v1866_v40 = vmul.f32 1.442695, %v1747_v53 }
 0x49f   : > { %v13137_v50 = vpop.eup %10943  ;;  %10963 = vpow2.f32 %v1856_v25  ;;  %1948 = vadd.xlane.f32.xlu1 %v1947_v30  ;;  %v2601_v25 = vmul.f32 1.442695, %v2486_v29  ;;  %2688 = vadd.xlane.f32.xlu0 %v2687_v31  ;;  %v2487_v61 = vsub.f32 %v16190_v4, %v2419_v60  ;;  %v2488_v58 = vsub.f32 %v16192_v22, %v2419_v60 }
 0x4a0   : > { %v13143_v14 = vpop.eup %10945  ;;  %10965 = vpow2.f32 %v1858_v35  ;;  %v2422_v49 = vpop.xlane.xlu1 %2421  ;;  %v2690_v35 = vadd.f32 %v13137_v50, %v13131_v52  ;;  %v1864_v62 = vmul.f32 1.442695, %v1746_v55 }
 0x4a1   : > { %16187 = vst [vmem:[#allocation46_spill] sm:$0xff] %v13143_v14  ;;  %v13147_v28 = vpop.eup %10947  ;;  %10967 = vpow2.f32 %v2595_v9  ;;  %v16194_v9 = vld [vmem:[#allocation63_spill] sm:$0xff]  ;;  %v1950_v30 = vadd.f32 %v13143_v14, %v13128_v2  ;;  %v2603_v60 = vmul.f32 1.442695, %v2487_v61  ;;  %v2605_v14 = vmul.f32 1.442695, %v2488_v58 }
 0x4a2   : > { %16189 = vst [vmem:[#allocation95_spill] sm:$0xff] %v13147_v28  ;;  %v13150_v19 = vpop.eup %10949  ;;  %10969 = vpow2.f32 %v2597_v0  ;;  %v1748_v29 = vsub.f32 %v16194_v9, %v12967_v8  ;;  %v2489_v0 = vsub.f32 %v16196_v16, %v2422_v49  ;;  %v16199_v9 = vld [vmem:[#allocation64_spill] sm:$0xff] }
 0x4a3   : > { %16191 = vst [vmem:[#allocation96_spill] sm:$0xff] %v13150_v19  ;;  %v13155_v11 = vpop.eup %10951  ;;  %10971 = vpow2.f32 %v1860_v39  ;;  %2691 = vadd.xlane.f32.xlu1 %v2690_v35  ;;  %1951 = vadd.xlane.f32.xlu0 %v1950_v30  ;;  %v16198_v39 = vld [vmem:[#allocation117_spill] sm:$0xff]  ;;  %v1749_v2 = vsub.f32 %v16199_v9, %v12967_v8  ;;  %v1953_v53 = vadd.f32 %v13150_v19, %v13147_v28  ;;  %v16201_v8 = vld [vmem:[#allocation66_spill] sm:$0xff] }
 0x4a4   : > { %16193 = vst [vmem:[#allocation97_spill] sm:$0xff] %v13155_v11  ;;  %v13161_v31 = vpop.eup %10953  ;;  %10973 = vpow2.f32 %v2599_v17  ;;  %v2490_v55 = vsub.f32 %v16198_v39, %v2422_v49  ;;  %v1868_v35 = vmul.f32 1.442695, %v1748_v29  ;;  %v1751_v58 = vsub.f32 %v16201_v8, %v12983_v27  ;;  %v16202_v29 = vld [vmem:[#allocation118_spill] sm:$0xff] }
 0x4a5   : > { %16195 = vst [vmem:[#allocation98_spill] sm:$0xff] %v13161_v31  ;;  %v13164_v22 = vpop.eup %10955  ;;  %10975 = vpow2.f32 %v2601_v25  ;;  %v16200_v25 = vld [vmem:[#allocation65_spill] sm:$0xff]  ;;  %v2693_v49 = vadd.f32 %v13161_v31, %v13155_v11  ;;  %v1870_v31 = vmul.f32 1.442695, %v1749_v2  ;;  %v16203_v11 = vld [vmem:[#allocation119_spill] sm:$0xff] }
 0x4a6   : > { %16197 = vst [vmem:[#allocation47_spill] sm:$0xff] %v13164_v22  ;;  %v13167_v4 = vpop.eup %10957  ;;  %10977 = vpow2.f32 %v1862_v43  ;;  %v1750_v61 = vsub.f32 %v16200_v25, %v12983_v27  ;;  %v2425_v30 = vpop.xlane.xlu0 %2424  ;;  %v2607_v43 = vmul.f32 1.442695, %v2489_v0 }
 0x4a7   : > { %v13173_v17 = vpop.eup %10959  ;;  %10979 = vpow2.f32 %v1864_v62  ;;  %1954 = vadd.xlane.f32.xlu1 %v1953_v53  ;;  %v2609_v62 = vmul.f32 1.442695, %v2490_v55  ;;  %2694 = vadd.xlane.f32.xlu0 %v2693_v49  ;;  %v2491_v9 = vsub.f32 %v16202_v29, %v2425_v30  ;;  %v2492_v19 = vsub.f32 %v16203_v11, %v2425_v30  ;;  %v16204_v49 = vld [vmem:[#allocation120_spill] sm:$0xff]  ;;  %v16205_v30 = vld [vmem:[#allocation121_spill] sm:$0xff] }
 0x4a8   : > { %v13179_v16 = vpop.eup %10961  ;;  %10981 = vpow2.f32 %v1866_v40  ;;  %v2428_v25 = vpop.xlane.xlu1 %2427  ;;  %v2696_v40 = vadd.f32 %v13173_v17, %v13167_v4  ;;  %v1872_v0 = vmul.f32 1.442695, %v1750_v61  ;;  %v1874_v53 = vmul.f32 1.442695, %v1751_v58 }
 0x4a9   : > { %v13183_v39 = vpop.eup %10963  ;;  %10983 = vpow2.f32 %v2603_v60  ;;  %v1956_v60 = vadd.f32 %v13179_v16, %v13164_v22  ;;  %v2493_v2 = vsub.f32 %v16204_v49, %v2428_v25  ;;  %v2611_v11 = vmul.f32 1.442695, %v2491_v9 }
 0x4aa   : > { %v13186_v28 = vpop.eup %10965  ;;  %10985 = vpow2.f32 %v2605_v14  ;;  %v2494_v8 = vsub.f32 %v16205_v30, %v2428_v25 }
 0x4ab   : > { %v13191_v27 = vpop.eup %10967  ;;  %10987 = vpow2.f32 %v1868_v35  ;;  %2697 = vadd.xlane.f32.xlu1 %v2696_v40  ;;  %1957 = vadd.xlane.f32.xlu0 %v1956_v60  ;;  %v2613_v35 = vmul.f32 1.442695, %v2492_v19  ;;  %v1959_v61 = vadd.f32 %v13186_v28, %v13183_v39 }
 0x4ac   : > { %v13195_v55 = vpop.eup %10969  ;;  %10989 = vpow2.f32 %v2607_v43  ;;  %v2617_v25 = vmul.f32 1.442695, %v2494_v8 }
 0x4ad   : > { %v13198_v14 = vpop.eup %10971  ;;  %10991 = vpow2.f32 %v2609_v62  ;;  %v2699_v58 = vadd.f32 %v13195_v55, %v13191_v27  ;;  %v2615_v62 = vmul.f32 1.442695, %v2493_v2 }
 0x4ae   : > { %v13201_v29 = vpop.eup %10973  ;;  %10993 = vpow2.f32 %v1870_v31 }
 0x4af   : > { %v13205_v22 = vpop.eup %10975  ;;  %10995 = vpow2.f32 %v1872_v0  ;;  %1960 = vadd.xlane.f32.xlu1 %v1959_v61  ;;  %2700 = vadd.xlane.f32.xlu0 %v2699_v58 }
 0x4b0   : > { %v13209_v43 = vpop.eup %10977  ;;  %10997 = vpow2.f32 %v1874_v53  ;;  %v2702_v31 = vadd.f32 %v13205_v22, %v13201_v29 }
 0x4b1   : > { %v13211_v9 = vpop.eup %10979  ;;  %10999 = vpow2.f32 %v2611_v11  ;;  %v1962_v0 = vadd.f32 %v13209_v43, %v13198_v14 }
 0x4b2   : > { %16206 = vst [vmem:[#allocation87_spill] sm:$0xff] %v13211_v9  ;;  %v13213_v19 = vpop.eup %10981  ;;  %11001 = vpow2.f32 %v2613_v35 }
 0x4b3   : > { %v13217_v40 = vpop.eup %10983  ;;  %11003 = vpow2.f32 %v2615_v62  ;;  %2703 = vadd.xlane.f32.xlu1 %v2702_v31  ;;  %1963 = vadd.xlane.f32.xlu0 %v1962_v0  ;;  %v1965_v2 = vadd.f32 %v13213_v19, %v13211_v9 }
 0x4b4   : > { %16207 = vst [vmem:[#allocation99_spill] sm:$0xff] %v13217_v40  ;;  %v13221_v60 = vpop.eup %10985  ;;  %11005 = vpow2.f32 %v2617_v25 }
 0x4b5   : > { %16208 = vst [vmem:[#allocation92_spill] sm:$0xff] %v13221_v60  ;;  %v13223_v53 = vpop.eup %10987  ;;  %v2705_v30 = vadd.f32 %v13221_v60, %v13217_v40 }
 0x4b6   : > { %16209 = vst [vmem:[#allocation86_spill] sm:$0xff] %v13223_v53  ;;  %v13225_v49 = vpop.eup %10989 }
 0x4b7   : > { %16210 = vst [vmem:[#allocation90_spill] sm:$0xff] %v13225_v49  ;;  %v13229_v11 = vpop.eup %10991  ;;  %1966 = vadd.xlane.f32.xlu1 %v1965_v2  ;;  %2706 = vadd.xlane.f32.xlu0 %v2705_v30 }
 0x4b8   : > { %16211 = vst [vmem:[#allocation100_spill] sm:$0xff] %v13229_v11  ;;  %v13233_v8 = vpop.eup %10993  ;;  %v2708_v58 = vadd.f32 %v13229_v11, %v13225_v49 }
 0x4b9   : > { %16212 = vst [vmem:[#allocation101_spill] sm:$0xff] %v13233_v8  ;;  %v13235_v35 = vpop.eup %10995  ;;  %v1968_v25 = vadd.f32 %v13233_v8, %v13223_v53 }
 0x4ba   : > { %16213 = vst [vmem:[#allocation48_spill] sm:$0xff] %v13235_v35  ;;  %v13237_v61 = vpop.eup %10997 }
 0x4bb   : > { %16214 = vst [vmem:[#allocation49_spill] sm:$0xff] %v13237_v61  ;;  %v13241_v62 = vpop.eup %10999  ;;  %2709 = vadd.xlane.f32.xlu1 %v2708_v58  ;;  %1969 = vadd.xlane.f32.xlu0 %v1968_v25  ;;  %v1971_v2 = vadd.f32 %v13237_v61, %v13235_v35 }
 0x4bc   : > { %16215 = vst [vmem:[#allocation50_spill] sm:$0xff] %v13241_v62  ;;  %v13245_v31 = vpop.eup %11001 }
 0x4bd   : > { %16216 = vst [vmem:[#allocation102_spill] sm:$0xff] %v13245_v31  ;;  %v13247_v0 = vpop.eup %11003  ;;  %v2711_v60 = vadd.f32 %v13245_v31, %v13241_v62 }
 0x4be   : > { %16217 = vst [vmem:[#allocation103_spill] sm:$0xff] %v13247_v0  ;;  %v13251_v30 = vpop.eup %11005 }
 0x4bf   : > { %16218 = vst [vmem:[#allocation51_spill] sm:$0xff] %v13251_v30  ;;  %1972 = vadd.xlane.f32.xlu1 %v1971_v2  ;;  %2712 = vadd.xlane.f32.xlu0 %v2711_v60  ;;  %v2714_v11 = vadd.f32 %v13251_v30, %v13247_v0 }
 0x4c3   : > { %2715 = vadd.xlane.f32.xlu1 %v2714_v11 }
 0x4d6   : > { %v2629_v53 = vpop.xlane.xlu0 %2628 }
 0x4d7   : > { %11007 = vrcp.f32 %v2629_v53 }
 0x4da   : > { %v1904_v58 = vpop.xlane.xlu0 %1903  ;;  %v2632_v25 = vpop.xlane.xlu1 %2631 }
 0x4db   : > { %11009 = vrcp.f32 %v1904_v58 }
 0x4dc   : > { %11011 = vrcp.f32 %v2632_v25 }
 0x4de   : > { %v1907_v8 = vpop.xlane.xlu1 %1906 }
 0x4df   : > { %11013 = vrcp.f32 %v1907_v8 }
 0x4e1   : > { %v2635_v35 = vpop.xlane.xlu0 %2634  ;;  %v11008_v61 = vpop.eup %11007 }
 0x4e2   : > { %11015 = vrcp.f32 %v2635_v35  ;;  %v2755_v53 = vmul.f32 %v11008_v61, %v12763_v46  ;;  %v2756_v31 = vmul.f32 %v11008_v61, %v12765_v20 }
 0x4e5   : > { %v2638_v49 = vpop.xlane.xlu1 %2637  ;;  %v1688_v40 = vpop.xlane.xlu0 %1687 }
 0x4e6   : > { %11017 = vrcp.f32 %v2638_v49  ;;  %v11010_v2 = vpop.eup %11009  ;;  %v1752_v60 = vsub.f32 %v12454_v44, %v1688_v40  ;;  %v1753_v30 = vsub.f32 %v12456_v18, %v1688_v40 }
 0x4e7   : > { %v11012_v11 = vpop.eup %11011  ;;  %v2025_v46 = vmul.f32 %v11010_v2, %v12774_v10 }
 0x4e8   : > { %v2757_v58 = vmul.f32 %v11012_v11, %v12781_v47  ;;  %v1876_v25 = vmul.f32 1.442695, %v1752_v60  ;;  %v1878_v8 = vmul.f32 1.442695, %v1753_v30  ;;  %v2758_v35 = vmul.f32 %v11012_v11, %v12783_v54 }
 0x4e9   : > { %v1691_v0 = vpop.xlane.xlu1 %1690  ;;  %v2641_v62 = vpop.xlane.xlu0 %2640  ;;  %v2024_v60 = vmul.f32 %v11010_v2, %v12769_v1 }
 0x4ea   : > { %v1754_v49 = vsub.f32 %v16067_v34, %v1691_v0  ;;  %v1755_v9 = vsub.f32 %v16068_v33, %v1691_v0  ;;  %v11014_v44 = vpop.eup %11013  ;;  %11019 = vpow2.f32 %v1876_v25  ;;  %v2820_v18 = vpack.c.bf16 %v2758_v35, %v2756_v31 }
 0x4eb   : > { %v2819_v40 = vpack.c.bf16 %v2757_v58, %v2755_v53  ;;  %11021 = vpow2.f32 %v1878_v8  ;;  %v2027_v47 = vmul.f32 %v11014_v44, %v12794_v41  ;;  %v2026_v34 = vmul.f32 %v11014_v44, %v12787_v51 }
 0x4ec   : > { %v1880_v20 = vmul.f32 1.442695, %v1754_v49  ;;  %v1882_v61 = vmul.f32 1.442695, %v1755_v9  ;;  %v11016_v30 = vpop.eup %11015  ;;  %11023 = vrcp.f32 %v2641_v62  ;;  %2883 = vmatprep.mubr.bf16.mxu0 %v2820_v18 }
 0x4ed   : > { %v2644_v54 = vpop.xlane.xlu1 %2643  ;;  %v2431_v33 = vpop.xlane.xlu0 %2430  ;;  %2884 = vmatmul.mubr.bf16.vlgmr.msra.gmra.mrb[240].mxu0 %v2819_v40  ;;  %v2083_v31 = vpack.c.bf16 %v2027_v47, %v2025_v46  ;;  %v2082_v9 = vpack.c.bf16 %v2026_v34, %v2024_v60  ;;  %v2760_v41 = vmul.f32 %v11016_v30, %v12810_v23  ;;  %v2759_v62 = vmul.f32 %v11016_v30, %v12807_v32  ;;  %v16219_v47 = vld [vmem:[#allocation130_spill] sm:$0xff]  ;;  %v16221_v34 = vld [vmem:[#allocation129_spill] sm:$0xff] }
 0x4ee   : > { %11025 = vpow2.f32 %v1880_v20  ;;  %v2495_v10 = vsub.f32 %v12709_v3, %v2431_v33  ;;  %v2496_v0 = vsub.f32 %v12711_v63, %v2431_v33 }
 0x4ef   : > { %11027 = vpow2.f32 %v1882_v61  ;;  %3068 = vmatprep.mubr.bf16.mxu1 %v2083_v31  ;;  %v16222_v31 = vld [vmem:[#allocation133_spill] sm:$0xff] }
 0x4f0   : > { %v11018_v11 = vpop.eup %11017  ;;  %11029 = vrcp.f32 %v2644_v54  ;;  %v2619_v1 = vmul.f32 1.442695, %v2495_v10  ;;  %v2621_v2 = vmul.f32 1.442695, %v2496_v0  ;;  %3069 = vmatmul.mubr.bf16.gmra.mrb[28].mxu1 %v2082_v9  ;;  %v16220_v54 = vld [vmem:[#allocation67_spill] sm:$0xff] }
 0x4f1   : > { %v2434_v51 = vpop.xlane.xlu1 %2433  ;;  %v2762_v53 = vmul.f32 %v11018_v11, %v12827_v12  ;;  %v2761_v58 = vmul.f32 %v11018_v11, %v12823_v42  ;;  %v2647_v25 = vpop.xlane.xlu0 %2646 }
 0x4f2   : > { %v2497_v3 = vsub.f32 %v12713_v37, %v2434_v51  ;;  %v2498_v63 = vsub.f32 %v12717_v13, %v2434_v51  ;;  %11031 = vpow2.f32 %v2619_v1 }
 0x4f3   : > { %v2822_v8 = vpack.c.bf16 %v2762_v53, %v2760_v41  ;;  %v2821_v35 = vpack.c.bf16 %v2761_v58, %v2759_v62  ;;  %11033 = vpow2.f32 %v2621_v2 }
 0x4f4   : > { %v2623_v23 = vmul.f32 1.442695, %v2497_v3  ;;  %v2625_v49 = vmul.f32 1.442695, %v2498_v63  ;;  %v13277_v32 = vpop.eup %11019  ;;  %11035 = vrcp.f32 %v2647_v25 }
 0x4f5   : > { %2891 = vmatprep.mubr.bf16.mxu0 %v2822_v8  ;;  %v2650_v44 = vpop.xlane.xlu1 %2649  ;;  %v13279_v18 = vpop.eup %11021 }
 0x4f6   : > { %11037 = vpow2.f32 %v2623_v23  ;;  %v1910_v42 = vpop.xlane.xlu0 %1909  ;;  %2892 = vmatmul.mubr.bf16.gmra.mrb[244].mxu0 %v2821_v35  ;;  %v11024_v12 = vpop.eup %11023  ;;  %v1974_v37 = vadd.f32 %v13279_v18, %v13277_v32  ;;  %v16223_v23 = vld [vmem:[#allocation71_spill] sm:$0xff] }
 0x4f7   : > { %11039 = vpow2.f32 %v2625_v49  ;;  %v2764_v30 = vmul.f32 %v11024_v12, %v16219_v47  ;;  %v2763_v33 = vmul.f32 %v11024_v12, %v16221_v34  ;;  %v16224_v12 = vld [vmem:[#allocation35_spill] sm:$0xff] }
 0x4f8   : > { %v13283_v13 = vpop.eup %11025  ;;  %11041 = vrcp.f32 %v1910_v42  ;;  %1975 = vadd.xlane.f32.xlu0 %v1974_v37 }
 0x4f9   : > { %v13285_v40 = vpop.eup %11027  ;;  %11043 = vrcp.f32 %v2650_v44  ;;  %v1913_v46 = vpop.xlane.xlu1 %1912 }
 0x4fa   : > { %v11030_v20 = vpop.eup %11029  ;;  %11045 = vrcp.f32 %v1913_v46  ;;  %v1977_v61 = vadd.f32 %v13285_v40, %v13283_v13  ;;  %v16225_v46 = vld [vmem:[#allocation135_spill] sm:$0xff] }
 0x4fb   : > { %v2766_v60 = vmul.f32 %v11030_v20, %v16220_v54  ;;  %v2765_v10 = vmul.f32 %v11030_v20, %v16222_v31  ;;  %v2653_v0 = vpop.xlane.xlu0 %2652 }
 0x4fc   : > { %1978 = vadd.xlane.f32.xlu1 %v1977_v61  ;;  %v13293_v9 = vpop.eup %11031  ;;  %11047 = vrcp.f32 %v2653_v0  ;;  %v16226_v61 = vld [vmem:[#allocation72_spill] sm:$0xff] }
 0x4fd   : > { %v2824_v11 = vpack.c.bf16 %v2766_v60, %v2764_v30  ;;  %v2823_v41 = vpack.c.bf16 %v2765_v10, %v2763_v33  ;;  %v13295_v62 = vpop.eup %11033  ;;  %v16227_v30 = vld [vmem:[#allocation126_spill] sm:$0xff]  ;;  %v16228_v60 = vld [vmem:[#allocation128_spill] sm:$0xff]  ;;  %v16229_v33 = vld [vmem:[#allocation125_spill] sm:$0xff] }
 0x4fe   : > { %v11036_v1 = vpop.eup %11035  ;;  %v2717_v2 = vadd.f32 %v13295_v62, %v13293_v9  ;;  %v16230_v10 = vld [vmem:[#allocation127_spill] sm:$0xff] }
 0x4ff   : > { %2899 = vmatprep.mubr.bf16.mxu0 %v2824_v11  ;;  %v2656_v51 = vpop.xlane.xlu1 %2655  ;;  %v1916_v58 = vpop.xlane.xlu0 %1915  ;;  %v2768_v49 = vmul.f32 %v11036_v1, %v16223_v23  ;;  %v2767_v20 = vmul.f32 %v11036_v1, %v16225_v46  ;;  %v16231_v23 = vld [vmem:[#allocation69_spill] sm:$0xff] }
 0x500   : > { %v13299_v53 = vpop.eup %11037  ;;  %2900 = vmatmul.mubr.bf16.gmra.mrb[248].mxu0 %v2823_v41  ;;  %11049 = vrcp.f32 %v2656_v51  ;;  %2718 = vadd.xlane.f32.xlu0 %v2717_v2 }
 0x501   : > { %v13301_v25 = vpop.eup %11039  ;;  %11051 = vrcp.f32 %v1916_v58 }
 0x502   : > { %v11042_v3 = vpop.eup %11041  ;;  %v2720_v63 = vadd.f32 %v13301_v25, %v13299_v53 }
 0x503   : > { %v11044_v8 = vpop.eup %11043  ;;  %v1919_v35 = vpop.xlane.xlu1 %1918  ;;  %v2029_v54 = vmul.f32 %v11042_v3, %v16227_v30  ;;  %v2028_v31 = vmul.f32 %v11042_v3, %v16229_v33  ;;  %v16232_v3 = vld [vmem:[#allocation70_spill] sm:$0xff] }
 0x504   : > { %v11046_v44 = vpop.eup %11045  ;;  %2721 = vadd.xlane.f32.xlu1 %v2720_v63  ;;  %v2659_v42 = vpop.xlane.xlu0 %2658  ;;  %11053 = vrcp.f32 %v1919_v35  ;;  %v2770_v37 = vmul.f32 %v11044_v8, %v16224_v12  ;;  %v2769_v47 = vmul.f32 %v11044_v8, %v16226_v61  ;;  %v16236_v33 = vld [vmem:[#allocation134_spill] sm:$0xff] }
 0x505   : > { %v2031_v34 = vmul.f32 %v11046_v44, %v16228_v60  ;;  %v2030_v0 = vmul.f32 %v11046_v44, %v16230_v10  ;;  %11055 = vrcp.f32 %v2659_v42  ;;  %v16233_v44 = vld [vmem:[#allocation73_spill] sm:$0xff]  ;;  %v16235_v60 = vld [vmem:[#allocation132_spill] sm:$0xff]  ;;  %v16237_v10 = vld [vmem:[#allocation131_spill] sm:$0xff] }
 0x506   : > { %v2826_v11 = vpack.c.bf16 %v2770_v37, %v2768_v49  ;;  %v2825_v41 = vpack.c.bf16 %v2769_v47, %v2767_v20  ;;  %v11048_v58 = vpop.eup %11047  ;;  %v16234_v37 = vld [vmem:[#allocation74_spill] sm:$0xff] }
 0x507   : > { %v2085_v2 = vpack.c.bf16 %v2031_v34, %v2029_v54  ;;  %v2084_v51 = vpack.c.bf16 %v2030_v0, %v2028_v31  ;;  %v2771_v12 = vmul.f32 %v11048_v58, %v16231_v23  ;;  %v2772_v49 = vmul.f32 %v11048_v58, %v16233_v44  ;;  %v16239_v23 = vld [vmem:[#allocation123_spill] sm:$0xff] }
 0x508   : > { %2907 = vmatprep.mubr.bf16.mxu0 %v2826_v11  ;;  %v1922_v63 = vpop.xlane.xlu0 %1921  ;;  %v2662_v1 = vpop.xlane.xlu1 %2661  ;;  %v16238_v11 = vld [vmem:[#allocation68_spill] sm:$0xff] }
 0x509   : > { %2908 = vmatmul.mubr.bf16.gmra.mrb[252].mxu0 %v2825_v41  ;;  %3076 = vmatprep.mubr.bf16.mxu1 %v2085_v2  ;;  %11057 = vrcp.f32 %v2662_v1 }
 0x50a   : > { %v11050_v8 = vpop.eup %11049  ;;  %3077 = vmatmul.mubr.bf16.gmra.mrb[32].mxu1 %v2084_v51  ;;  %11059 = vrcp.f32 %v1922_v63 }
 0x50b   : > { %v11052_v35 = vpop.eup %11051  ;;  %v2773_v46 = vmul.f32 %v11050_v8, %v16232_v3  ;;  %v2774_v20 = vmul.f32 %v11050_v8, %v16234_v37  ;;  %v16240_v3 = vld [vmem:[#allocation82_spill] sm:$0xff]  ;;  %v16242_v37 = vld [vmem:[#allocation83_spill] sm:$0xff] }
 0x50c   : > { %v1925_v42 = vpop.xlane.xlu1 %1924  ;;  %v2665_v54 = vpop.xlane.xlu0 %2664  ;;  %v2033_v34 = vmul.f32 %v11052_v35, %v16235_v60  ;;  %v2032_v0 = vmul.f32 %v11052_v35, %v16237_v10  ;;  %v16244_v10 = vld [vmem:[#allocation77_spill] sm:$0xff] }
 0x50d   : > { %v2827_v61 = vpack.c.bf16 %v2773_v46, %v2771_v12  ;;  %v2828_v47 = vpack.c.bf16 %v2774_v20, %v2772_v49  ;;  %11061 = vrcp.f32 %v1925_v42  ;;  %v16241_v49 = vld [vmem:[#allocation39_spill] sm:$0xff] }
 0x50e   : > { %v11054_v30 = vpop.eup %11053  ;;  %11063 = vrcp.f32 %v2665_v54 }
 0x50f   : > { %2915 = vmatprep.mubr.bf16.mxu0 %v2828_v47  ;;  %v2035_v31 = vmul.f32 %v11054_v30, %v16236_v33  ;;  %v2034_v41 = vmul.f32 %v11054_v30, %v16238_v11  ;;  %v11056_v63 = vpop.eup %11055  ;;  %v16243_v33 = vld [vmem:[#allocation37_spill] sm:$0xff]  ;;  %v16245_v11 = vld [vmem:[#allocation36_spill] sm:$0xff] }
 0x510   : > { %v2668_v2 = vpop.xlane.xlu1 %2667  ;;  %v1928_v1 = vpop.xlane.xlu0 %1927  ;;  %v2775_v12 = vmul.f32 %v11056_v63, %v16239_v23  ;;  %v2776_v35 = vmul.f32 %v11056_v63, %v16241_v49  ;;  %v10747_v63 = vld [vmem:[%s15678_s5] sm:$0xff]  }
 0x511   : > { %2916 = vmatmul.mubr.bf16.gmra.mrb[0].mxu0 %v2827_v61  ;;  %v2087_v51 = vpack.c.bf16 %v2035_v31, %v2033_v34  ;;  %v2086_v58 = vpack.c.bf16 %v2034_v41, %v2032_v0  ;;  %11065 = vrcp.f32 %v2668_v2  ;;  %v16246_v2 = vld [vmem:[#allocation38_spill] sm:$0xff]  ;;  %9999 = vmatprep.subr.bf16.mxu0 %v10747_v63 }
 0x512   : > { %11067 = vrcp.f32 %v1928_v1  ;;  %10000 = vmatpush3.bf16.msra.mxu0 %v10747_v63  ;;  %v10749_v63 = vld [vmem:[%s15678_s5 + $0x10] sm:$0xff]  }
 0x513   : > { %3084 = vmatprep.mubr.bf16.mxu1 %v2087_v51  ;;  %v11058_v8 = vpop.eup %11057 }
 0x514   : > { %3085 = vmatmul.mubr.bf16.gmra.mrb[36].mxu1 %v2086_v58  ;;  %v2777_v46 = vmul.f32 %v11058_v8, %v16240_v3  ;;  %v1931_v44 = vpop.xlane.xlu1 %1930  ;;  %v2778_v20 = vmul.f32 %v11058_v8, %v16242_v37  ;;  %v11060_v42 = vpop.eup %11059  ;;  %v16249_v37 = vld [vmem:[#allocation84_spill] sm:$0xff] }
 0x515   : > { %v2671_v61 = vpop.xlane.xlu0 %2670  ;;  %11069 = vrcp.f32 %v1931_v44  ;;  %v2037_v31 = vmul.f32 %v11060_v42, %v16243_v33  ;;  %v2036_v41 = vmul.f32 %v11060_v42, %v16245_v11  ;;  %v16248_v44 = vld [vmem:[#allocation85_spill] sm:$0xff]  ;;  %v16250_v42 = vld [vmem:[#allocation76_spill] sm:$0xff]  ;;  %v16252_v11 = vld [vmem:[#allocation79_spill] sm:$0xff] }
 0x516   : > { %v2829_v47 = vpack.c.bf16 %v2777_v46, %v2775_v12  ;;  %v2830_v30 = vpack.c.bf16 %v2778_v20, %v2776_v35  ;;  %11071 = vrcp.f32 %v2671_v61  ;;  %v16247_v12 = vld [vmem:[#allocation40_spill] sm:$0xff] }
 0x517   : > { %v11062_v54 = vpop.eup %11061 }
 0x518   : > { %v11064_v60 = vpop.eup %11063  ;;  %2923 = vmatprep.mubr.bf16.mxu0 %v2830_v30  ;;  %v2674_v34 = vpop.xlane.xlu1 %2673  ;;  %v2039_v0 = vmul.f32 %v11062_v54, %v16244_v10  ;;  %v2038_v51 = vmul.f32 %v11062_v54, %v16246_v2 }
 0x519   : > { %v1934_v58 = vpop.xlane.xlu0 %1933  ;;  %11073 = vrcp.f32 %v2674_v34  ;;  %2924 = vmatmul.mubr.bf16.gmra.mrb[4].mxu0 %v2829_v47  ;;  %v2779_v3 = vmul.f32 %v11064_v60, %v16247_v12  ;;  %v2780_v20 = vmul.f32 %v11064_v60, %v16249_v37  ;;  %v10748_v34 = vld [vmem:[%s15678_s5 + $0x8] sm:$0xff]  }
 0x51a   : > { %v2089_v1 = vpack.c.bf16 %v2039_v0, %v2037_v31  ;;  %v2088_v8 = vpack.c.bf16 %v2038_v51, %v2036_v41  ;;  %11075 = vrcp.f32 %v1934_v58  ;;  %v16251_v31 = vld [vmem:[#allocation81_spill] sm:$0xff]  ;;  %10001 = vmatprep.subr.bf16.mxu0 %v10748_v34 }
 0x51b   : > { %v11066_v23 = vpop.eup %11065  ;;  %10002 = vmatpush3.bf16.msra.mxu0 %v10748_v34 }
 0x51c   : > { %v11068_v46 = vpop.eup %11067  ;;  %v2781_v49 = vmul.f32 %v11066_v23, %v16248_v44  ;;  %3092 = vmatprep.mubr.bf16.mxu1 %v2089_v1  ;;  %v1937_v35 = vpop.xlane.xlu1 %1936  ;;  %v2782_v61 = vmul.f32 %v11066_v23, %v16250_v42  ;;  %10003 = vmatprep.subr.bf16.mxu0 %v10749_v63 }
 0x51d   : > { %v2677_v47 = vpop.xlane.xlu0 %2676  ;;  %11077 = vrcp.f32 %v1937_v35  ;;  %3093 = vmatmul.mubr.bf16.gmra.mrb[40].mxu1 %v2088_v8  ;;  %v2041_v10 = vmul.f32 %v11068_v46, %v16251_v31  ;;  %v2040_v41 = vmul.f32 %v11068_v46, %v16252_v11  ;;  %v16253_v31 = vld [vmem:[#allocation75_spill] sm:$0xff] }
 0x51e   : > { %v2831_v30 = vpack.c.bf16 %v2781_v49, %v2779_v3  ;;  %v2832_v54 = vpack.c.bf16 %v2782_v61, %v2780_v20  ;;  %11079 = vrcp.f32 %v2677_v47 }
 0x51f   : > { %v11070_v33 = vpop.eup %11069  ;;  %10004 = vmatpush3.bf16.msra.mxu0 %v10749_v63  ;;  %v16255_v63 = vld [vmem:[#allocation122_spill] sm:$0xff] }
 0x520   : > { %2931 = vmatprep.mubr.bf16.mxu0 %v2832_v54  ;;  %v2680_v0 = vpop.xlane.xlu1 %2679  ;;  %v2043_v60 = vmul.f32 %v11070_v33, %v12965_v6  ;;  %v2042_v2 = vmul.f32 %v11070_v33, %v12963_v45  ;;  %v11072_v51 = vpop.eup %11071  ;;  %v10750_v6 = vld [vmem:[%s15678_s5 + $0x18] sm:$0xff]  }
 0x521   : > { %v1940_v58 = vpop.xlane.xlu0 %1939  ;;  %11081 = vrcp.f32 %v2680_v0  ;;  %2932 = vmatmul.mubr.bf16.gmra.mrb[8].mxu0 %v2831_v30  ;;  %v2783_v45 = vmul.f32 %v11072_v51, %v13013_v56  ;;  %v2784_v46 = vmul.f32 %v11072_v51, %v13016_v36  ;;  %10005 = vmatprep.subr.bf16.mxu0 %v10750_v6 }
 0x522   : > { %v2091_v1 = vpack.c.bf16 %v2043_v60, %v2041_v10  ;;  %v2090_v8 = vpack.c.bf16 %v2042_v2, %v2040_v41  ;;  %11083 = vrcp.f32 %v1940_v58 }
 0x523   : > { %v11074_v23 = vpop.eup %11073  ;;  %10006 = vmatpush3.bf16.msra.mxu0 %v10750_v6 }
 0x524   : > { %v2785_v12 = vmul.f32 %v11074_v23, %v13039_v21  ;;  %3100 = vmatprep.mubr.bf16.mxu1 %v2091_v1  ;;  %v1943_v3 = vpop.xlane.xlu1 %1942  ;;  %v2786_v44 = vmul.f32 %v11074_v23, %v13043_v26  ;;  %v11076_v49 = vpop.eup %11075  ;;  %v16257_v23 = vld [vmem:[#allocation80_spill] sm:$0xff] }
 0x525   : > { %v2683_v35 = vpop.xlane.xlu0 %2682  ;;  %11085 = vrcp.f32 %v1943_v3  ;;  %3101 = vmatmul.mubr.bf16.gmra.mrb[44].mxu1 %v2090_v8  ;;  %v2045_v21 = vmul.f32 %v11076_v49, %v13021_v59  ;;  %v2044_v36 = vmul.f32 %v11076_v49, %v12977_v24  ;;  %v16256_v8 = vld [vmem:[#allocation42_spill] sm:$0xff] }
 0x526   : > { %v2833_v37 = vpack.c.bf16 %v2785_v12, %v2783_v45  ;;  %v2834_v20 = vpack.c.bf16 %v2786_v44, %v2784_v46  ;;  %11087 = vrcp.f32 %v2683_v35  ;;  %v16258_v45 = vld [vmem:[#allocation41_spill] sm:$0xff]  ;;  %v16259_v35 = vld [vmem:[#allocation88_spill] sm:$0xff] }
 0x527   : > { %v11078_v42 = vpop.eup %11077 }
 0x528   : > { %2939 = vmatprep.mubr.bf16.mxu0 %v2834_v20  ;;  %v2686_v56 = vpop.xlane.xlu1 %2685  ;;  %v2047_v61 = vmul.f32 %v11078_v42, %v13029_v7  ;;  %v2046_v26 = vmul.f32 %v11078_v42, %v13025_v38  ;;  %v11080_v47 = vpop.eup %11079  ;;  %v16254_v7 = vld [vmem:[#allocation78_spill] sm:$0xff] }
 0x529   : > { %v1946_v30 = vpop.xlane.xlu0 %1945  ;;  %11089 = vrcp.f32 %v2686_v56  ;;  %2940 = vmatmul.mubr.bf16.gmra.mrb[12].mxu0 %v2833_v37  ;;  %v2787_v10 = vmul.f32 %v11080_v47, %v16253_v31  ;;  %v2788_v60 = vmul.f32 %v11080_v47, %v16254_v7  ;;  %v16260_v56 = vld [vmem:[#allocation89_spill] sm:$0xff] }
 0x52a   : > { %v2093_v54 = vpack.c.bf16 %v2047_v61, %v2045_v21  ;;  %v2092_v34 = vpack.c.bf16 %v2046_v26, %v2044_v36  ;;  %11091 = vrcp.f32 %v1946_v30  ;;  %v16264_v7 = vld [vmem:[#allocation93_spill] sm:$0xff] }
 0x52b   : > { %v11082_v33 = vpop.eup %11081 }
 0x52c   : > { %v2789_v0 = vmul.f32 %v11082_v33, %v13061_v57  ;;  %3108 = vmatprep.mubr.bf16.mxu1 %v2093_v54  ;;  %v1949_v59 = vpop.xlane.xlu1 %1948  ;;  %v2790_v24 = vmul.f32 %v11082_v33, %v13067_v15  ;;  %v11084_v38 = vpop.eup %11083  ;;  %v16261_v33 = vld [vmem:[#allocation91_spill] sm:$0xff] }
 0x52d   : > { %v2689_v11 = vpop.xlane.xlu0 %2688  ;;  %11093 = vrcp.f32 %v1949_v59  ;;  %3109 = vmatmul.mubr.bf16.gmra.mrb[48].mxu1 %v2092_v34  ;;  %v2049_v1 = vmul.f32 %v11084_v38, %v16255_v63  ;;  %v2048_v6 = vmul.f32 %v11084_v38, %v16257_v23 }
 0x52e   : > { %v2835_v41 = vpack.c.bf16 %v2789_v0, %v2787_v10  ;;  %v2836_v2 = vpack.c.bf16 %v2790_v24, %v2788_v60  ;;  %11095 = vrcp.f32 %v2689_v11  ;;  %v16262_v10 = vld [vmem:[#allocation44_spill] sm:$0xff]  ;;  %v16263_v0 = vld [vmem:[#allocation43_spill] sm:$0xff] }
 0x52f   : > { %v11086_v51 = vpop.eup %11085 }
 0x530   : > { %2947 = vmatprep.mubr.bf16.mxu0 %v2836_v2  ;;  %v2692_v58 = vpop.xlane.xlu1 %2691  ;;  %v2051_v57 = vmul.f32 %v11086_v51, %v16256_v8  ;;  %v2050_v12 = vmul.f32 %v11086_v51, %v16258_v45  ;;  %v11088_v3 = vpop.eup %11087  ;;  %v16265_v51 = vld [vmem:[#allocation124_spill] sm:$0xff]  ;;  %v16266_v8 = vld [vmem:[#allocation45_spill] sm:$0xff] }
 0x531   : > { %v1952_v15 = vpop.xlane.xlu0 %1951  ;;  %11097 = vrcp.f32 %v2692_v58  ;;  %2948 = vmatmul.mubr.bf16.gmra.mrb[16].mxu0 %v2835_v41  ;;  %v2791_v37 = vmul.f32 %v11088_v3, %v16259_v35  ;;  %v2792_v21 = vmul.f32 %v11088_v3, %v16260_v56  ;;  %v16269_v56 = vld [vmem:[#allocation94_spill] sm:$0xff] }
 0x532   : > { %11099 = vrcp.f32 %v1952_v15  ;;  %v2095_v46 = vpack.c.bf16 %v2051_v57, %v2049_v1  ;;  %v2094_v44 = vpack.c.bf16 %v2050_v12, %v2048_v6 }
 0x533   : > { %v11090_v49 = vpop.eup %11089 }
 0x534   : > { %v2793_v20 = vmul.f32 %v11090_v49, %v13095_v48  ;;  %3116 = vmatprep.mubr.bf16.mxu1 %v2095_v46  ;;  %v1955_v42 = vpop.xlane.xlu1 %1954  ;;  %v2794_v61 = vmul.f32 %v11090_v49, %v13101_v5  ;;  %v11092_v36 = vpop.eup %11091 }
 0x535   : > { %v2695_v26 = vpop.xlane.xlu0 %2694  ;;  %11101 = vrcp.f32 %v1955_v42  ;;  %3117 = vmatmul.mubr.bf16.gmra.mrb[52].mxu1 %v2094_v44  ;;  %v2053_v31 = vmul.f32 %v11092_v36, %v16261_v33  ;;  %v2052_v59 = vmul.f32 %v11092_v36, %v16263_v0  ;;  %v16267_v44 = vld [vmem:[#allocation46_spill] sm:$0xff] }
 0x536   : > { %v2837_v47 = vpack.c.bf16 %v2793_v20, %v2791_v37  ;;  %v2838_v30 = vpack.c.bf16 %v2794_v61, %v2792_v21  ;;  %11103 = vrcp.f32 %v2695_v26  ;;  %v16268_v20 = vld [vmem:[#allocation96_spill] sm:$0xff]  ;;  %v16270_v21 = vld [vmem:[#allocation95_spill] sm:$0xff] }
 0x537   : > { %v11094_v54 = vpop.eup %11093 }
 0x538   : > { %2955 = vmatprep.mubr.bf16.mxu0 %v2838_v30  ;;  %v2698_v34 = vpop.xlane.xlu1 %2697  ;;  %v2055_v48 = vmul.f32 %v11094_v54, %v16262_v10  ;;  %v2054_v60 = vmul.f32 %v11094_v54, %v16264_v7  ;;  %v11096_v24 = vpop.eup %11095  ;;  %v16271_v10 = vld [vmem:[#allocation97_spill] sm:$0xff]  ;;  %v16272_v7 = vld [vmem:[#allocation98_spill] sm:$0xff] }
 0x539   : > { %v1958_v5 = vpop.xlane.xlu0 %1957  ;;  %11105 = vrcp.f32 %v2698_v34  ;;  %2956 = vmatmul.mubr.bf16.gmra.mrb[20].mxu0 %v2837_v47  ;;  %v2795_v58 = vmul.f32 %v11096_v24, %v16265_v51  ;;  %v2796_v57 = vmul.f32 %v11096_v24, %v16266_v8  ;;  %v16273_v8 = vld [vmem:[#allocation47_spill] sm:$0xff] }
 0x53a   : > { %11107 = vrcp.f32 %v1958_v5  ;;  %v2097_v38 = vpack.c.bf16 %v2055_v48, %v2053_v31  ;;  %v2096_v11 = vpack.c.bf16 %v2054_v60, %v2052_v59  ;;  %v10751_v5 = vld [vmem:[%s15678_s5 + $0x20] sm:$0xff]  }
 0x53b   : > { %v11098_v41 = vpop.eup %11097  ;;  %10007 = vmatprep.subr.bf16.mxu0 %v10751_v5 }
 0x53c   : > { %v11100_v2 = vpop.eup %11099  ;;  %v2797_v63 = vmul.f32 %v11098_v41, %v13131_v52  ;;  %3124 = vmatprep.mubr.bf16.mxu1 %v2097_v38  ;;  %v1961_v1 = vpop.xlane.xlu1 %1960  ;;  %v2798_v23 = vmul.f32 %v11098_v41, %v13137_v50  ;;  %10008 = vmatpush3.bf16.msra.mxu0 %v10751_v5 }
 0x53d   : > { %v2701_v6 = vpop.xlane.xlu0 %2700  ;;  %11109 = vrcp.f32 %v1961_v1  ;;  %3125 = vmatmul.mubr.bf16.gmra.mrb[56].mxu1 %v2096_v11  ;;  %v2057_v49 = vmul.f32 %v11100_v2, %v16267_v44  ;;  %v2056_v50 = vmul.f32 %v11100_v2, %v16269_v56 }
 0x53e   : > { %v2839_v45 = vpack.c.bf16 %v2797_v63, %v2795_v58  ;;  %11111 = vrcp.f32 %v2701_v6  ;;  %v2840_v12 = vpack.c.bf16 %v2798_v23, %v2796_v57 }
 0x53f   : > { %v9595_v3 = vpop.f32.mrb[16].mxu1  ;;  %v11102_v15 = vpop.eup %11101 }
 0x540   : > { %v9596_v46 = vpop.f32.mrb[17].mxu1  ;;  %2963 = vmatprep.mubr.bf16.mxu0 %v2840_v12  ;;  %v2704_v35 = vpop.xlane.xlu1 %2703  ;;  %v2059_v42 = vmul.f32 %v11102_v15, %v16268_v20  ;;  %v2058_v61 = vmul.f32 %v11102_v15, %v16270_v21 }
 0x541   : > { %v13378_v52 = vadd.f32 %v9596_v46, %v9595_v3  ;;  %v9598_v37 = vpop.f32.mrb[18].mxu1  ;;  %v11104_v36 = vpop.eup %11103  ;;  %11113 = vrcp.f32 %v2704_v35  ;;  %2964 = vmatmul.mubr.bf16.gmra.mrb[24].mxu0 %v2839_v45 }
 0x542   : > { %v1964_v26 = vpop.xlane.xlu0 %1963  ;;  %v9599_v47 = vpop.f32.mrb[19].mxu1  ;;  %v2099_v54 = vpack.c.bf16 %v2059_v42, %v2057_v49  ;;  %v2098_v34 = vpack.c.bf16 %v2058_v61, %v2056_v50  ;;  %v2799_v48 = vmul.f32 %v11104_v36, %v16271_v10  ;;  %v2800_v60 = vmul.f32 %v11104_v36, %v16272_v7  ;;  %v10753_v42 = vld [vmem:[%s15678_s5 + $0x30] sm:$0xff]  }
 0x543   : > { %v13383_v30 = vadd.f32 %v9599_v47, %v9598_v37  ;;  %v11106_v33 = vpop.eup %11105  ;;  %11115 = vrcp.f32 %v1964_v26  ;;  %v16274_v26 = vld [vmem:[#allocation87_spill] sm:$0xff]  ;;  %v16278_v7 = vld [vmem:[#allocation100_spill] sm:$0xff] }
 0x544   : > { %v11108_v31 = vpop.eup %11107  ;;  %v2801_v0 = vmul.f32 %v11106_v33, %v13167_v4  ;;  %3132 = vmatprep.mubr.bf16.mxu1 %v2099_v54  ;;  %v1967_v59 = vpop.xlane.xlu1 %1966  ;;  %v2802_v24 = vmul.f32 %v11106_v33, %v13173_v17  ;;  %v10752_v4 = vld [vmem:[%s15678_s5 + $0x28] sm:$0xff]   ;;  %v10754_v54 = vld [vmem:[%s15678_s5 + $0x38] sm:$0xff]  }
 0x545   : > { %11117 = vrcp.f32 %v1967_v59  ;;  %3133 = vmatmul.mubr.bf16.gmra.mrb[60].mxu1 %v2098_v34  ;;  %v2061_v51 = vmul.f32 %v11108_v31, %v13179_v16  ;;  %v2060_v57 = vmul.f32 %v11108_v31, %v16273_v8  ;;  %10009 = vmatprep.subr.bf16.mxu0 %v10752_v4 }
 0x546   : > { %v2707_v38 = vpop.xlane.xlu0 %2706  ;;  %v2841_v11 = vpack.c.bf16 %v2801_v0, %v2799_v48  ;;  %v2842_v41 = vpack.c.bf16 %v2802_v24, %v2800_v60  ;;  %10010 = vmatpush3.bf16.msra.mxu0 %v10752_v4  ;;  %v16275_v48 = vld [vmem:[#allocation99_spill] sm:$0xff]  ;;  %v16276_v0 = vld [vmem:[#allocation90_spill] sm:$0xff]  ;;  %v16279_v4 = vld [vmem:[#allocation101_spill] sm:$0xff] }
 0x547   : > { %v11110_v2 = vpop.eup %11109  ;;  %11119 = vrcp.f32 %v2707_v38  ;;  %10011 = vmatprep.subr.bf16.mxu0 %v10753_v42 }
 0x548   : > { %v11112_v17 = vpop.eup %11111  ;;  %2971 = vmatprep.mubr.bf16.mxu0 %v2842_v41  ;;  %v2710_v58 = vpop.xlane.xlu1 %2709  ;;  %v2063_v1 = vmul.f32 %v11110_v2, %v13186_v28  ;;  %v2062_v23 = vmul.f32 %v11110_v2, %v13183_v39 }
 0x549   : > { %v9601_v63 = vpop.f32.mrb[20].mxu1  ;;  %11121 = vrcp.f32 %v2710_v58  ;;  %2972 = vmatmul.mubr.bf16.gmra.mrb[28].mxu0 %v2841_v11  ;;  %v2803_v44 = vmul.f32 %v11112_v17, %v13191_v27  ;;  %v2804_v37 = vmul.f32 %v11112_v17, %v13195_v55  ;;  %v16281_v58 = vld [vmem:[#allocation86_spill] sm:$0xff] }
 0x54a   : > { %v1970_v6 = vpop.xlane.xlu0 %1969  ;;  %v9602_v45 = vpop.f32.mrb[21].mxu1  ;;  %v2101_v16 = vpack.c.bf16 %v2063_v1, %v2061_v51  ;;  %v2100_v15 = vpack.c.bf16 %v2062_v23, %v2060_v57  ;;  %10012 = vmatpush3.bf16.msra.mxu0 %v10753_v42  ;;  %v16280_v51 = vld [vmem:[#allocation49_spill] sm:$0xff]  ;;  %v16282_v1 = vld [vmem:[#allocation48_spill] sm:$0xff] }
 0x54b   : > { %v13399_v12 = vadd.f32 %v9602_v45, %v9601_v63  ;;  %v9604_v3 = vpop.f32.mrb[22].mxu1  ;;  %v11114_v46 = vpop.eup %11113  ;;  %11123 = vrcp.f32 %v1970_v6  ;;  %10013 = vmatprep.subr.bf16.mxu0 %v10754_v54 }
 0x54c   : > { %v9605_v49 = vpop.f32.mrb[23].mxu1  ;;  %v2805_v28 = vmul.f32 %v11114_v46, %v13201_v29  ;;  %3140 = vmatprep.mubr.bf16.mxu1 %v2101_v16  ;;  %v1973_v39 = vpop.xlane.xlu1 %1972  ;;  %v2806_v20 = vmul.f32 %v11114_v46, %v13205_v22  ;;  %v16284_v46 = vld [vmem:[#allocation103_spill] sm:$0xff] }
 0x54d   : > { %v13403_v35 = vadd.f32 %v9605_v49, %v9604_v3  ;;  %v11116_v56 = vpop.eup %11115  ;;  %11125 = vrcp.f32 %v1973_v39  ;;  %3141 = vmatmul.mubr.bf16.gmra.mrb[64].mxu1 %v2100_v15  ;;  %v16283_v3 = vld [vmem:[#allocation50_spill] sm:$0xff] }
 0x54e   : > { %v2713_v50 = vpop.xlane.xlu0 %2712  ;;  %v2843_v27 = vpack.c.bf16 %v2805_v28, %v2803_v44  ;;  %v2844_v21 = vpack.c.bf16 %v2806_v20, %v2804_v37  ;;  %v2065_v55 = vmul.f32 %v11116_v56, %v13209_v43  ;;  %v2064_v36 = vmul.f32 %v11116_v56, %v13198_v14  ;;  %10014 = vmatpush3.bf16.msra.mxu0 %v10754_v54  ;;  %v16277_v14 = vld [vmem:[#allocation92_spill] sm:$0xff]  ;;  %v16285_v39 = vld [vmem:[#allocation102_spill] sm:$0xff]  ;;  %v16286_v20 = vld [vmem:[#allocation51_spill] sm:$0xff] }
 0x54f   : > { %11127 = vrcp.f32 %v2713_v50  ;;  %v11118_v29 = vpop.eup %11117 }
 0x550   : > { %2979 = vmatprep.mubr.bf16.mxu0 %v2844_v21  ;;  %v2716_v61 = vpop.xlane.xlu1 %2715  ;;  %v2067_v22 = vmul.f32 %v11118_v29, %v13213_v19  ;;  %v2066_v47 = vmul.f32 %v11118_v29, %v16274_v26 }
 0x551   : > { %v11120_v34 = vpop.eup %11119  ;;  %11129 = vrcp.f32 %v2716_v61  ;;  %2980 = vmatmul.mubr.bf16.gmra.mrb[32].mxu0 %v2843_v27 }
 0x552   : > { %v2103_v33 = vpack.c.bf16 %v2067_v22, %v2065_v55  ;;  %v2102_v31 = vpack.c.bf16 %v2066_v47, %v2064_v36  ;;  %v2807_v43 = vmul.f32 %v11120_v34, %v16275_v48  ;;  %v2808_v59 = vmul.f32 %v11120_v34, %v16277_v14 }
 0x553   : > { %v11122_v10 = vpop.eup %11121 }
 0x554   : > { %v2809_v19 = vmul.f32 %v11122_v10, %v16276_v0  ;;  %3148 = vmatprep.mubr.bf16.mxu1 %v2103_v33  ;;  %v2810_v60 = vmul.f32 %v11122_v10, %v16278_v7 }
 0x555   : > { %v11124_v24 = vpop.eup %11123  ;;  %3149 = vmatmul.mubr.bf16.gmra.mrb[68].mxu1 %v2102_v31 }
 0x556   : > { %v2845_v5 = vpack.c.bf16 %v2809_v19, %v2807_v43  ;;  %v2846_v38 = vpack.c.bf16 %v2810_v60, %v2808_v59  ;;  %v2069_v2 = vmul.f32 %v11124_v24, %v16279_v4  ;;  %v2068_v63 = vmul.f32 %v11124_v24, %v16281_v58 }
 0x557   : > { %v11126_v11 = vpop.eup %11125 }
 0x558   : > { %2987 = vmatprep.mubr.bf16.mxu0 %v2846_v38  ;;  %v2071_v17 = vmul.f32 %v11126_v11, %v16280_v51  ;;  %v2070_v8 = vmul.f32 %v11126_v11, %v16282_v1 }
 0x559   : > { %v11128_v41 = vpop.eup %11127  ;;  %2988 = vmatmul.mubr.bf16.gmra.mrb[36].mxu0 %v2845_v5  ;;  %v9607_v57 = vpop.f32.mrb[24].mxu1 }
 0x55a   : > { %v2105_v23 = vpack.c.bf16 %v2071_v17, %v2069_v2  ;;  %v2104_v6 = vpack.c.bf16 %v2070_v8, %v2068_v63  ;;  %v2811_v16 = vmul.f32 %v11128_v41, %v16283_v3  ;;  %v9608_v15 = vpop.f32.mrb[25].mxu1  ;;  %v2812_v37 = vmul.f32 %v11128_v41, %v16285_v39 }
 0x55b   : > { %v11130_v45 = vpop.eup %11129  ;;  %v13427_v49 = vadd.f32 %v9608_v15, %v9607_v57  ;;  %v9610_v28 = vpop.f32.mrb[26].mxu1 }
 0x55c   : > { %v2813_v44 = vmul.f32 %v11130_v45, %v16284_v46  ;;  %3156 = vmatprep.mubr.bf16.mxu1 %v2105_v23  ;;  %v2814_v42 = vmul.f32 %v11130_v45, %v16286_v20  ;;  %v9611_v56 = vpop.f32.mrb[27].mxu1 }
 0x55d   : > { %3157 = vmatmul.mubr.bf16.gmra.mrb[72].mxu1 %v2104_v6  ;;  %v13431_v27 = vadd.f32 %v9611_v56, %v9610_v28 }
 0x55e   : > { %v2847_v50 = vpack.c.bf16 %v2813_v44, %v2811_v16  ;;  %v2848_v21 = vpack.c.bf16 %v2814_v42, %v2812_v37 }
 0x560   : > { %2995 = vmatprep.mubr.bf16.mxu0 %v2848_v21 }
 0x561   : > { %2996 = vmatmul.mubr.bf16.gmra.mrb[40].mxu0 %v2847_v50 }
 0x585   : > { %v1976_v29 = vpop.xlane.xlu0 %1975 }
 0x586   : > { %11131 = vrcp.f32 %v1976_v29 }
 0x589   : > { %v1979_v61 = vpop.xlane.xlu1 %1978 }
 0x58a   : > { %11133 = vrcp.f32 %v1979_v61 }
 0x58d   : > { %v2719_v55 = vpop.xlane.xlu0 %2718 }
 0x58e   : > { %11135 = vrcp.f32 %v2719_v55 }
 0x590   : > { %v11132_v36 = vpop.eup %11131 }
 0x591   : > { %v2722_v22 = vpop.xlane.xlu1 %2721  ;;  %v2073_v47 = vmul.f32 %v11132_v36, %v13279_v18  ;;  %v2072_v34 = vmul.f32 %v11132_v36, %v13277_v32 }
 0x592   : > { %11137 = vrcp.f32 %v2722_v22 }
 0x594   : > { %v11134_v26 = vpop.eup %11133 }
 0x595   : > { %v2075_v54 = vmul.f32 %v11134_v26, %v13285_v40  ;;  %v2074_v33 = vmul.f32 %v11134_v26, %v13283_v13 }
 0x597   : > { %v2107_v31 = vpack.c.bf16 %v2075_v54, %v2073_v47  ;;  %v2106_v10 = vpack.c.bf16 %v2074_v33, %v2072_v34 }
 0x598   : > { %v11136_v48 = vpop.eup %11135 }
 0x599   : > { %3164 = vmatprep.mubr.bf16.mxu1 %v2107_v31  ;;  %v2815_v0 = vmul.f32 %v11136_v48, %v13293_v9  ;;  %v2816_v14 = vmul.f32 %v11136_v48, %v13295_v62 }
 0x59a   : > { %3165 = vmatmul.mubr.bf16.gmra.mrb[76].mxu1 %v2106_v10 }
 0x59c   : > { %v11138_v43 = vpop.eup %11137 }
 0x59d   : > { %v2817_v19 = vmul.f32 %v11138_v43, %v13299_v53  ;;  %v2818_v18 = vmul.f32 %v11138_v43, %v13301_v25 }
 0x59f   : > { %v2849_v59 = vpack.c.bf16 %v2817_v19, %v2815_v0  ;;  %v2850_v40 = vpack.c.bf16 %v2818_v18, %v2816_v14 }
 0x5a1   : > { %3003 = vmatprep.mubr.bf16.mxu0 %v2850_v40 }
 0x5a2   : > { %3004 = vmatmul.mubr.bf16.gmra.mrb[44].mxu0 %v2849_v59 }
 0x5c0   : > { %v9483_v32 = vpop.f32.mrb[240].mxu0 }
 0x5c1   : > { %v9484_v13 = vpop.f32.mrb[241].mxu0 }
 0x5c2   : > { %v9485_v7 = vadd.f32 %v9484_v13, %v9483_v32  ;;  %v9486_v60 = vpop.f32.mrb[242].mxu0 }
 0x5c3   : > { %v9487_v24 = vpop.f32.mrb[243].mxu0  ;;  %v9613_v5 = vpop.f32.mrb[28].mxu1 }
 0x5c4   : > { %v3047_v38 = vadd.f32 %v13378_v52, %v9485_v7  ;;  %v9488_v11 = vadd.f32 %v9487_v24, %v9486_v60  ;;  %v9614_v9 = vpop.f32.mrb[29].mxu1 }
 0x5c5   : > { %v9615_v41 = vadd.f32 %v9614_v9, %v9613_v5  ;;  %v9616_v53 = vpop.f32.mrb[30].mxu1 }
 0x5c6   : > { %v3050_v62 = vadd.f32 %v13383_v30, %v9488_v11  ;;  %v9617_v4 = vpop.f32.mrb[31].mxu1 }
 0x5c7   : > { %v9618_v25 = vadd.f32 %v9617_v4, %v9616_v53 }
 0x5c8   : > { %v3173_v51 = vpack.c.bf16 %v3050_v62, %v3047_v38 }
 0x5c9   : > { %v9489_v2 = vpop.f32.mrb[244].mxu0 }
 0x5ca   : > { %v9490_v17 = vpop.f32.mrb[245].mxu0  ;;  %10015 = vmatprep.mubr.bf16.mxu0 %v3173_v51 }
 0x5cb   : > { %v9491_v58 = vadd.f32 %v9490_v17, %v9489_v2  ;;  %v9492_v63 = vpop.f32.mrb[246].mxu0 }
 0x5cc   : > { %v9493_v1 = vpop.f32.mrb[247].mxu0 }
 0x5cd   : > { %v3055_v8 = vadd.f32 %v13399_v12, %v9491_v58  ;;  %v9494_v57 = vadd.f32 %v9493_v1, %v9492_v63 }
 0x5cf   : > { %v3058_v52 = vadd.f32 %v13403_v35, %v9494_v57 }
 0x5d1   : > { %v3174_v23 = vpack.c.bf16 %v3058_v52, %v3055_v8 }
 0x5d3   : > { %v9495_v6 = vpop.f32.mrb[248].mxu0  ;;  %10016 = vmatmul.mubr.bf16.vlgmr.msra.gmra.mrb[48].mxu0 %v3174_v23 }
 0x5d4   : > { %v9496_v45 = vpop.f32.mrb[249].mxu0 }
 0x5d5   : > { %v9497_v3 = vadd.f32 %v9496_v45, %v9495_v6  ;;  %v9498_v30 = vpop.f32.mrb[250].mxu0 }
 0x5d6   : > { %v9499_v16 = vpop.f32.mrb[251].mxu0 }
 0x5d7   : > { %v3063_v15 = vadd.f32 %v13427_v49, %v9497_v3  ;;  %v9500_v46 = vadd.f32 %v9499_v16, %v9498_v30 }
 0x5d9   : > { %v3066_v44 = vadd.f32 %v13431_v27, %v9500_v46 }
 0x5db   : > { %v3175_v28 = vpack.c.bf16 %v3066_v44, %v3063_v15 }
 0x5dc   : > { %v9501_v39 = vpop.f32.mrb[252].mxu0 }
 0x5dd   : > { %v9502_v37 = vpop.f32.mrb[253].mxu0  ;;  %10019 = vmatprep.mubr.bf16.mxu0 %v3175_v28  ;;  %v9619_v12 = vpop.f32.mrb[32].mxu1 }
 0x5de   : > { %v9503_v20 = vadd.f32 %v9502_v37, %v9501_v39  ;;  %v9504_v42 = vpop.f32.mrb[254].mxu0  ;;  %v9620_v35 = vpop.f32.mrb[33].mxu1 }
 0x5df   : > { %v9505_v56 = vpop.f32.mrb[255].mxu0  ;;  %v9621_v50 = vadd.f32 %v9620_v35, %v9619_v12  ;;  %v9622_v21 = vpop.f32.mrb[34].mxu1 }
 0x5e0   : > { %v3071_v29 = vadd.f32 %v9615_v41, %v9503_v20  ;;  %v9506_v61 = vadd.f32 %v9505_v56, %v9504_v42  ;;  %v9623_v55 = vpop.f32.mrb[35].mxu1 }
 0x5e1   : > { %v9624_v22 = vadd.f32 %v9623_v55, %v9622_v21 }
 0x5e2   : > { %v3074_v36 = vadd.f32 %v9618_v25, %v9506_v61 }
 0x5e4   : > { %v3176_v49 = vpack.c.bf16 %v3074_v36, %v3071_v29  ;;  %v9507_v26 = vpop.f32.mrb[0].mxu0 }
 0x5e5   : > { %v9508_v47 = vpop.f32.mrb[1].mxu0 }
 0x5e6   : > { %10020 = vmatmul.mubr.bf16.gmra.mrb[52].mxu0 %v3176_v49  ;;  %v9509_v27 = vadd.f32 %v9508_v47, %v9507_v26  ;;  %v9510_v54 = vpop.f32.mrb[2].mxu0 }
 0x5e7   : > { %v9511_v34 = vpop.f32.mrb[3].mxu0  ;;  %v9625_v33 = vpop.f32.mrb[36].mxu1 }
 0x5e8   : > { %v3079_v31 = vadd.f32 %v9621_v50, %v9509_v27  ;;  %v9512_v10 = vadd.f32 %v9511_v34, %v9510_v54  ;;  %v9626_v48 = vpop.f32.mrb[37].mxu1 }
 0x5e9   : > { %v9627_v43 = vadd.f32 %v9626_v48, %v9625_v33  ;;  %v9628_v0 = vpop.f32.mrb[38].mxu1 }
 0x5ea   : > { %v3082_v19 = vadd.f32 %v9624_v22, %v9512_v10  ;;  %v9629_v14 = vpop.f32.mrb[39].mxu1 }
 0x5eb   : > { %v9630_v18 = vadd.f32 %v9629_v14, %v9628_v0 }
 0x5ec   : > { %v3177_v59 = vpack.c.bf16 %v3082_v19, %v3079_v31  ;;  %v9513_v40 = vpop.f32.mrb[4].mxu0 }
 0x5ed   : > { %v9514_v32 = vpop.f32.mrb[5].mxu0 }
 0x5ee   : > { %10023 = vmatprep.mubr.bf16.mxu0 %v3177_v59  ;;  %v9515_v13 = vadd.f32 %v9514_v32, %v9513_v40  ;;  %v9516_v7 = vpop.f32.mrb[6].mxu0 }
 0x5ef   : > { %v9517_v60 = vpop.f32.mrb[7].mxu0 }
 0x5f0   : > { %v3087_v24 = vadd.f32 %v9627_v43, %v9515_v13  ;;  %v9518_v5 = vadd.f32 %v9517_v60, %v9516_v7  ;;  %v9631_v38 = vpop.f32.mrb[40].mxu1 }
 0x5f1   : > { %v9632_v11 = vpop.f32.mrb[41].mxu1 }
 0x5f2   : > { %v3090_v9 = vadd.f32 %v9630_v18, %v9518_v5  ;;  %v9633_v41 = vadd.f32 %v9632_v11, %v9631_v38  ;;  %v9634_v53 = vpop.f32.mrb[42].mxu1 }
 0x5f3   : > { %v9635_v62 = vpop.f32.mrb[43].mxu1 }
 0x5f4   : > { %v3178_v4 = vpack.c.bf16 %v3090_v9, %v3087_v24  ;;  %v9636_v25 = vadd.f32 %v9635_v62, %v9634_v53  ;;  %v9519_v2 = vpop.f32.mrb[8].mxu0 }
 0x5f5   : > { %v9520_v51 = vpop.f32.mrb[9].mxu0 }
 0x5f6   : > { %v9521_v17 = vadd.f32 %v9520_v51, %v9519_v2  ;;  %v9522_v58 = vpop.f32.mrb[10].mxu0  ;;  %10024 = vmatmul.mubr.bf16.gmra.mrb[56].mxu0 %v3178_v4 }
 0x5f7   : > { %v9523_v63 = vpop.f32.mrb[11].mxu0 }
 0x5f8   : > { %v3095_v1 = vadd.f32 %v9633_v41, %v9521_v17  ;;  %v9524_v8 = vadd.f32 %v9523_v63, %v9522_v58  ;;  %v9637_v57 = vpop.f32.mrb[44].mxu1 }
 0x5f9   : > { %v9638_v52 = vpop.f32.mrb[45].mxu1 }
 0x5fa   : > { %v3098_v23 = vadd.f32 %v9636_v25, %v9524_v8  ;;  %v9639_v6 = vadd.f32 %v9638_v52, %v9637_v57  ;;  %v9640_v45 = vpop.f32.mrb[46].mxu1 }
 0x5fb   : > { %v9641_v3 = vpop.f32.mrb[47].mxu1 }
 0x5fc   : > { %v9642_v30 = vadd.f32 %v9641_v3, %v9640_v45  ;;  %v9525_v16 = vpop.f32.mrb[12].mxu0  ;;  %v3179_v15 = vpack.c.bf16 %v3098_v23, %v3095_v1 }
 0x5fd   : > { %v9526_v46 = vpop.f32.mrb[13].mxu0 }
 0x5fe   : > { %v9527_v44 = vadd.f32 %v9526_v46, %v9525_v16  ;;  %v9528_v28 = vpop.f32.mrb[14].mxu0  ;;  %10027 = vmatprep.mubr.bf16.mxu0 %v3179_v15 }
 0x5ff   : > { %v9529_v39 = vpop.f32.mrb[15].mxu0 }
 0x600   : > { %v3103_v37 = vadd.f32 %v9639_v6, %v9527_v44  ;;  %v9530_v12 = vadd.f32 %v9529_v39, %v9528_v28  ;;  %v9643_v20 = vpop.f32.mrb[48].mxu1 }
 0x601   : > { %v9644_v42 = vpop.f32.mrb[49].mxu1 }
 0x602   : > { %v3106_v35 = vadd.f32 %v9642_v30, %v9530_v12  ;;  %v9645_v56 = vadd.f32 %v9644_v42, %v9643_v20  ;;  %v9646_v50 = vpop.f32.mrb[50].mxu1 }
 0x603   : > { %v9647_v21 = vpop.f32.mrb[51].mxu1 }
 0x604   : > { %v3180_v29 = vpack.c.bf16 %v3106_v35, %v3103_v37  ;;  %v9648_v61 = vadd.f32 %v9647_v21, %v9646_v50  ;;  %v9531_v55 = vpop.f32.mrb[16].mxu0 }
 0x605   : > { %v9532_v22 = vpop.f32.mrb[17].mxu0 }
 0x606   : > { %v9533_v36 = vadd.f32 %v9532_v22, %v9531_v55  ;;  %v9534_v49 = vpop.f32.mrb[18].mxu0  ;;  %10028 = vmatmul.mubr.bf16.gmra.mrb[60].mxu0 %v3180_v29 }
 0x607   : > { %v9535_v26 = vpop.f32.mrb[19].mxu0 }
 0x608   : > { %v3111_v47 = vadd.f32 %v9645_v56, %v9533_v36  ;;  %v9536_v27 = vadd.f32 %v9535_v26, %v9534_v49  ;;  %v9649_v54 = vpop.f32.mrb[52].mxu1 }
 0x609   : > { %v9650_v34 = vpop.f32.mrb[53].mxu1 }
 0x60a   : > { %v3114_v33 = vadd.f32 %v9648_v61, %v9536_v27  ;;  %v9651_v31 = vadd.f32 %v9650_v34, %v9649_v54  ;;  %v9652_v10 = vpop.f32.mrb[54].mxu1 }
 0x60b   : > { %v9653_v48 = vpop.f32.mrb[55].mxu1 }
 0x60c   : > { %v9654_v43 = vadd.f32 %v9653_v48, %v9652_v10  ;;  %v9537_v0 = vpop.f32.mrb[20].mxu0  ;;  %v3181_v19 = vpack.c.bf16 %v3114_v33, %v3111_v47 }
 0x60d   : > { %v9538_v14 = vpop.f32.mrb[21].mxu0 }
 0x60e   : > { %v9539_v18 = vadd.f32 %v9538_v14, %v9537_v0  ;;  %v9540_v59 = vpop.f32.mrb[22].mxu0  ;;  %10031 = vmatprep.mubr.bf16.mxu0 %v3181_v19 }
 0x60f   : > { %v9541_v40 = vpop.f32.mrb[23].mxu0 }
 0x610   : > { %v3119_v32 = vadd.f32 %v9651_v31, %v9539_v18  ;;  %v9542_v13 = vadd.f32 %v9541_v40, %v9540_v59  ;;  %v9655_v7 = vpop.f32.mrb[56].mxu1 }
 0x611   : > { %v9656_v60 = vpop.f32.mrb[57].mxu1 }
 0x612   : > { %v3122_v24 = vadd.f32 %v9654_v43, %v9542_v13  ;;  %v9657_v5 = vadd.f32 %v9656_v60, %v9655_v7  ;;  %v9658_v38 = vpop.f32.mrb[58].mxu1 }
 0x613   : > { %v9659_v11 = vpop.f32.mrb[59].mxu1 }
 0x614   : > { %v3182_v9 = vpack.c.bf16 %v3122_v24, %v3119_v32  ;;  %v9660_v41 = vadd.f32 %v9659_v11, %v9658_v38  ;;  %v9543_v53 = vpop.f32.mrb[24].mxu0 }
 0x615   : > { %v9544_v62 = vpop.f32.mrb[25].mxu0 }
 0x616   : > { %v9545_v4 = vadd.f32 %v9544_v62, %v9543_v53  ;;  %v9546_v25 = vpop.f32.mrb[26].mxu0  ;;  %10032 = vmatmul.mubr.bf16.gmra.mrb[64].mxu0 %v3182_v9 }
 0x617   : > { %v9547_v2 = vpop.f32.mrb[27].mxu0 }
 0x618   : > { %v3127_v51 = vadd.f32 %v9657_v5, %v9545_v4  ;;  %v9548_v17 = vadd.f32 %v9547_v2, %v9546_v25  ;;  %v9661_v58 = vpop.f32.mrb[60].mxu1 }
 0x619   : > { %v9662_v63 = vpop.f32.mrb[61].mxu1 }
 0x61a   : > { %v3130_v1 = vadd.f32 %v9660_v41, %v9548_v17  ;;  %v9663_v8 = vadd.f32 %v9662_v63, %v9661_v58  ;;  %v9664_v57 = vpop.f32.mrb[62].mxu1 }
 0x61b   : > { %v9665_v52 = vpop.f32.mrb[63].mxu1 }
 0x61c   : > { %v9666_v23 = vadd.f32 %v9665_v52, %v9664_v57  ;;  %v9549_v6 = vpop.f32.mrb[28].mxu0  ;;  %v3183_v45 = vpack.c.bf16 %v3130_v1, %v3127_v51 }
 0x61d   : > { %v9550_v3 = vpop.f32.mrb[29].mxu0 }
 0x61e   : > { %v9551_v30 = vadd.f32 %v9550_v3, %v9549_v6  ;;  %v9552_v16 = vpop.f32.mrb[30].mxu0  ;;  %10035 = vmatprep.mubr.bf16.mxu0 %v3183_v45 }
 0x61f   : > { %v9553_v15 = vpop.f32.mrb[31].mxu0 }
 0x620   : > { %v3135_v46 = vadd.f32 %v9663_v8, %v9551_v30  ;;  %v9554_v44 = vadd.f32 %v9553_v15, %v9552_v16  ;;  %v9667_v28 = vpop.f32.mrb[64].mxu1 }
 0x621   : > { %v9668_v39 = vpop.f32.mrb[65].mxu1 }
 0x622   : > { %v3138_v37 = vadd.f32 %v9666_v23, %v9554_v44  ;;  %v9669_v12 = vadd.f32 %v9668_v39, %v9667_v28  ;;  %v9670_v20 = vpop.f32.mrb[66].mxu1 }
 0x623   : > { %v9671_v42 = vpop.f32.mrb[67].mxu1 }
 0x624   : > { %v3184_v35 = vpack.c.bf16 %v3138_v37, %v3135_v46  ;;  %v9672_v56 = vadd.f32 %v9671_v42, %v9670_v20  ;;  %v9555_v50 = vpop.f32.mrb[32].mxu0  ;;  %v13450_v46 = vld [vmem:[%s15679_s6] ss:$0 sm:$0xff] }
 0x625   : > { %v9556_v21 = vpop.f32.mrb[33].mxu0 }
 0x626   : > { %v9557_v29 = vadd.f32 %v9556_v21, %v9555_v50  ;;  %v9558_v61 = vpop.f32.mrb[34].mxu0  ;;  %10036 = vmatmul.mubr.bf16.gmra.mrb[68].mxu0 %v3184_v35  ;;  %v16288_v50 = vld [vmem:[#allocation5_spill] sm:$0xff] }
 0x627   : > { %v9559_v55 = vpop.f32.mrb[35].mxu0 }
 0x628   : > { %v3143_v22 = vadd.f32 %v9669_v12, %v9557_v29  ;;  %v9560_v36 = vadd.f32 %v9559_v55, %v9558_v61  ;;  %v9673_v49 = vpop.f32.mrb[68].mxu1  ;;  %v16287_v12 = vld [vmem:[#allocation6_spill] sm:$0xff]  ;;  %v16289_v61 = vld [vmem:[#allocation3_spill] sm:$0xff] }
 0x629   : > { %v9674_v26 = vpop.f32.mrb[69].mxu1 }
 0x62a   : > { %v3146_v47 = vadd.f32 %v9672_v56, %v9560_v36  ;;  %v9675_v27 = vadd.f32 %v9674_v26, %v9673_v49  ;;  %v9676_v54 = vpop.f32.mrb[70].mxu1 }
 0x62b   : > { %v9677_v34 = vpop.f32.mrb[71].mxu1 }
 0x62c   : > { %v9678_v33 = vadd.f32 %v9677_v34, %v9676_v54  ;;  %v9561_v31 = vpop.f32.mrb[36].mxu0  ;;  %v3185_v10 = vpack.c.bf16 %v3146_v47, %v3143_v22  ;;  %v16290_v22 = vld [vmem:[#allocation4_spill] sm:$0xff] }
 0x62d   : > { %v9562_v48 = vpop.f32.mrb[37].mxu0 }
 0x62e   : > { %v9563_v43 = vadd.f32 %v9562_v48, %v9561_v31  ;;  %v9564_v0 = vpop.f32.mrb[38].mxu0  ;;  %10039 = vmatprep.mubr.bf16.mxu0 %v3185_v10  ;;  %v16291_v10 = vld [vmem:[#allocation9_spill] sm:$0xff] }
 0x62f   : > { %v9565_v19 = vpop.f32.mrb[39].mxu0 }
 0x630   : > { %v3151_v14 = vadd.f32 %v9675_v27, %v9563_v43  ;;  %v9566_v18 = vadd.f32 %v9565_v19, %v9564_v0  ;;  %v9679_v59 = vpop.f32.mrb[72].mxu1 }
 0x631   : > { %v9680_v40 = vpop.f32.mrb[73].mxu1 }
 0x632   : > { %v3154_v32 = vadd.f32 %v9678_v33, %v9566_v18  ;;  %v9681_v13 = vadd.f32 %v9680_v40, %v9679_v59  ;;  %v9682_v7 = vpop.f32.mrb[74].mxu1  ;;  %v16293_v40 = vld [vmem:[#allocation7_spill] sm:$0xff] }
 0x633   : > { %v9683_v60 = vpop.f32.mrb[75].mxu1 }
 0x634   : > { %v3186_v24 = vpack.c.bf16 %v3154_v32, %v3151_v14  ;;  %v9684_v5 = vadd.f32 %v9683_v60, %v9682_v7  ;;  %v9567_v38 = vpop.f32.mrb[40].mxu0  ;;  %v16292_v14 = vld [vmem:[#allocation10_spill] sm:$0xff] }
 0x635   : > { %v9568_v11 = vpop.f32.mrb[41].mxu0 }
 0x636   : > { %v9569_v9 = vadd.f32 %v9568_v11, %v9567_v38  ;;  %v9570_v41 = vpop.f32.mrb[42].mxu0  ;;  %10040 = vmatmul.mubr.bf16.gmra.mrb[72].mxu0 %v3186_v24 }
 0x637   : > { %v9571_v53 = vpop.f32.mrb[43].mxu0 }
 0x638   : > { %v3159_v62 = vadd.f32 %v9681_v13, %v9569_v9  ;;  %v9572_v4 = vadd.f32 %v9571_v53, %v9570_v41  ;;  %v16294_v13 = vld [vmem:[#allocation8_spill] sm:$0xff] }
 0x63a   : > { %v3162_v25 = vadd.f32 %v9684_v5, %v9572_v4 }
 0x63c   : > { %v3187_v2 = vpack.c.bf16 %v3162_v25, %v3159_v62  ;;  %v16295_v62 = vld [vmem:[#allocation18_spill] sm:$0xff] }
 0x63e   : > { %10043 = vmatprep.mubr.bf16.mxu0 %v3187_v2 }
 0x66d   : > { %v9685_v51 = vpop.f32.mrb[76].mxu1 }
 0x66e   : > { %v9686_v17 = vpop.f32.mrb[77].mxu1 }
 0x66f   : > { %v9687_v58 = vadd.f32 %v9686_v17, %v9685_v51  ;;  %v9688_v63 = vpop.f32.mrb[78].mxu1  ;;  %v16296_v17 = vld [vmem:[#allocation19_spill] sm:$0xff] }
 0x670   : > { %v9689_v1 = vpop.f32.mrb[79].mxu1 }
 0x671   : > { %v9690_v8 = vadd.f32 %v9689_v1, %v9688_v63  ;;  %v16297_v1 = vld [vmem:[#allocation12_spill] sm:$0xff] }
 0x675   : > { %v9573_v57 = vpop.f32.mrb[44].mxu0 }
 0x676   : > { %v9574_v52 = vpop.f32.mrb[45].mxu0 }
 0x677   : > { %v9575_v23 = vadd.f32 %v9574_v52, %v9573_v57  ;;  %v9576_v6 = vpop.f32.mrb[46].mxu0  ;;  %v16298_v57 = vld [vmem:[#allocation13_spill] sm:$0xff] }
 0x678   : > { %v9577_v45 = vpop.f32.mrb[47].mxu0 }
 0x679   : > { %v3167_v3 = vadd.f32 %v9687_v58, %v9575_v23  ;;  %v9578_v30 = vadd.f32 %v9577_v45, %v9576_v6 }
 0x67b   : > { %v3170_v16 = vadd.f32 %v9690_v8, %v9578_v30 }
 0x67d   : > { %v3188_v15 = vpack.c.bf16 %v3170_v16, %v3167_v3 }
 0x67f   : > { %10044 = vmatmul.mubr.bf16.gmra.mrb[76].mxu0 %v3188_v15 }
 0x6a6   : > { %v10017_v44 = vpop.f32.mrb[48].mxu0 }
 0x6a7   : > { %v3303_v28 = vadd.f32 %v10017_v44, %v13450_v46  ;;  %v3294_v39 = vpop.f32.mrb[49].mxu0 }
 0x6a8   : > { %v10018_v37 = vpop.f32.mrb[50].mxu0  ;;  %v3295_v42 = vadd.f32 %v13450_v46, %v3294_v39 }
 0x6a9   : > { %v13454_v20 = vadd.f32 %v3303_v28, %v16287_v12  ;;  %v3306_v35 = vadd.f32 %v10018_v37, %v13450_v46  ;;  %v3297_v56 = vpop.f32.mrb[51].mxu0  ;;  %v16299_v28 = vld [vmem:[#allocation30_spill] sm:$0xff] }
 0x6aa   : > { %v3298_v29 = vadd.f32 %v13450_v46, %v3297_v56  ;;  %v13464_v55 = vadd.f32 %v3295_v42, %v16289_v61 }
 0x6ab   : > { %v13459_v21 = vadd.f32 %v3306_v35, %v16288_v50  ;;  %3457 = vadd.xlane.f32.xlu0 %v13454_v20  ;;  %v3551_v49 = vmul.f32 %v13454_v20, %v13454_v20  ;;  %v16300_v35 = vld [vmem:[#allocation31_spill] sm:$0xff] }
 0x6ac   : > { %v13468_v36 = vadd.f32 %v3298_v29, %v16290_v22  ;;  %v3549_v47 = vmul.f32 %v13464_v55, %v13464_v55  ;;  %v16301_v29 = vld [vmem:[#allocation23_spill] sm:$0xff]  ;;  %v16302_v22 = vld [vmem:[#allocation24_spill] sm:$0xff] }
 0x6ad   : > { %3459 = vadd.xlane.f32.xlu1 %v13459_v21  ;;  %v3552_v26 = vmul.f32 %v13459_v21, %v13459_v21 }
 0x6ae   : > { %v3550_v27 = vmul.f32 %v13468_v36, %v13468_v36 }
 0x6af   : > { %3453 = vadd.xlane.f32.xlu0 %v13464_v55 }
 0x6b1   : > { %3455 = vadd.xlane.f32.xlu1 %v13468_v36 }
 0x6b3   : > { %3585 = vadd.xlane.f32.xlu0 %v3551_v49 }
 0x6b5   : > { %3587 = vadd.xlane.f32.xlu1 %v3552_v26 }
 0x6b7   : > { %3581 = vadd.xlane.f32.xlu0 %v3549_v47 }
 0x6b9   : > { %v10021_v54 = vpop.f32.mrb[52].mxu0  ;;  %3583 = vadd.xlane.f32.xlu1 %v3550_v27 }
 0x6ba   : > { %v3319_v34 = vadd.f32 %v10021_v54, %v13450_v46  ;;  %v3310_v33 = vpop.f32.mrb[53].mxu0 }
 0x6bb   : > { %v10022_v31 = vpop.f32.mrb[54].mxu0  ;;  %v3311_v43 = vadd.f32 %v13450_v46, %v3310_v33 }
 0x6bc   : > { %v13482_v48 = vadd.f32 %v3319_v34, %v16291_v10  ;;  %v3322_v0 = vadd.f32 %v10022_v31, %v13450_v46  ;;  %v3313_v19 = vpop.f32.mrb[55].mxu0 }
 0x6bd   : > { %v3314_v59 = vadd.f32 %v13450_v46, %v3313_v19  ;;  %v13492_v32 = vadd.f32 %v3311_v43, %v16293_v40  ;;  %v16303_v43 = vld [vmem:[#allocation11_spill] sm:$0xff] }
 0x6be   : > { %v13487_v18 = vadd.f32 %v3322_v0, %v16292_v14  ;;  %3465 = vadd.xlane.f32.xlu0 %v13482_v48  ;;  %v3555_v60 = vmul.f32 %v13482_v48, %v13482_v48  ;;  %v16304_v40 = vld [vmem:[#allocation15_spill] sm:$0xff] }
 0x6bf   : > { %v13496_v7 = vadd.f32 %v3314_v59, %v16294_v13  ;;  %v3553_v5 = vmul.f32 %v13492_v32, %v13492_v32 }
 0x6c0   : > { %3467 = vadd.xlane.f32.xlu1 %v13487_v18  ;;  %v3556_v24 = vmul.f32 %v13487_v18, %v13487_v18 }
 0x6c1   : > { %v3554_v11 = vmul.f32 %v13496_v7, %v13496_v7 }
 0x6c2   : > { %3461 = vadd.xlane.f32.xlu0 %v13492_v32 }
 0x6c4   : > { %3463 = vadd.xlane.f32.xlu1 %v13496_v7 }
 0x6c6   : > { %3593 = vadd.xlane.f32.xlu0 %v3555_v60 }
 0x6c8   : > { %3595 = vadd.xlane.f32.xlu1 %v3556_v24  ;;  %v16305_v24 = vld [vmem:[#allocation14_spill] sm:$0xff] }
 0x6c9   : > { %v10025_v38 = vpop.f32.mrb[56].mxu0 }
 0x6ca   : > { %3589 = vadd.xlane.f32.xlu0 %v3553_v5  ;;  %v3335_v9 = vadd.f32 %v10025_v38, %v13450_v46  ;;  %v3326_v41 = vpop.f32.mrb[57].mxu0  ;;  %v16306_v38 = vld [vmem:[#allocation16_spill] sm:$0xff] }
 0x6cb   : > { %v10026_v53 = vpop.f32.mrb[58].mxu0  ;;  %v3327_v25 = vadd.f32 %v13450_v46, %v3326_v41 }
 0x6cc   : > { %3591 = vadd.xlane.f32.xlu1 %v3554_v11  ;;  %v13510_v4 = vadd.f32 %v3335_v9, %v16295_v62  ;;  %v3338_v2 = vadd.f32 %v10026_v53, %v13450_v46  ;;  %v3329_v51 = vpop.f32.mrb[59].mxu0 }
 0x6cd   : > { %v3330_v63 = vadd.f32 %v13450_v46, %v3329_v51  ;;  %v13520_v8 = vadd.f32 %v3327_v25, %v16297_v1 }
 0x6ce   : > { %v13515_v58 = vadd.f32 %v3338_v2, %v16296_v17  ;;  %3473 = vadd.xlane.f32.xlu0 %v13510_v4  ;;  %v3559_v23 = vmul.f32 %v13510_v4, %v13510_v4 }
 0x6cf   : > { %v13524_v52 = vadd.f32 %v3330_v63, %v16298_v57  ;;  %v3557_v45 = vmul.f32 %v13520_v8, %v13520_v8  ;;  %v16307_v63 = vld [vmem:[#allocation17_spill] sm:$0xff] }
 0x6d0   : > { %3475 = vadd.xlane.f32.xlu1 %v13515_v58  ;;  %v3560_v6 = vmul.f32 %v13515_v58, %v13515_v58 }
 0x6d1   : > { %v3558_v15 = vmul.f32 %v13524_v52, %v13524_v52 }
 0x6d2   : > { %3469 = vadd.xlane.f32.xlu0 %v13520_v8 }
 0x6d4   : > { %3471 = vadd.xlane.f32.xlu1 %v13524_v52 }
 0x6d6   : > { %3601 = vadd.xlane.f32.xlu0 %v3559_v23 }
 0x6d8   : > { %3603 = vadd.xlane.f32.xlu1 %v3560_v6 }
 0x6d9   : > { %v10029_v3 = vpop.f32.mrb[60].mxu0 }
 0x6da   : > { %v3351_v30 = vadd.f32 %v10029_v3, %v13450_v46  ;;  %v3342_v16 = vpop.f32.mrb[61].mxu0  ;;  %3597 = vadd.xlane.f32.xlu0 %v3557_v45  ;;  %v16308_v45 = vld [vmem:[#allocation21_spill] sm:$0xff] }
 0x6db   : > { %v10030_v44 = vpop.f32.mrb[62].mxu0  ;;  %v3343_v37 = vadd.f32 %v13450_v46, %v3342_v16  ;;  %v16309_v16 = vld [vmem:[#allocation20_spill] sm:$0xff] }
 0x6dc   : > { %v13538_v39 = vadd.f32 %v3351_v30, %v16299_v28  ;;  %v3354_v12 = vadd.f32 %v10030_v44, %v13450_v46  ;;  %v3345_v42 = vpop.f32.mrb[63].mxu0  ;;  %3599 = vadd.xlane.f32.xlu1 %v3558_v15  ;;  %v16310_v44 = vld [vmem:[#allocation22_spill] sm:$0xff] }
 0x6dd   : > { %v3346_v50 = vadd.f32 %v13450_v46, %v3345_v42  ;;  %v13548_v61 = vadd.f32 %v3343_v37, %v16301_v29 }
 0x6de   : > { %v13543_v56 = vadd.f32 %v3354_v12, %v16300_v35  ;;  %3481 = vadd.xlane.f32.xlu0 %v13538_v39  ;;  %v3563_v26 = vmul.f32 %v13538_v39, %v13538_v39 }
 0x6df   : > { %v13552_v49 = vadd.f32 %v3346_v50, %v16302_v22  ;;  %v3561_v27 = vmul.f32 %v13548_v61, %v13548_v61 }
 0x6e0   : > { %3483 = vadd.xlane.f32.xlu1 %v13543_v56  ;;  %v3564_v47 = vmul.f32 %v13543_v56, %v13543_v56 }
 0x6e1   : > { %v3562_v31 = vmul.f32 %v13552_v49, %v13552_v49 }
 0x6e2   : > { %3477 = vadd.xlane.f32.xlu0 %v13548_v61 }
 0x6e4   : > { %3479 = vadd.xlane.f32.xlu1 %v13552_v49 }
 0x6e6   : > { %3609 = vadd.xlane.f32.xlu0 %v3563_v26 }
 0x6e8   : > { %3611 = vadd.xlane.f32.xlu1 %v3564_v47  ;;  %v16311_v47 = vld [vmem:[#allocation27_spill] sm:$0xff] }
 0x6e9   : > { %v10033_v54 = vpop.f32.mrb[64].mxu0 }
 0x6ea   : > { %v3367_v34 = vadd.f32 %v10033_v54, %v13450_v46  ;;  %v3358_v33 = vpop.f32.mrb[65].mxu0  ;;  %3605 = vadd.xlane.f32.xlu0 %v3561_v27 }
 0x6eb   : > { %v10034_v10 = vpop.f32.mrb[66].mxu0  ;;  %v3359_v19 = vadd.f32 %v13450_v46, %v3358_v33 }
 0x6ec   : > { %v13566_v0 = vadd.f32 %v3367_v34, %v16303_v43  ;;  %v3370_v14 = vadd.f32 %v10034_v10, %v13450_v46  ;;  %v3361_v59 = vpop.f32.mrb[67].mxu0  ;;  %3607 = vadd.xlane.f32.xlu1 %v3562_v31  ;;  %v16312_v31 = vld [vmem:[#allocation28_spill] sm:$0xff] }
 0x6ed   : > { %v3362_v60 = vadd.f32 %v13450_v46, %v3361_v59  ;;  %v13576_v5 = vadd.f32 %v3359_v19, %v16305_v24  ;;  %v16313_v19 = vld [vmem:[#allocation25_spill] sm:$0xff]  ;;  %v16314_v59 = vld [vmem:[#allocation26_spill] sm:$0xff] }
 0x6ee   : > { %v13571_v13 = vadd.f32 %v3370_v14, %v16304_v40  ;;  %3489 = vadd.xlane.f32.xlu0 %v13566_v0  ;;  %v3567_v9 = vmul.f32 %v13566_v0, %v13566_v0 }
 0x6ef   : > { %v13580_v11 = vadd.f32 %v3362_v60, %v16306_v38  ;;  %v3565_v53 = vmul.f32 %v13576_v5, %v13576_v5 }
 0x6f0   : > { %3491 = vadd.xlane.f32.xlu1 %v13571_v13  ;;  %v3568_v41 = vmul.f32 %v13571_v13, %v13571_v13 }
 0x6f1   : > { %v3566_v51 = vmul.f32 %v13580_v11, %v13580_v11 }
 0x6f2   : > { %3485 = vadd.xlane.f32.xlu0 %v13576_v5 }
 0x6f4   : > { %3487 = vadd.xlane.f32.xlu1 %v13580_v11 }
 0x6f6   : > { %3617 = vadd.xlane.f32.xlu0 %v3567_v9 }
 0x6f8   : > { %3619 = vadd.xlane.f32.xlu1 %v3568_v41 }
 0x6f9   : > { %v10037_v62 = vpop.f32.mrb[68].mxu0 }
 0x6fa   : > { %v3383_v25 = vadd.f32 %v10037_v62, %v13450_v46  ;;  %v3374_v2 = vpop.f32.mrb[69].mxu0  ;;  %3613 = vadd.xlane.f32.xlu0 %v3565_v53 }
 0x6fb   : > { %v10038_v17 = vpop.f32.mrb[70].mxu0  ;;  %v3375_v57 = vadd.f32 %v13450_v46, %v3374_v2 }
 0x6fc   : > { %v13594_v1 = vadd.f32 %v3383_v25, %v16307_v63  ;;  %v3386_v23 = vadd.f32 %v10038_v17, %v13450_v46  ;;  %v3377_v6 = vpop.f32.mrb[71].mxu0  ;;  %3615 = vadd.xlane.f32.xlu1 %v3566_v51 }
 0x6fd   : > { %v3378_v30 = vadd.f32 %v13450_v46, %v3377_v6  ;;  %v13604_v15 = vadd.f32 %v3375_v57, %v16309_v16 }
 0x6fe   : > { %v13599_v3 = vadd.f32 %v3386_v23, %v16308_v45  ;;  %3497 = vadd.xlane.f32.xlu0 %v13594_v1  ;;  %v3571_v37 = vmul.f32 %v13594_v1, %v13594_v1 }
 0x6ff   : > { %v13608_v28 = vadd.f32 %v3378_v30, %v16310_v44  ;;  %v3569_v42 = vmul.f32 %v13604_v15, %v13604_v15 }
 0x700   : > { %3499 = vadd.xlane.f32.xlu1 %v13599_v3  ;;  %v3572_v12 = vmul.f32 %v13599_v3, %v13599_v3 }
 0x701   : > { %v3570_v22 = vmul.f32 %v13608_v28, %v13608_v28 }
 0x702   : > { %3493 = vadd.xlane.f32.xlu0 %v13604_v15 }
 0x704   : > { %3495 = vadd.xlane.f32.xlu1 %v13608_v28 }
 0x706   : > { %3625 = vadd.xlane.f32.xlu0 %v3571_v37 }
 0x708   : > { %3627 = vadd.xlane.f32.xlu1 %v3572_v12 }
 0x709   : > { %v10041_v35 = vpop.f32.mrb[72].mxu0 }
 0x70a   : > { %v3399_v50 = vadd.f32 %v10041_v35, %v13450_v46  ;;  %v3390_v29 = vpop.f32.mrb[73].mxu0  ;;  %3621 = vadd.xlane.f32.xlu0 %v3569_v42 }
 0x70b   : > { %v10042_v26 = vpop.f32.mrb[74].mxu0  ;;  %v3391_v54 = vadd.f32 %v13450_v46, %v3390_v29 }
 0x70c   : > { %v13622_v27 = vadd.f32 %v3399_v50, %v16311_v47  ;;  %v3402_v34 = vadd.f32 %v10042_v26, %v13450_v46  ;;  %v3393_v33 = vpop.f32.mrb[75].mxu0  ;;  %3623 = vadd.xlane.f32.xlu1 %v3570_v22 }
 0x70d   : > { %v3394_v43 = vadd.f32 %v13450_v46, %v3393_v33  ;;  %v13632_v14 = vadd.f32 %v3391_v54, %v16313_v19 }
 0x70e   : > { %v13627_v10 = vadd.f32 %v3402_v34, %v16312_v31  ;;  %3505 = vadd.xlane.f32.xlu0 %v13622_v27  ;;  %v3575_v60 = vmul.f32 %v13622_v27, %v13622_v27 }
 0x70f   : > { %v13636_v40 = vadd.f32 %v3394_v43, %v16314_v59  ;;  %v3573_v38 = vmul.f32 %v13632_v14, %v13632_v14 }
 0x710   : > { %3507 = vadd.xlane.f32.xlu1 %v13627_v10  ;;  %v3576_v24 = vmul.f32 %v13627_v10, %v13627_v10 }
 0x711   : > { %v3574_v9 = vmul.f32 %v13636_v40, %v13636_v40 }
 0x712   : > { %3501 = vadd.xlane.f32.xlu0 %v13632_v14 }
 0x714   : > { %3503 = vadd.xlane.f32.xlu1 %v13636_v40 }
 0x716   : > { %3633 = vadd.xlane.f32.xlu0 %v3575_v60 }
 0x718   : > { %3635 = vadd.xlane.f32.xlu1 %v3576_v24 }
 0x71a   : > { %3629 = vadd.xlane.f32.xlu0 %v3573_v38 }
 0x71c   : > { %3631 = vadd.xlane.f32.xlu1 %v3574_v9 }
 0x738   : > { %v3458_v41 = vpop.xlane.xlu0 %3457 }
 0x739   : > { %v3519_v25 = vmul.f32 0.125, %v3458_v41  ;;  %v13660_v41 = vld [vmem:[%s15680_s7] ss:$0 sm:$0xff] }
 0x73a   : > { %v3460_v53 = vpop.xlane.xlu1 %3459 }
 0x73b   : > { %v3520_v51 = vmul.f32 0.125, %v3460_v53  ;;  %v3679_v63 = vmul.f32 %v3519_v25, %v3519_v25  ;;  %v3743_v24 = vsub.f32 %v13454_v20, %v3519_v25  ;;  %v13669_v20 = vld [vmem:[%s15681_s8] ss:$0 sm:$0xff] }
 0x73c   : > { %v3454_v62 = vpop.xlane.xlu0 %3453 }
 0x73d   : > { %v3517_v57 = vmul.f32 0.125, %v3454_v62  ;;  %v3680_v30 = vmul.f32 %v3520_v51, %v3520_v51  ;;  %v3744_v62 = vsub.f32 %v13459_v21, %v3520_v51 }
 0x73e   : > { %v3456_v2 = vpop.xlane.xlu1 %3455 }
 0x73f   : > { %v13648_v6 = vmul.f32 0.125, %v3456_v2  ;;  %v3677_v12 = vmul.f32 %v3517_v57, %v3517_v57  ;;  %v3741_v2 = vsub.f32 %v13464_v55, %v3517_v57 }
 0x740   : > { %v3586_v17 = vpop.xlane.xlu0 %3585 }
 0x741   : > { %v3647_v23 = vmul.f32 0.125, %v3586_v17  ;;  %v3678_v29 = vmul.f32 %v13648_v6, %v13648_v6 }
 0x742   : > { %v3588_v45 = vpop.xlane.xlu1 %3587 }
 0x743   : > { %v3711_v16 = vsub.f32 %v3647_v23, %v3679_v63  ;;  %v3648_v44 = vmul.f32 0.125, %v3588_v45  ;;  %v3742_v45 = vsub.f32 %v13468_v36, %v13648_v6 }
 0x744   : > { %v3582_v37 = vpop.xlane.xlu0 %3581 }
 0x745   : > { %v3775_v42 = vadd.f32 1e-05, %v3711_v16  ;;  %v3712_v35 = vsub.f32 %v3648_v44, %v3680_v30  ;;  %v3645_v50 = vmul.f32 0.125, %v3582_v37 }
 0x746   : > { %v3584_v22 = vpop.xlane.xlu1 %3583 }
 0x747   : > { %11139 = vrsqrt.f32 %v3775_v42  ;;  %v3776_v26 = vadd.f32 1e-05, %v3712_v35  ;;  %v3709_v47 = vsub.f32 %v3645_v50, %v3677_v12  ;;  %v3646_v54 = vmul.f32 0.125, %v3584_v22  ;;  %v16315_v42 = vld [vmem:[#allocation29_spill] sm:$0xff] }
 0x749   : > { %11141 = vrsqrt.f32 %v3776_v26  ;;  %v3773_v34 = vadd.f32 1e-05, %v3709_v47  ;;  %v3710_v33 = vsub.f32 %v3646_v54, %v3678_v29 }
 0x74b   : > { %11143 = vrsqrt.f32 %v3773_v34  ;;  %v3774_v31 = vadd.f32 1e-05, %v3710_v33  ;;  %v3466_v43 = vpop.xlane.xlu0 %3465 }
 0x74c   : > { %v13652_v59 = vmul.f32 0.125, %v3466_v43 }
 0x74d   : > { %11145 = vrsqrt.f32 %v3774_v31  ;;  %v3468_v19 = vpop.xlane.xlu1 %3467 }
 0x74e   : > { %v13655_v38 = vmul.f32 0.125, %v3468_v19  ;;  %v3683_v25 = vmul.f32 %v13652_v59, %v13652_v59 }
 0x74f   : > { %v3462_v60 = vpop.xlane.xlu0 %3461 }
 0x750   : > { %v13673_v30 = vmul.f32 0.125, %v3462_v60  ;;  %v3684_v36 = vmul.f32 %v13655_v38, %v13655_v38  ;;  %v16316_v60 = vld [vmem:[#allocation33_spill] sm:$0xff] }
 0x751   : > { %v11140_v9 = vpop.eup %11139  ;;  %v3464_v53 = vpop.xlane.xlu1 %3463 }
 0x752   : > { %v3839_v17 = vmul.f32 %v11140_v9, %v3743_v24  ;;  %v10045_v63 = vpop.f32.mrb[76].mxu0  ;;  %v13679_v6 = vmul.f32 0.125, %v3464_v53  ;;  %v3681_v43 = vmul.f32 %v13673_v30, %v13673_v30 }
 0x753   : > { %v11142_v23 = vpop.eup %11141  ;;  %v3594_v16 = vpop.xlane.xlu0 %3593  ;;  %v3415_v21 = vadd.f32 %v10045_v63, %v13450_v46 }
 0x754   : > { %v3406_v55 = vpop.f32.mrb[77].mxu0  ;;  %v3878_v51 = vmul.f32 %v13660_v41, %v3839_v17  ;;  %v3840_v57 = vmul.f32 %v11142_v23, %v3744_v62  ;;  %v3651_v12 = vmul.f32 0.125, %v3594_v16  ;;  %v3682_v23 = vmul.f32 %v13679_v6, %v13679_v6 }
 0x755   : > { %v10046_v44 = vpop.f32.mrb[78].mxu0  ;;  %v11144_v37 = vpop.eup %11143  ;;  %v13682_v35 = vadd.f32 %v3415_v21, %v16315_v42  ;;  %v3407_v29 = vadd.f32 %v13450_v46, %v3406_v55 }
 0x756   : > { %v3596_v50 = vpop.xlane.xlu1 %3595  ;;  %v3418_v22 = vadd.f32 %v10046_v44, %v13450_v46  ;;  %v3409_v26 = vpop.f32.mrb[79].mxu0  ;;  %v13687_v47 = vadd.f32 %v13669_v20, %v3878_v51  ;;  %v3879_v54 = vmul.f32 %v13660_v41, %v3840_v57  ;;  %v3837_v34 = vmul.f32 %v11144_v37, %v3741_v2 }
 0x757   : > { %v3652_v33 = vmul.f32 0.125, %v3596_v50  ;;  %v11146_v31 = vpop.eup %11145  ;;  %v3715_v19 = vsub.f32 %v3651_v12, %v3683_v25  ;;  %v3590_v9 = vpop.xlane.xlu0 %3589  ;;  %v3410_v53 = vadd.f32 %v13450_v46, %v3409_v26  ;;  %3513 = vadd.xlane.f32.xlu0 %v13682_v35  ;;  %v16317_v25 = vld [vmem:[#allocation32_spill] sm:$0xff] }
 0x758   : > { %v13693_v24 = vadd.f32 %v3418_v22, %v16316_v60  ;;  %v13698_v62 = vadd.f32 %v13669_v20, %v3879_v54  ;;  %v3876_v17 = vmul.f32 %v13660_v41, %v3837_v34  ;;  %v3838_v2 = vmul.f32 %v11146_v31, %v3742_v45 }
 0x759   : > { %v3716_v63 = vsub.f32 %v3652_v33, %v3684_v36  ;;  %v3779_v16 = vadd.f32 1e-05, %v3715_v19  ;;  %v13704_v21 = vadd.f32 %v3407_v29, %v16317_v25  ;;  %v3649_v55 = vmul.f32 0.125, %v3590_v9  ;;  %v16318_v36 = vld [vmem:[#allocation34_spill] sm:$0xff] }
 0x75a   : > { %v3592_v51 = vpop.xlane.xlu1 %3591  ;;  %3515 = vadd.xlane.f32.xlu1 %v13693_v24  ;;  %v13708_v46 = vadd.f32 %v13669_v20, %v3876_v17  ;;  %v3877_v57 = vmul.f32 %v13660_v41, %v3838_v2  ;;  %v13712_v12 = vadd.f32 %v3410_v53, %v16318_v36  ;;  %v3579_v19 = vmul.f32 %v13682_v35, %v13682_v35 }
 0x75b   : > { %v3780_v44 = vadd.f32 1e-05, %v3716_v63  ;;  %v3650_v37 = vmul.f32 0.125, %v3592_v51  ;;  %11147 = vrsqrt.f32 %v3779_v16  ;;  %v3713_v45 = vsub.f32 %v3649_v55, %v3681_v43  ;;  %3509 = vadd.xlane.f32.xlu0 %v13704_v21  ;;  %v3474_v29 = vpop.xlane.xlu0 %3473 }
 0x75c   : > { %v13716_v42 = vadd.f32 %v13669_v20, %v3877_v57  ;;  %v3577_v26 = vmul.f32 %v13704_v21, %v13704_v21  ;;  %v3578_v33 = vmul.f32 %v13712_v12, %v13712_v12  ;;  %v13723_v43 = vmul.f32 0.125, %v3474_v29 }
 0x75d   : > { %11149 = vrsqrt.f32 %v3780_v44  ;;  %v3714_v50 = vsub.f32 %v3650_v37, %v3682_v23  ;;  %v3777_v22 = vadd.f32 1e-05, %v3713_v45  ;;  %v3580_v53 = vmul.f32 %v13693_v24, %v13693_v24 }
 0x75e   : > { %3511 = vadd.xlane.f32.xlu1 %v13712_v12  ;;  %v3476_v34 = vpop.xlane.xlu1 %3475  ;;  %v3747_v17 = vsub.f32 %v13482_v48, %v13652_v59  ;;  %v3748_v23 = vsub.f32 %v13487_v18, %v13655_v38  ;;  %v3687_v16 = vmul.f32 %v13723_v43, %v13723_v43  ;;  %v3745_v36 = vsub.f32 %v13492_v32, %v13673_v30 }
 0x75f   : > { %v3778_v54 = vadd.f32 1e-05, %v3714_v50  ;;  %11151 = vrsqrt.f32 %v3777_v22  ;;  %3637 = vadd.xlane.f32.xlu0 %v3577_v26  ;;  %v3470_v31 = vpop.xlane.xlu0 %3469  ;;  %v13727_v9 = vmul.f32 0.125, %v3476_v34  ;;  %v3746_v18 = vsub.f32 %v13496_v7, %v13679_v6 }
 0x760   : > { %v13737_v57 = vmul.f32 0.125, %v3470_v31 }
 0x761   : > { %11153 = vrsqrt.f32 %v3778_v54  ;;  %v3688_v45 = vmul.f32 %v13727_v9, %v13727_v9 }
 0x762   : > { %3639 = vadd.xlane.f32.xlu1 %v3578_v33  ;;  %v3472_v60 = vpop.xlane.xlu1 %3471  ;;  %v3685_v32 = vmul.f32 %v13737_v57, %v13737_v57 }
 0x763   : > { %3641 = vadd.xlane.f32.xlu0 %v3579_v19  ;;  %v3602_v2 = vpop.xlane.xlu0 %3601  ;;  %v13746_v50 = vmul.f32 0.125, %v3472_v60 }
 0x764   : > { %v3655_v25 = vmul.f32 0.125, %v3602_v2 }
 0x765   : > { %v11148_v63 = vpop.eup %11147  ;;  %v3686_v2 = vmul.f32 %v13746_v50, %v13746_v50 }
 0x766   : > { %3643 = vadd.xlane.f32.xlu1 %v3580_v53  ;;  %v3843_v51 = vmul.f32 %v11148_v63, %v3747_v17  ;;  %v3604_v44 = vpop.xlane.xlu1 %3603  ;;  %v3719_v48 = vsub.f32 %v3655_v25, %v3687_v16 }
 0x767   : > { %v11150_v55 = vpop.eup %11149  ;;  %v3656_v59 = vmul.f32 0.125, %v3604_v44  ;;  %v3598_v29 = vpop.xlane.xlu0 %3597 }
 0x768   : > { %v3844_v37 = vmul.f32 %v11150_v55, %v3748_v23  ;;  %v3882_v38 = vmul.f32 %v13660_v41, %v3843_v51  ;;  %v3783_v54 = vadd.f32 1e-05, %v3719_v48  ;;  %v3653_v33 = vmul.f32 0.125, %v3598_v29 }
 0x769   : > { %v11152_v22 = vpop.eup %11151  ;;  %v3720_v34 = vsub.f32 %v3656_v59, %v3688_v45  ;;  %v3751_v29 = vsub.f32 %v13510_v4, %v13723_v43  ;;  %v3749_v4 = vsub.f32 %v13520_v8, %v13737_v57 }
 0x76a   : > { %v3883_v26 = vmul.f32 %v13660_v41, %v3844_v37  ;;  %v13750_v19 = vadd.f32 %v13669_v20, %v3882_v38  ;;  %v3841_v53 = vmul.f32 %v11152_v22, %v3745_v36  ;;  %v3600_v7 = vpop.xlane.xlu1 %3599  ;;  %11155 = vrsqrt.f32 %v3783_v54 }
 0x76b   : > { %v11154_v31 = vpop.eup %11153  ;;  %v3784_v60 = vadd.f32 1e-05, %v3720_v34  ;;  %v3717_v63 = vsub.f32 %v3653_v33, %v3685_v32  ;;  %v3654_v23 = vmul.f32 0.125, %v3600_v7  ;;  %v3482_v16 = vpop.xlane.xlu0 %3481 }
 0x76c   : > { %v13755_v30 = vadd.f32 %v13669_v20, %v3883_v26  ;;  %v3842_v6 = vmul.f32 %v11154_v31, %v3746_v18  ;;  %v3880_v17 = vmul.f32 %v13660_v41, %v3841_v53  ;;  %v13767_v36 = vmul.f32 0.125, %v3482_v16 }
 0x76d   : > { %11157 = vrsqrt.f32 %v3784_v60  ;;  %v3781_v51 = vadd.f32 1e-05, %v3717_v63  ;;  %v3718_v44 = vsub.f32 %v3654_v23, %v3686_v2  ;;  %v3752_v31 = vsub.f32 %v13515_v58, %v13727_v9 }
 0x76e   : > { %v3881_v25 = vmul.f32 %v13660_v41, %v3842_v6  ;;  %v13762_v55 = vadd.f32 %v13669_v20, %v3880_v17  ;;  %v3484_v37 = vpop.xlane.xlu1 %3483  ;;  %v3691_v54 = vmul.f32 %v13767_v36, %v13767_v36 }
 0x76f   : > { %11159 = vrsqrt.f32 %v3781_v51  ;;  %v3782_v48 = vadd.f32 1e-05, %v3718_v44  ;;  %v3478_v59 = vpop.xlane.xlu0 %3477  ;;  %v13769_v38 = vmul.f32 0.125, %v3484_v37  ;;  %v3750_v44 = vsub.f32 %v13524_v52, %v13746_v50 }
 0x770   : > { %v13765_v45 = vadd.f32 %v13669_v20, %v3881_v25  ;;  %v13775_v34 = vmul.f32 0.125, %v3478_v59 }
 0x771   : > { %11161 = vrsqrt.f32 %v3782_v48  ;;  %v3692_v6 = vmul.f32 %v13769_v38, %v13769_v38 }
 0x772   : > { %v3480_v18 = vpop.xlane.xlu1 %3479  ;;  %v3689_v58 = vmul.f32 %v13775_v34, %v13775_v34 }
 0x773   : > { %v3610_v22 = vpop.xlane.xlu0 %3609  ;;  %v13784_v63 = vmul.f32 0.125, %v3480_v18 }
 0x774   : > { %v11156_v26 = vpop.eup %11155  ;;  %v3659_v33 = vmul.f32 0.125, %v3610_v22 }
 0x775   : > { %v3847_v53 = vmul.f32 %v11156_v26, %v3751_v29  ;;  %v3690_v26 = vmul.f32 %v13784_v63, %v13784_v63 }
 0x776   : > { %v3612_v32 = vpop.xlane.xlu1 %3611  ;;  %v3723_v60 = vsub.f32 %v3659_v33, %v3691_v54 }
 0x777   : > { %v11158_v7 = vpop.eup %11157  ;;  %v3660_v17 = vmul.f32 0.125, %v3612_v32  ;;  %v3886_v43 = vmul.f32 %v13660_v41, %v3847_v53  ;;  %v3606_v23 = vpop.xlane.xlu0 %3605 }
 0x778   : > { %v3848_v2 = vmul.f32 %v11158_v7, %v3752_v31  ;;  %v3787_v9 = vadd.f32 1e-05, %v3723_v60  ;;  %v3657_v25 = vmul.f32 0.125, %v3606_v23 }
 0x779   : > { %v3724_v16 = vsub.f32 %v3660_v17, %v3692_v6  ;;  %v11160_v51 = vpop.eup %11159  ;;  %v13791_v37 = vadd.f32 %v13669_v20, %v3886_v43 }
 0x77a   : > { %v3887_v8 = vmul.f32 %v13660_v41, %v3848_v2  ;;  %v3608_v57 = vpop.xlane.xlu1 %3607  ;;  %v3845_v48 = vmul.f32 %v11160_v51, %v3749_v4  ;;  %11163 = vrsqrt.f32 %v3787_v9  ;;  %v3721_v18 = vsub.f32 %v3657_v25, %v3689_v58 }
 0x77b   : > { %v3788_v59 = vadd.f32 1e-05, %v3724_v16  ;;  %v11162_v29 = vpop.eup %11161  ;;  %v3658_v54 = vmul.f32 0.125, %v3608_v57  ;;  %v3490_v33 = vpop.xlane.xlu0 %3489  ;;  %v3755_v58 = vsub.f32 %v13538_v39, %v13767_v36 }
 0x77c   : > { %v13795_v22 = vadd.f32 %v13669_v20, %v3887_v8  ;;  %v3884_v52 = vmul.f32 %v13660_v41, %v3845_v48  ;;  %v3846_v50 = vmul.f32 %v11162_v29, %v3750_v44  ;;  %v3785_v31 = vadd.f32 1e-05, %v3721_v18 }
 0x77d   : > { %11165 = vrsqrt.f32 %v3788_v59  ;;  %v3722_v53 = vsub.f32 %v3658_v54, %v3690_v26  ;;  %v13807_v43 = vmul.f32 0.125, %v3490_v33  ;;  %v3756_v8 = vsub.f32 %v13543_v56, %v13769_v38 }
 0x77e   : > { %v3492_v32 = vpop.xlane.xlu1 %3491  ;;  %v13801_v7 = vadd.f32 %v13669_v20, %v3884_v52  ;;  %v3885_v6 = vmul.f32 %v13660_v41, %v3846_v50  ;;  %11167 = vrsqrt.f32 %v3785_v31  ;;  %v3753_v26 = vsub.f32 %v13548_v61, %v13775_v34 }
 0x77f   : > { %v3786_v60 = vadd.f32 1e-05, %v3722_v53  ;;  %v3486_v17 = vpop.xlane.xlu0 %3485  ;;  %v13809_v23 = vmul.f32 0.125, %v3492_v32  ;;  %v3695_v25 = vmul.f32 %v13807_v43, %v13807_v43  ;;  %v3754_v54 = vsub.f32 %v13552_v49, %v13784_v63 }
 0x780   : > { %v13805_v4 = vadd.f32 %v13669_v20, %v3885_v6  ;;  %v13815_v51 = vmul.f32 0.125, %v3486_v17 }
 0x781   : > { %11169 = vrsqrt.f32 %v3786_v60  ;;  %v3696_v29 = vmul.f32 %v13809_v23, %v13809_v23 }
 0x782   : > { %v3488_v2 = vpop.xlane.xlu1 %3487  ;;  %v3693_v50 = vmul.f32 %v13815_v51, %v13815_v51 }
 0x783   : > { %v3618_v9 = vpop.xlane.xlu0 %3617  ;;  %v13819_v48 = vmul.f32 0.125, %v3488_v2 }
 0x784   : > { %v11164_v16 = vpop.eup %11163  ;;  %v3663_v44 = vmul.f32 0.125, %v3618_v9 }
 0x785   : > { %v3851_v57 = vmul.f32 %v11164_v16, %v3755_v58  ;;  %v3694_v49 = vmul.f32 %v13819_v48, %v13819_v48 }
 0x786   : > { %v3620_v59 = vpop.xlane.xlu1 %3619  ;;  %v3727_v39 = vsub.f32 %v3663_v44, %v3695_v25 }
 0x787   : > { %v11166_v18 = vpop.eup %11165  ;;  %v3664_v36 = vmul.f32 0.125, %v3620_v59  ;;  %v3890_v33 = vmul.f32 %v13660_v41, %v3851_v57  ;;  %v3614_v56 = vpop.xlane.xlu0 %3613 }
 0x788   : > { %v3852_v52 = vmul.f32 %v11166_v18, %v3756_v8  ;;  %v11168_v38 = vpop.eup %11167  ;;  %v3791_v31 = vadd.f32 1e-05, %v3727_v39  ;;  %v3661_v32 = vmul.f32 0.125, %v3614_v56  ;;  %v3759_v56 = vsub.f32 %v13566_v0, %v13807_v43 }
 0x789   : > { %v3728_v53 = vsub.f32 %v3664_v36, %v3696_v29  ;;  %v13831_v6 = vadd.f32 %v13669_v20, %v3890_v33  ;;  %v3849_v61 = vmul.f32 %v11168_v38, %v3753_v26 }
 0x78a   : > { %v3891_v60 = vmul.f32 %v13660_v41, %v3852_v52  ;;  %v3616_v34 = vpop.xlane.xlu1 %3615  ;;  %11171 = vrsqrt.f32 %v3791_v31  ;;  %v3725_v17 = vsub.f32 %v3661_v32, %v3693_v50 }
 0x78b   : > { %v3792_v63 = vadd.f32 1e-05, %v3728_v53  ;;  %v3662_v2 = vmul.f32 0.125, %v3616_v34  ;;  %v11170_v58 = vpop.eup %11169  ;;  %v3888_v16 = vmul.f32 %v13660_v41, %v3849_v61  ;;  %v3498_v25 = vpop.xlane.xlu0 %3497 }
 0x78c   : > { %v13837_v9 = vadd.f32 %v13669_v20, %v3891_v60  ;;  %v3850_v44 = vmul.f32 %v11170_v58, %v3754_v54  ;;  %v3789_v8 = vadd.f32 1e-05, %v3725_v17  ;;  %v13847_v33 = vmul.f32 0.125, %v3498_v25 }
 0x78d   : > { %11173 = vrsqrt.f32 %v3792_v63  ;;  %v3726_v57 = vsub.f32 %v3662_v2, %v3694_v49  ;;  %v13841_v59 = vadd.f32 %v13669_v20, %v3888_v16  ;;  %v3760_v60 = vsub.f32 %v13571_v13, %v13809_v23 }
 0x78e   : > { %v3500_v18 = vpop.xlane.xlu1 %3499  ;;  %v3889_v29 = vmul.f32 %v13660_v41, %v3850_v44  ;;  %11175 = vrsqrt.f32 %v3789_v8  ;;  %v3699_v31 = vmul.f32 %v13847_v33, %v13847_v33  ;;  %v3757_v2 = vsub.f32 %v13576_v5, %v13815_v51 }
 0x78f   : > { %v3790_v39 = vadd.f32 1e-05, %v3726_v57  ;;  %v3494_v36 = vpop.xlane.xlu0 %3493  ;;  %v13849_v54 = vmul.f32 0.125, %v3500_v18  ;;  %v3758_v58 = vsub.f32 %v13580_v11, %v13819_v48 }
 0x790   : > { %v13845_v26 = vadd.f32 %v13669_v20, %v3889_v29  ;;  %v13855_v53 = vmul.f32 0.125, %v3494_v36 }
 0x791   : > { %11177 = vrsqrt.f32 %v3790_v39  ;;  %v3700_v17 = vmul.f32 %v13849_v54, %v13849_v54 }
 0x792   : > { %v3496_v52 = vpop.xlane.xlu1 %3495  ;;  %v3697_v44 = vmul.f32 %v13855_v53, %v13855_v53 }
 0x793   : > { %v3626_v38 = vpop.xlane.xlu0 %3625  ;;  %v13859_v49 = vmul.f32 0.125, %v3496_v52 }
 0x794   : > { %v11172_v50 = vpop.eup %11171  ;;  %v3667_v32 = vmul.f32 0.125, %v3626_v38 }
 0x795   : > { %v3855_v61 = vmul.f32 %v11172_v50, %v3759_v56  ;;  %v3698_v11 = vmul.f32 %v13859_v49, %v13859_v49 }
 0x796   : > { %v3628_v34 = vpop.xlane.xlu1 %3627  ;;  %v3731_v0 = vsub.f32 %v3667_v32, %v3699_v31 }
 0x797   : > { %v11174_v63 = vpop.eup %11173  ;;  %v3668_v43 = vmul.f32 0.125, %v3628_v34  ;;  %v3894_v16 = vmul.f32 %v13660_v41, %v3855_v61  ;;  %v3622_v13 = vpop.xlane.xlu0 %3621 }
 0x798   : > { %v3856_v25 = vmul.f32 %v11174_v63, %v3760_v60  ;;  %v11176_v23 = vpop.eup %11175  ;;  %v3795_v8 = vadd.f32 1e-05, %v3731_v0  ;;  %v3665_v18 = vmul.f32 0.125, %v3622_v13  ;;  %v3763_v13 = vsub.f32 %v13594_v1, %v13847_v33 }
 0x799   : > { %v3732_v57 = vsub.f32 %v3668_v43, %v3700_v17  ;;  %v13871_v29 = vadd.f32 %v13669_v20, %v3894_v16  ;;  %v3853_v5 = vmul.f32 %v11176_v23, %v3757_v2  ;;  %v3762_v1 = vsub.f32 %v13608_v28, %v13859_v49 }
 0x79a   : > { %v3895_v39 = vmul.f32 %v13660_v41, %v3856_v25  ;;  %v3624_v51 = vpop.xlane.xlu1 %3623  ;;  %11179 = vrsqrt.f32 %v3795_v8  ;;  %v3729_v52 = vsub.f32 %v3665_v18, %v3697_v44 }
 0x79b   : > { %v11178_v48 = vpop.eup %11177  ;;  %v3796_v36 = vadd.f32 1e-05, %v3732_v57  ;;  %v3666_v56 = vmul.f32 0.125, %v3624_v51  ;;  %v3892_v50 = vmul.f32 %v13660_v41, %v3853_v5  ;;  %v3506_v32 = vpop.xlane.xlu0 %3505 }
 0x79c   : > { %v13877_v38 = vadd.f32 %v13669_v20, %v3895_v39  ;;  %v3854_v31 = vmul.f32 %v11178_v48, %v3758_v58  ;;  %v3793_v60 = vadd.f32 1e-05, %v3729_v52  ;;  %v3543_v16 = vmul.f32 0.125, %v3506_v32 }
 0x79d   : > { %11181 = vrsqrt.f32 %v3796_v36  ;;  %v3730_v61 = vsub.f32 %v3666_v56, %v3698_v11  ;;  %v13881_v34 = vadd.f32 %v13669_v20, %v3892_v50  ;;  %v3764_v39 = vsub.f32 %v13599_v3, %v13849_v54 }
 0x79e   : > { %v3893_v63 = vmul.f32 %v13660_v41, %v3854_v31  ;;  %v3508_v17 = vpop.xlane.xlu1 %3507  ;;  %11183 = vrsqrt.f32 %v3793_v60  ;;  %v3703_v8 = vmul.f32 %v3543_v16, %v3543_v16  ;;  %v3761_v50 = vsub.f32 %v13604_v15, %v13855_v53 }
 0x79f   : > { %v3794_v0 = vadd.f32 1e-05, %v3730_v61  ;;  %v3502_v2 = vpop.xlane.xlu0 %3501  ;;  %v3544_v58 = vmul.f32 0.125, %v3508_v17 }
 0x7a0   : > { %v13885_v43 = vadd.f32 %v13669_v20, %v3893_v63  ;;  %v3541_v57 = vmul.f32 0.125, %v3502_v2 }
 0x7a1   : > { %11185 = vrsqrt.f32 %v3794_v0  ;;  %v3704_v36 = vmul.f32 %v3544_v58, %v3544_v58 }
 0x7a2   : > { %v3504_v25 = vpop.xlane.xlu1 %3503  ;;  %v3701_v61 = vmul.f32 %v3541_v57, %v3541_v57 }
 0x7a3   : > { %v3634_v23 = vpop.xlane.xlu0 %3633  ;;  %v3542_v11 = vmul.f32 0.125, %v3504_v25 }
 0x7a4   : > { %v11180_v44 = vpop.eup %11179  ;;  %v3671_v18 = vmul.f32 0.125, %v3634_v23 }
 0x7a5   : > { %v3859_v5 = vmul.f32 %v11180_v44, %v3763_v13  ;;  %v3702_v25 = vmul.f32 %v3542_v11, %v3542_v11 }
 0x7a6   : > { %v3636_v51 = vpop.xlane.xlu1 %3635  ;;  %v3735_v52 = vsub.f32 %v3671_v18, %v3703_v8 }
 0x7a7   : > { %v11182_v48 = vpop.eup %11181  ;;  %v3672_v56 = vmul.f32 0.125, %v3636_v51  ;;  %v3898_v33 = vmul.f32 %v13660_v41, %v3859_v5  ;;  %v3630_v32 = vpop.xlane.xlu0 %3629 }
 0x7a8   : > { %v3860_v31 = vmul.f32 %v11182_v48, %v3764_v39  ;;  %v11184_v60 = vpop.eup %11183  ;;  %v3799_v3 = vadd.f32 1e-05, %v3735_v52  ;;  %v3669_v63 = vmul.f32 0.125, %v3630_v32  ;;  %v3767_v52 = vsub.f32 %v13622_v27, %v3543_v16 }
 0x7a9   : > { %v3736_v54 = vsub.f32 %v3672_v56, %v3704_v36  ;;  %v13897_v17 = vadd.f32 %v13669_v20, %v3898_v33  ;;  %v3857_v2 = vmul.f32 %v11184_v60, %v3761_v50  ;;  %v3768_v50 = vsub.f32 %v13627_v10, %v3544_v58 }
 0x7aa   : > { %v3899_v0 = vmul.f32 %v13660_v41, %v3860_v31  ;;  %v3632_v15 = vpop.xlane.xlu1 %3631  ;;  %11187 = vrsqrt.f32 %v3799_v3  ;;  %v3733_v49 = vsub.f32 %v3669_v63, %v3701_v61  ;;  %v3765_v31 = vsub.f32 %v13632_v14, %v3541_v57 }
 0x7ab   : > { %v11186_v53 = vpop.eup %11185  ;;  %v3800_v28 = vadd.f32 1e-05, %v3736_v54  ;;  %v3670_v13 = vmul.f32 0.125, %v3632_v15  ;;  %v3896_v44 = vmul.f32 %v13660_v41, %v3857_v2  ;;  %v3766_v3 = vsub.f32 %v13636_v40, %v3542_v11 }
 0x7ac   : > { %v13901_v23 = vadd.f32 %v13669_v20, %v3899_v0  ;;  %v3858_v8 = vmul.f32 %v11186_v53, %v3762_v1  ;;  %v3797_v18 = vadd.f32 1e-05, %v3733_v49 }
 0x7ad   : > { %11189 = vrsqrt.f32 %v3800_v28  ;;  %v3734_v39 = vsub.f32 %v3670_v13, %v3702_v25  ;;  %v13905_v5 = vadd.f32 %v13669_v20, %v3896_v44 }
 0x7ae   : > { %v3897_v51 = vmul.f32 %v13660_v41, %v3858_v8  ;;  %11191 = vrsqrt.f32 %v3797_v18 }
 0x7af   : > { %v3798_v48 = vadd.f32 1e-05, %v3734_v39 }
 0x7b0   : > { %v13909_v36 = vadd.f32 %v13669_v20, %v3897_v51 }
 0x7b1   : > { %11193 = vrsqrt.f32 %v3798_v48 }
 0x7b4   : > { %v11188_v56 = vpop.eup %11187 }
 0x7b5   : > { %v3863_v1 = vmul.f32 %v11188_v56, %v3767_v52 }
 0x7b7   : > { %v11190_v33 = vpop.eup %11189  ;;  %v3902_v32 = vmul.f32 %v13660_v41, %v3863_v1 }
 0x7b8   : > { %v3864_v60 = vmul.f32 %v11190_v33, %v3768_v50  ;;  %v11192_v61 = vpop.eup %11191 }
 0x7b9   : > { %v13917_v54 = vadd.f32 %v13669_v20, %v3902_v32  ;;  %v3861_v0 = vmul.f32 %v11192_v61, %v3765_v31 }
 0x7ba   : > { %v3903_v63 = vmul.f32 %v13660_v41, %v3864_v60 }
 0x7bb   : > { %v11194_v27 = vpop.eup %11193  ;;  %v3900_v10 = vmul.f32 %v13660_v41, %v3861_v0 }
 0x7bc   : > { %v13921_v16 = vadd.f32 %v13669_v20, %v3903_v63  ;;  %v3862_v58 = vmul.f32 %v11194_v27, %v3766_v3 }
 0x7bd   : > { %v13925_v14 = vadd.f32 %v13669_v20, %v3900_v10 }
 0x7be   : > { %v3901_v57 = vmul.f32 %v13660_v41, %v3862_v58 }
 0x7c0   : > { %v13929_v40 = vadd.f32 %v13669_v20, %v3901_v57 }
 0x7e4   : > { %v3514_v11 = vpop.xlane.xlu0 %3513 }
 0x7e5   : > { %v3547_v13 = vmul.f32 0.125, %v3514_v11 }
 0x7e7   : > { %v3516_v2 = vpop.xlane.xlu1 %3515  ;;  %v3707_v50 = vmul.f32 %v3547_v13, %v3547_v13 }
 0x7e8   : > { %v3510_v25 = vpop.xlane.xlu0 %3509  ;;  %v3548_v18 = vmul.f32 0.125, %v3516_v2 }
 0x7e9   : > { %v3545_v15 = vmul.f32 0.125, %v3510_v25 }
 0x7ea   : > { %v3708_v32 = vmul.f32 %v3548_v18, %v3548_v18 }
 0x7eb   : > { %v3512_v53 = vpop.xlane.xlu1 %3511  ;;  %v3705_v44 = vmul.f32 %v3545_v15, %v3545_v15  ;;  %v3769_v58 = vsub.f32 %v13704_v21, %v3545_v15 }
 0x7ec   : > { %v3546_v28 = vmul.f32 0.125, %v3512_v53  ;;  %v3638_v49 = vpop.xlane.xlu0 %3637  ;;  %v3771_v53 = vsub.f32 %v13682_v35, %v3547_v13 }
 0x7ed   : > { %v3673_v8 = vmul.f32 0.125, %v3638_v49 }
 0x7ee   : > { %v3706_v51 = vmul.f32 %v3546_v28, %v3546_v28  ;;  %v3770_v11 = vsub.f32 %v13712_v12, %v3546_v28 }
 0x7ef   : > { %v3640_v39 = vpop.xlane.xlu1 %3639  ;;  %v3737_v48 = vsub.f32 %v3673_v8, %v3705_v44 }
 0x7f0   : > { %v3674_v52 = vmul.f32 0.125, %v3640_v39  ;;  %v3642_v56 = vpop.xlane.xlu0 %3641  ;;  %v3772_v39 = vsub.f32 %v13693_v24, %v3548_v18  ;;  %v11485_v24 = vmov (!%p8693_p4), 0  }
 0x7f1   : > { %v3801_v1 = vadd.f32 1e-05, %v3737_v48  ;;  %v3675_v31 = vmul.f32 0.125, %v3642_v56  ;;  %3951 = vst [vmem:[#allocation2 + $0x80] sm:$0xf] (!%p8693_p4), %v11485_v24 }
 0x7f2   : > { %v3738_v33 = vsub.f32 %v3674_v52, %v3706_v51 }
 0x7f3   : > { %v3644_v60 = vpop.xlane.xlu1 %3643  ;;  %11195 = vrsqrt.f32 %v3801_v1  ;;  %v3739_v3 = vsub.f32 %v3675_v31, %v3707_v50 }
 0x7f4   : > { %v3802_v61 = vadd.f32 1e-05, %v3738_v33  ;;  %v3676_v63 = vmul.f32 0.125, %v3644_v60 }
 0x7f5   : > { %v3803_v0 = vadd.f32 1e-05, %v3739_v3 }
 0x7f6   : > { %11197 = vrsqrt.f32 %v3802_v61  ;;  %v3740_v27 = vsub.f32 %v3676_v63, %v3708_v32 }
 0x7f7   : > { %11199 = vrsqrt.f32 %v3803_v0 }
 0x7f8   : > { %v3804_v10 = vadd.f32 1e-05, %v3740_v27 }
 0x7fa   : > { %11201 = vrsqrt.f32 %v3804_v10 }
 0x7fd   : > { %v11196_v57 = vpop.eup %11195 }
 0x7fe   : > { %v3865_v2 = vmul.f32 %v11196_v57, %v3769_v58 }
 0x800   : > { %v11198_v25 = vpop.eup %11197  ;;  %v3904_v49 = vmul.f32 %v13660_v41, %v3865_v2 }
 0x801   : > { %v3866_v44 = vmul.f32 %v11198_v25, %v3770_v11  ;;  %v11200_v8 = vpop.eup %11199 }
 0x802   : > { %v3943_v51 = vadd.f32 %v13669_v20, %v3904_v49  ;;  %v3867_v52 = vmul.f32 %v11200_v8, %v3771_v53 }
 0x803   : > { %v3905_v48 = vmul.f32 %v13660_v41, %v3866_v44  ;;  %3950 = sbr.rel (%p8693_p4) target bundleno = 2058 (0x80a), region = 72 }
 0x804   : > { %v11202_v56 = vpop.eup %11201  ;;  %v3906_v12 = vmul.f32 %v13660_v41, %v3867_v52 }
 0x805   : > { %v3944_v21 = vadd.f32 %v13669_v20, %v3905_v48  ;;  %v3868_v15 = vmul.f32 %v11202_v56, %v3772_v39 }
 0x806   : > { %v13941_v28 = vadd.f32 %v13669_v20, %v3906_v12 }
 0x807   : > { %v3907_v35 = vmul.f32 %v13660_v41, %v3868_v15 }
 0x809   : > { %v13945_v13 = vadd.f32 %v13669_v20, %v3907_v35 }
 0x80a PF: > { %v11203_v18 = vld [vmem:[%s15682_s9 + $0x40] sm:$0xff]   ;;  %v9153_v50 = vpack.c.bf16 %v13716_v42, %v13708_v46  ;;  %v9158_v1 = vpack.c.bf16 %v13698_v62, %v13687_v47  ;;  %v9163_v41 = vpack.c.bf16 %v13765_v45, %v13762_v55  ;;  %v9168_v20 = vpack.c.bf16 %v13755_v30, %v13750_v19  ;;  %v11204_v33 = vld [vmem:[%s15682_s9 + $0x48] sm:$0xff]   ;;  %v11210_v60 = vld [vmem:[%s15682_s9 + $0x78] sm:$0xff]  }
 0x80b   : > { %v9173_v31 = vpack.c.bf16 %v13805_v4, %v13801_v7  ;;  %v9178_v32 = vpack.c.bf16 %v13795_v22, %v13791_v37  ;;  %v9183_v46 = vpack.c.bf16 %v13845_v26, %v13841_v59  ;;  %v9188_v47 = vpack.c.bf16 %v13837_v9, %v13831_v6  ;;  %10047 = vmatprep.subr.bf16.mxu1 %v11203_v18  ;;  %v11205_v22 = vld [vmem:[%s15682_s9 + $0x50] sm:$0xff]   ;;  %v11206_v7 = vld [vmem:[%s15682_s9 + $0x58] sm:$0xff]   ;;  %v11207_v26 = vld [vmem:[%s15682_s9 + $0x60] sm:$0xff]  }
 0x80c   : > { %9154 = vst [vmem:[#allocation2] sm:$0xff] %v9153_v50   ;;  %9300 = vst [vmem:[#allocation2 + $0x8] sm:$0xff] %v9158_v1   ;;  %v9193_v62 = vpack.c.bf16 %v13885_v43, %v13881_v34  ;;  %v9198_v42 = vpack.c.bf16 %v13877_v38, %v13871_v29  ;;  %v9203_v19 = vpack.c.bf16 %v13909_v36, %v13905_v5  ;;  %10048 = vmatpush3.bf16.msra.mxu1 %v11203_v18  ;;  %vm4247_vm6 = vsmask.f32 7424  ;;  %v11214_v58 = vld [vmem:[%s15682_s9] sm:$0xff]   ;;  %v11216_v49 = vld [vmem:[%s15682_s9 + $0x8] sm:$0xff]  }
 0x80d   : > { %9301 = vst [vmem:[#allocation2 + $0x10] sm:$0xff] %v9163_v41   ;;  %9302 = vst [vmem:[#allocation2 + $0x18] sm:$0xff] %v9168_v20   ;;  %v9208_v30 = vpack.c.bf16 %v13901_v23, %v13897_v17  ;;  %v9213_v55 = vpack.c.bf16 %v13929_v40, %v13925_v14  ;;  %v9218_v45 = vpack.c.bf16 %v13921_v16, %v13917_v54  ;;  %10049 = vmatprep.subr.bf16.mxu1 %v11204_v33  ;;  %v11208_v23 = vld [vmem:[%s15682_s9 + $0x68] sm:$0xff]   ;;  %v11209_v14 = vld [vmem:[%s15682_s9 + $0x70] sm:$0xff]   ;;  %vm4799_vm7 = vcmask 1046528  }
 0x80e   : > { %9303 = vst [vmem:[#allocation2 + $0x20] sm:$0xff] %v9173_v31   ;;  %9304 = vst [vmem:[#allocation2 + $0x28] sm:$0xff] %v9178_v32   ;;  %v9223_v37 = vpack.c.bf16 %v3944_v21, %v3943_v51  ;;  %v11218_v12 = vld [vmem:[%s15682_s9 + $0x10] sm:$0xff]   ;;  %v11221_v1 = vld [vmem:[%s15682_s9 + $0x18] sm:$0xff]  }
 0x80f   : > { %9305 = vst [vmem:[#allocation2 + $0x30] sm:$0xff] %v9183_v46   ;;  %9306 = vst [vmem:[#allocation2 + $0x38] sm:$0xff] %v9188_v47  }
 0x810   : > { %9307 = vst [vmem:[#allocation2 + $0x40] sm:$0xff] %v9193_v62   ;;  %9308 = vst [vmem:[#allocation2 + $0x48] sm:$0xff] %v9198_v42   ;;  %10050 = vmatpush3.bf16.msra.mxu1 %v11204_v33 }
 0x811   : > { %9309 = vst [vmem:[#allocation2 + $0x50] sm:$0xff] %v9203_v19   ;;  %9310 = vst [vmem:[#allocation2 + $0x58] sm:$0xff] %v9208_v30   ;;  %10051 = vmatprep.subr.bf16.mxu1 %v11205_v22 }
 0x812   : > { %9311 = vst [vmem:[#allocation2 + $0x60] sm:$0xff] %v9213_v55   ;;  %9312 = vst [vmem:[#allocation2 + $0x68] sm:$0xff] %v9218_v45   ;;  %v11224_v55 = vld [vmem:[%s15682_s9 + $0x20] sm:$0xff]  }
 0x813   : > { %9313 = vst [vmem:[#allocation2 + $0x70] sm:$0xff] %v9223_v37   ;;  %v4112_v4 = vld [vmem:[#allocation2] sm:$0xf]  ;;  %v13988_v6 = vld [vmem:[#allocation2 + $0x4] sm:$0xf]  ;;  %v13993_v59 = vld [vmem:[#allocation2 + $0x8] sm:$0xff]  }
 0x814   : > { %v13991_v9 = vcombine.low %v4112_v4, %v13988_v6  ;;  %10052 = vmatpush3.bf16.msra.mxu1 %v11205_v22  ;;  %v4256_v34 = vshll.u32 %v13993_v59, 16  ;;  %v14005_v54 = vld [vmem:[#allocation2 + $0x10] sm:$0xff]   ;;  %v14007_v16 = vld [vmem:[#allocation2 + $0x18] sm:$0xff]   ;;  %v4260_v61 = vshrl.u32 %v13993_v59, 16 }
 0x815   : > { %10053 = vmatprep.subr.bf16.mxu1 %v11206_v7  ;;  %v4264_v40 = vshll.u32 %v14005_v54, 16  ;;  %v4268_v3 = vshrl.u32 %v14005_v54, 16  ;;  %v4272_v63 = vshll.u32 %v14007_v16, 16  ;;  %v14019_v27 = vld [vmem:[#allocation2 + $0x20] sm:$0xff]   ;;  %v14024_v2 = vld [vmem:[#allocation2 + $0x28] sm:$0xff]   ;;  %v4276_v44 = vshrl.u32 %v14007_v16, 16 }
 0x816   : > { %v4249_v29 = vshrl.u32 %v13991_v9, 16  ;;  %v4251_v38 = vshll.u32 %v13991_v9, 16  ;;  %v4258_v17 = vrot.slane %v4256_v34, 1  ;;  %v4280_v25 = vshll.u32 %v14019_v27, 16  ;;  %v14035_v52 = vld [vmem:[#allocation2 + $0x30] sm:$0xff]   ;;  %v14037_v21 = vld [vmem:[#allocation2 + $0x38] sm:$0xff]  }
 0x817   : > { %v4266_v0 = vrot.slane %v4264_v40, 1  ;;  %v4274_v11 = vrot.slane %v4272_v63, 1  ;;  %v4284_v39 = vshrl.u32 %v14019_v27, 16  ;;  %v4288_v51 = vshll.u32 %v14024_v2, 16  ;;  %v14043_v18 = vld [vmem:[#allocation2 + $0x40] sm:$0xff]   ;;  %v14051_v33 = vld [vmem:[#allocation2 + $0x48] sm:$0xff]  }
 0x818   : > { %v4253_v43 = vrot.slane %v4251_v38, 1  ;;  %10054 = vmatpush3.bf16.msra.mxu1 %v11206_v7  ;;  %v4262_v10 = vor.u32 %v4260_v61, %v4258_v17  ;;  %v4282_v48 = vrot.slane %v4280_v25, 1  ;;  %v4292_v24 = vshrl.u32 %v14024_v2, 16  ;;  %v14055_v46 = vld [vmem:[#allocation2 + $0x50] sm:$0xff]   ;;  %v14069_v38 = vld [vmem:[#allocation2 + $0x58] sm:$0xff]  }
 0x819   : > { %10055 = vmatprep.subr.bf16.mxu1 %v11207_v26  ;;  %v4270_v57 = vor.u32 %v4268_v3, %v4266_v0  ;;  %v4278_v56 = vor.u32 %v4276_v44, %v4274_v11  ;;  %v4290_v35 = vrot.slane %v4288_v51, 1  ;;  %v4296_v50 = vshll.u32 %v14035_v52, 16  ;;  %v11230_v3 = vld [vmem:[%s15682_s9 + $0x30] sm:$0xff]   ;;  %v11234_v44 = vld [vmem:[%s15682_s9 + $0x80] sm:$0xff]  }
 0x81a   : > { %v4254_v5 = vor.u32 %v4253_v43, %v4249_v29  ;;  %v4267_v53 = vsel %vm4247_vm6, %v4262_v10, %v4266_v0  ;;  %v4286_v15 = vor.u32 %v4284_v39, %v4282_v48  ;;  %v4304_v20 = vshll.u32 %v14037_v21, 16  ;;  %v11227_v29 = vld [vmem:[%s15682_s9 + $0x28] sm:$0xff]   ;;  %v11233_v10 = vld [vmem:[%s15682_s9 + $0x38] sm:$0xff]   ;;  %v14094_v39 = vld [vmem:[#allocation2 + $0x70] ss:$0 sps:$4 sm:$0x11]  }
 0x81b   : > { %v4275_v8 = vsel %vm4247_vm6, %v4270_v57, %v4274_v11  ;;  %v4283_v41 = vsel %vm4247_vm6, %v4278_v56, %v4282_v48  ;;  %v4300_v32 = vshrl.u32 %v14035_v52, 16  ;;  %v4312_v47 = vshll.u32 %v14043_v18, 16  ;;  %v14082_v0 = vld [vmem:[#allocation2 + $0x68] sm:$0xff]  }
 0x81c   : > { %v4259_v36 = vsel %vm4247_vm6, %v4254_v5, %v4258_v17  ;;  %10056 = vmatpush3.bf16.msra.mxu1 %v11207_v26  ;;  %v4291_v31 = vsel %vm4247_vm6, %v4286_v15, %v4290_v35  ;;  %v4298_v62 = vrot.slane %v4296_v50, 1  ;;  %v4294_v42 = vor.u32 %v4292_v24, %v4290_v35  ;;  %v14073_v17 = vld [vmem:[#allocation2 + $0x60] sm:$0xff]  }
 0x81d   : > { %10063 = vmatprep.mubr.bf16.mxu1 %v4259_v36  ;;  %10057 = vmatprep.subr.bf16.mxu1 %v11208_v23  ;;  %v4306_v19 = vrot.slane %v4304_v20, 1  ;;  %v4308_v30 = vshrl.u32 %v14037_v21, 16  ;;  %v4320_v37 = vshll.u32 %v14051_v33, 16  ;;  %v4328_v22 = vshll.u32 %v14055_v46, 16 }
 0x81e   : > { %v4302_v45 = vor.u32 %v4300_v32, %v4298_v62  ;;  %v4314_v7 = vrot.slane %v4312_v47, 1  ;;  %v4316_v4 = vshrl.u32 %v14043_v18, 16  ;;  %v4324_v26 = vshrl.u32 %v14051_v33, 16  ;;  %v11235_v47 = vld [vmem:[%s15682_s9 + $0x88] sm:$0xff]  }
 0x81f   : > { %v4299_v34 = vsel %vm4247_vm6, %v4294_v42, %v4298_v62  ;;  %v4332_v43 = vshrl.u32 %v14055_v46, 16  ;;  %v4322_v5 = vrot.slane %v4320_v37, 1  ;;  %v4330_v36 = vrot.slane %v4328_v22, 1  ;;  %v11236_v62 = vld [vmem:[%s15682_s9 + $0x90] sm:$0xff]   ;;  %v11237_v42 = vld [vmem:[%s15682_s9 + $0x98] sm:$0xff]  }
 0x820   : > { %10058 = vmatpush3.bf16.msra.mxu1 %v11208_v23  ;;  %v4307_v23 = vsel %vm4247_vm6, %v4302_v45, %v4306_v19  ;;  %v4340_v40 = vshrl.u32 %v14069_v38, 16  ;;  %v4344_v61 = vshll.u32 %v14073_v17, 16  ;;  %v4318_v63 = vor.u32 %v4316_v4, %v4314_v7  ;;  %v11243_v45 = vld [vmem:[%s15682_s9 + $0xc0] sm:$0xff]  }
 0x821   : > { %10059 = vmatprep.subr.bf16.mxu1 %v11209_v14  ;;  %v4348_v25 = vshrl.u32 %v14073_v17, 16  ;;  %v4360_v24 = vshll.u32 %v14094_v39, 16  ;;  %v4778_v37 = vld [vmem:[#allocation2] sm:$0xe]  ;;  %v4801_v4 = vrot.slane %v13993_v59, 1 }
 0x822   : > { %v4323_v57 = vsel %vm4247_vm6, %v4318_v63, %v4322_v5  ;;  %v4346_v56 = vrot.slane %v4344_v61, 1  ;;  %v8789_v22 = vcombine.low %v4778_v37, %v13988_v6  ;;  %v4817_v63 = vrot.slane %v14051_v33, 1  ;;  %v11268_v37 = vld [vmem:[#allocation2 + $0x60] sm:$0xff]  }
 0x824   : > { %10060 = vmatpush3.bf16.msra.mxu1 %v11209_v14  ;;  %v4336_v14 = vshll.u32 %v14069_v38, 16  ;;  %v4350_v50 = vor.u32 %v4348_v25, %v4346_v56 }
 0x825   : > { %10061 = vmatprep.subr.bf16.mxu1 %v11210_v60 }
 0x826   : > { %v4338_v11 = vrot.slane %v4336_v14, 1  ;;  %v11246_v14 = vld [vmem:[%s15682_s9 + $0xd8] sm:$0xff]  }
 0x828   : > { %10062 = vmatpush3.bf16.msra.mxu1 %v11210_v60  ;;  %v4310_v60 = vor.u32 %v4308_v30, %v4306_v19  ;;  %v4342_v15 = vor.u32 %v4340_v40, %v4338_v11  ;;  %v11239_v19 = vld [vmem:[%s15682_s9 + $0xa8] sm:$0xff]   ;;  %v11240_v30 = vld [vmem:[%s15682_s9 + $0xb0] sm:$0xff]   ;;  %v4813_v40 = vrot.slane %v14037_v21, 1 }
 0x829   : > { %10091 = vmatprep.subr.bf16.mxu1 %v11214_v58 }
 0x82b   : > { %10064 = vmatmul.mubr.bf16.vlgmr.msra.gmra.mrb[80].mxu1 %v4267_v53  ;;  %v4326_v53 = vor.u32 %v4324_v26, %v4322_v5 }
 0x82c   : > { %10092 = vmatpush3.bf16.msra.mxu1 %v11214_v58  ;;  %10067 = vmatprep.mubr.bf16.mxu1 %v4275_v8  ;;  %v4315_v58 = vsel %vm4247_vm6, %v4310_v60, %v4314_v7  ;;  %v4334_v8 = vor.u32 %v4332_v43, %v4330_v36  ;;  %v4800_v7 = vrot.slane %v8789_v22, 1  ;;  %v11270_v22 = vld [vmem:[#allocation2 + $0x68] sm:$0xff]  }
 0x82d   : > { %10093 = vmatprep.subr.bf16.mxu1 %v11216_v49  ;;  %v4331_v51 = vsel %vm4247_vm6, %v4326_v53, %v4330_v36  ;;  %v4823_v53 = vrot.slane %v14073_v17, 1 }
 0x82e   : > { %v4339_v48 = vsel %vm4247_vm6, %v4334_v8, %v4338_v11  ;;  %v4802_v26 = vsel %vm4799_vm7, %v4800_v7, %v4801_v4 }
 0x830   : > { %10094 = vmatpush3.bf16.msra.mxu1 %v11216_v49  ;;  %v4352_v49 = vshll.u32 %v14082_v0, 16 }
 0x831   : > { %10095 = vmatprep.subr.bf16.mxu1 %v11218_v12 }
 0x832   : > { %v4354_v35 = vrot.slane %v4352_v49, 1 }
 0x833   : > { %10068 = vmatmul.mubr.bf16.gmra.mrb[84].mxu1 %v4283_v41 }
 0x834   : > { %10071 = vmatprep.mubr.bf16.mxu1 %v4291_v31  ;;  %10096 = vmatpush3.bf16.msra.mxu1 %v11218_v12  ;;  %v4356_v12 = vshrl.u32 %v14082_v0, 16  ;;  %v4355_v41 = vsel %vm4247_vm6, %v4350_v50, %v4354_v35  ;;  %v4362_v31 = vrot.slane %v4360_v24, 1  ;;  %v11259_v24 = vld [vmem:[#allocation2 + $0x30] sm:$0xff]   ;;  %v11261_v50 = vld [vmem:[#allocation2 + $0x38] sm:$0xff]  }
 0x835   : > { %10097 = vmatprep.subr.bf16.mxu1 %v11221_v1 }
 0x836   : > { %v4358_v20 = vor.u32 %v4356_v12, %v4354_v35  ;;  %v11258_v12 = vld [vmem:[#allocation2 + $0x28] sm:$0xff]   ;;  %v11263_v35 = vld [vmem:[%s15682_s9 + $0x120] sm:$0xff]  }
 0x838   : > { %10098 = vmatpush3.bf16.msra.mxu1 %v11221_v1  ;;  %v4347_v1 = vsel %vm4247_vm6, %v4342_v15, %v4346_v56  ;;  %v4363_v32 = vsel %vm4247_vm6, %v4358_v20, %v4362_v31  ;;  %v11254_v56 = vld [vmem:[#allocation2 + $0x18] sm:$0xff]   ;;  %v11262_v20 = vld [vmem:[#allocation2 + $0x40] sm:$0xff]   ;;  %v11264_v31 = vld [vmem:[#allocation2 + $0x48] sm:$0xff]  }
 0x839   : > { %10099 = vmatprep.subr.bf16.mxu1 %v11224_v55  ;;  %v11260_v15 = vld [vmem:[%s15682_s9 + $0x118] sm:$0xff]  }
 0x83b   : > { %10072 = vmatmul.mubr.bf16.gmra.mrb[88].mxu1 %v4299_v34  ;;  %v4805_v34 = vrot.slane %v14007_v16, 1 }
 0x83c   : > { %10075 = vmatprep.mubr.bf16.mxu1 %v4307_v23  ;;  %10100 = vmatpush3.bf16.msra.mxu1 %v11224_v55  ;;  %v11241_v55 = vld [vmem:[%s15682_s9 + $0xb8] sm:$0xff]   ;;  %v11244_v23 = vld [vmem:[%s15682_s9 + $0xc8] sm:$0xff]  }
 0x83d   : > { %10101 = vmatprep.subr.bf16.mxu1 %v11227_v29 }
 0x840   : > { %10102 = vmatpush3.bf16.msra.mxu1 %v11227_v29  ;;  %v4803_v29 = vrot.slane %v14005_v54, 1 }
 0x841   : > { %10103 = vmatprep.subr.bf16.mxu1 %v11230_v3 }
 0x842   : > { %v4804_v43 = vsel %vm4799_vm7, %v4801_v4, %v4803_v29  ;;  %v4806_v6 = vsel %vm4799_vm7, %v4803_v29, %v4805_v34  ;;  %v14226_v29 = vld [vmem:[#allocation2 + $0x18] sm:$0xff]  }
 0x843   : > { %10076 = vmatmul.mubr.bf16.gmra.mrb[92].mxu1 %v4315_v58 }
 0x844   : > { %10079 = vmatprep.mubr.bf16.mxu1 %v4323_v57  ;;  %10104 = vmatpush3.bf16.msra.mxu1 %v11230_v3  ;;  %v11248_v3 = vld [vmem:[%s15682_s9 + $0xe8] sm:$0xff]  }
 0x845   : > { %10105 = vmatprep.subr.bf16.mxu1 %v11233_v10 }
 0x848   : > { %10106 = vmatpush3.bf16.msra.mxu1 %v11233_v10  ;;  %v11249_v10 = vld [vmem:[%s15682_s9 + $0xf0] sm:$0xff]  }
 0x849   : > { %10135 = vmatprep.subr.bf16.mxu1 %v11234_v44 }
 0x84b   : > { %10080 = vmatmul.mubr.bf16.gmra.mrb[96].mxu1 %v4331_v51  ;;  %v11251_v51 = vld [vmem:[#allocation2 + $0x8] sm:$0xff]  }
 0x84c   : > { %10083 = vmatprep.mubr.bf16.mxu1 %v4339_v48  ;;  %v11252_v48 = vld [vmem:[#allocation2 + $0x10] sm:$0xff]  }
 0x853   : > { %10084 = vmatmul.mubr.bf16.gmra.mrb[100].mxu1 %v4347_v1  ;;  %v11266_v1 = vld [vmem:[%s15682_s9 + $0x128] sm:$0xff]  }
 0x854   : > { %10087 = vmatprep.mubr.bf16.mxu1 %v4355_v41  ;;  %v11269_v41 = vld [vmem:[%s15682_s9 + $0x130] sm:$0xff]  }
 0x85b   : > { %10088 = vmatmul.mubr.bf16.gmra.mrb[104].mxu1 %v4363_v32  ;;  %v11272_v32 = vld [vmem:[%s15682_s9 + $0x138] sm:$0xff]  }
 0x85c   : > { %10107 = vmatprep.mubr.bf16.mxu1 %v13991_v9  ;;  %v11238_v9 = vld [vmem:[%s15682_s9 + $0xa0] sm:$0xff]  }
 0x863   : > { %10108 = vmatmul.mubr.bf16.vlgmr.msra.gmra.mrb[80].mxu1 %v13993_v59  ;;  %v4807_v59 = vrot.slane %v14019_v27, 1 }
 0x864   : > { %10136 = vmatpush3.bf16.msra.mxu1 %v11234_v44  ;;  %10111 = vmatprep.mubr.bf16.mxu1 %v14005_v54  ;;  %v11245_v54 = vld [vmem:[%s15682_s9 + $0xd0] sm:$0xff]   ;;  %v4827_v44 = vrot.slane %v14094_v39, 1  ;;  %v11256_v39 = vld [vmem:[#allocation2 + $0x20] sm:$0xff]  }
 0x865   : > { %10137 = vmatprep.subr.bf16.mxu1 %v11235_v47  ;;  %v4808_v5 = vsel %vm4799_vm7, %v4805_v34, %v4807_v59 }
 0x868   : > { %10138 = vmatpush3.bf16.msra.mxu1 %v11235_v47  ;;  %v11276_v47 = vld [vmem:[%s15682_s9 + $0x140] sm:$0xff]  }
 0x869   : > { %10139 = vmatprep.subr.bf16.mxu1 %v11236_v62 }
 0x86b   : > { %10112 = vmatmul.mubr.bf16.gmra.mrb[84].mxu1 %v14007_v16  ;;  %v4809_v16 = vrot.slane %v14024_v2, 1 }
 0x86c   : > { %10115 = vmatprep.mubr.bf16.mxu1 %v14019_v27  ;;  %10140 = vmatpush3.bf16.msra.mxu1 %v11236_v62  ;;  %v4811_v27 = vrot.slane %v14035_v52, 1  ;;  %v5414_v62 = vld [vmem:[#allocation2 + $0x8] sm:$0xf] }
 0x86d   : > { %10141 = vmatprep.subr.bf16.mxu1 %v11237_v42  ;;  %v4810_v36 = vsel %vm4799_vm7, %v4807_v59, %v4809_v16  ;;  %v5549_v59 = vshll.u32 %v14226_v29, 16 }
 0x86e   : > { %v4812_v60 = vsel %vm4799_vm7, %v4809_v16, %v4811_v27  ;;  %v4814_v61 = vsel %vm4799_vm7, %v4811_v27, %v4813_v40  ;;  %v14235_v27 = vld [vmem:[#allocation2 + $0x28] sm:$0xff]  }
 0x870   : > { %10142 = vmatpush3.bf16.msra.mxu1 %v11237_v42  ;;  %v14220_v42 = vld [vmem:[#allocation2 + $0xc] sm:$0xf] }
 0x871   : > { %10143 = vmatprep.subr.bf16.mxu1 %v11238_v9 }
 0x873   : > { %10116 = vmatmul.mubr.bf16.gmra.mrb[88].mxu1 %v14024_v2  ;;  %v11247_v2 = vld [vmem:[%s15682_s9 + $0xe0] sm:$0xff]  }
 0x874   : > { %10119 = vmatprep.mubr.bf16.mxu1 %v14035_v52  ;;  %10144 = vmatpush3.bf16.msra.mxu1 %v11238_v9  ;;  %v9228_v52 = vpack.c.bf16 %v13945_v13, %v13941_v28  ;;  %v11250_v28 = vld [vmem:[%s15682_s9 + $0xf8] sm:$0xff]   ;;  %v4819_v13 = vrot.slane %v14055_v46, 1  ;;  %v11265_v9 = vld [vmem:[#allocation2 + $0x50] sm:$0xff]  }
 0x875   : > { %10145 = vmatprep.subr.bf16.mxu1 %v11239_v19 }
 0x876   : > { %9314 = vst [vmem:[#allocation2 + $0x78] sm:$0xff] %v9228_v52   ;;  %v4820_v11 = vsel %vm4799_vm7, %v4817_v63, %v4819_v13 }
 0x878   : > { %10146 = vmatpush3.bf16.msra.mxu1 %v11239_v19  ;;  %v11267_v19 = vld [vmem:[#allocation2 + $0x58] sm:$0xff]  }
 0x879   : > { %10147 = vmatprep.subr.bf16.mxu1 %v11240_v30 }
 0x87b   : > { %10120 = vmatmul.mubr.bf16.gmra.mrb[92].mxu1 %v14037_v21  ;;  %v4815_v21 = vrot.slane %v14043_v18, 1 }
 0x87c   : > { %10123 = vmatprep.mubr.bf16.mxu1 %v14043_v18  ;;  %10148 = vmatpush3.bf16.msra.mxu1 %v11240_v30  ;;  %v4821_v18 = vrot.slane %v14069_v38, 1  ;;  %v8852_v30 = vcombine.low %v5414_v62, %v14220_v42  ;;  %v14280_v62 = vld [vmem:[#allocation2 + $0x58] sm:$0xff]  }
 0x87d   : > { %10149 = vmatprep.subr.bf16.mxu1 %v11241_v55  ;;  %v4816_v58 = vsel %vm4799_vm7, %v4813_v40, %v4815_v21  ;;  %v4818_v57 = vsel %vm4799_vm7, %v4815_v21, %v4817_v63 }
 0x87e   : > { %v4822_v25 = vsel %vm4799_vm7, %v4819_v13, %v4821_v18  ;;  %v4824_v49 = vsel %vm4799_vm7, %v4821_v18, %v4823_v53  ;;  %v5534_v7 = vshrl.u32 %v8852_v30, 16  ;;  %v14248_v13 = vld [vmem:[#allocation2 + $0x38] sm:$0xff]  }
 0x880   : > { %10150 = vmatpush3.bf16.msra.mxu1 %v11241_v55  ;;  %v14223_v55 = vld [vmem:[#allocation2 + $0x10] sm:$0xff]  }
 0x881   : > { %10179 = vmatprep.subr.bf16.mxu1 %v11243_v45 }
 0x883   : > { %10124 = vmatmul.mubr.bf16.gmra.mrb[96].mxu1 %v14051_v33  ;;  %v11253_v33 = vld [vmem:[%s15682_s9 + $0x100] sm:$0xff]  }
 0x884   : > { %10127 = vmatprep.mubr.bf16.mxu1 %v14055_v46  ;;  %v4825_v46 = vrot.slane %v14082_v0, 1 }
 0x886   : > { %v4828_v8 = vsel %vm4799_vm7, %v4825_v46, %v4827_v44 }
 0x88b   : > { %10128 = vmatmul.mubr.bf16.gmra.mrb[100].mxu1 %v14069_v38  ;;  %v4826_v38 = vsel %vm4799_vm7, %v4823_v53, %v4825_v46  ;;  %v14253_v53 = vld [vmem:[#allocation2 + $0x40] sm:$0xff]   ;;  %v5581_v46 = vshll.u32 %v14248_v13, 16 }
 0x88c   : > { %10131 = vmatprep.mubr.bf16.mxu1 %v14073_v17  ;;  %v11255_v17 = vld [vmem:[%s15682_s9 + $0x108] sm:$0xff]  }
 0x893   : > { %10132 = vmatmul.mubr.bf16.gmra.mrb[104].mxu1 %v14082_v0  ;;  %v11257_v0 = vld [vmem:[%s15682_s9 + $0x110] sm:$0xff]  }
 0x894   : > { %10151 = vmatprep.mubr.bf16.mxu1 %v4802_v26  ;;  %v5541_v26 = vshll.u32 %v14223_v55, 16 }
 0x89b   : > { %10152 = vmatmul.mubr.bf16.vlgmr.msra.gmra.mrb[80].mxu1 %v4804_v43  ;;  %v5543_v43 = vrot.slane %v5541_v26, 1 }
 0x89c   : > { %10180 = vmatpush3.bf16.msra.mxu1 %v11243_v45  ;;  %10155 = vmatprep.mubr.bf16.mxu1 %v4806_v6  ;;  %v5536_v45 = vshll.u32 %v8852_v30, 16  ;;  %v14228_v6 = vld [vmem:[#allocation2 + $0x20] sm:$0xff]  }
 0x89d   : > { %10181 = vmatprep.subr.bf16.mxu1 %v11244_v23  ;;  %v5561_v21 = vshrl.u32 %v14228_v6, 16 }
 0x89e   : > { %v5538_v4 = vrot.slane %v5536_v45, 1  ;;  %v14282_v45 = vld [vmem:[#allocation2 + $0x60] sm:$0xff]  }
 0x8a0   : > { %10182 = vmatpush3.bf16.msra.mxu1 %v11244_v23  ;;  %v5539_v34 = vor.u32 %v5538_v4, %v5534_v7  ;;  %v11271_v23 = vld [vmem:[#allocation2 + $0x70] sm:$0xff]  }
 0x8a1   : > { %10183 = vmatprep.subr.bf16.mxu1 %v11245_v54 }
 0x8a2   : > { %v5544_v16 = vsel %vm4247_vm6, %v5539_v34, %v5543_v43  ;;  %v5617_v34 = vshrl.u32 %v14280_v62, 16 }
 0x8a3   : > { %10156 = vmatmul.mubr.bf16.gmra.mrb[84].mxu1 %v4808_v5  ;;  %v5553_v5 = vshrl.u32 %v14226_v29, 16 }
 0x8a4   : > { %10159 = vmatprep.mubr.bf16.mxu1 %v4810_v36  ;;  %10184 = vmatpush3.bf16.msra.mxu1 %v11245_v54  ;;  %v5545_v54 = vshrl.u32 %v14223_v55, 16  ;;  %v5557_v36 = vshll.u32 %v14228_v6, 16 }
 0x8a5   : > { %10185 = vmatprep.subr.bf16.mxu1 %v11246_v14 }
 0x8a6   : > { %v5547_v40 = vor.u32 %v5545_v54, %v5543_v43  ;;  %v5621_v43 = vshll.u32 %v14282_v45, 16  ;;  %v14296_v54 = vld [vmem:[#allocation2 + $0x68] sm:$0xff]  }
 0x8a8   : > { %10186 = vmatpush3.bf16.msra.mxu1 %v11246_v14  ;;  %v5551_v14 = vrot.slane %v5549_v59, 1 }
 0x8a9   : > { %10187 = vmatprep.subr.bf16.mxu1 %v11247_v2 }
 0x8aa   : > { %v5552_v52 = vsel %vm4247_vm6, %v5547_v40, %v5551_v14  ;;  %v11297_v40 = vld [vmem:[%s15682_s9 + $0x180] sm:$0xff]  }
 0x8ab   : > { %10160 = vmatmul.mubr.bf16.gmra.mrb[88].mxu1 %v4812_v60  ;;  %v5559_v60 = vrot.slane %v5557_v36, 1  ;;  %v5623_v36 = vrot.slane %v5621_v43, 1 }
 0x8ac   : > { %10163 = vmatprep.mubr.bf16.mxu1 %v4814_v61  ;;  %10188 = vmatpush3.bf16.msra.mxu1 %v11247_v2  ;;  %v5555_v2 = vor.u32 %v5553_v5, %v5551_v14  ;;  %v14237_v61 = vld [vmem:[#allocation2 + $0x30] sm:$0xff]  }
 0x8ad   : > { %10189 = vmatprep.subr.bf16.mxu1 %v11248_v3  ;;  %v5563_v18 = vor.u32 %v5561_v21, %v5559_v60  ;;  %v14298_v14 = vld [vmem:[#allocation2 + $0x70] sm:$0xff]   ;;  %v5633_v21 = vshrl.u32 %v14296_v54, 16 }
 0x8ae   : > { %v5560_v63 = vsel %vm4247_vm6, %v5555_v2, %v5559_v60  ;;  %v5629_v2 = vshll.u32 %v14296_v54, 16 }
 0x8b0   : > { %10190 = vmatpush3.bf16.msra.mxu1 %v11248_v3  ;;  %v5565_v3 = vshll.u32 %v14235_v27, 16 }
 0x8b1   : > { %10191 = vmatprep.subr.bf16.mxu1 %v11249_v10 }
 0x8b3   : > { %10164 = vmatmul.mubr.bf16.gmra.mrb[92].mxu1 %v4816_v58  ;;  %v5569_v58 = vshrl.u32 %v14235_v27, 16 }
 0x8b4   : > { %10167 = vmatprep.mubr.bf16.mxu1 %v4818_v57  ;;  %10192 = vmatpush3.bf16.msra.mxu1 %v11249_v10  ;;  %v11278_v10 = vld [vmem:[%s15682_s9 + $0x148] sm:$0xff]   ;;  %v5573_v57 = vshll.u32 %v14237_v61, 16 }
 0x8b5   : > { %10193 = vmatprep.subr.bf16.mxu1 %v11250_v28 }
 0x8b8   : > { %10194 = vmatpush3.bf16.msra.mxu1 %v11250_v28  ;;  %v5567_v28 = vrot.slane %v5565_v3, 1  ;;  %v5625_v3 = vshrl.u32 %v14282_v45, 16 }
 0x8b9   : > { %10223 = vmatprep.subr.bf16.mxu1 %v11253_v33 }
 0x8bb   : > { %10168 = vmatmul.mubr.bf16.gmra.mrb[96].mxu1 %v4820_v11  ;;  %v5571_v11 = vor.u32 %v5569_v58, %v5567_v28  ;;  %v5627_v58 = vor.u32 %v5625_v3, %v5623_v36  ;;  %v11313_v3 = vld [vmem:[#allocation2 + $0x38] sm:$0xff]  }
 0x8bc   : > { %10171 = vmatprep.mubr.bf16.mxu1 %v4822_v25  ;;  %v5575_v25 = vrot.slane %v5573_v57, 1  ;;  %v14309_v57 = vld [vmem:[#allocation2 + $0x78] ss:$0 sps:$4 sm:$0x11]  }
 0x8bd   : > { %v5932_v43 = vrot.slane %v14309_v57, 1 }
 0x8be   : > { %v5576_v44 = vsel %vm4247_vm6, %v5571_v11, %v5575_v25 }
 0x8c3   : > { %10172 = vmatmul.mubr.bf16.gmra.mrb[100].mxu1 %v4824_v49  ;;  %v5568_v49 = vsel %vm4247_vm6, %v5563_v18, %v5567_v28 }
 0x8c4   : > { %10175 = vmatprep.mubr.bf16.mxu1 %v4826_v38  ;;  %v5577_v38 = vshrl.u32 %v14237_v61, 16 }
 0x8cb   : > { %10176 = vmatmul.mubr.bf16.gmra.mrb[104].mxu1 %v4828_v8  ;;  %v11283_v8 = vld [vmem:[%s15682_s9 + $0x158] sm:$0xff]  }
 0x8cc   : > { %10195 = vmatprep.mubr.bf16.mxu1 %v11251_v51  ;;  %v5585_v51 = vshrl.u32 %v14248_v13, 16 }
 0x8d3   : > { %10196 = vmatmul.mubr.bf16.vlgmr.msra.gmra.mrb[80].mxu1 %v11252_v48  ;;  %v5589_v48 = vshll.u32 %v14253_v53, 16 }
 0x8d4   : > { %10224 = vmatpush3.bf16.msra.mxu1 %v11253_v33  ;;  %10199 = vmatprep.mubr.bf16.mxu1 %v11254_v56  ;;  %v11280_v33 = vld [vmem:[%s15682_s9 + $0x150] sm:$0xff]   ;;  %v5583_v56 = vrot.slane %v5581_v46, 1  ;;  %v5645_v46 = vshll.u32 %v14309_v57, 16  ;;  %v11326_v57 = vld [vmem:[%s15682_s9 + $0x1f8] sm:$0xff]  }
 0x8d5   : > { %10225 = vmatprep.subr.bf16.mxu1 %v11255_v17 }
 0x8d8   : > { %10226 = vmatpush3.bf16.msra.mxu1 %v11255_v17  ;;  %v14264_v17 = vld [vmem:[#allocation2 + $0x48] sm:$0xff]  }
 0x8d9   : > { %10227 = vmatprep.subr.bf16.mxu1 %v11257_v0 }
 0x8db   : > { %10200 = vmatmul.mubr.bf16.gmra.mrb[84].mxu1 %v11256_v39  ;;  %v5587_v39 = vor.u32 %v5585_v51, %v5583_v56 }
 0x8dc   : > { %10203 = vmatprep.mubr.bf16.mxu1 %v11258_v12  ;;  %10228 = vmatpush3.bf16.msra.mxu1 %v11257_v0  ;;  %v5579_v0 = vor.u32 %v5577_v38, %v5575_v25  ;;  %v5591_v12 = vrot.slane %v5589_v48, 1  ;;  %v5641_v25 = vshrl.u32 %v14298_v14, 16  ;;  %v5906_v48 = vrot.slane %v14223_v55, 1 }
 0x8dd   : > { %10229 = vmatprep.subr.bf16.mxu1 %v11260_v15  ;;  %v5912_v55 = vrot.slane %v14235_v27, 1  ;;  %v5916_v27 = vrot.slane %v14248_v13, 1  ;;  %v5920_v13 = vrot.slane %v14264_v17, 1 }
 0x8e0   : > { %10230 = vmatpush3.bf16.msra.mxu1 %v11260_v15  ;;  %v11286_v15 = vld [vmem:[%s15682_s9 + $0x160] sm:$0xff]  }
 0x8e1   : > { %10231 = vmatprep.subr.bf16.mxu1 %v11263_v35 }
 0x8e3   : > { %10204 = vmatmul.mubr.bf16.gmra.mrb[88].mxu1 %v11259_v24  ;;  %v5597_v24 = vshll.u32 %v14264_v17, 16 }
 0x8e4   : > { %10207 = vmatprep.mubr.bf16.mxu1 %v11261_v50  ;;  %10232 = vmatpush3.bf16.msra.mxu1 %v11263_v35  ;;  %v14269_v35 = vld [vmem:[#allocation2 + $0x50] sm:$0xff]   ;;  %v5584_v50 = vsel %vm4247_vm6, %v5579_v0, %v5583_v56 }
 0x8e5   : > { %10233 = vmatprep.subr.bf16.mxu1 %v11266_v1  ;;  %v5609_v4 = vshrl.u32 %v14269_v35, 16 }
 0x8e8   : > { %10234 = vmatpush3.bf16.msra.mxu1 %v11266_v1  ;;  %v5593_v1 = vshrl.u32 %v14253_v53, 16 }
 0x8e9   : > { %10235 = vmatprep.subr.bf16.mxu1 %v11269_v41 }
 0x8eb   : > { %10208 = vmatmul.mubr.bf16.gmra.mrb[92].mxu1 %v11262_v20  ;;  %v5601_v20 = vshrl.u32 %v14264_v17, 16  ;;  %v5924_v17 = vrot.slane %v14280_v62, 1 }
 0x8ec   : > { %10211 = vmatprep.mubr.bf16.mxu1 %v11264_v31  ;;  %10236 = vmatpush3.bf16.msra.mxu1 %v11269_v41  ;;  %v5592_v41 = vsel %vm4247_vm6, %v5587_v39, %v5591_v12  ;;  %v5605_v31 = vshll.u32 %v14269_v35, 16  ;;  %v5908_v39 = vrot.slane %v14226_v29, 1  ;;  %v11299_v29 = vld [vmem:[%s15682_s9 + $0x190] sm:$0xff]  }
 0x8ed   : > { %10237 = vmatprep.subr.bf16.mxu1 %v11272_v32 }
 0x8ee   : > { %v5607_v30 = vrot.slane %v5605_v31, 1 }
 0x8f0   : > { %10238 = vmatpush3.bf16.msra.mxu1 %v11272_v32  ;;  %v11289_v32 = vld [vmem:[%s15682_s9 + $0x168] sm:$0xff]  }
 0x8f1   : > { %10267 = vmatprep.subr.bf16.mxu1 %v11276_v47 }
 0x8f3   : > { %10212 = vmatmul.mubr.bf16.gmra.mrb[96].mxu1 %v11265_v9  ;;  %v5595_v9 = vor.u32 %v5593_v1, %v5591_v12  ;;  %v5910_v12 = vrot.slane %v14228_v6, 1  ;;  %v5914_v6 = vrot.slane %v14237_v61, 1  ;;  %v11301_v61 = vld [vmem:[%s15682_s9 + $0x1a0] sm:$0xff]  }
 0x8f4   : > { %10215 = vmatprep.mubr.bf16.mxu1 %v11267_v19 }
 0x8f5   : > { %v5915_v1 = vsel %vm4799_vm7, %v5912_v55, %v5914_v6  ;;  %v5917_v31 = vsel %vm4799_vm7, %v5914_v6, %v5916_v27 }
 0x8fb   : > { %10216 = vmatmul.mubr.bf16.gmra.mrb[100].mxu1 %v11268_v37  ;;  %v11292_v37 = vld [vmem:[%s15682_s9 + $0x170] sm:$0xff]  }
 0x8fc   : > { %10219 = vmatprep.mubr.bf16.mxu1 %v11270_v22  ;;  %v5613_v22 = vshll.u32 %v14280_v62, 16  ;;  %v5930_v62 = vrot.slane %v14298_v14, 1 }
 0x8fe   : > { %v5615_v59 = vrot.slane %v5613_v22, 1  ;;  %v11307_v22 = vld [vmem:[%s15682_s9 + $0x1c0] sm:$0xff]  }
 0x900   : > { %v5619_v5 = vor.u32 %v5617_v34, %v5615_v59 }
 0x903   : > { %10220 = vmatmul.mubr.bf16.gmra.mrb[104].mxu1 %v11271_v23  ;;  %v11295_v23 = vld [vmem:[%s15682_s9 + $0x178] sm:$0xff]  }
 0x904   : > { %10239 = vmatprep.mubr.bf16.mxu1 %v5544_v16  ;;  %v5611_v16 = vor.u32 %v5609_v4, %v5607_v30 }
 0x906   : > { %v5616_v60 = vsel %vm4247_vm6, %v5611_v16, %v5615_v59  ;;  %v11305_v59 = vld [vmem:[#allocation2 + $0x10] sm:$0xff]   ;;  %v11306_v16 = vld [vmem:[#allocation2 + $0x18] sm:$0xff]  }
 0x90b   : > { %10240 = vmatmul.mubr.bf16.vlgmr.msra.gmra.mrb[80].mxu1 %v5552_v52  ;;  %v5624_v52 = vsel %vm4247_vm6, %v5619_v5, %v5623_v36  ;;  %v11308_v5 = vld [vmem:[#allocation2 + $0x20] sm:$0xff]   ;;  %v11311_v36 = vld [vmem:[%s15682_s9 + $0x1d0] sm:$0xff]  }
 0x90c   : > { %10268 = vmatpush3.bf16.msra.mxu1 %v11276_v47  ;;  %10243 = vmatprep.mubr.bf16.mxu1 %v5560_v63  ;;  %v5599_v47 = vrot.slane %v5597_v24, 1  ;;  %v5637_v63 = vshll.u32 %v14298_v14, 16  ;;  %v11298_v24 = vld [vmem:[%s15682_s9 + $0x188] sm:$0xff]  }
 0x90d   : > { %10269 = vmatprep.subr.bf16.mxu1 %v11278_v10  ;;  %v11310_v14 = vld [vmem:[#allocation2 + $0x28] sm:$0xff]  }
 0x90e   : > { %v5603_v19 = vor.u32 %v5601_v20, %v5599_v47  ;;  %v5600_v7 = vsel %vm4247_vm6, %v5595_v9, %v5599_v47  ;;  %v5639_v18 = vrot.slane %v5637_v63, 1  ;;  %v5918_v20 = vrot.slane %v14253_v53, 1  ;;  %v11302_v47 = vld [vmem:[%s15682_s9 + $0x1a8] sm:$0xff]   ;;  %v11303_v9 = vld [vmem:[%s15682_s9 + $0x1b0] sm:$0xff]  }
 0x90f   : > { %v5922_v53 = vrot.slane %v14269_v35, 1  ;;  %v5926_v35 = vrot.slane %v14282_v45, 1  ;;  %v11323_v63 = vld [vmem:[%s15682_s9 + $0x1f0] sm:$0xff]  }
 0x910   : > { %10270 = vmatpush3.bf16.msra.mxu1 %v11278_v10  ;;  %v5608_v26 = vsel %vm4247_vm6, %v5603_v19, %v5607_v30  ;;  %v5631_v10 = vrot.slane %v5629_v2, 1  ;;  %v5921_v19 = vsel %vm4799_vm7, %v5918_v20, %v5920_v13  ;;  %v11314_v2 = vld [vmem:[%s15682_s9 + $0x1d8] sm:$0xff]  }
 0x911   : > { %10271 = vmatprep.subr.bf16.mxu1 %v11280_v33  ;;  %v5923_v30 = vsel %vm4799_vm7, %v5920_v13, %v5922_v53  ;;  %v5927_v4 = vsel %vm4799_vm7, %v5924_v17, %v5926_v35 }
 0x912   : > { %v5635_v28 = vor.u32 %v5633_v21, %v5631_v10  ;;  %v5632_v11 = vsel %vm4247_vm6, %v5627_v58, %v5631_v10  ;;  %v11320_v21 = vld [vmem:[%s15682_s9 + $0x1e8] sm:$0xff]   ;;  %v11318_v58 = vld [vmem:[#allocation2 + $0x50] sm:$0xff]  }
 0x913   : > { %10244 = vmatmul.mubr.bf16.gmra.mrb[84].mxu1 %v5568_v49  ;;  %v11316_v10 = vld [vmem:[#allocation2 + $0x48] sm:$0xff]  }
 0x914   : > { %10247 = vmatprep.mubr.bf16.mxu1 %v5576_v44  ;;  %10272 = vmatpush3.bf16.msra.mxu1 %v11280_v33  ;;  %v5884_v33 = vld [vmem:[#allocation2 + $0x8] sm:$0xe]  ;;  %v5640_v49 = vsel %vm4247_vm6, %v5635_v28, %v5639_v18  ;;  %v5643_v44 = vor.u32 %v5641_v25, %v5639_v18  ;;  %v11330_v28 = vld [vmem:[%s15682_s9 + $0x200] sm:$0xff]   ;;  %v6519_v18 = vld [vmem:[#allocation2 + $0x10] sm:$0xf] }
 0x915   : > { %10273 = vmatprep.subr.bf16.mxu1 %v11283_v8  ;;  %v8891_v38 = vcombine.low %v5884_v33, %v14220_v42  ;;  %v5911_v42 = vsel %vm4799_vm7, %v5908_v39, %v5910_v12  ;;  %v14393_v33 = vld [vmem:[#allocation2 + $0x14] sm:$0xf]  ;;  %v11321_v25 = vld [vmem:[#allocation2 + $0x60] sm:$0xff]  }
 0x917   : > { %v5905_v51 = vrot.slane %v8891_v38, 1 }
 0x918   : > { %10274 = vmatpush3.bf16.msra.mxu1 %v11283_v8  ;;  %v5647_v8 = vrot.slane %v5645_v46, 1  ;;  %v8954_v46 = vcombine.low %v6519_v18, %v14393_v33  ;;  %v14453_v18 = vld [vmem:[#allocation2 + $0x60] sm:$0xff]  }
 0x919   : > { %10275 = vmatprep.subr.bf16.mxu1 %v11286_v15  ;;  %v5907_v0 = vsel %vm4799_vm7, %v5905_v51, %v5906_v48 }
 0x91a   : > { %v5648_v56 = vsel %vm4247_vm6, %v5643_v44, %v5647_v8  ;;  %v6641_v38 = vshll.u32 %v8954_v46, 16  ;;  %v11322_v44 = vld [vmem:[#allocation2 + $0x68] sm:$0xff]   ;;  %v11324_v8 = vld [vmem:[#allocation2 + $0x70] sm:$0xff]   ;;  %v6639_v51 = vshrl.u32 %v8954_v46, 16 }
 0x91b   : > { %10248 = vmatmul.mubr.bf16.gmra.mrb[88].mxu1 %v5584_v50  ;;  %v5913_v50 = vsel %vm4799_vm7, %v5910_v12, %v5912_v55 }
 0x91c   : > { %10251 = vmatprep.mubr.bf16.mxu1 %v5592_v41  ;;  %10276 = vmatpush3.bf16.msra.mxu1 %v11286_v15  ;;  %v5909_v15 = vsel %vm4799_vm7, %v5906_v48, %v5908_v39  ;;  %v11300_v41 = vld [vmem:[%s15682_s9 + $0x198] sm:$0xff]   ;;  %v6643_v48 = vrot.slane %v6641_v38, 1  ;;  %v14455_v38 = vld [vmem:[#allocation2 + $0x68] sm:$0xff]  }
 0x91d   : > { %10277 = vmatprep.subr.bf16.mxu1 %v11289_v32 }
 0x91e   : > { %v6644_v39 = vor.u32 %v6643_v48, %v6639_v51 }
 0x920   : > { %10278 = vmatpush3.bf16.msra.mxu1 %v11289_v32  ;;  %v5919_v32 = vsel %vm4799_vm7, %v5916_v27, %v5918_v20 }
 0x921   : > { %10279 = vmatprep.subr.bf16.mxu1 %v11292_v37 }
 0x923   : > { %10252 = vmatmul.mubr.bf16.gmra.mrb[92].mxu1 %v5600_v7  ;;  %v5925_v7 = vsel %vm4799_vm7, %v5922_v53, %v5924_v17  ;;  %v14421_v17 = vld [vmem:[#allocation2 + $0x40] sm:$0xff]  }
 0x924   : > { %10255 = vmatprep.mubr.bf16.mxu1 %v5608_v26  ;;  %10280 = vmatpush3.bf16.msra.mxu1 %v11292_v37  ;;  %v11304_v37 = vld [vmem:[%s15682_s9 + $0x1b8] sm:$0xff]   ;;  %v5928_v26 = vrot.slane %v14296_v54, 1  ;;  %v11309_v54 = vld [vmem:[%s15682_s9 + $0x1c8] sm:$0xff]  }
 0x925   : > { %10281 = vmatprep.subr.bf16.mxu1 %v11295_v23 }
 0x926   : > { %v5929_v34 = vsel %vm4799_vm7, %v5926_v35, %v5928_v26  ;;  %v5931_v45 = vsel %vm4799_vm7, %v5928_v26, %v5930_v62  ;;  %v14426_v26 = vld [vmem:[#allocation2 + $0x48] sm:$0xff]  }
 0x928   : > { %10282 = vmatpush3.bf16.msra.mxu1 %v11295_v23  ;;  %v5933_v23 = vsel %vm4799_vm7, %v5930_v62, %v5932_v43  ;;  %v6686_v62 = vshll.u32 %v14421_v17, 16 }
 0x929   : > { %10311 = vmatprep.subr.bf16.mxu1 %v11297_v40 }
 0x92b   : > { %10256 = vmatmul.mubr.bf16.gmra.mrb[96].mxu1 %v5616_v60  ;;  %v11317_v60 = vld [vmem:[%s15682_s9 + $0x1e0] sm:$0xff]  }
 0x92c   : > { %10259 = vmatprep.mubr.bf16.mxu1 %v5624_v52  ;;  %v11315_v52 = vld [vmem:[#allocation2 + $0x40] sm:$0xff]  }
 0x933   : > { %10260 = vmatmul.mubr.bf16.gmra.mrb[100].mxu1 %v5632_v11  ;;  %v11319_v11 = vld [vmem:[#allocation2 + $0x58] sm:$0xff]  }
 0x934   : > { %10263 = vmatprep.mubr.bf16.mxu1 %v5640_v49  ;;  %v14396_v49 = vld [vmem:[#allocation2 + $0x18] sm:$0xff]  }
 0x935   : > { %v6650_v55 = vshrl.u32 %v14396_v49, 16 }
 0x93b   : > { %10264 = vmatmul.mubr.bf16.gmra.mrb[104].mxu1 %v5648_v56  ;;  %v6646_v56 = vshll.u32 %v14396_v49, 16 }
 0x93c   : > { %10283 = vmatprep.mubr.bf16.mxu1 %v5907_v0  ;;  %v14399_v0 = vld [vmem:[#allocation2 + $0x20] sm:$0xff]  }
 0x93d   : > { %v6648_v12 = vrot.slane %v6646_v56, 1  ;;  %v6658_v6 = vshrl.u32 %v14399_v0, 16 }
 0x93f   : > { %v6652_v27 = vor.u32 %v6650_v55, %v6648_v12  ;;  %v14469_v55 = vld [vmem:[#allocation2 + $0x70] sm:$0xff]  }
 0x943   : > { %10284 = vmatmul.mubr.bf16.vlgmr.msra.gmra.mrb[80].mxu1 %v5909_v15  ;;  %v14401_v15 = vld [vmem:[#allocation2 + $0x28] sm:$0xff]  }
 0x944   : > { %10312 = vmatpush3.bf16.msra.mxu1 %v11297_v40  ;;  %10287 = vmatprep.mubr.bf16.mxu1 %v5911_v42  ;;  %v11312_v40 = vld [vmem:[#allocation2 + $0x30] sm:$0xff]   ;;  %v11325_v42 = vld [vmem:[#allocation2 + $0x78] sm:$0xff]   ;;  %v6666_v13 = vshrl.u32 %v14401_v15, 16 }
 0x945   : > { %10313 = vmatprep.subr.bf16.mxu1 %v11298_v24 }
 0x948   : > { %10314 = vmatpush3.bf16.msra.mxu1 %v11298_v24  ;;  %v6654_v24 = vshll.u32 %v14399_v0, 16 }
 0x949   : > { %10315 = vmatprep.subr.bf16.mxu1 %v11299_v29 }
 0x94b   : > { %10288 = vmatmul.mubr.bf16.gmra.mrb[84].mxu1 %v5913_v50  ;;  %v6662_v50 = vshll.u32 %v14401_v15, 16 }
 0x94c   : > { %10291 = vmatprep.mubr.bf16.mxu1 %v5915_v1  ;;  %10316 = vmatpush3.bf16.msra.mxu1 %v11299_v29  ;;  %v6649_v29 = vsel %vm4247_vm6, %v6644_v39, %v6648_v12  ;;  %v6656_v1 = vrot.slane %v6654_v24, 1  ;;  %v6722_v39 = vshrl.u32 %v14453_v18, 16  ;;  %v6726_v12 = vshll.u32 %v14455_v38, 16 }
 0x94d   : > { %10317 = vmatprep.subr.bf16.mxu1 %v11300_v41 }
 0x94e   : > { %v6660_v20 = vor.u32 %v6658_v6, %v6656_v1 }
 0x950   : > { %10318 = vmatpush3.bf16.msra.mxu1 %v11300_v41  ;;  %v14408_v41 = vld [vmem:[#allocation2 + $0x30] sm:$0xff]  }
 0x951   : > { %10319 = vmatprep.subr.bf16.mxu1 %v11301_v61 }
 0x953   : > { %10292 = vmatmul.mubr.bf16.gmra.mrb[88].mxu1 %v5917_v31  ;;  %v14410_v31 = vld [vmem:[#allocation2 + $0x38] sm:$0xff]  }
 0x954   : > { %10295 = vmatprep.mubr.bf16.mxu1 %v5919_v32  ;;  %10320 = vmatpush3.bf16.msra.mxu1 %v11301_v61  ;;  %v6664_v61 = vrot.slane %v6662_v50, 1  ;;  %v6670_v32 = vshll.u32 %v14408_v41, 16  ;;  %v6728_v50 = vrot.slane %v6726_v12, 1 }
 0x955   : > { %10321 = vmatprep.subr.bf16.mxu1 %v11302_v47 }
 0x956   : > { %v6665_v53 = vsel %vm4247_vm6, %v6660_v20, %v6664_v61  ;;  %v6668_v35 = vor.u32 %v6666_v13, %v6664_v61  ;;  %v6730_v61 = vshrl.u32 %v14455_v38, 16 }
 0x958   : > { %10322 = vmatpush3.bf16.msra.mxu1 %v11302_v47  ;;  %v6657_v47 = vsel %vm4247_vm6, %v6652_v27, %v6656_v1  ;;  %v14471_v1 = vld [vmem:[#allocation2 + $0x78] sm:$0xff]   ;;  %v6734_v27 = vshll.u32 %v14469_v55, 16 }
 0x959   : > { %10323 = vmatprep.subr.bf16.mxu1 %v11303_v9  ;;  %v6742_v13 = vshll.u32 %v14471_v1, 16 }
 0x95b   : > { %10296 = vmatmul.mubr.bf16.gmra.mrb[92].mxu1 %v5921_v19  ;;  %v6674_v19 = vshrl.u32 %v14408_v41, 16 }
 0x95c   : > { %10299 = vmatprep.mubr.bf16.mxu1 %v5923_v30  ;;  %10324 = vmatpush3.bf16.msra.mxu1 %v11303_v9  ;;  %v11332_v9 = vld [vmem:[%s15682_s9 + $0x208] sm:$0xff]   ;;  %v6678_v30 = vshll.u32 %v14410_v31, 16 }
 0x95d   : > { %10325 = vmatprep.subr.bf16.mxu1 %v11304_v37 }
 0x960   : > { %10326 = vmatpush3.bf16.msra.mxu1 %v11304_v37  ;;  %v6672_v37 = vrot.slane %v6670_v32, 1 }
 0x961   : > { %10355 = vmatprep.subr.bf16.mxu1 %v11307_v22 }
 0x963   : > { %10300 = vmatmul.mubr.bf16.gmra.mrb[96].mxu1 %v5925_v7  ;;  %v6676_v7 = vor.u32 %v6674_v19, %v6672_v37  ;;  %v11348_v19 = vld [vmem:[#allocation2 + $0x80] ss:$0 sps:$4 sm:$0x11]  }
 0x964   : > { %10303 = vmatprep.mubr.bf16.mxu1 %v5927_v4  ;;  %v6680_v4 = vrot.slane %v6678_v30, 1 }
 0x966   : > { %v6681_v43 = vsel %vm4247_vm6, %v6676_v7, %v6680_v4  ;;  %v6746_v7 = vshrl.u32 %v14471_v1, 16 }
 0x96b   : > { %10304 = vmatmul.mubr.bf16.gmra.mrb[100].mxu1 %v5929_v34  ;;  %v6673_v34 = vsel %vm4247_vm6, %v6668_v35, %v6672_v37  ;;  %v6744_v37 = vrot.slane %v6742_v13, 1  ;;  %v6989_v35 = vld [vmem:[#allocation2 + $0x10] sm:$0xe] }
 0x96c   : > { %10307 = vmatprep.mubr.bf16.mxu1 %v5931_v45  ;;  %v6682_v45 = vshrl.u32 %v14410_v31, 16 }
 0x973   : > { %10308 = vmatmul.mubr.bf16.gmra.mrb[104].mxu1 %v5933_v23  ;;  %v11337_v23 = vld [vmem:[%s15682_s9 + $0x218] sm:$0xff]  }
 0x974   : > { %10327 = vmatprep.mubr.bf16.mxu1 %v11305_v59  ;;  %v6690_v59 = vshrl.u32 %v14421_v17, 16 }
 0x97b   : > { %10328 = vmatmul.mubr.bf16.vlgmr.msra.gmra.mrb[80].mxu1 %v11306_v16  ;;  %v6694_v16 = vshll.u32 %v14426_v26, 16 }
 0x97c   : > { %10356 = vmatpush3.bf16.msra.mxu1 %v11307_v22  ;;  %10331 = vmatprep.mubr.bf16.mxu1 %v11308_v5  ;;  %v11334_v22 = vld [vmem:[%s15682_s9 + $0x210] sm:$0xff]   ;;  %v6688_v5 = vrot.slane %v6686_v62, 1 }
 0x97d   : > { %10357 = vmatprep.subr.bf16.mxu1 %v11309_v54 }
 0x980   : > { %10358 = vmatpush3.bf16.msra.mxu1 %v11309_v54  ;;  %v14437_v54 = vld [vmem:[#allocation2 + $0x50] sm:$0xff]  }
 0x981   : > { %10359 = vmatprep.subr.bf16.mxu1 %v11311_v36 }
 0x983   : > { %10332 = vmatmul.mubr.bf16.gmra.mrb[84].mxu1 %v11310_v14  ;;  %v6692_v14 = vor.u32 %v6690_v59, %v6688_v5  ;;  %v7011_v59 = vrot.slane %v14396_v49, 1  ;;  %v7019_v49 = vrot.slane %v14410_v31, 1 }
 0x984   : > { %10335 = vmatprep.mubr.bf16.mxu1 %v11312_v40  ;;  %10360 = vmatpush3.bf16.msra.mxu1 %v11311_v36  ;;  %v6684_v36 = vor.u32 %v6682_v45, %v6680_v4  ;;  %v6696_v40 = vrot.slane %v6694_v16, 1  ;;  %v6750_v4 = vshll.u32 %v11348_v19, 16  ;;  %v6748_v45 = vor.u32 %v6746_v7, %v6744_v37 }
 0x985   : > { %10361 = vmatprep.subr.bf16.mxu1 %v11314_v2 }
 0x988   : > { %10362 = vmatpush3.bf16.msra.mxu1 %v11314_v2  ;;  %v11340_v2 = vld [vmem:[%s15682_s9 + $0x220] sm:$0xff]  }
 0x989   : > { %10363 = vmatprep.subr.bf16.mxu1 %v11317_v60 }
 0x98b   : > { %10336 = vmatmul.mubr.bf16.gmra.mrb[88].mxu1 %v11313_v3  ;;  %v6702_v3 = vshll.u32 %v14437_v54, 16 }
 0x98c   : > { %10339 = vmatprep.mubr.bf16.mxu1 %v11315_v52  ;;  %10364 = vmatpush3.bf16.msra.mxu1 %v11317_v60  ;;  %v14442_v60 = vld [vmem:[#allocation2 + $0x58] sm:$0xff]   ;;  %v6689_v52 = vsel %vm4247_vm6, %v6684_v36, %v6688_v5  ;;  %v7013_v36 = vrot.slane %v14399_v0, 1  ;;  %v7021_v0 = vrot.slane %v14421_v17, 1  ;;  %v7029_v17 = vrot.slane %v14453_v18, 1 }
 0x98d   : > { %10365 = vmatprep.subr.bf16.mxu1 %v11320_v21  ;;  %v6714_v48 = vshrl.u32 %v14442_v60, 16  ;;  %v7027_v31 = vrot.slane %v14442_v60, 1 }
 0x990   : > { %10366 = vmatpush3.bf16.msra.mxu1 %v11320_v21  ;;  %v6698_v21 = vshrl.u32 %v14426_v26, 16 }
 0x991   : > { %10367 = vmatprep.subr.bf16.mxu1 %v11323_v63 }
 0x993   : > { %10340 = vmatmul.mubr.bf16.gmra.mrb[92].mxu1 %v11316_v10  ;;  %v6706_v10 = vshrl.u32 %v14437_v54, 16 }
 0x994   : > { %10343 = vmatprep.mubr.bf16.mxu1 %v11318_v58  ;;  %10368 = vmatpush3.bf16.msra.mxu1 %v11323_v63  ;;  %v6697_v63 = vsel %vm4247_vm6, %v6692_v14, %v6696_v40  ;;  %v6710_v58 = vshll.u32 %v14442_v60, 16  ;;  %v7015_v14 = vrot.slane %v14401_v15, 1  ;;  %v7023_v15 = vrot.slane %v14426_v26, 1 }
 0x995   : > { %10369 = vmatprep.subr.bf16.mxu1 %v11326_v57  ;;  %v7031_v26 = vrot.slane %v14455_v38, 1  ;;  %v7035_v60 = vrot.slane %v14471_v1, 1 }
 0x996   : > { %v6712_v46 = vrot.slane %v6710_v58, 1 }
 0x998   : > { %10370 = vmatpush3.bf16.msra.mxu1 %v11326_v57  ;;  %v11343_v57 = vld [vmem:[%s15682_s9 + $0x228] sm:$0xff]  }
 0x999   : > { %10399 = vmatprep.subr.bf16.mxu1 %v11330_v28 }
 0x99b   : > { %10344 = vmatmul.mubr.bf16.gmra.mrb[96].mxu1 %v11319_v11  ;;  %v6700_v11 = vor.u32 %v6698_v21, %v6696_v40  ;;  %v7014_v40 = vsel %vm4799_vm7, %v7011_v59, %v7013_v36  ;;  %v7022_v21 = vsel %vm4799_vm7, %v7019_v49, %v7021_v0 }
 0x99c   : > { %10347 = vmatprep.mubr.bf16.mxu1 %v11321_v25 }
 0x9a3   : > { %10348 = vmatmul.mubr.bf16.gmra.mrb[100].mxu1 %v11322_v44  ;;  %v11346_v44 = vld [vmem:[%s15682_s9 + $0x230] sm:$0xff]  }
 0x9a4   : > { %10351 = vmatprep.mubr.bf16.mxu1 %v11324_v8  ;;  %v6718_v8 = vshll.u32 %v14453_v18, 16 }
 0x9a6   : > { %v6720_v24 = vrot.slane %v6718_v8, 1 }
 0x9a8   : > { %v6724_v6 = vor.u32 %v6722_v39, %v6720_v24 }
 0x9aa   : > { %v6729_v32 = vsel %vm4247_vm6, %v6724_v6, %v6728_v50 }
 0x9ab   : > { %10352 = vmatmul.mubr.bf16.gmra.mrb[104].mxu1 %v11325_v42  ;;  %v11349_v42 = vld [vmem:[%s15682_s9 + $0x238] sm:$0xff]  }
 0x9ac   : > { %10371 = vmatprep.mubr.bf16.mxu1 %v6649_v29  ;;  %v6716_v29 = vor.u32 %v6714_v48, %v6712_v46 }
 0x9ae   : > { %v6721_v20 = vsel %vm4247_vm6, %v6716_v29, %v6720_v24 }
 0x9b3   : > { %10372 = vmatmul.mubr.bf16.vlgmr.msra.gmra.mrb[80].mxu1 %v6657_v47  ;;  %v6738_v47 = vshrl.u32 %v14469_v55, 16 }
 0x9b4   : > { %10400 = vmatpush3.bf16.msra.mxu1 %v11330_v28  ;;  %10375 = vmatprep.mubr.bf16.mxu1 %v6665_v53  ;;  %v6704_v28 = vrot.slane %v6702_v3, 1  ;;  %v6736_v53 = vrot.slane %v6734_v27, 1 }
 0x9b5   : > { %10401 = vmatprep.subr.bf16.mxu1 %v11332_v9 }
 0x9b6   : > { %v6708_v25 = vor.u32 %v6706_v10, %v6704_v28  ;;  %v6705_v51 = vsel %vm4247_vm6, %v6700_v11, %v6704_v28  ;;  %v6740_v30 = vor.u32 %v6738_v47, %v6736_v53  ;;  %v7032_v28 = vsel %vm4799_vm7, %v7029_v17, %v7031_v26 }
 0x9b8   : > { %10402 = vmatpush3.bf16.msra.mxu1 %v11332_v9  ;;  %v6713_v56 = vsel %vm4247_vm6, %v6708_v25, %v6712_v46  ;;  %v6732_v9 = vor.u32 %v6730_v61, %v6728_v50  ;;  %v6745_v62 = vsel %vm4247_vm6, %v6740_v30, %v6744_v37  ;;  %v7037_v46 = vrot.slane %v11348_v19, 1 }
 0x9b9   : > { %10403 = vmatprep.subr.bf16.mxu1 %v11334_v22 }
 0x9ba   : > { %v7038_v18 = vsel %vm4799_vm7, %v7035_v60, %v7037_v46 }
 0x9bb   : > { %10376 = vmatmul.mubr.bf16.gmra.mrb[84].mxu1 %v6673_v34  ;;  %v8993_v34 = vcombine.low %v6989_v35, %v14393_v33  ;;  %v7016_v33 = vsel %vm4799_vm7, %v7013_v36, %v7015_v14 }
 0x9bc   : > { %10379 = vmatprep.mubr.bf16.mxu1 %v6681_v43  ;;  %10404 = vmatpush3.bf16.msra.mxu1 %v11334_v22  ;;  %v6737_v22 = vsel %vm4247_vm6, %v6732_v9, %v6736_v53  ;;  %v6752_v43 = vrot.slane %v6750_v4, 1 }
 0x9bd   : > { %10405 = vmatprep.subr.bf16.mxu1 %v11337_v23 }
 0x9be   : > { %v6753_v16 = vsel %vm4247_vm6, %v6748_v45, %v6752_v43 }
 0x9c0   : > { %10406 = vmatpush3.bf16.msra.mxu1 %v11337_v23  ;;  %v7010_v23 = vrot.slane %v8993_v34, 1 }
 0x9c1   : > { %10407 = vmatprep.subr.bf16.mxu1 %v11340_v2 }
 0x9c2   : > { %v7012_v5 = vsel %vm4799_vm7, %v7010_v23, %v7011_v59 }
 0x9c3   : > { %10380 = vmatmul.mubr.bf16.gmra.mrb[88].mxu1 %v6689_v52 }
 0x9c4   : > { %10383 = vmatprep.mubr.bf16.mxu1 %v6697_v63  ;;  %10408 = vmatpush3.bf16.msra.mxu1 %v11340_v2  ;;  %v7017_v2 = vrot.slane %v14408_v41, 1  ;;  %v7024_v63 = vsel %vm4799_vm7, %v7021_v0, %v7023_v15  ;;  %v7025_v41 = vrot.slane %v14437_v54, 1  ;;  %v7033_v54 = vrot.slane %v14469_v55, 1 }
 0x9c5   : > { %10409 = vmatprep.subr.bf16.mxu1 %v11343_v57 }
 0x9c6   : > { %v7018_v3 = vsel %vm4799_vm7, %v7015_v14, %v7017_v2  ;;  %v7020_v52 = vsel %vm4799_vm7, %v7017_v2, %v7019_v49  ;;  %v7026_v10 = vsel %vm4799_vm7, %v7023_v15, %v7025_v41  ;;  %v7028_v58 = vsel %vm4799_vm7, %v7025_v41, %v7027_v31 }
 0x9c7   : > { %v7034_v11 = vsel %vm4799_vm7, %v7031_v26, %v7033_v54  ;;  %v7036_v25 = vsel %vm4799_vm7, %v7033_v54, %v7035_v60 }
 0x9c8   : > { %10410 = vmatpush3.bf16.msra.mxu1 %v11343_v57  ;;  %v7030_v57 = vsel %vm4799_vm7, %v7027_v31, %v7029_v17 }
 0x9c9   : > { %10411 = vmatprep.subr.bf16.mxu1 %v11346_v44 }
 0x9cb   : > { %10384 = vmatmul.mubr.bf16.gmra.mrb[92].mxu1 %v6705_v51 }
 0x9cc   : > { %10387 = vmatprep.mubr.bf16.mxu1 %v6713_v56  ;;  %10412 = vmatpush3.bf16.msra.mxu1 %v11346_v44 }
 0x9cd   : > { %10413 = vmatprep.subr.bf16.mxu1 %v11349_v42 }
 0x9d0   : > { %10414 = vmatpush3.bf16.msra.mxu1 %v11349_v42 }
 0x9d3   : > { %10388 = vmatmul.mubr.bf16.gmra.mrb[96].mxu1 %v6721_v20  ;;  %v14528_v20 = vld [vmem:[%s15683_s10] ss:$0 sm:$0xff] }
 0x9d4   : > { %10391 = vmatprep.mubr.bf16.mxu1 %v6729_v32 }
 0x9db   : > { %10392 = vmatmul.mubr.bf16.gmra.mrb[100].mxu1 %v6737_v22 }
 0x9dc   : > { %10395 = vmatprep.mubr.bf16.mxu1 %v6745_v62 }
 0x9e3   : > { %10396 = vmatmul.mubr.bf16.gmra.mrb[104].mxu1 %v6753_v16 }
 0x9e4   : > { %10415 = vmatprep.mubr.bf16.mxu1 %v7012_v5 }
 0x9eb   : > { %10416 = vmatmul.mubr.bf16.vlgmr.msra.gmra.mrb[80].mxu1 %v7014_v40 }
 0x9ec   : > { %10419 = vmatprep.mubr.bf16.mxu1 %v7016_v33 }
 0x9f3   : > { %10420 = vmatmul.mubr.bf16.gmra.mrb[84].mxu1 %v7018_v3 }
 0x9f4   : > { %10423 = vmatprep.mubr.bf16.mxu1 %v7020_v52 }
 0x9fb   : > { %10424 = vmatmul.mubr.bf16.gmra.mrb[88].mxu1 %v7022_v21 }
 0x9fc   : > { %10427 = vmatprep.mubr.bf16.mxu1 %v7024_v63 }
 0xa03   : > { %10428 = vmatmul.mubr.bf16.gmra.mrb[92].mxu1 %v7026_v10 }
 0xa04   : > { %10431 = vmatprep.mubr.bf16.mxu1 %v7028_v58 }
 0xa0b   : > { %10432 = vmatmul.mubr.bf16.gmra.mrb[96].mxu1 %v7030_v57 }
 0xa0c   : > { %10435 = vmatprep.mubr.bf16.mxu1 %v7032_v28 }
 0xa13   : > { %10436 = vmatmul.mubr.bf16.gmra.mrb[100].mxu1 %v7034_v11 }
 0xa14   : > { %10439 = vmatprep.mubr.bf16.mxu1 %v7036_v25 }
 0xa1b   : > { %10440 = vmatmul.mubr.bf16.gmra.mrb[104].mxu1 %v7038_v18 }
 0xabe   : > { %v10417_v38 = vpop.f32.mrb[80].mxu1 }
 0xabf   : > { %v7135_v44 = vpop.f32.mrb[81].mxu1  ;;  %v14537_v13 = vadd.f32 %v10417_v38, %v14528_v20 }
 0xac0   : > { %v10418_v8 = vpop.f32.mrb[82].mxu1  ;;  %v14542_v9 = vadd.f32 %v14528_v20, %v7135_v44 }
 0xac1   : > { %v7138_v51 = vpop.f32.mrb[83].mxu1  ;;  %v14545_v19 = vmul.f32 0.70710677, %v14537_v13  ;;  %v14551_v37 = vadd.f32 %v10418_v8, %v14528_v20 }
 0xac2   : > { %v14548_v30 = vmul.f32 0.70710677, %v14542_v9  ;;  %v14571_v43 = vadd.f32 %v14528_v20, %v7138_v51 }
 0xac3   : > { %v14558_v7 = vand.u32 2147483647, %v14545_v19  ;;  %v14566_v34 = vmul.f32 0.70710677, %v14551_v37  ;;  %vm7899_vm8 = vcmp.lt.f32.partialorder %v14545_v19, 0.0 }
 0xac4   : > { %v14563_v62 = vand.u32 2147483647, %v14548_v30  ;;  %v14584_v14 = vmul.f32 0.70710677, %v14571_v43  ;;  %vm7897_vm9 = vcmp.lt.f32.partialorder %v14548_v30, 0.0 }
 0xac5   : > { %v7367_v23 = vmul.f32 0.3275911, %v14558_v7  ;;  %v14576_v16 = vand.u32 2147483647, %v14566_v34  ;;  %vm7900_vm10 = vcmp.lt.f32.partialorder %v14566_v34, 0.0 }
 0xac6   : > { %v10421_v48 = vpop.f32.mrb[84].mxu1  ;;  %v7365_v59 = vmul.f32 0.3275911, %v14563_v62  ;;  %v14600_v21 = vand.u32 2147483647, %v14584_v14  ;;  %vm7898_vm11 = vcmp.lt.f32.partialorder %v14584_v14, 0.0 }
 0xac7   : > { %v7151_v56 = vpop.f32.mrb[85].mxu1  ;;  %v14579_v5 = vadd.f32 %v10421_v48, %v14528_v20  ;;  %v7395_v2 = vadd.f32 1.0, %v7367_v23  ;;  %v7368_v52 = vmul.f32 0.3275911, %v14576_v16 }
 0xac8   : > { %v10422_v39 = vpop.f32.mrb[86].mxu1  ;;  %v14587_v40 = vadd.f32 %v14528_v20, %v7151_v56  ;;  %v7393_v3 = vadd.f32 1.0, %v7365_v59  ;;  %v7366_v58 = vmul.f32 0.3275911, %v14600_v21 }
 0xac9   : > { %v7154_v12 = vpop.f32.mrb[87].mxu1  ;;  %v14595_v0 = vmul.f32 0.70710677, %v14579_v5  ;;  %v14606_v41 = vadd.f32 %v10422_v39, %v14528_v20  ;;  %11351 = vrcp.f32 %v7395_v2  ;;  %v7396_v31 = vadd.f32 1.0, %v7368_v52 }
 0xaca   : > { %v14603_v63 = vmul.f32 0.70710677, %v14587_v40  ;;  %11353 = vrcp.f32 %v7393_v3  ;;  %v14619_v57 = vadd.f32 %v14528_v20, %v7154_v12  ;;  %v7394_v54 = vadd.f32 1.0, %v7366_v58 }
 0xacb   : > { %v14609_v10 = vand.u32 2147483647, %v14595_v0  ;;  %v14616_v26 = vmul.f32 0.70710677, %v14606_v41  ;;  %11355 = vrcp.f32 %v7396_v31  ;;  %v7731_v3 = vsub.f32 0.0, %v14558_v7 }
 0xacc   : > { %v14613_v17 = vand.u32 2147483647, %v14603_v63  ;;  %v14627_v25 = vmul.f32 0.70710677, %v14619_v57  ;;  %11357 = vrcp.f32 %v7394_v54  ;;  %vm7903_vm12 = vcmp.lt.f32.partialorder %v14595_v0, 0.0 }
 0xacd   : > { %v7371_v28 = vmul.f32 0.3275911, %v14609_v10  ;;  %v14624_v11 = vand.u32 2147483647, %v14616_v26  ;;  %vm7901_vm13 = vcmp.lt.f32.partialorder %v14603_v63, 0.0  ;;  %vm7904_vm14 = vcmp.lt.f32.partialorder %v14616_v26, 0.0 }
 0xace   : > { %v10425_v42 = vpop.f32.mrb[88].mxu1  ;;  %v7369_v60 = vmul.f32 0.3275911, %v14613_v17  ;;  %v14638_v48 = vand.u32 2147483647, %v14627_v25  ;;  %vm7902_vm15 = vcmp.lt.f32.partialorder %v14627_v25, 0.0 }
 0xacf   : > { %v14511_v24 = vpop.f32.mrb[89].mxu1  ;;  %v14630_v46 = vadd.f32 %v10425_v42, %v14528_v20  ;;  %v7399_v18 = vadd.f32 1.0, %v7371_v28  ;;  %v7372_v8 = vmul.f32 0.3275911, %v14624_v11 }
 0xad0   : > { %v14513_v55 = vpop.f32.mrb[90].mxu1  ;;  %v7397_v44 = vadd.f32 1.0, %v7369_v60  ;;  %v7370_v59 = vmul.f32 0.3275911, %v14638_v48  ;;  %v7729_v60 = vsub.f32 0.0, %v14563_v62 }
 0xad1   : > { %v14515_v29 = vpop.f32.mrb[91].mxu1  ;;  %v14641_v56 = vmul.f32 0.70710677, %v14630_v46  ;;  %11359 = vrcp.f32 %v7399_v18  ;;  %v7400_v42 = vadd.f32 1.0, %v7372_v8  ;;  %v7759_v8 = vmul.f32 %v7731_v3, %v14558_v7 }
 0xad2   : > { %11361 = vrcp.f32 %v7397_v44  ;;  %v7398_v28 = vadd.f32 1.0, %v7370_v59  ;;  %v7757_v59 = vmul.f32 %v7729_v60, %v14563_v62  ;;  %v14672_v7 = vmul.f32 0.5, %v14537_v13 }
 0xad3   : > { %v14632_v38 = vpop.eup %11351  ;;  %v14649_v2 = vand.u32 2147483647, %v14641_v56  ;;  %11363 = vrcp.f32 %v7400_v42  ;;  %v7730_v3 = vsub.f32 0.0, %v14600_v21  ;;  %vm7907_vm0 = vcmp.lt.f32.partialorder %v14641_v56, 0.0 }
 0xad4   : > { %v14635_v51 = vpop.eup %11353  ;;  %v7479_v39 = vmul.f32 1.0614054, %v14632_v38  ;;  %11365 = vrcp.f32 %v7398_v28 }
 0xad5   : > { %v7477_v12 = vmul.f32 1.0614054, %v14635_v51  ;;  %v14645_v23 = vpop.eup %11355  ;;  %v7375_v18 = vmul.f32 0.3275911, %v14649_v2 }
 0xad6   : > { %v14517_v6 = vpop.f32.mrb[92].mxu1  ;;  %v9005_v52 = vadd.f32 -1.4531521, %v7479_v39  ;;  %v7480_v58 = vmul.f32 1.0614054, %v14645_v23  ;;  %v14653_v54 = vpop.eup %11357  ;;  %v7732_v39 = vsub.f32 0.0, %v14576_v16 }
 0xad7   : > { %v14519_v50 = vpop.f32.mrb[93].mxu1  ;;  %v9003_v31 = vadd.f32 -1.4531521, %v7477_v12  ;;  %v7478_v12 = vmul.f32 1.0614054, %v14653_v54 }
 0xad8   : > { %v14521_v1 = vpop.f32.mrb[94].mxu1  ;;  %v7535_v44 = vmul.f32 %v14632_v38, %v9005_v52  ;;  %v14669_v52 = vadd.f32 %v14528_v20, %v14511_v24  ;;  %v7760_v28 = vmul.f32 %v7732_v39, %v14576_v16  ;;  %v7785_v24 = vmul.f32 1.442695, %v7757_v59 }
 0xad9   : > { %v14523_v27 = vpop.f32.mrb[95].mxu1  ;;  %v14692_v16 = vmul.f32 0.5, %v14551_v37 }
 0xada   : > { %16330 = vst [vmem:[#allocation57_spill] sm:$0xff] %v14669_v52  ;;  %v14682_v13 = vmul.f32 0.70710677, %v14669_v52  ;;  %v7791_v37 = vmul.f32 1.442695, %v7760_v28 }
 0xadc   : > { %16331 = vst [vmem:[#allocation58_spill] sm:$0xff] %v14682_v13 }
 0xade   : > { %v14530_v61 = vpop.f32.mrb[96].mxu1 }
 0xadf   : > { %v14532_v32 = vpop.f32.mrb[97].mxu1 }
 0xae0   : > { %16319 = vst [vmem:[#allocation104_spill] sm:$0xff] %v14532_v32  ;;  %v14534_v47 = vpop.f32.mrb[98].mxu1 }
 0xae1   : > { %16320 = vst [vmem:[#allocation105_spill] sm:$0xff] %v14534_v47  ;;  %v14539_v53 = vpop.f32.mrb[99].mxu1 }
 0xae2   : > { %16321 = vst [vmem:[#allocation52_spill] sm:$0xff] %v14539_v53  ;;  %v14703_v53 = vand.u32 2147483647, %v14682_v13 }
 0xae6   : > { %v14553_v35 = vpop.f32.mrb[100].mxu1 }
 0xae7   : > { %16322 = vst [vmem:[#allocation53_spill] sm:$0xff] %v14553_v35  ;;  %v14555_v22 = vpop.f32.mrb[101].mxu1 }
 0xae8   : > { %16323 = vst [vmem:[#allocation54_spill] sm:$0xff] %v14555_v22  ;;  %v14560_v4 = vpop.f32.mrb[102].mxu1  ;;  %v9004_v22 = vadd.f32 -1.4531521, %v7478_v12 }
 0xae9   : > { %16324 = vst [vmem:[#allocation106_spill] sm:$0xff] %v14560_v4  ;;  %v14568_v45 = vpop.f32.mrb[103].mxu1 }
 0xaea   : > { %16325 = vst [vmem:[#allocation107_spill] sm:$0xff] %v14568_v45 }
 0xaee   : > { %v14581_v36 = vpop.f32.mrb[104].mxu1 }
 0xaef   : > { %16326 = vst [vmem:[#allocation55_spill] sm:$0xff] %v14581_v36  ;;  %v14589_v33 = vpop.f32.mrb[105].mxu1  ;;  %v7403_v36 = vadd.f32 1.0, %v7375_v18 }
 0xaf0   : > { %16327 = vst [vmem:[#allocation108_spill] sm:$0xff] %v14589_v33  ;;  %v14591_v49 = vpop.f32.mrb[106].mxu1  ;;  %v14660_v33 = vpop.eup %11359 }
 0xaf1   : > { %16328 = vst [vmem:[#allocation109_spill] sm:$0xff] %v14591_v49  ;;  %v14597_v15 = vpop.f32.mrb[107].mxu1  ;;  %v7533_v49 = vmul.f32 %v14635_v51, %v9003_v31  ;;  %v14664_v42 = vpop.eup %11361  ;;  %v7563_v31 = vadd.f32 1.4214138, %v7535_v44  ;;  %v7483_v62 = vmul.f32 1.0614054, %v14660_v33  ;;  %11367 = vrcp.f32 %v7403_v36 }
 0xaf2   : > { %16329 = vst [vmem:[#allocation56_spill] sm:$0xff] %v14597_v15  ;;  %v9006_v15 = vadd.f32 -1.4531521, %v7480_v58  ;;  %v7789_v58 = vmul.f32 1.442695, %v7759_v8  ;;  %v14679_v18 = vpop.eup %11363  ;;  %v14686_v44 = vadd.f32 %v14513_v55, %v14528_v20  ;;  %v14696_v8 = vmul.f32 0.5, %v14571_v43 }
 0xaf3   : > { %v7561_v45 = vadd.f32 1.4214138, %v7533_v49  ;;  %v7481_v60 = vmul.f32 1.0614054, %v14664_v42  ;;  %v14689_v49 = vmul.f32 0.5, %v14542_v9  ;;  %v7591_v36 = vmul.f32 %v14632_v38, %v7563_v31 }
 0xaf4   : > { %v7536_v4 = vmul.f32 %v14645_v23, %v9006_v15  ;;  %16332 = vst [vmem:[#allocation110_spill] sm:$0xff] %v14686_v44  ;;  %v7758_v15 = vmul.f32 %v7730_v3, %v14600_v21  ;;  %11369 = vpow2.f32 %v7789_v58  ;;  %v7534_v55 = vmul.f32 %v14653_v54, %v9004_v22  ;;  %v14708_v21 = vpop.eup %11365 }
 0xaf5   : > { %v7589_v39 = vmul.f32 %v14635_v51, %v7561_v45  ;;  %v9009_v59 = vadd.f32 -1.4531521, %v7483_v62  ;;  %v9007_v35 = vadd.f32 -1.4531521, %v7481_v60  ;;  %v7484_v9 = vmul.f32 1.0614054, %v14679_v18 }
 0xaf6   : > { %v7564_v12 = vadd.f32 1.4214138, %v7536_v4  ;;  %11371 = vpow2.f32 %v7785_v24  ;;  %v14706_v43 = vmul.f32 0.70710677, %v14686_v44  ;;  %v7787_v3 = vmul.f32 1.442695, %v7758_v15 }
 0xaf7   : > { %v7735_v45 = vsub.f32 0.0, %v14609_v10  ;;  %v14712_v4 = vmul.f32 0.5, %v14579_v5  ;;  %v14715_v22 = vmul.f32 0.5, %v14587_v40  ;;  %v9033_v31 = vadd.f32 -0.28449672, %v7591_v36 }
 0xaf8   : > { %16333 = vst [vmem:[#allocation111_spill] sm:$0xff] %v14706_v43  ;;  %v9031_v58 = vadd.f32 -0.28449672, %v7589_v39  ;;  %v7592_v28 = vmul.f32 %v14645_v23, %v7564_v12  ;;  %v7733_v62 = vsub.f32 0.0, %v14613_v17  ;;  %v7562_v60 = vadd.f32 1.4214138, %v7534_v55 }
 0xaf9   : > { %16334 = vst [vmem:[#allocation59_spill] sm:$0xff] %v14712_v4  ;;  %16335 = vst [vmem:[#allocation112_spill] sm:$0xff] %v14715_v22  ;;  %v7539_v24 = vmul.f32 %v14660_v33, %v9009_v59  ;;  %v7537_v13 = vmul.f32 %v14664_v42, %v9007_v35  ;;  %v9010_v15 = vadd.f32 -1.4531521, %v7484_v9  ;;  %11373 = vpow2.f32 %v7791_v37 }
 0xafa   : > { %v7482_v47 = vmul.f32 1.0614054, %v14708_v21  ;;  %v7373_v5 = vmul.f32 0.3275911, %v14703_v53  ;;  %v14724_v40 = vand.u32 2147483647, %v14706_v43  ;;  %v7763_v36 = vmul.f32 %v7735_v45, %v14609_v10 }
 0xafb   : > { %v7736_v39 = vsub.f32 0.0, %v14624_v11  ;;  %v14729_v12 = vmul.f32 0.5, %v14606_v41  ;;  %v14733_v55 = vadd.f32 %v14528_v20, %v14515_v29  ;;  %v14735_v35 = vpop.eup %11367  ;;  %v7647_v59 = vmul.f32 %v14632_v38, %v9033_v31 }
 0xafc   : > { %v7645_v9 = vmul.f32 %v14635_v51, %v9031_v58  ;;  %v7761_v37 = vmul.f32 %v7733_v62, %v14613_v17  ;;  %v14741_v43 = vmul.f32 0.5, %v14619_v57  ;;  %v9034_v10 = vadd.f32 -0.28449672, %v7592_v28 }
 0xafd   : > { %16336 = vst [vmem:[#allocation113_spill] sm:$0xff] %v14729_v12  ;;  %16337 = vst [vmem:[#allocation60_spill] sm:$0xff] %v14733_v55  ;;  %v7590_v45 = vmul.f32 %v14653_v54, %v7562_v60  ;;  %v7567_v41 = vadd.f32 1.4214138, %v7539_v24  ;;  %v7565_v12 = vadd.f32 1.4214138, %v7537_v13  ;;  %v7540_v29 = vmul.f32 %v14679_v18, %v9010_v15 }
 0xafe   : > { %16338 = vst [vmem:[#allocation61_spill] sm:$0xff] %v14741_v43  ;;  %v11370_v44 = vpop.eup %11369  ;;  %v9008_v22 = vadd.f32 -1.4531521, %v7482_v47  ;;  %v7401_v4 = vadd.f32 1.0, %v7373_v5  ;;  %v7376_v52 = vmul.f32 0.3275911, %v14724_v40  ;;  %v14752_v57 = vadd.f32 %v14517_v6, %v14528_v20 }
 0xaff   : > { %v7797_v31 = vmul.f32 1.442695, %v7763_v36  ;;  %v7487_v58 = vmul.f32 1.0614054, %v14735_v35  ;;  %v14748_v17 = vmul.f32 0.70710677, %v14733_v55  ;;  %v7764_v24 = vmul.f32 %v7736_v39, %v14624_v11 }
 0xb00   : > { %v11372_v28 = vpop.eup %11371  ;;  %v7675_v62 = vadd.f32 0.2548296, %v7647_v59  ;;  %v7673_v13 = vadd.f32 0.2548296, %v7645_v9  ;;  %v7793_v60 = vmul.f32 1.442695, %v7761_v37  ;;  %v7648_v47 = vmul.f32 %v14645_v23, %v9034_v10 }
 0xb01   : > { %v9032_v15 = vadd.f32 -0.28449672, %v7590_v45  ;;  %v7595_v5 = vmul.f32 %v14660_v33, %v7567_v41  ;;  %v7593_v36 = vmul.f32 %v14664_v42, %v7565_v12  ;;  %v7568_v43 = vadd.f32 1.4214138, %v7540_v29 }
 0xb02   : > { %v7538_v55 = vmul.f32 %v14708_v21, %v9008_v22  ;;  %11375 = vrcp.f32 %v7401_v4  ;;  %v7404_v32 = vadd.f32 1.0, %v7376_v52  ;;  %v9013_v6 = vadd.f32 -1.4531521, %v7487_v58 }
 0xb03   : > { %11377 = vpow2.f32 %v7787_v3  ;;  %v14760_v59 = vand.u32 2147483647, %v14748_v17  ;;  %v14763_v9 = vmul.f32 0.70710677, %v14752_v57  ;;  %v11374_v11 = vpop.eup %11373  ;;  %v7703_v39 = vmul.f32 %v14632_v38, %v7675_v62 }
 0xb04   : > { %v7799_v37 = vmul.f32 1.442695, %v7764_v24  ;;  %v7734_v10 = vsub.f32 0.0, %v14638_v48  ;;  %v14769_v12 = vadd.f32 %v14528_v20, %v14519_v50  ;;  %v7701_v52 = vmul.f32 %v14635_v51, %v7673_v13 }
 0xb05   : > { %v7676_v3 = vadd.f32 0.2548296, %v7648_v47  ;;  %v7646_v4 = vmul.f32 %v14653_v54, %v9032_v15  ;;  %v9037_v22 = vadd.f32 -0.28449672, %v7595_v5  ;;  %v9035_v45 = vadd.f32 -0.28449672, %v7593_v36 }
 0xb06   : > { %v7596_v41 = vmul.f32 %v14679_v18, %v7568_v43  ;;  %v7566_v29 = vadd.f32 1.4214138, %v7538_v55  ;;  %11379 = vrcp.f32 %v7404_v32  ;;  %v7543_v38 = vmul.f32 %v14735_v35, %v9013_v6 }
 0xb07   : > { %11381 = vpow2.f32 %v7797_v31  ;;  %v7374_v58 = vmul.f32 0.3275911, %v14760_v59  ;;  %v14777_v62 = vand.u32 2147483647, %v14763_v9  ;;  %v7843_v50 = vmul.f32 %v11370_v44, %v7703_v39 }
 0xb08   : > { %11383 = vpow2.f32 %v7793_v60  ;;  %v7762_v51 = vmul.f32 %v7734_v10, %v14638_v48  ;;  %v14781_v13 = vmul.f32 0.70710677, %v14769_v12  ;;  %v7704_v24 = vmul.f32 %v14645_v23, %v7676_v3 }
 0xb09   : > { %v7674_v43 = vadd.f32 0.2548296, %v7646_v4  ;;  %v7651_v32 = vmul.f32 %v14660_v33, %v9037_v22  ;;  %v7739_v55 = vsub.f32 0.0, %v14649_v2  ;;  %v14786_v31 = vmul.f32 %v11372_v28, %v7701_v52 }
 0xb0a   : > { %16339 = vst [vmem:[#allocation62_spill] sm:$0xff] %v14781_v13  ;;  %v7649_v47 = vmul.f32 %v14664_v42, %v9035_v45  ;;  %v9038_v15 = vadd.f32 -0.28449672, %v7596_v41  ;;  %v7594_v44 = vmul.f32 %v14708_v21, %v7566_v29  ;;  %11385 = vpow2.f32 %v7799_v37 }
 0xb0b   : > { %v7571_v48 = vadd.f32 1.4214138, %v7543_v38  ;;  %v7402_v60 = vadd.f32 1.0, %v7374_v58  ;;  %v7379_v5 = vmul.f32 0.3275911, %v14777_v62  ;;  %v7871_v36 = vsub.f32 1.0, %v7843_v50 }
 0xb0c   : > { %v14792_v23 = vpop.eup %11375  ;;  %v7795_v6 = vmul.f32 1.442695, %v7762_v51  ;;  %v14795_v39 = vand.u32 2147483647, %v14781_v13  ;;  %v14799_v28 = vadd.f32 %v14521_v1, %v14528_v20  ;;  %v7844_v52 = vmul.f32 %v11374_v11, %v7704_v24 }
 0xb0d   : > { %v11378_v10 = vpop.eup %11377  ;;  %v7702_v3 = vmul.f32 %v14653_v54, %v7674_v43  ;;  %v7679_v37 = vadd.f32 0.2548296, %v7651_v32  ;;  %v7767_v4 = vmul.f32 %v7739_v55, %v14649_v2  ;;  %v7869_v22 = vsub.f32 1.0, %v14786_v31 }
 0xb0e   : > { %v7677_v45 = vadd.f32 0.2548296, %v7649_v47  ;;  %v7652_v41 = vmul.f32 %v14679_v18, %v9038_v15  ;;  %v9036_v29 = vadd.f32 -0.28449672, %v7594_v44  ;;  %v7599_v38 = vmul.f32 %v14735_v35, %v7571_v48 }
 0xb0f   : > { %v7485_v1 = vmul.f32 1.0614054, %v14792_v23  ;;  %11387 = vrcp.f32 %v7402_v60  ;;  %v7407_v58 = vadd.f32 1.0, %v7379_v5  ;;  %v7927_v54 = vsub.f32 0.0, %v7871_v36 }
 0xb10   : > { %v14808_v11 = vpop.eup %11379  ;;  %11389 = vpow2.f32 %v7795_v6  ;;  %v7377_v2 = vmul.f32 0.3275911, %v14795_v39  ;;  %v14813_v50 = vmul.f32 0.70710677, %v14799_v28  ;;  %v7872_v24 = vsub.f32 1.0, %v7844_v52 }
 0xb11   : > { %v11382_v51 = vpop.eup %11381  ;;  %v7842_v43 = vmul.f32 %v11378_v10, %v7702_v3  ;;  %v7707_v32 = vmul.f32 %v14660_v33, %v7679_v37  ;;  %v7805_v55 = vmul.f32 1.442695, %v7767_v4  ;;  %v7925_v47 = vsub.f32 0.0, %v7869_v22 }
 0xb12   : > { %v11384_v31 = vpop.eup %11383  ;;  %v7705_v15 = vmul.f32 %v14664_v42, %v7677_v45  ;;  %v7680_v44 = vadd.f32 0.2548296, %v7652_v41  ;;  %v7650_v48 = vmul.f32 %v14708_v21, %v9036_v29  ;;  %v9041_v60 = vadd.f32 -0.28449672, %v7599_v38 }
 0xb13   : > { %v9011_v5 = vadd.f32 -1.4531521, %v7485_v1  ;;  %v7488_v6 = vmul.f32 1.0614054, %v14808_v11  ;;  %11391 = vrcp.f32 %v7407_v58  ;;  %v7955_v13 = vsel %vm7899_vm8, %v7927_v54, %v7871_v36 }
 0xb14   : > { %v7405_v10 = vadd.f32 1.0, %v7377_v2  ;;  %v14823_v33 = vand.u32 2147483647, %v14813_v50  ;;  %v14827_v42 = vadd.f32 %v14528_v20, %v14523_v27  ;;  %v11386_v52 = vpop.eup %11385  ;;  %v7928_v3 = vsub.f32 0.0, %v7872_v24 }
 0xb15   : > { %v7870_v37 = vsub.f32 1.0, %v7842_v43  ;;  %v7847_v4 = vmul.f32 %v11382_v51, %v7707_v32  ;;  %v14830_v45 = vmul.f32 0.5, %v14630_v46  ;;  %v14832_v41 = vmul.f32 %v11384_v31, %v7705_v15 }
 0xb16   : > { %v7708_v19 = vmul.f32 %v14679_v18, %v7680_v44  ;;  %v7678_v36 = vadd.f32 0.2548296, %v7650_v48  ;;  %11393 = vpow2.f32 %v7805_v55  ;;  %v8011_v29 = vadd.f32 1.0, %v7955_v13 }
 0xb17   : > { %v7655_v38 = vmul.f32 %v14735_v35, %v9041_v60  ;;  %v7541_v1 = vmul.f32 %v14792_v23, %v9011_v5  ;;  %v9014_v27 = vadd.f32 -1.4531521, %v7488_v6  ;;  %v7953_v58 = vsel %vm7897_vm9, %v7925_v47, %v7869_v22 }
 0xb18   : > { %11395 = vrcp.f32 %v7405_v10  ;;  %v7380_v54 = vmul.f32 0.3275911, %v14823_v33  ;;  %v14841_v46 = vmul.f32 0.70710677, %v14827_v42  ;;  %v7956_v18 = vsel %vm7900_vm10, %v7928_v3, %v7872_v24 }
 0xb19   : > { %v14843_v2 = vpop.eup %11387  ;;  %v7926_v13 = vsub.f32 0.0, %v7870_v37  ;;  %v7875_v51 = vsub.f32 1.0, %v7847_v4  ;;  %v14850_v43 = vadd.f32 %v14530_v61, %v14528_v20  ;;  %v7873_v22 = vsub.f32 1.0, %v14832_v41 }
 0xb1a   : > { %v11390_v30 = vpop.eup %11389  ;;  %v7848_v32 = vmul.f32 %v11386_v52, %v7708_v19  ;;  %v7706_v55 = vmul.f32 %v14708_v21, %v7678_v36  ;;  %v7737_v31 = vsub.f32 0.0, %v14703_v53  ;;  %v8009_v34 = vadd.f32 1.0, %v7953_v58 }
 0xb1b   : > { %v7683_v24 = vadd.f32 0.2548296, %v7655_v38  ;;  %v7569_v47 = vadd.f32 1.4214138, %v7541_v1  ;;  %v7544_v15 = vmul.f32 %v14808_v11, %v9014_v27  ;;  %v14858_v44 = vmul.f32 %v8011_v29, %v14672_v7 }
 0xb1c   : > { %v7486_v61 = vmul.f32 1.0614054, %v14843_v2  ;;  %v7408_v48 = vadd.f32 1.0, %v7380_v54  ;;  %v14862_v60 = vand.u32 2147483647, %v14841_v46  ;;  %v8012_v6 = vadd.f32 1.0, %v7956_v18 }
 0xb1d   : > { %16340 = vst [vmem:[#allocation114_spill] sm:$0xff] %v14858_v44  ;;  %v14864_v5 = vpop.eup %11391  ;;  %v7954_v21 = vsel %vm7898_vm11, %v7926_v13, %v7870_v37  ;;  %v7931_v10 = vsub.f32 0.0, %v7875_v51  ;;  %v14870_v52 = vmul.f32 0.70710677, %v14850_v43  ;;  %v7929_v7 = vsub.f32 0.0, %v7873_v22 }
 0xb1e   : > { %v7876_v3 = vsub.f32 1.0, %v7848_v32  ;;  %v7846_v4 = vmul.f32 %v11390_v30, %v7706_v55  ;;  %v7765_v41 = vmul.f32 %v7737_v31, %v14703_v53  ;;  %v7711_v19 = vmul.f32 %v14735_v35, %v7683_v24 }
 0xb1f   : > { %v7597_v36 = vmul.f32 %v14792_v23, %v7569_v47  ;;  %v7572_v29 = vadd.f32 1.4214138, %v7544_v15  ;;  %v7740_v38 = vsub.f32 0.0, %v14724_v40  ;;  %v9012_v37 = vadd.f32 -1.4531521, %v7486_v61 }
 0xb20   : > { %v11394_v14 = vpop.eup %11393  ;;  %v7491_v1 = vmul.f32 1.0614054, %v14864_v5  ;;  %11397 = vrcp.f32 %v7408_v48  ;;  %v7378_v27 = vmul.f32 0.3275911, %v14862_v60  ;;  %v14879_v58 = vmul.f32 %v8009_v34, %v14689_v49 }
 0xb21   : > { %v14882_v54 = vmul.f32 %v8012_v6, %v14692_v16  ;;  %v8010_v53 = vadd.f32 1.0, %v7954_v21  ;;  %v14885_v35 = vand.u32 2147483647, %v14870_v52  ;;  %v7959_v13 = vsel %vm7903_vm12, %v7931_v10, %v7875_v51 }
 0xb22   : > { %16341 = vst [vmem:[#allocation115_spill] sm:$0xff] %v14879_v58  ;;  %v14887_v18 = vpop.eup %11395  ;;  %v7932_v30 = vsub.f32 0.0, %v7876_v3  ;;  %v7874_v32 = vsub.f32 1.0, %v7846_v4  ;;  %v7801_v55 = vmul.f32 1.442695, %v7765_v41  ;;  %v7957_v49 = vsel %vm7901_vm13, %v7929_v7, %v7873_v22  ;;  %v16344_v4 = vld [vmem:[#allocation104_spill] sm:$0xff] }
 0xb23   : > { %16342 = vst [vmem:[#allocation63_spill] sm:$0xff] %v14882_v54  ;;  %v7851_v31 = vmul.f32 %v11394_v14, %v7711_v19  ;;  %v9039_v16 = vadd.f32 -0.28449672, %v7597_v36  ;;  %v7768_v34 = vmul.f32 %v7740_v38, %v14724_v40  ;;  %v7600_v24 = vmul.f32 %v14808_v11, %v7572_v29  ;;  %v16345_v29 = vld [vmem:[#allocation57_spill] sm:$0xff] }
 0xb24   : > { %v7542_v47 = vmul.f32 %v14843_v2, %v9012_v37  ;;  %v9017_v15 = vadd.f32 -1.4531521, %v7491_v1  ;;  %v7406_v61 = vadd.f32 1.0, %v7378_v27  ;;  %v14898_v0 = vmul.f32 %v8010_v53, %v14696_v8  ;;  %v16346_v1 = vld [vmem:[#allocation59_spill] sm:$0xff]  ;;  %v16347_v53 = vld [vmem:[#allocation112_spill] sm:$0xff] }
 0xb25   : > { %v8015_v51 = vadd.f32 1.0, %v7959_v13  ;;  %v7489_v48 = vmul.f32 1.0614054, %v14887_v18  ;;  %v7383_v6 = vmul.f32 0.3275911, %v14885_v35  ;;  %v8013_v63 = vadd.f32 1.0, %v7957_v49 }
 0xb26   : > { %16343 = vst [vmem:[#allocation116_spill] sm:$0xff] %v14898_v0  ;;  %v7960_v22 = vsel %vm7904_vm14, %v7932_v30, %v7876_v3  ;;  %v7930_v21 = vsub.f32 0.0, %v7874_v32  ;;  %11399 = vpow2.f32 %v7801_v55  ;;  %v7879_v40 = vsub.f32 1.0, %v7851_v31 }
 0xb27   : > { %v7653_v10 = vmul.f32 %v14792_v23, %v9039_v16  ;;  %v7807_v7 = vmul.f32 1.442695, %v7768_v34  ;;  %v14908_v8 = vadd.f32 %v14528_v20, %v16344_v4  ;;  %v9042_v41 = vadd.f32 -0.28449672, %v7600_v24 }
 0xb28   : > { %v7570_v19 = vadd.f32 1.4214138, %v7542_v47  ;;  %v7547_v36 = vmul.f32 %v14864_v5, %v9017_v15  ;;  %11401 = vrcp.f32 %v7406_v61  ;;  %v14912_v26 = vmul.f32 0.5, %v16345_v29 }
 0xb29   : > { %v7738_v3 = vsub.f32 0.0, %v14760_v59  ;;  %v9015_v38 = vadd.f32 -1.4531521, %v7489_v48  ;;  %v7411_v14 = vadd.f32 1.0, %v7383_v6  ;;  %v14918_v27 = vmul.f32 %v8015_v51, %v16346_v1  ;;  %v16352_v1 = vld [vmem:[#allocation61_spill] sm:$0xff] }
 0xb2a   : > { %v14915_v37 = vpop.eup %11397  ;;  %v14921_v13 = vmul.f32 %v8013_v63, %v16347_v53  ;;  %v8016_v30 = vadd.f32 1.0, %v7960_v22  ;;  %v7743_v55 = vsub.f32 0.0, %v14777_v62  ;;  %v7958_v49 = vsel %vm7902_vm15, %v7930_v21, %v7874_v32  ;;  %v16349_v32 = vld [vmem:[#allocation110_spill] sm:$0xff] }
 0xb2b   : > { %v7935_v31 = vsub.f32 0.0, %v7879_v40  ;;  %v7681_v16 = vadd.f32 0.2548296, %v7653_v10  ;;  %11403 = vpow2.f32 %v7807_v7  ;;  %v7656_v34 = vmul.f32 %v14808_v11, %v9042_v41  ;;  %v16350_v7 = vld [vmem:[#allocation60_spill] sm:$0xff] }
 0xb2c   : > { %v7598_v24 = vmul.f32 %v14843_v2, %v7570_v19  ;;  %v7575_v47 = vadd.f32 1.4214138, %v7547_v36  ;;  %v14929_v15 = vmul.f32 0.70710677, %v14908_v8  ;;  %v7766_v61 = vmul.f32 %v7738_v3, %v14760_v59  ;;  %v16351_v3 = vld [vmem:[#allocation113_spill] sm:$0xff] }
 0xb2d   : > { %v7545_v51 = vmul.f32 %v14887_v18, %v9015_v38  ;;  %v7492_v48 = vmul.f32 1.0614054, %v14915_v37  ;;  %11405 = vrcp.f32 %v7411_v14  ;;  %v8014_v25 = vadd.f32 1.0, %v7958_v49  ;;  %v16353_v49 = vld [vmem:[#allocation105_spill] sm:$0xff] }
 0xb2e   : > { %16348 = vst [vmem:[#allocation117_spill] sm:$0xff] %v14929_v15  ;;  %v14935_v6 = vmul.f32 0.5, %v16349_v32  ;;  %v7771_v63 = vmul.f32 %v7743_v55, %v14777_v62  ;;  %v7741_v22 = vsub.f32 0.0, %v14795_v39  ;;  %v7963_v21 = vsel %vm7907_vm0, %v7935_v31, %v7879_v40 }
 0xb2f   : > { %v7709_v10 = vmul.f32 %v14792_v23, %v7681_v16  ;;  %v14943_v59 = vmul.f32 0.5, %v16350_v7  ;;  %v14946_v4 = vmul.f32 0.5, %v14752_v57  ;;  %v7684_v19 = vadd.f32 0.2548296, %v7656_v34 }
 0xb30   : > { %v11400_v41 = vpop.eup %11399  ;;  %v9040_v36 = vadd.f32 -0.28449672, %v7598_v24  ;;  %v7603_v29 = vmul.f32 %v14864_v5, %v7575_v47  ;;  %v14950_v62 = vand.u32 2147483647, %v14929_v15  ;;  %v14953_v38 = vmul.f32 %v8016_v30, %v16351_v3 }
 0xb31   : > { %v7803_v56 = vmul.f32 1.442695, %v7766_v61  ;;  %v7573_v40 = vadd.f32 1.4214138, %v7545_v51  ;;  %v9018_v23 = vadd.f32 -1.4531521, %v7492_v48  ;;  %v14958_v53 = vmul.f32 %v8014_v25, %v16352_v1 }
 0xb32   : > { %v14955_v14 = vpop.eup %11401  ;;  %v7813_v57 = vmul.f32 1.442695, %v7771_v63  ;;  %v7769_v55 = vmul.f32 %v7741_v22, %v14795_v39  ;;  %v14963_v31 = vadd.f32 %v16353_v49, %v14528_v20  ;;  %v8019_v16 = vadd.f32 1.0, %v7963_v21  ;;  %v16355_v21 = vld [vmem:[#allocation52_spill] sm:$0xff] }
 0xb33   : > { %v7849_v34 = vmul.f32 %v11400_v41, %v7709_v10  ;;  %v14966_v30 = vmul.f32 0.5, %v14769_v12  ;;  %v7744_v24 = vsub.f32 0.0, %v14823_v33  ;;  %v7712_v47 = vmul.f32 %v14808_v11, %v7684_v19  ;;  %v16356_v41 = vld [vmem:[#allocation58_spill] sm:$0xff] }
 0xb34   : > { %v7654_v61 = vmul.f32 %v14843_v2, %v9040_v36  ;;  %v9045_v51 = vadd.f32 -0.28449672, %v7603_v29  ;;  %v7381_v48 = vmul.f32 0.3275911, %v14950_v62  ;;  %11407 = vpow2.f32 %v7803_v56 }
 0xb35   : > { %v11404_v25 = vpop.eup %11403  ;;  %v7601_v39 = vmul.f32 %v14887_v18, %v7573_v40  ;;  %v7548_v32 = vmul.f32 %v14915_v37, %v9018_v23  ;;  %v7490_v63 = vmul.f32 1.0614054, %v14955_v14  ;;  %11409 = vpow2.f32 %v7813_v57 }
 0xb36   : > { %v7809_v12 = vmul.f32 1.442695, %v7769_v55  ;;  %v14976_v22 = vmul.f32 0.70710677, %v14963_v31  ;;  %v14980_v11 = vadd.f32 %v14528_v20, %v16355_v21  ;;  %v7877_v7 = vsub.f32 1.0, %v7849_v34 }
 0xb37   : > { %v14982_v10 = vpop.eup %11405  ;;  %vm7905_vm1 = vcmp.lt.f32.partialorder %v16356_v41, 0.0  ;;  %v7772_v19 = vmul.f32 %v7744_v24, %v14823_v33  ;;  %v14987_v36 = vmul.f32 0.5, %v14799_v28  ;;  %v7742_v29 = vsub.f32 0.0, %v14862_v60  ;;  %v16358_v24 = vld [vmem:[#allocation111_spill] sm:$0xff] }
 0xb38   : > { %16354 = vst [vmem:[#allocation64_spill] sm:$0xff] %v14976_v22  ;;  %v7852_v3 = vmul.f32 %v11404_v25, %v7712_v47  ;;  %v7682_v56 = vadd.f32 0.2548296, %v7654_v61  ;;  %v7659_v40 = vmul.f32 %v14864_v5, %v9045_v51  ;;  %v7409_v23 = vadd.f32 1.0, %v7381_v48 }
 0xb39   : > { %v14992_v1 = vmul.f32 %v8019_v16, %v14830_v45  ;;  %v9043_v57 = vadd.f32 -0.28449672, %v7601_v39  ;;  %v7576_v55 = vadd.f32 1.4214138, %v7548_v32  ;;  %v9016_v49 = vadd.f32 -1.4531521, %v7490_v63 }
 0xb3a   : > { %11411 = vpow2.f32 %v7809_v12  ;;  %v7495_v34 = vmul.f32 1.0614054, %v14982_v10  ;;  %v14996_v33 = vand.u32 2147483647, %v14976_v22  ;;  %v14999_v28 = vmul.f32 0.70710677, %v14980_v11 }
 0xb3b   : > { %vm7908_vm2 = vcmp.lt.f32.partialorder %v16358_v24, 0.0  ;;  %v7815_v47 = vmul.f32 1.442695, %v7772_v19  ;;  %v15003_v61 = vmul.f32 0.5, %v14827_v42  ;;  %v7747_v45 = vsub.f32 0.0, %v14885_v35  ;;  %v16360_v16 = vld [vmem:[#allocation53_spill] sm:$0xff] }
 0xb3c   : > { %16357 = vst [vmem:[#allocation65_spill] sm:$0xff] %v14999_v28  ;;  %v15008_v51 = vadd.f32 %v16360_v16, %v14528_v20  ;;  %v7933_v48 = vsub.f32 0.0, %v7877_v7  ;;  %v7880_v25 = vsub.f32 1.0, %v7852_v3  ;;  %v7687_v39 = vadd.f32 0.2548296, %v7659_v40 }
 0xb3d   : > { %16359 = vst [vmem:[#allocation66_spill] sm:$0xff] %v15003_v61  ;;  %v7770_v32 = vmul.f32 %v7742_v29, %v14862_v60  ;;  %v7710_v63 = vmul.f32 %v14843_v2, %v7682_v56  ;;  %v7657_v12 = vmul.f32 %v14887_v18, %v9043_v57  ;;  %v7604_v21 = vmul.f32 %v14915_v37, %v7576_v55  ;;  %v16362_v2 = vld [vmem:[#allocation54_spill] sm:$0xff] }
 0xb3e   : > { %16361 = vst [vmem:[#allocation118_spill] sm:$0xff] %v15008_v51  ;;  %11413 = vrcp.f32 %v7409_v23  ;;  %v7546_v42 = vmul.f32 %v14955_v14, %v9016_v49  ;;  %v9021_v19 = vadd.f32 -1.4531521, %v7495_v34  ;;  %v7384_v22 = vmul.f32 0.3275911, %v14996_v33  ;;  %v11408_v15 = vpop.eup %11407 }
 0xb3f   : > { %v15017_v16 = vand.u32 2147483647, %v14999_v28  ;;  %11415 = vpow2.f32 %v7815_v47  ;;  %v7775_v3 = vmul.f32 %v7747_v45, %v14885_v35  ;;  %v15021_v60 = vmul.f32 0.70710677, %v15008_v51  ;;  %v11410_v56 = vpop.eup %11409 }
 0xb40   : > { %v15025_v29 = vadd.f32 %v14528_v20, %v16362_v2  ;;  %v7961_v40 = vsel %vm7905_vm1, %v7933_v48, %v7877_v7  ;;  %v7936_v23 = vsub.f32 0.0, %v7880_v25  ;;  %v7811_v57 = vmul.f32 1.442695, %v7770_v32 }
 0xb41   : > { %v15030_v55 = vmul.f32 0.5, %v14850_v43  ;;  %v7850_v49 = vmul.f32 %v11408_v15, %v7710_v63  ;;  %v7715_v34 = vmul.f32 %v14864_v5, %v7687_v39  ;;  %v7685_v35 = vadd.f32 0.2548296, %v7657_v12  ;;  %v16364_v43 = vld [vmem:[#allocation106_spill] sm:$0xff] }
 0xb42   : > { %16363 = vst [vmem:[#allocation119_spill] sm:$0xff] %v15025_v29  ;;  %v9046_v47 = vadd.f32 -0.28449672, %v7604_v21  ;;  %v7574_v45 = vadd.f32 1.4214138, %v7546_v42  ;;  %v7551_v51 = vmul.f32 %v14982_v10, %v9021_v19  ;;  %v7412_v28 = vadd.f32 1.0, %v7384_v22 }
 0xb43   : > { %v7382_v2 = vmul.f32 0.3275911, %v15017_v16  ;;  %v7821_v61 = vmul.f32 1.442695, %v7775_v3  ;;  %v15036_v41 = vand.u32 2147483647, %v15021_v60  ;;  %v15043_v15 = vadd.f32 %v16364_v43, %v14528_v20 }
 0xb44   : > { %v15039_v7 = vmul.f32 0.70710677, %v15025_v29  ;;  %v11412_v5 = vpop.eup %11411  ;;  %v8017_v48 = vadd.f32 1.0, %v7961_v40  ;;  %v7964_v39 = vsel %vm7908_vm2, %v7936_v23, %v7880_v25  ;;  %vm7906_vm3 = vcmp.lt.f32.partialorder %v14748_v17, 0.0  ;;  %v8067_v42 = vld [vmem:[%s15684_s11 + $0x10] sm:$0xff]  ;;  %v8068_v17 = vld [vmem:[%s15684_s11 + $0x18] sm:$0xff] }
 0xb45   : > { %16365 = vst [vmem:[#allocation120_spill] sm:$0xff] %v15043_v15  ;;  %11417 = vpow2.f32 %v7811_v57  ;;  %v7745_v22 = vsub.f32 0.0, %v14950_v62  ;;  %v7878_v32 = vsub.f32 1.0, %v7850_v49  ;;  %v7855_v63 = vmul.f32 %v11410_v56, %v7715_v34  ;;  %v16367_v49 = vld [vmem:[#allocation107_spill] sm:$0xff] }
 0xb46   : > { %v7713_v12 = vmul.f32 %v14887_v18, %v7685_v35  ;;  %v7660_v21 = vmul.f32 %v14915_v37, %v9046_v47  ;;  %v7602_v19 = vmul.f32 %v14955_v14, %v7574_v45  ;;  %v7579_v3 = vadd.f32 1.4214138, %v7551_v51 }
 0xb47   : > { %11419 = vrcp.f32 %v7412_v28  ;;  %v7410_v24 = vadd.f32 1.0, %v7382_v2  ;;  %v7387_v40 = vmul.f32 0.3275911, %v15036_v41  ;;  %v15059_v56 = vand.u32 2147483647, %v15039_v7 }
 0xb48   : > { %v15055_v25 = vpop.eup %11413  ;;  %11421 = vpow2.f32 %v7821_v61  ;;  %v15062_v18 = vmul.f32 0.70710677, %v15043_v15  ;;  %v8020_v23 = vadd.f32 1.0, %v7964_v39  ;;  %vm7911_vm4 = vcmp.lt.f32.partialorder %v14763_v9, 0.0 }
 0xb49   : > { %v7773_v57 = vmul.f32 %v7745_v22, %v14950_v62  ;;  %v15068_v28 = vadd.f32 %v14528_v20, %v16367_v49  ;;  %v8095_v51 = vmul.f32 %v8067_v42, %v14858_v44  ;;  %v11416_v61 = vpop.eup %11415  ;;  %v15072_v34 = vmul.f32 %v8017_v48, %v14912_v26 }
 0xb4a   : > { %16366 = vst [vmem:[#allocation121_spill] sm:$0xff] %v15062_v18  ;;  %v7934_v35 = vsub.f32 0.0, %v7878_v32  ;;  %v7883_v47 = vsub.f32 1.0, %v7855_v63  ;;  %v15074_v45 = vmul.f32 %v11412_v5, %v7713_v12  ;;  %v7688_v2 = vadd.f32 0.2548296, %v7660_v21  ;;  %v16370_v63 = vld [vmem:[#allocation55_spill] sm:$0xff] }
 0xb4b   : > { %16368 = vst [vmem:[#allocation130_spill] sm:$0xff] %v15068_v28  ;;  %v9044_v43 = vadd.f32 -0.28449672, %v7602_v19  ;;  %v7607_v39 = vmul.f32 %v14982_v10, %v7579_v3  ;;  %v7493_v62 = vmul.f32 1.0614054, %v15055_v25  ;;  %8125 = vadd.xlane.f32.xlu1 %v8095_v51  ;;  %11423 = vrcp.f32 %v7410_v24  ;;  %v8065_v21 = vld [vmem:[%s15684_s11] sm:$0xff] }
 0xb4c   : > { %v7415_v22 = vadd.f32 1.0, %v7387_v40  ;;  %v7385_v49 = vmul.f32 0.3275911, %v15059_v56  ;;  %v15080_v42 = vand.u32 2147483647, %v15062_v18  ;;  %v15083_v26 = vmul.f32 %v8020_v23, %v14935_v6  ;;  %v16372_v6 = vld [vmem:[#allocation62_spill] sm:$0xff] }
 0xb4d   : > { %v7817_v48 = vmul.f32 1.442695, %v7773_v57  ;;  %v15086_v5 = vmul.f32 0.70710677, %v15068_v28  ;;  %v15090_v12 = vadd.f32 %v16370_v63, %v14528_v20  ;;  %v7962_v19 = vsel %vm7906_vm3, %v7934_v35, %v7878_v32 }
 0xb4e   : > { %v7939_v3 = vsub.f32 0.0, %v7883_v47  ;;  %v7881_v24 = vsub.f32 1.0, %v15074_v45  ;;  %vm7909_vm5 = vcmp.lt.f32.partialorder %v16372_v6, 0.0  ;;  %v15100_v40 = vmul.f32 0.5, %v14908_v8 }
 0xb4f   : > { %16369 = vst [vmem:[#allocation67_spill] sm:$0xff] %v15086_v5  ;;  %16371 = vst [vmem:[#allocation129_spill] sm:$0xff] %v15090_v12  ;;  %v15102_v23 = vpop.eup %11417  ;;  %v7716_v20 = vmul.f32 %v14915_v37, %v7688_v2  ;;  %v7658_v57 = vmul.f32 %v14955_v14, %v9044_v43  ;;  %v9049_v63 = vadd.f32 -0.28449672, %v7607_v39  ;;  %v9019_v28 = vadd.f32 -1.4531521, %v7493_v62 }
 0xb50   : > { %11425 = vrcp.f32 %v7415_v22  ;;  %v7413_v32 = vadd.f32 1.0, %v7385_v49  ;;  %v7388_v35 = vmul.f32 0.3275911, %v15080_v42  ;;  %v8093_v45 = vmul.f32 %v8065_v21, %v14879_v58  ;;  %v11465_v22 = vld [vmem:[%s15683_s10] ss:$0 sm:$0xff]  ;;  %v16374_v49 = vld [vmem:[#allocation108_spill] sm:$0xff] }
 0xb51   : > { %v15111_v8 = vpop.eup %11419  ;;  %v8018_v15 = vadd.f32 1.0, %v7962_v19  ;;  %11427 = vpow2.f32 %v7817_v48  ;;  %v15114_v37 = vand.u32 2147483647, %v15086_v5  ;;  %v15117_v2 = vmul.f32 0.70710677, %v15090_v12 }
 0xb52   : > { %v15119_v43 = vpop.eup %11421  ;;  %v7967_v39 = vsel %vm7911_vm4, %v7939_v3, %v7883_v47  ;;  %v7937_v62 = vsub.f32 0.0, %v7881_v24  ;;  %v15127_v21 = vadd.f32 %v11465_v22, %v16374_v49  ;;  %8121 = vadd.xlane.f32.xlu0 %v8093_v45  ;;  %v8096_v48 = vmul.f32 %v8068_v17, %v14882_v54 }
 0xb53   : > { %16373 = vst [vmem:[#allocation133_spill] sm:$0xff] %v15117_v2  ;;  %v15130_v19 = vmul.f32 %v11416_v61, %v7716_v20  ;;  %v7686_v12 = vadd.f32 0.2548296, %v7658_v57  ;;  %v7663_v5 = vmul.f32 %v14982_v10, %v9049_v63  ;;  %v7549_v29 = vmul.f32 %v15055_v25, %v9019_v28  ;;  %v8066_v28 = vld [vmem:[%s15684_s11 + $0x8] sm:$0xff] }
 0xb54   : > { %16375 = vst [vmem:[#allocation71_spill] sm:$0xff] %v15127_v21  ;;  %v7496_v9 = vmul.f32 1.0614054, %v15111_v8  ;;  %11429 = vrcp.f32 %v7413_v32  ;;  %v7416_v47 = vadd.f32 1.0, %v7388_v35  ;;  %8127 = vadd.xlane.f32.xlu1 %v8096_v48  ;;  %v8212_v3 = vmul.f32 %v8095_v51, %v14858_v44 }
 0xb55   : > { %v15137_v49 = vmul.f32 %v8018_v15, %v14943_v59  ;;  %v8023_v18 = vadd.f32 1.0, %v7967_v39  ;;  %v7386_v17 = vmul.f32 0.3275911, %v15114_v37  ;;  %v15141_v61 = vand.u32 2147483647, %v15117_v2  ;;  %v15146_v20 = vpop.eup %11423  ;;  %v16376_v15 = vld [vmem:[#allocation56_spill] sm:$0xff] }
 0xb56   : > { %vm7912_vm6 = vcmp.lt.f32.partialorder %v14813_v50, 0.0  ;;  %v15150_v57 = vmul.f32 0.5, %v14963_v31  ;;  %v15153_v59 = vmul.f32 0.70710677, %v15127_v21  ;;  %v15156_v51 = vadd.f32 %v11465_v22, %v16376_v15  ;;  %8242 = vadd.xlane.f32.xlu0 %v8212_v3  ;;  %v8071_v31 = vld [vmem:[%s15684_s11 + $0x30] sm:$0xff] }
 0xb57   : > { %v8210_v63 = vmul.f32 %v8093_v45, %v14879_v58  ;;  %v7965_v32 = vsel %vm7909_vm5, %v7937_v62, %v7881_v24  ;;  %v7884_v35 = vsub.f32 1.0, %v15130_v19  ;;  %v7714_v39 = vmul.f32 %v14955_v14, %v7686_v12  ;;  %v16378_v12 = vld [vmem:[#allocation109_spill] sm:$0xff] }
 0xb58   : > { %16377 = vst [vmem:[#allocation35_spill] sm:$0xff] %v15156_v51  ;;  %v7691_v44 = vadd.f32 0.2548296, %v7663_v5  ;;  %v7577_v21 = vadd.f32 1.4214138, %v7549_v29  ;;  %11431 = vrcp.f32 %v7416_v47  ;;  %v8094_v3 = vmul.f32 %v8066_v28, %v14898_v0 }
 0xb59   : > { %v9022_v2 = vadd.f32 -1.4531521, %v7496_v9  ;;  %8238 = vadd.xlane.f32.xlu1 %v8210_v63  ;;  %v15168_v45 = vmul.f32 %v8023_v18, %v14946_v4  ;;  %v7494_v24 = vmul.f32 1.0614054, %v15146_v20  ;;  %v7414_v6 = vadd.f32 1.0, %v7386_v17 }
 0xb5a   : > { %v7391_v62 = vmul.f32 0.3275911, %v15141_v61  ;;  %v15172_v14 = vpop.eup %11425  ;;  %v15175_v5 = vand.u32 2147483647, %v15153_v59  ;;  %v15178_v29 = vadd.f32 %v11465_v22, %v16378_v12  ;;  %v15181_v19 = vmul.f32 0.70710677, %v15156_v51  ;;  %8123 = vadd.xlane.f32.xlu0 %v8094_v3 }
 0xb5b   : > { %v8099_v4 = vmul.f32 %v8071_v31, %v14918_v27  ;;  %v15184_v18 = vpop.eup %11427  ;;  %v8021_v9 = vadd.f32 1.0, %v7965_v32  ;;  %v7940_v47 = vsub.f32 0.0, %v7884_v35  ;;  %v15187_v17 = vmul.f32 %v15102_v23, %v7714_v39  ;;  %v8069_v22 = vld [vmem:[%s15684_s11 + $0x20] sm:$0xff] }
 0xb5c   : > { %16379 = vst [vmem:[#allocation135_spill] sm:$0xff] %v15178_v29  ;;  %16380 = vst [vmem:[#allocation72_spill] sm:$0xff] %v15181_v19  ;;  %v7748_v28 = vsub.f32 0.0, %v14996_v33  ;;  %v7719_v15 = vmul.f32 %v14982_v10, %v7691_v44  ;;  %v7605_v63 = vmul.f32 %v15055_v25, %v7577_v21  ;;  %v7552_v12 = vmul.f32 %v15111_v8, %v9022_v2 }
 0xb5d   : > { %8133 = vadd.xlane.f32.xlu1 %v8099_v4  ;;  %v8213_v31 = vmul.f32 %v8096_v48, %v14882_v54  ;;  %v9020_v32 = vadd.f32 -1.4531521, %v7494_v24  ;;  %v7499_v58 = vmul.f32 1.0614054, %v15172_v14  ;;  %11433 = vrcp.f32 %v7414_v6 }
 0xb5e   : > { %v7419_v23 = vadd.f32 1.0, %v7391_v62  ;;  %v15198_v39 = vpop.eup %11429  ;;  %vm7910_vm7 = vcmp.lt.f32.partialorder %v14841_v46, 0.0  ;;  %v7389_v51 = vmul.f32 0.3275911, %v15175_v5  ;;  %v15203_v44 = vmul.f32 0.70710677, %v15178_v29 }
 0xb5f   : > { %v15206_v10 = vand.u32 2147483647, %v15181_v19  ;;  %8244 = vadd.xlane.f32.xlu0 %v8213_v31  ;;  %v8097_v2 = vmul.f32 %v8069_v22, %v14921_v13  ;;  %v15210_v21 = vmul.f32 %v8021_v9, %v14966_v30  ;;  %v7968_v48 = vsel %vm7912_vm6, %v7940_v47, %v7884_v35  ;;  %v8072_v62 = vld [vmem:[%s15684_s11 + $0x38] sm:$0xff] }
 0xb60   : > { %16381 = vst [vmem:[#allocation126_spill] sm:$0xff] %v15203_v44  ;;  %v7882_v24 = vsub.f32 1.0, %v15187_v17  ;;  %v7776_v6 = vmul.f32 %v7748_v28, %v14996_v33  ;;  %v15220_v54 = vmul.f32 %v15119_v43, %v7719_v15  ;;  %v9047_v31 = vadd.f32 -0.28449672, %v7605_v63  ;;  %v8070_v63 = vld [vmem:[%s15684_s11 + $0x28] sm:$0xff] }
 0xb61   : > { %v7580_v29 = vadd.f32 1.4214138, %v7552_v12  ;;  %8129 = vadd.xlane.f32.xlu1 %v8097_v2  ;;  %v8211_v30 = vmul.f32 %v8094_v3, %v14898_v0  ;;  %v7550_v9 = vmul.f32 %v15146_v20, %v9020_v32  ;;  %v9025_v50 = vadd.f32 -1.4531521, %v7499_v58 }
 0xb62   : > { %v7497_v35 = vmul.f32 1.0614054, %v15198_v39  ;;  %11435 = vrcp.f32 %v7419_v23  ;;  %v15225_v47 = vpop.eup %11431  ;;  %v7417_v33 = vadd.f32 1.0, %v7389_v51  ;;  %v15228_v17 = vand.u32 2147483647, %v15203_v44 }
 0xb63   : > { %v7390_v43 = vmul.f32 0.3275911, %v15206_v10  ;;  %8240 = vadd.xlane.f32.xlu0 %v8211_v30  ;;  %v8100_v28 = vmul.f32 %v8072_v62, %v14953_v38  ;;  %v8024_v22 = vadd.f32 1.0, %v7968_v48  ;;  %v7938_v15 = vsub.f32 0.0, %v7882_v24 }
 0xb64   : > { %vm7915_vm8 = vcmp.lt.f32.partialorder %v14870_v52, 0.0  ;;  %v7823_v3 = vmul.f32 1.442695, %v7776_v6  ;;  %v7746_v58 = vsub.f32 0.0, %v15017_v16  ;;  %v7887_v51 = vsub.f32 1.0, %v15220_v54 }
 0xb65   : > { %v7661_v12 = vmul.f32 %v15055_v25, %v9047_v31  ;;  %v7608_v32 = vmul.f32 %v15111_v8, %v7580_v29  ;;  %8135 = vadd.xlane.f32.xlu1 %v8100_v28  ;;  %v8216_v23 = vmul.f32 %v8099_v4, %v14918_v27  ;;  %v7578_v48 = vadd.f32 1.4214138, %v7550_v9  ;;  %v8075_v9 = vld [vmem:[%s15684_s11 + $0x50] sm:$0xff] }
 0xb66   : > { %v7555_v62 = vmul.f32 %v15172_v14, %v9025_v50  ;;  %v9023_v30 = vadd.f32 -1.4531521, %v7497_v35  ;;  %v7500_v6 = vmul.f32 1.0614054, %v15225_v47  ;;  %11437 = vrcp.f32 %v7417_v33 }
 0xb67   : > { %v7392_v0 = vmul.f32 0.3275911, %v15228_v17  ;;  %v7418_v44 = vadd.f32 1.0, %v7390_v43  ;;  %8250 = vadd.xlane.f32.xlu0 %v8216_v23  ;;  %v8098_v54 = vmul.f32 %v8070_v63, %v14958_v53  ;;  %v15245_v19 = vpop.eup %11433  ;;  %v15248_v29 = vmul.f32 %v8024_v22, %v14987_v36  ;;  %v15270_v23 = vld [vmem:[%s15684_s11 + $0x40] sm:$0xff] }
 0xb68   : > { %v7966_v4 = vsel %vm7910_vm7, %v7938_v15, %v7882_v24  ;;  %11439 = vpow2.f32 %v7823_v3  ;;  %v7774_v31 = vmul.f32 %v7746_v58, %v15017_v16  ;;  %v7943_v50 = vsub.f32 0.0, %v7887_v51 }
 0xb69   : > { %v7689_v35 = vadd.f32 0.2548296, %v7661_v12  ;;  %v9050_v33 = vadd.f32 -0.28449672, %v7608_v32  ;;  %8131 = vadd.xlane.f32.xlu1 %v8098_v54  ;;  %v8214_v43 = vmul.f32 %v8097_v2, %v14921_v13  ;;  %v7606_v63 = vmul.f32 %v15146_v20, %v7578_v48 }
 0xb6a   : > { %v7583_v36 = vadd.f32 1.4214138, %v7555_v62  ;;  %v7553_v22 = vmul.f32 %v15198_v39, %v9023_v30  ;;  %v9026_v46 = vadd.f32 -1.4531521, %v7500_v6  ;;  %v7498_v24 = vmul.f32 1.0614054, %v15245_v19 }
 0xb6b   : > { %v7420_v15 = vadd.f32 1.0, %v7392_v0  ;;  %11441 = vrcp.f32 %v7418_v44  ;;  %8246 = vadd.xlane.f32.xlu0 %v8214_v43  ;;  %v8103_v16 = vmul.f32 %v8075_v9, %v14992_v1  ;;  %v8022_v58 = vadd.f32 1.0, %v7966_v4 }
 0xb6c   : > { %v15261_v3 = vpop.eup %11435  ;;  %v7819_v12 = vmul.f32 1.442695, %v7774_v31  ;;  %v15264_v32 = vmul.f32 0.5, %v14980_v11  ;;  %v7751_v2 = vsub.f32 0.0, %v15036_v41  ;;  %v7971_v0 = vsel %vm7915_vm8, %v7943_v50, %v7887_v51 }
 0xb6d   : > { %v7717_v44 = vmul.f32 %v15055_v25, %v7689_v35  ;;  %v7749_v48 = vsub.f32 0.0, %v15059_v56  ;;  %8141 = vadd.xlane.f32.xlu1 %v8103_v16  ;;  %v8217_v62 = vmul.f32 %v8100_v28, %v14953_v38  ;;  %v7664_v11 = vmul.f32 %v15111_v8, %v9050_v33  ;;  %v16382_v25 = vld [vmem:[#allocation66_spill] sm:$0xff] }
 0xb6e   : > { %v9048_v30 = vadd.f32 -0.28449672, %v7606_v63  ;;  %v7611_v6 = vmul.f32 %v15172_v14, %v7583_v36  ;;  %v7581_v4 = vadd.f32 1.4214138, %v7553_v22  ;;  %v7556_v31 = vmul.f32 %v15225_v47, %v9026_v46  ;;  %v15290_v33 = vld [vmem:[%s15684_s11 + $0x58] sm:$0xff] }
 0xb6f   : > { %v9024_v9 = vadd.f32 -1.4531521, %v7498_v24  ;;  %11443 = vrcp.f32 %v7420_v15  ;;  %8252 = vadd.xlane.f32.xlu0 %v8217_v62  ;;  %v8101_v52 = vmul.f32 %v15270_v23, %v15072_v34  ;;  %v15283_v51 = vmul.f32 %v8022_v58, %v16382_v25  ;;  %16383 = vst [vmem:[#allocation128_spill] sm:$0xff] %v15290_v33 }
 0xb70   : > { %v8027_v50 = vadd.f32 1.0, %v7971_v0  ;;  %v7779_v28 = vmul.f32 %v7751_v2, %v15036_v41  ;;  %v7503_v35 = vmul.f32 1.0614054, %v15261_v3  ;;  %v15292_v43 = vpop.eup %11437  ;;  %11445 = vpow2.f32 %v7819_v12 }
 0xb71   : > { %v7777_v63 = vmul.f32 %v7749_v48, %v15059_v56  ;;  %v7752_v36 = vsub.f32 0.0, %v15080_v42  ;;  %8137 = vadd.xlane.f32.xlu1 %v8101_v52  ;;  %v8215_v22 = vmul.f32 %v8098_v54, %v14958_v53  ;;  %v15298_v41 = vmul.f32 %v15184_v18, %v7717_v44  ;;  %v15308_v54 = vld [vmem:[%s15684_s11 + $0x48] sm:$0xff] }
 0xb72   : > { %v11440_v46 = vpop.eup %11439  ;;  %v7692_v24 = vadd.f32 0.2548296, %v7664_v11  ;;  %v7662_v15 = vmul.f32 %v15146_v20, %v9048_v30  ;;  %v7609_v58 = vmul.f32 %v15198_v39, %v7581_v4  ;;  %v9053_v2 = vadd.f32 -0.28449672, %v7611_v6  ;;  %16384 = vst [vmem:[#allocation125_spill] sm:$0xff] %v15308_v54 }
 0xb73   : > { %v7584_v0 = vadd.f32 1.4214138, %v7556_v31  ;;  %v7554_v12 = vmul.f32 %v15245_v19, %v9024_v9  ;;  %8248 = vadd.xlane.f32.xlu0 %v8215_v22  ;;  %v8104_v56 = vmul.f32 %v15290_v33, %v15083_v26  ;;  %v15311_v18 = vmul.f32 %v8027_v50, %v15030_v55 }
 0xb74   : > { %v7829_v44 = vmul.f32 1.442695, %v7779_v28  ;;  %v9029_v48 = vadd.f32 -1.4531521, %v7503_v35  ;;  %v7501_v62 = vmul.f32 1.0614054, %v15292_v43  ;;  %v7780_v6 = vmul.f32 %v7752_v36, %v15080_v42 }
 0xb75   : > { %v15314_v11 = vpop.eup %11441  ;;  %v7825_v30 = vmul.f32 1.442695, %v7777_v63  ;;  %v7750_v4 = vsub.f32 0.0, %v15114_v37  ;;  %8143 = vadd.xlane.f32.xlu1 %v8104_v56  ;;  %v8220_v31 = vmul.f32 %v8103_v16, %v14992_v1  ;;  %v7885_v9 = vsub.f32 1.0, %v15298_v41  ;;  %v16385_v63 = vld [vmem:[#allocation117_spill] sm:$0xff] }
 0xb76   : > { %v7720_v25 = vmul.f32 %v15111_v8, %v7692_v24  ;;  %v7690_v55 = vadd.f32 0.2548296, %v7662_v15  ;;  %v9051_v50 = vadd.f32 -0.28449672, %v7609_v58  ;;  %v7667_v28 = vmul.f32 %v15172_v14, %v9053_v2  ;;  %v15331_v8 = vld [vmem:[%s15684_s11 + $0x70] sm:$0xff] }
 0xb77   : > { %v7612_v35 = vmul.f32 %v15225_v47, %v7584_v0  ;;  %v7582_v22 = vadd.f32 1.4214138, %v7554_v12  ;;  %8258 = vadd.xlane.f32.xlu0 %v8220_v31  ;;  %v8102_v42 = vmul.f32 %v15308_v54, %v15137_v49  ;;  %vm7913_vm9 = vcmp.lt.f32.partialorder %v16385_v63, 0.0  ;;  %16386 = vst [vmem:[#allocation127_spill] sm:$0xff] %v15331_v8 }
 0xb78   : > { %11447 = vpow2.f32 %v7829_v44  ;;  %v7559_v16 = vmul.f32 %v15261_v3, %v9029_v48  ;;  %v9027_v36 = vadd.f32 -1.4531521, %v7501_v62  ;;  %v7502_v41 = vmul.f32 1.0614054, %v15314_v11 }
 0xb79   : > { %v15333_v24 = vpop.eup %11443  ;;  %11449 = vpow2.f32 %v7825_v30  ;;  %v7831_v15 = vmul.f32 1.442695, %v7780_v6  ;;  %v7778_v58 = vmul.f32 %v7750_v4, %v15114_v37  ;;  %8139 = vadd.xlane.f32.xlu1 %v8102_v42  ;;  %v8218_v2 = vmul.f32 %v8101_v52, %v15072_v34  ;;  %v15348_v52 = vld [vmem:[%s15684_s11 + $0x60] sm:$0xff] }
 0xb7a   : > { %v15337_v0 = vmul.f32 %v11440_v46, %v7720_v25  ;;  %v7718_v12 = vmul.f32 %v15146_v20, %v7690_v55  ;;  %v7665_v44 = vmul.f32 %v15198_v39, %v9051_v50  ;;  %v7755_v48 = vsub.f32 0.0, %v15141_v61  ;;  %v11446_v62 = vpop.eup %11445  ;;  %v16387_v25 = vld [vmem:[#allocation64_spill] sm:$0xff] }
 0xb7b   : > { %v7695_v31 = vadd.f32 0.2548296, %v7667_v28  ;;  %v9054_v33 = vadd.f32 -0.28449672, %v7612_v35  ;;  %v7610_v54 = vmul.f32 %v15245_v19, %v7582_v22  ;;  %8254 = vadd.xlane.f32.xlu0 %v8218_v2  ;;  %v8107_v37 = vmul.f32 %v15331_v8, %v15168_v45 }
 0xb7c   : > { %v7587_v46 = vadd.f32 1.4214138, %v7559_v16  ;;  %v7557_v20 = vmul.f32 %v15292_v43, %v9027_v36  ;;  %v7504_v30 = vmul.f32 1.0614054, %v15333_v24  ;;  %v9028_v6 = vadd.f32 -1.4531521, %v7502_v41 }
 0xb7d   : > { %v7941_v4 = vsub.f32 0.0, %v7885_v9  ;;  %vm7916_vm10 = vcmp.lt.f32.partialorder %v16387_v25, 0.0  ;;  %11451 = vpow2.f32 %v7831_v15  ;;  %v7827_v55 = vmul.f32 1.442695, %v7778_v58  ;;  %8149 = vadd.xlane.f32.xlu1 %v8107_v37  ;;  %v15399_v25 = vld [vmem:[%s15684_s11 + $0x90] sm:$0xff] }
 0xb7e   : > { %v8221_v50 = vmul.f32 %v8104_v56, %v15083_v26  ;;  %v7888_v28 = vsub.f32 1.0, %v15337_v0  ;;  %v15355_v35 = vmul.f32 %v11446_v62, %v7718_v12  ;;  %v7693_v22 = vadd.f32 0.2548296, %v7665_v44  ;;  %v15367_v12 = vld [vmem:[%s15684_s11 + $0x78] sm:$0xff]  ;;  %16390 = vst [vmem:[#allocation70_spill] sm:$0xff] %v15399_v25 }
 0xb7f   : > { %v7783_v16 = vmul.f32 %v7755_v48, %v15141_v61  ;;  %v7723_v36 = vmul.f32 %v15172_v14, %v7695_v31  ;;  %v7668_v2 = vmul.f32 %v15225_v47, %v9054_v33  ;;  %v9052_v41 = vadd.f32 -0.28449672, %v7610_v54  ;;  %16388 = vst [vmem:[#allocation69_spill] sm:$0xff] %v15367_v12  ;;  %v16389_v14 = vld [vmem:[#allocation65_spill] sm:$0xff] }
 0xb80   : > { %8260 = vadd.xlane.f32.xlu0 %v8221_v50  ;;  %v8105_v15 = vmul.f32 %v15348_v52, %v15210_v21  ;;  %v7615_v58 = vmul.f32 %v15261_v3, %v7587_v46  ;;  %v7585_v8 = vadd.f32 1.4214138, %v7557_v20  ;;  %v9030_v56 = vadd.f32 -1.4531521, %v7504_v30 }
 0xb81   : > { %v7558_v0 = vmul.f32 %v15314_v11, %v9028_v6  ;;  %v7969_v61 = vsel %vm7913_vm9, %v7941_v4, %v7885_v9  ;;  %vm7914_vm11 = vcmp.lt.f32.partialorder %v16389_v14, 0.0  ;;  %11453 = vpow2.f32 %v7827_v55  ;;  %v15417_v14 = vld [vmem:[%s15684_s11 + $0x80] sm:$0xff] }
 0xb82   : > { %v7753_v33 = vsub.f32 0.0, %v15175_v5  ;;  %8145 = vadd.xlane.f32.xlu1 %v8105_v15  ;;  %v8219_v54 = vmul.f32 %v8102_v42, %v15137_v49  ;;  %v11448_v44 = vpop.eup %11447  ;;  %v7944_v48 = vsub.f32 0.0, %v7888_v28  ;;  %v7886_v62 = vsub.f32 1.0, %v15355_v35  ;;  %16391 = vst [vmem:[#allocation73_spill] sm:$0xff] %v15417_v14 }
 0xb83   : > { %v7721_v31 = vmul.f32 %v15198_v39, %v7693_v22  ;;  %v7837_v46 = vmul.f32 1.442695, %v7783_v16  ;;  %v11450_v20 = vpop.eup %11449  ;;  %v7863_v30 = vmul.f32 %v11448_v44, %v7723_v36  ;;  %v7696_v6 = vadd.f32 0.2548296, %v7668_v2  ;;  %v15384_v39 = vld [vmem:[%s15684_s11 + $0x68] sm:$0xff] }
 0xb84   : > { %v7666_v9 = vmul.f32 %v15245_v19, %v9052_v41  ;;  %8256 = vadd.xlane.f32.xlu0 %v8219_v54  ;;  %v8108_v63 = vmul.f32 %v15367_v12, %v15248_v29  ;;  %v9057_v4 = vadd.f32 -0.28449672, %v7615_v58  ;;  %v7613_v55 = vmul.f32 %v15292_v43, %v7585_v8 }
 0xb85   : > { %v7560_v42 = vmul.f32 %v15333_v24, %v9030_v56  ;;  %v7586_v50 = vadd.f32 1.4214138, %v7558_v0  ;;  %v8025_v35 = vadd.f32 1.0, %v7969_v61  ;;  %v7781_v22 = vmul.f32 %v7753_v33, %v15175_v5 }
 0xb86   : > { %v7754_v16 = vsub.f32 0.0, %v15206_v10  ;;  %8151 = vadd.xlane.f32.xlu1 %v8108_v63  ;;  %v8224_v36 = vmul.f32 %v8107_v37, %v15168_v45  ;;  %v7972_v2 = vsel %vm7916_vm10, %v7944_v48, %v7888_v28  ;;  %v7942_v8 = vsub.f32 0.0, %v7886_v62 }
 0xb87   : > { %v7861_v41 = vmul.f32 %v11450_v20, %v7721_v31  ;;  %11455 = vpow2.f32 %v7837_v46  ;;  %v11452_v58 = vpop.eup %11451  ;;  %v7891_v56 = vsub.f32 1.0, %v7863_v30  ;;  %v7724_v0 = vmul.f32 %v15225_v47, %v7696_v6 }
 0xb88   : > { %v7694_v54 = vadd.f32 0.2548296, %v7666_v9  ;;  %8266 = vadd.xlane.f32.xlu0 %v8224_v36  ;;  %v8106_v5 = vmul.f32 %v15384_v39, %v15283_v51  ;;  %v7671_v61 = vmul.f32 %v15261_v3, %v9057_v4  ;;  %v9055_v33 = vadd.f32 -0.28449672, %v7613_v55 }
 0xb89   : > { %v7588_v44 = vadd.f32 1.4214138, %v7560_v42  ;;  %v7614_v37 = vmul.f32 %v15314_v11, %v7586_v50  ;;  %v7833_v28 = vmul.f32 1.442695, %v7781_v22  ;;  %v7756_v48 = vsub.f32 0.0, %v15228_v17 }
 0xb8a   : > { %v7782_v47 = vmul.f32 %v7754_v16, %v15206_v10  ;;  %8147 = vadd.xlane.f32.xlu1 %v8106_v5  ;;  %v8222_v31 = vmul.f32 %v8105_v15, %v15210_v21  ;;  %v15405_v46 = vmul.f32 %v8025_v35, %v15100_v40  ;;  %v8028_v20 = vadd.f32 1.0, %v7972_v2 }
 0xb8b   : > { %v7970_v30 = vsel %vm7914_vm11, %v7942_v8, %v7886_v62  ;;  %v7889_v6 = vsub.f32 1.0, %v7861_v41  ;;  %v11454_v9 = vpop.eup %11453  ;;  %v7947_v4 = vsub.f32 0.0, %v7891_v56  ;;  %v7864_v55 = vmul.f32 %v11452_v58, %v7724_v0 }
 0xb8c   : > { %v7722_v42 = vmul.f32 %v15245_v19, %v7694_v54  ;;  %8262 = vadd.xlane.f32.xlu0 %v8222_v31  ;;  %v8111_v10 = vmul.f32 %v15399_v25, %v15311_v18  ;;  %v7699_v50 = vadd.f32 0.2548296, %v7671_v61  ;;  %v7669_v15 = vmul.f32 %v15292_v43, %v9055_v33 }
 0xb8d   : > { %v7616_v40 = vmul.f32 %v15333_v24, %v7588_v44  ;;  %v9056_v35 = vadd.f32 -0.28449672, %v7614_v37  ;;  %11457 = vpow2.f32 %v7833_v28  ;;  %v7784_v62 = vmul.f32 %v7756_v48, %v15228_v17 }
 0xb8e   : > { %v7835_v22 = vmul.f32 1.442695, %v7782_v47  ;;  %8157 = vadd.xlane.f32.xlu1 %v8111_v10  ;;  %v8225_v19 = vmul.f32 %v8108_v63, %v15248_v29  ;;  %v15422_v16 = vmul.f32 %v8028_v20, %v15150_v57  ;;  %v8026_v36 = vadd.f32 1.0, %v7970_v30  ;;  %v15432_v57 = vld [vmem:[%s15684_s11 + $0x98] sm:$0xff] }
 0xb8f   : > { %vm7919_vm12 = vcmp.lt.f32.partialorder %v15021_v60, 0.0  ;;  %v7945_v2 = vsub.f32 0.0, %v7889_v6  ;;  %v7892_v41 = vsub.f32 1.0, %v7864_v55  ;;  %v7862_v58 = vmul.f32 %v11454_v9, %v7722_v42  ;;  %16392 = vst [vmem:[#allocation74_spill] sm:$0xff] %v15432_v57  ;;  %v16395_v55 = vld [vmem:[#allocation121_spill] sm:$0xff] }
 0xb90   : > { %v7975_v8 = vsel %vm7919_vm12, %v7947_v4, %v7891_v56  ;;  %8268 = vadd.xlane.f32.xlu0 %v8225_v19  ;;  %v8109_v0 = vmul.f32 %v15417_v14, %v15405_v46  ;;  %v7727_v17 = vmul.f32 %v15261_v3, %v7699_v50  ;;  %v7697_v61 = vadd.f32 0.2548296, %v7669_v15 }
 0xb91   : > { %v11456_v54 = vpop.eup %11455  ;;  %v9058_v33 = vadd.f32 -0.28449672, %v7616_v40  ;;  %v7670_v63 = vmul.f32 %v15314_v11, %v9056_v35  ;;  %v7839_v60 = vmul.f32 1.442695, %v7784_v62  ;;  %11459 = vpow2.f32 %v7835_v22 }
 0xb92   : > { %8153 = vadd.xlane.f32.xlu1 %v8109_v0  ;;  %v8223_v56 = vmul.f32 %v8106_v5, %v15283_v51  ;;  %v15436_v44 = vmul.f32 %v8026_v36, %v15264_v32  ;;  %v8031_v37 = vadd.f32 1.0, %v7975_v8  ;;  %vm7917_vm13 = vcmp.lt.f32.partialorder %v15039_v7, 0.0  ;;  %v15446_v32 = vld [vmem:[%s15684_s11 + $0x88] sm:$0xff]  ;;  %v16394_v5 = vld [vmem:[#allocation118_spill] sm:$0xff] }
 0xb93   : > { %v7973_v3 = vsel %vm7917_vm13, %v7945_v2, %v7889_v6  ;;  %v7948_v28 = vsub.f32 0.0, %v7892_v41  ;;  %v7890_v48 = vsub.f32 1.0, %v7862_v58  ;;  %v8112_v47 = vmul.f32 %v15432_v57, %v15422_v16  ;;  %16393 = vst [vmem:[#allocation132_spill] sm:$0xff] %v15446_v32  ;;  %v16397_v36 = vld [vmem:[#allocation119_spill] sm:$0xff] }
 0xb94   : > { %8264 = vadd.xlane.f32.xlu0 %v8223_v56  ;;  %v7867_v31 = vmul.f32 %v11456_v54, %v7727_v17  ;;  %v7725_v20 = vmul.f32 %v15292_v43, %v7697_v61  ;;  %v7672_v30 = vmul.f32 %v15333_v24, %v9058_v33  ;;  %v7698_v9 = vadd.f32 0.2548296, %v7670_v63 }
 0xb95   : > { %v8003_v7 = vmul.f32 0.5, %v16394_v5  ;;  %11461 = vpow2.f32 %v7839_v60  ;;  %v8228_v6 = vmul.f32 %v8111_v10, %v15311_v18  ;;  %v8029_v4 = vadd.f32 1.0, %v7973_v3  ;;  %v15459_v10 = vld [vmem:[%s15684_s11 + $0xb0] sm:$0xff] }
 0xb96   : > { %8159 = vadd.xlane.f32.xlu1 %v8112_v47  ;;  %vm7920_vm14 = vcmp.lt.f32.partialorder %v16395_v55, 0.0  ;;  %v7946_v15 = vsub.f32 0.0, %v7890_v48  ;;  %v8110_v40 = vmul.f32 %v15446_v32, %v15436_v44  ;;  %v7895_v35 = vsub.f32 1.0, %v7867_v31  ;;  %16396 = vst [vmem:[#allocation134_spill] sm:$0xff] %v15459_v10 }
 0xb97   : > { %v11458_v42 = vpop.eup %11457  ;;  %v15451_v50 = vmul.f32 %v8031_v37, %v8003_v7  ;;  %v7976_v43 = vsel %vm7920_vm14, %v7948_v28, %v7892_v41  ;;  %v7700_v22 = vadd.f32 0.2548296, %v7672_v30  ;;  %v7726_v19 = vmul.f32 %v15314_v11, %v7698_v9  ;;  %v16398_v41 = vld [vmem:[#allocation67_spill] sm:$0xff]  ;;  %v16400_v37 = vld [vmem:[#allocation120_spill] sm:$0xff]  ;;  %v16401_v30 = vld [vmem:[#allocation133_spill] sm:$0xff] }
 0xb98   : > { %8274 = vadd.xlane.f32.xlu0 %v8228_v6  ;;  %v7865_v62 = vmul.f32 %v11458_v42, %v7725_v20  ;;  %v8001_v2 = vmul.f32 0.5, %v16397_v36  ;;  %v8226_v8 = vmul.f32 %v8109_v0, %v15405_v46  ;;  %vm7918_vm15 = vcmp.lt.f32.partialorder %v16398_v41, 0.0  ;;  %v15472_v0 = vld [vmem:[%s15684_s11 + $0xa0] sm:$0xff]  ;;  %v15496_v36 = vld [vmem:[%s15684_s11 + $0xa8] sm:$0xff] }
 0xb99   : > { %v8032_v17 = vadd.f32 1.0, %v7976_v43  ;;  %v7974_v61 = vsel %vm7918_vm15, %v7946_v15, %v7890_v48  ;;  %v8115_v11 = vmul.f32 %v15459_v10, %v15451_v50  ;;  %v7951_v33 = vsub.f32 0.0, %v7895_v35  ;;  %16399 = vst [vmem:[#allocation131_spill] sm:$0xff] %v15472_v0  ;;  %16404 = vst [vmem:[#allocation123_spill] sm:$0xff] %v15496_v36 }
 0xb9a   : > { %8155 = vadd.xlane.f32.xlu1 %v8110_v40  ;;  %v15464_v54 = vmul.f32 %v8029_v4, %v8001_v2  ;;  %v7893_v63 = vsub.f32 1.0, %v7865_v62  ;;  %v7728_v60 = vmul.f32 %v15333_v24, %v7700_v22  ;;  %v8004_v3 = vmul.f32 0.5, %v16400_v37  ;;  %v15484_v4 = vld [vmem:[%s15684_s11 + $0xb8] sm:$0xff] }
 0xb9b   : > { %v11460_v58 = vpop.eup %11459  ;;  %v8229_v28 = vmul.f32 %v8112_v47, %v15422_v16  ;;  %v8030_v20 = vadd.f32 1.0, %v7974_v61  ;;  %vm7923_vm0 = vcmp.lt.f32.partialorder %v16401_v30, 0.0  ;;  %16402 = vst [vmem:[#allocation68_spill] sm:$0xff] %v15484_v4  ;;  %v16403_v47 = vld [vmem:[#allocation130_spill] sm:$0xff]  ;;  %v8227_v42 = vmul.f32 %v8110_v40, %v15436_v44  ;;  %v16405_v2 = vld [vmem:[#allocation129_spill] sm:$0xff] }
 0xb9c   : > { %8270 = vadd.xlane.f32.xlu0 %v8226_v8  ;;  %v7866_v56 = vmul.f32 %v11460_v58, %v7726_v19  ;;  %v15476_v31 = vmul.f32 %v8032_v17, %v8004_v3  ;;  %v8113_v24 = vmul.f32 %v15472_v0, %v15464_v54  ;;  %v7979_v9 = vsel %vm7923_vm0, %v7951_v33, %v7895_v35  ;;  %v16406_v58 = vld [vmem:[#allocation72_spill] sm:$0xff]  ;;  %v16409_v3 = vld [vmem:[#allocation126_spill] sm:$0xff] }
 0xb9d   : > { %v7949_v5 = vsub.f32 0.0, %v7893_v63  ;;  %v8002_v55 = vmul.f32 0.5, %v16403_v47  ;;  %v8035_v15 = vadd.f32 1.0, %v7979_v9  ;;  %vm7921_vm1 = vcmp.lt.f32.partialorder %v15153_v59, 0.0  ;;  %v15520_v30 = vld [vmem:[%s15684_s11 + $0xc0] sm:$0xff] }
 0xb9e   : > { %8165 = vadd.xlane.f32.xlu1 %v8115_v11  ;;  %v7894_v6 = vsub.f32 1.0, %v7866_v56  ;;  %v8116_v35 = vmul.f32 %v15484_v4, %v15476_v31  ;;  %v8007_v8 = vmul.f32 0.5, %v16405_v2  ;;  %v8232_v40 = vmul.f32 %v8115_v11, %v15451_v50  ;;  %16410 = vst [vmem:[#allocation39_spill] sm:$0xff] %v15520_v30  ;;  %v16411_v9 = vld [vmem:[#allocation35_spill] sm:$0xff] }
 0xb9f   : > { %v11462_v48 = vpop.eup %11461  ;;  %v15488_v43 = vmul.f32 %v8030_v20, %v8002_v55  ;;  %v7977_v62 = vsel %vm7921_vm1, %v7949_v5, %v7893_v63  ;;  %vm7922_vm2 = vcmp.lt.f32.partialorder %v16406_v58, 0.0  ;;  %v15508_v63 = vld [vmem:[%s15684_s11 + $0xd0] sm:$0xff]  ;;  %v8230_v11 = vmul.f32 %v8113_v24, %v15464_v54  ;;  %v15531_v55 = vld [vmem:[%s15684_s11 + $0xc8] sm:$0xff] }
 0xba0   : > { %8276 = vadd.xlane.f32.xlu0 %v8229_v28  ;;  %v7868_v7 = vmul.f32 %v11462_v48, %v7728_v60  ;;  %v7950_v19 = vsub.f32 0.0, %v7894_v6  ;;  %v15500_v41 = vmul.f32 %v8035_v15, %v8007_v8  ;;  %v8033_v59 = vadd.f32 1.0, %v7977_v62  ;;  %16407 = vst [vmem:[#allocation82_spill] sm:$0xff] %v15508_v63  ;;  %v16408_v60 = vld [vmem:[#allocation71_spill] sm:$0xff]  ;;  %16412 = vst [vmem:[#allocation83_spill] sm:$0xff] %v15531_v55 }
 0xba1   : > { %v8114_v17 = vmul.f32 %v15496_v36, %v15488_v43  ;;  %v8005_v56 = vmul.f32 0.5, %v16408_v60  ;;  %vm7924_vm3 = vcmp.lt.f32.partialorder %v16409_v3, 0.0  ;;  %v8006_v5 = vmul.f32 0.5, %v16411_v9 }
 0xba2   : > { %8161 = vadd.xlane.f32.xlu1 %v8113_v24  ;;  %v7896_v22 = vsub.f32 1.0, %v7868_v7  ;;  %v7978_v33 = vsel %vm7922_vm2, %v7950_v19, %v7894_v6  ;;  %v8119_v48 = vmul.f32 %v15508_v63, %v15500_v41  ;;  %v8233_v24 = vmul.f32 %v8116_v35, %v15476_v31  ;;  %v15542_v19 = vld [vmem:[%s15684_s11 + $0xd8] sm:$0xff] }
 0xba3   : > { %v15512_v37 = vmul.f32 %v8033_v59, %v8005_v56  ;;  %v8034_v28 = vadd.f32 1.0, %v7978_v33  ;;  %v8231_v62 = vmul.f32 %v8114_v17, %v15488_v43  ;;  %16414 = vst [vmem:[#allocation37_spill] sm:$0xff] %v15542_v19 }
 0xba4   : > { %8272 = vadd.xlane.f32.xlu0 %v8227_v42  ;;  %v7952_v61 = vsub.f32 0.0, %v7896_v22  ;;  %v16413_v42 = vld [vmem:[#allocation135_spill] sm:$0xff]  ;;  %v8236_v58 = vmul.f32 %v8119_v48, %v15500_v41 }
 0xba5   : > { %v15524_v6 = vmul.f32 %v8034_v28, %v8006_v5  ;;  %v8117_v47 = vmul.f32 %v15520_v30, %v15512_v37  ;;  %v8008_v15 = vmul.f32 0.5, %v16413_v42 }
 0xba6   : > { %8167 = vadd.xlane.f32.xlu1 %v8116_v35  ;;  %v7980_v20 = vsel %vm7924_vm3, %v7952_v61, %v7896_v22 }
 0xba7   : > { %v8036_v7 = vadd.f32 1.0, %v7980_v20  ;;  %v8118_v35 = vmul.f32 %v15531_v55, %v15524_v6  ;;  %v8234_v2 = vmul.f32 %v8117_v47, %v15512_v37 }
 0xba8   : > { %8282 = vadd.xlane.f32.xlu0 %v8232_v40 }
 0xba9   : > { %v15535_v22 = vmul.f32 %v8036_v7, %v8008_v15  ;;  %v8235_v40 = vmul.f32 %v8118_v35, %v15524_v6 }
 0xbaa   : > { %8163 = vadd.xlane.f32.xlu1 %v8114_v17 }
 0xbab   : > { %v8120_v8 = vmul.f32 %v15542_v19, %v15535_v22 }
 0xbac   : > { %8278 = vadd.xlane.f32.xlu0 %v8230_v11 }
 0xbad   : > { %v8237_v59 = vmul.f32 %v8120_v8, %v15535_v22 }
 0xbae   : > { %8173 = vadd.xlane.f32.xlu1 %v8119_v48 }
 0xbb0   : > { %8284 = vadd.xlane.f32.xlu0 %v8233_v24 }
 0xbb2   : > { %8169 = vadd.xlane.f32.xlu1 %v8117_v47 }
 0xbb4   : > { %8280 = vadd.xlane.f32.xlu0 %v8231_v62 }
 0xbb6   : > { %8171 = vadd.xlane.f32.xlu1 %v8118_v35 }
 0xbb8   : > { %8286 = vadd.xlane.f32.xlu0 %v8234_v2 }
 0xbba   : > { %8175 = vadd.xlane.f32.xlu1 %v8120_v8 }
 0xbbc   : > { %8288 = vadd.xlane.f32.xlu0 %v8235_v40 }
 0xbbe   : > { %8292 = vadd.xlane.f32.xlu1 %v8237_v59 }
 0xbc0   : > { %8290 = vadd.xlane.f32.xlu0 %v8236_v58 }
 0xbd8   : > { %v8126_v17 = vpop.xlane.xlu1 %8125 }
 0xbdf   : > { %v8122_v61 = vpop.xlane.xlu0 %8121 }
 0xbe1   : > { %v8128_v33 = vpop.xlane.xlu1 %8127 }
 0xbe3   : > { %v8243_v60 = vpop.xlane.xlu0 %8242 }
 0xbe6   : > { %v8239_v56 = vpop.xlane.xlu1 %8238 }
 0xbe7   : > { %v8124_v11 = vpop.xlane.xlu0 %8123 }
 0xbe8   : > { %v8177_v42 = vadd.f32 %v8124_v11, %v8122_v61 }
 0xbea   : > { %v8134_v3 = vpop.xlane.xlu1 %8133  ;;  %v8178_v35 = vadd.f32 %v8177_v42, %v8126_v17 }
 0xbec   : > { %v8245_v28 = vpop.xlane.xlu0 %8244  ;;  %v8179_v8 = vadd.f32 %v8178_v35, %v8128_v33 }
 0xbee   : > { %v8130_v20 = vpop.xlane.xlu1 %8129 }
 0xbef   : > { %v8180_v58 = vadd.f32 %v8179_v8, %v8130_v20 }
 0xbf0   : > { %v8241_v9 = vpop.xlane.xlu0 %8240 }
 0xbf1   : > { %v8294_v19 = vadd.f32 %v8241_v9, %v8239_v56 }
 0xbf2   : > { %v8136_v5 = vpop.xlane.xlu1 %8135 }
 0xbf3   : > { %v8295_v4 = vadd.f32 %v8294_v19, %v8243_v60 }
 0xbf4   : > { %v8251_v24 = vpop.xlane.xlu0 %8250 }
 0xbf5   : > { %v8296_v57 = vadd.f32 %v8295_v4, %v8245_v28 }
 0xbf6   : > { %v8132_v7 = vpop.xlane.xlu1 %8131 }
 0xbf7   : > { %v8181_v55 = vadd.f32 %v8180_v58, %v8132_v7 }
 0xbf8   : > { %v8247_v47 = vpop.xlane.xlu0 %8246 }
 0xbf9   : > { %v8182_v36 = vadd.f32 %v8181_v55, %v8134_v3  ;;  %v8297_v61 = vadd.f32 %v8296_v57, %v8247_v47 }
 0xbfa   : > { %v8142_v15 = vpop.xlane.xlu1 %8141 }
 0xbfb   : > { %v8183_v11 = vadd.f32 %v8182_v36, %v8136_v5 }
 0xbfc   : > { %v8253_v62 = vpop.xlane.xlu0 %8252 }
 0xbfe   : > { %v8138_v48 = vpop.xlane.xlu1 %8137 }
 0xbff   : > { %v8184_v17 = vadd.f32 %v8183_v11, %v8138_v48 }
 0xc00   : > { %v8249_v2 = vpop.xlane.xlu0 %8248 }
 0xc01   : > { %v8298_v42 = vadd.f32 %v8297_v61, %v8249_v2 }
 0xc02   : > { %v8144_v40 = vpop.xlane.xlu1 %8143 }
 0xc03   : > { %v8299_v12 = vadd.f32 %v8298_v42, %v8251_v24 }
 0xc04   : > { %v8259_v59 = vpop.xlane.xlu0 %8258 }
 0xc05   : > { %v8300_v7 = vadd.f32 %v8299_v12, %v8253_v62 }
 0xc06   : > { %v8140_v63 = vpop.xlane.xlu1 %8139 }
 0xc07   : > { %v8185_v33 = vadd.f32 %v8184_v17, %v8140_v63 }
 0xc08   : > { %v8255_v30 = vpop.xlane.xlu0 %8254 }
 0xc09   : > { %v8186_v56 = vadd.f32 %v8185_v33, %v8142_v15  ;;  %v8301_v19 = vadd.f32 %v8300_v7, %v8255_v30 }
 0xc0a   : > { %v8150_v10 = vpop.xlane.xlu1 %8149 }
 0xc0b   : > { %v8187_v60 = vadd.f32 %v8186_v56, %v8144_v40 }
 0xc0d   : > { %v8261_v0 = vpop.xlane.xlu0 %8260 }
 0xc0f   : > { %v8146_v25 = vpop.xlane.xlu1 %8145 }
 0xc10   : > { %v8188_v3 = vadd.f32 %v8187_v60, %v8146_v25 }
 0xc11   : > { %v8257_v32 = vpop.xlane.xlu0 %8256 }
 0xc12   : > { %v8302_v4 = vadd.f32 %v8301_v19, %v8257_v32 }
 0xc13   : > { %v8152_v14 = vpop.xlane.xlu1 %8151 }
 0xc14   : > { %v8303_v5 = vadd.f32 %v8302_v4, %v8259_v59 }
 0xc15   : > { %v8267_v35 = vpop.xlane.xlu0 %8266 }
 0xc16   : > { %v8304_v63 = vadd.f32 %v8303_v5, %v8261_v0 }
 0xc17   : > { %v8148_v20 = vpop.xlane.xlu1 %8147 }
 0xc18   : > { %v8189_v57 = vadd.f32 %v8188_v3, %v8148_v20 }
 0xc19   : > { %v8263_v9 = vpop.xlane.xlu0 %8262 }
 0xc1a   : > { %v8190_v48 = vadd.f32 %v8189_v57, %v8150_v10  ;;  %v8305_v24 = vadd.f32 %v8304_v63, %v8263_v9 }
 0xc1b   : > { %v8158_v8 = vpop.xlane.xlu1 %8157 }
 0xc1c   : > { %v8191_v61 = vadd.f32 %v8190_v48, %v8152_v14 }
 0xc1d   : > { %v8269_v55 = vpop.xlane.xlu0 %8268 }
 0xc1f   : > { %v8154_v28 = vpop.xlane.xlu1 %8153 }
 0xc20   : > { %v8192_v11 = vadd.f32 %v8191_v61, %v8154_v28 }
 0xc21   : > { %v8265_v36 = vpop.xlane.xlu0 %8264 }
 0xc22   : > { %v8306_v12 = vadd.f32 %v8305_v24, %v8265_v36 }
 0xc23   : > { %v8160_v47 = vpop.xlane.xlu1 %8159 }
 0xc24   : > { %v8307_v17 = vadd.f32 %v8306_v12, %v8267_v35 }
 0xc25   : > { %v8275_v2 = vpop.xlane.xlu0 %8274 }
 0xc26   : > { %v8308_v33 = vadd.f32 %v8307_v17, %v8269_v55 }
 0xc27   : > { %v8156_v58 = vpop.xlane.xlu1 %8155 }
 0xc28   : > { %v8193_v30 = vadd.f32 %v8192_v11, %v8156_v58 }
 0xc29   : > { %v8271_v15 = vpop.xlane.xlu0 %8270 }
 0xc2a   : > { %v8194_v32 = vadd.f32 %v8193_v30, %v8158_v8  ;;  %v8309_v59 = vadd.f32 %v8308_v33, %v8271_v15 }
 0xc2b   : > { %v8166_v62 = vpop.xlane.xlu1 %8165 }
 0xc2c   : > { %v8195_v56 = vadd.f32 %v8194_v32, %v8160_v47 }
 0xc2d   : > { %v8277_v40 = vpop.xlane.xlu0 %8276 }
 0xc2f   : > { %v8162_v25 = vpop.xlane.xlu1 %8161 }
 0xc30   : > { %v8196_v7 = vadd.f32 %v8195_v56, %v8162_v25 }
 0xc31   : > { %v8273_v42 = vpop.xlane.xlu0 %8272 }
 0xc32   : > { %v8310_v0 = vadd.f32 %v8309_v59, %v8273_v42 }
 0xc33   : > { %v8168_v20 = vpop.xlane.xlu1 %8167 }
 0xc34   : > { %v8311_v60 = vadd.f32 %v8310_v0, %v8275_v2 }
 0xc35   : > { %v8283_v10 = vpop.xlane.xlu0 %8282 }
 0xc36   : > { %v8312_v57 = vadd.f32 %v8311_v60, %v8277_v40 }
 0xc37   : > { %v8164_v19 = vpop.xlane.xlu1 %8163 }
 0xc38   : > { %v8197_v9 = vadd.f32 %v8196_v7, %v8164_v19 }
 0xc39   : > { %v8279_v14 = vpop.xlane.xlu0 %8278 }
 0xc3a   : > { %v8198_v4 = vadd.f32 %v8197_v9, %v8166_v62  ;;  %v8313_v35 = vadd.f32 %v8312_v57, %v8279_v14 }
 0xc3b   : > { %v8174_v3 = vpop.xlane.xlu1 %8173 }
 0xc3c   : > { %v8199_v5 = vadd.f32 %v8198_v4, %v8168_v20 }
 0xc3d   : > { %v8285_v28 = vpop.xlane.xlu0 %8284 }
 0xc3f   : > { %v8170_v36 = vpop.xlane.xlu1 %8169 }
 0xc40   : > { %v8200_v48 = vadd.f32 %v8199_v5, %v8170_v36 }
 0xc41   : > { %v8281_v8 = vpop.xlane.xlu0 %8280 }
 0xc42   : > { %v8314_v55 = vadd.f32 %v8313_v35, %v8281_v8  ;;  %v16415_v35 = vld [vmem:[#allocation115_spill] sm:$0xff]  ;;  %v16416_v8 = vld [vmem:[#allocation116_spill] sm:$0xff] }
 0xc43   : > { %v8172_v63 = vpop.xlane.xlu1 %8171 }
 0xc44   : > { %v8315_v58 = vadd.f32 %v8314_v55, %v8283_v10  ;;  %v8201_v47 = vadd.f32 %v8200_v48, %v8172_v63  ;;  %v16417_v55 = vld [vmem:[#allocation114_spill] sm:$0xff] }
 0xc45   : > { %v8287_v24 = vpop.xlane.xlu0 %8286 }
 0xc46   : > { %v8316_v61 = vadd.f32 %v8315_v58, %v8285_v28  ;;  %v8202_v15 = vadd.f32 %v8201_v47, %v8174_v3  ;;  %v16418_v58 = vld [vmem:[#allocation63_spill] sm:$0xff] }
 0xc47   : > { %v8176_v11 = vpop.xlane.xlu1 %8175 }
 0xc48   : > { %v8317_v12 = vadd.f32 %v8316_v61, %v8287_v24  ;;  %v8203_v30 = vadd.f32 %v8202_v15, %v8176_v11 }
 0xc49   : > { %v8289_v2 = vpop.xlane.xlu0 %8288 }
 0xc4a   : > { %v8204_v17 = vrot.slane %v8203_v30, 4  ;;  %v8318_v62 = vadd.f32 %v8317_v12, %v8289_v2 }
 0xc4b   : > { %v8293_v42 = vpop.xlane.xlu1 %8292 }
 0xc4c   : > { %v8205_v25 = vadd.f32 %v8204_v17, %v8203_v30 }
 0xc4d   : > { %v8291_v40 = vpop.xlane.xlu0 %8290 }
 0xc4e   : > { %v8319_v32 = vadd.f32 %v8318_v62, %v8291_v40  ;;  %v8206_v20 = vrot.slane %v8205_v25, 2 }
 0xc50   : > { %v8320_v33 = vadd.f32 %v8319_v32, %v8293_v42  ;;  %v8207_v56 = vadd.f32 %v8206_v20, %v8205_v25 }
 0xc52   : > { %v8321_v59 = vrot.slane %v8320_v33, 4  ;;  %v8208_v10 = vrot.slane %v8207_v56, 1 }
 0xc54   : > { %v8322_v7 = vadd.f32 %v8321_v59, %v8320_v33  ;;  %v8209_v19 = vadd.f32 %v8208_v10, %v8207_v56 }
 0xc56   : > { %v8323_v0 = vrot.slane %v8322_v7, 2  ;;  %v15550_v14 = vmul.f32 0.0006377551, %v8209_v19 }
 0xc58   : > { %v8324_v9 = vadd.f32 %v8323_v0, %v8322_v7  ;;  %v8329_v4 = vmul.f32 %v15550_v14, %v15550_v14  ;;  %v8331_v5 = vsub.f32 %v16415_v35, %v15550_v14  ;;  %v8332_v48 = vsub.f32 %v16416_v8, %v15550_v14  ;;  %v11466_v35 = vld [vmem:[%s15684_s11] sm:$0xff]  ;;  %v11467_v8 = vld [vmem:[%s15684_s11 + $0x8] sm:$0xff] }
 0xc59   : > { %v8333_v63 = vsub.f32 %v16417_v55, %v15550_v14  ;;  %v8334_v47 = vsub.f32 %v16418_v58, %v15550_v14  ;;  %v8335_v24 = vsub.f32 %v14921_v13, %v15550_v14  ;;  %v8336_v61 = vsub.f32 %v14958_v53, %v15550_v14  ;;  %v11468_v55 = vld [vmem:[%s15684_s11 + $0x10] sm:$0xff]  ;;  %v11469_v58 = vld [vmem:[%s15684_s11 + $0x18] sm:$0xff] }
 0xc5a   : > { %v8325_v60 = vrot.slane %v8324_v9, 1  ;;  %v8337_v15 = vsub.f32 %v14918_v27, %v15550_v14  ;;  %v8338_v11 = vsub.f32 %v14953_v38, %v15550_v14  ;;  %v8339_v12 = vsub.f32 %v15072_v34, %v15550_v14 }
 0xc5b   : > { %v8340_v30 = vsub.f32 %v15137_v49, %v15550_v14  ;;  %v8341_v2 = vsub.f32 %v14992_v1, %v15550_v14  ;;  %v8342_v13 = vsub.f32 %v15083_v26, %v15550_v14  ;;  %v8343_v53 = vsub.f32 %v15210_v21, %v15550_v14 }
 0xc5c   : > { %v8326_v3 = vadd.f32 %v8325_v60, %v8324_v9  ;;  %v8344_v27 = vsub.f32 %v15283_v51, %v15550_v14  ;;  %v8345_v38 = vsub.f32 %v15168_v45, %v15550_v14  ;;  %v8346_v34 = vsub.f32 %v15248_v29, %v15550_v14 }
 0xc5d   : > { %v8347_v49 = vsub.f32 %v15405_v46, %v15550_v14  ;;  %v8348_v1 = vsub.f32 %v15436_v44, %v15550_v14  ;;  %v8349_v26 = vsub.f32 %v15311_v18, %v15550_v14  ;;  %v8350_v21 = vsub.f32 %v15422_v16, %v15550_v14 }
 0xc5e   : > { %v8328_v28 = vmul.f32 0.0006377551, %v8326_v3  ;;  %v8351_v51 = vsub.f32 %v15464_v54, %v15550_v14  ;;  %v8352_v45 = vsub.f32 %v15488_v43, %v15550_v14  ;;  %v8353_v29 = vsub.f32 %v15451_v50, %v15550_v14 }
 0xc5f   : > { %v8354_v46 = vsub.f32 %v15476_v31, %v15550_v14  ;;  %v8355_v44 = vsub.f32 %v15512_v37, %v15550_v14  ;;  %v8356_v18 = vsub.f32 %v15524_v6, %v15550_v14  ;;  %v8357_v16 = vsub.f32 %v15500_v41, %v15550_v14 }
 0xc60   : > { %v8330_v57 = vsub.f32 %v8328_v28, %v8329_v4  ;;  %v8358_v54 = vsub.f32 %v15535_v22, %v15550_v14 }
 0xc62   : > { %v8359_v36 = vadd.f32 1e-05, %v8330_v57 }
 0xc64   : > { %11463 = vrsqrt.f32 %v8359_v36 }
 0xc6e   : > { %v11464_v17 = vpop.eup %11463 }
 0xc6f   : > { %v8361_v43 = vmul.f32 %v11464_v17, %v8331_v5  ;;  %v8362_v62 = vmul.f32 %v11464_v17, %v8332_v48  ;;  %v8363_v25 = vmul.f32 %v11464_v17, %v8333_v63  ;;  %v8364_v50 = vmul.f32 %v11464_v17, %v8334_v47 }
 0xc70   : > { %v8365_v40 = vmul.f32 %v11464_v17, %v8335_v24  ;;  %v8366_v32 = vmul.f32 %v11464_v17, %v8336_v61  ;;  %v8367_v31 = vmul.f32 %v11464_v17, %v8337_v15  ;;  %v8368_v42 = vmul.f32 %v11464_v17, %v8338_v11  ;;  %v11470_v24 = vld [vmem:[%s15684_s11 + $0x20] sm:$0xff]  ;;  %v11471_v15 = vld [vmem:[%s15684_s11 + $0x28] sm:$0xff] }
 0xc71   : > { %v8369_v33 = vmul.f32 %v11464_v17, %v8339_v12  ;;  %v8370_v20 = vmul.f32 %v11464_v17, %v8340_v30  ;;  %v8371_v37 = vmul.f32 %v11464_v17, %v8341_v2  ;;  %v8372_v59 = vmul.f32 %v11464_v17, %v8342_v13  ;;  %v11472_v12 = vld [vmem:[%s15684_s11 + $0x30] sm:$0xff]  ;;  %v11473_v2 = vld [vmem:[%s15684_s11 + $0x38] sm:$0xff] }
 0xc72   : > { %v8373_v56 = vmul.f32 %v11464_v17, %v8343_v53  ;;  %v8374_v6 = vmul.f32 %v11464_v17, %v8344_v27  ;;  %v8375_v7 = vmul.f32 %v11464_v17, %v8345_v38  ;;  %v8376_v10 = vmul.f32 %v11464_v17, %v8346_v34  ;;  %v16419_v27 = vld [vmem:[#allocation125_spill] sm:$0xff] }
 0xc73   : > { %v8377_v41 = vmul.f32 %v11464_v17, %v8347_v49  ;;  %v8378_v0 = vmul.f32 %v11464_v17, %v8348_v1  ;;  %v8379_v19 = vmul.f32 %v11464_v17, %v8349_v26  ;;  %v8380_v22 = vmul.f32 %v11464_v17, %v8350_v21  ;;  %v11474_v34 = vld [vmem:[%s15684_s11 + $0x50] sm:$0xff] }
 0xc74   : > { %v8381_v9 = vmul.f32 %v11464_v17, %v8351_v51  ;;  %v8382_v14 = vmul.f32 %v11464_v17, %v8352_v45  ;;  %v8383_v60 = vmul.f32 %v11464_v17, %v8353_v29  ;;  %v8384_v3 = vmul.f32 %v11464_v17, %v8354_v46  ;;  %v16420_v1 = vld [vmem:[#allocation128_spill] sm:$0xff]  ;;  %v16421_v45 = vld [vmem:[#allocation127_spill] sm:$0xff]  ;;  %v16422_v46 = vld [vmem:[#allocation69_spill] sm:$0xff] }
 0xc75   : > { %v8385_v4 = vmul.f32 %v11464_v17, %v8355_v44  ;;  %v8386_v28 = vmul.f32 %v11464_v17, %v8356_v18  ;;  %v8387_v57 = vmul.f32 %v11464_v17, %v8357_v16  ;;  %v8388_v36 = vmul.f32 %v11464_v17, %v8358_v54  ;;  %v16423_v44 = vld [vmem:[#allocation73_spill] sm:$0xff]  ;;  %v16425_v54 = vld [vmem:[#allocation70_spill] sm:$0xff] }
 0xc76   : > { %v8389_v5 = vmul.f32 %v11466_v35, %v8361_v43  ;;  %v8390_v48 = vmul.f32 %v11467_v8, %v8362_v62  ;;  %v8391_v63 = vmul.f32 %v11468_v55, %v8363_v25  ;;  %v8392_v47 = vmul.f32 %v11469_v58, %v8364_v50  ;;  %v16426_v62 = vld [vmem:[#allocation74_spill] sm:$0xff]  ;;  %v16427_v50 = vld [vmem:[#allocation131_spill] sm:$0xff] }
 0xc77   : > { %v8393_v61 = vmul.f32 %v11470_v24, %v8365_v40  ;;  %v8394_v11 = vmul.f32 %v11471_v15, %v8366_v32  ;;  %v8395_v30 = vmul.f32 %v11472_v12, %v8367_v31  ;;  %v8396_v13 = vmul.f32 %v11473_v2, %v8368_v42  ;;  %v16428_v32 = vld [vmem:[#allocation123_spill] sm:$0xff]  ;;  %v16430_v42 = vld [vmem:[#allocation68_spill] sm:$0xff] }
 0xc78   : > { %v8397_v53 = vmul.f32 %v8369_v33, %v15270_v23  ;;  %v8398_v38 = vmul.f32 %v8370_v20, %v16419_v27  ;;  %v8399_v49 = vmul.f32 %v11474_v34, %v8371_v37  ;;  %v8400_v26 = vmul.f32 %v8372_v59, %v16420_v1  ;;  %v16424_v23 = vld [vmem:[#allocation132_spill] sm:$0xff]  ;;  %v16431_v20 = vld [vmem:[#allocation39_spill] sm:$0xff] }
 0xc79   : > { %v8401_v21 = vmul.f32 %v8373_v56, %v15348_v52  ;;  %v8402_v51 = vmul.f32 %v8374_v6, %v15384_v39  ;;  %v8403_v29 = vmul.f32 %v8375_v7, %v16421_v45  ;;  %v8404_v17 = vmul.f32 %v8376_v10, %v16422_v46  ;;  %v16429_v52 = vld [vmem:[#allocation134_spill] sm:$0xff]  ;;  %v16432_v59 = vld [vmem:[#allocation83_spill] sm:$0xff]  ;;  %v16434_v10 = vld [vmem:[#allocation37_spill] sm:$0xff] }
 0xc7a   : > { %v8405_v18 = vmul.f32 %v8377_v41, %v16423_v44  ;;  %v8406_v16 = vmul.f32 %v8378_v0, %v16424_v23  ;;  %v8407_v43 = vmul.f32 %v8379_v19, %v16425_v54  ;;  %v8408_v25 = vmul.f32 %v8380_v22, %v16426_v62  ;;  %v16433_v6 = vld [vmem:[#allocation82_spill] sm:$0xff] }
 0xc7b   : > { %v8409_v40 = vmul.f32 %v8381_v9, %v16427_v50  ;;  %v8410_v31 = vmul.f32 %v8382_v14, %v16428_v32  ;;  %v8411_v39 = vmul.f32 %v8383_v60, %v16429_v52  ;;  %v8412_v33 = vmul.f32 %v8384_v3, %v16430_v42 }
 0xc7c   : > { %v8413_v37 = vmul.f32 %v8385_v4, %v16431_v20  ;;  %v8414_v56 = vmul.f32 %v8386_v28, %v16432_v59  ;;  %v8415_v7 = vmul.f32 %v8387_v57, %v16433_v6  ;;  %v8416_v41 = vmul.f32 %v8388_v36, %v16434_v10 }
 0xc7d   : > { %v9233_v0 = vpack.c.bf16 %v8390_v48, %v8389_v5  ;;  %v9238_v19 = vpack.c.bf16 %v8392_v47, %v8391_v63  ;;  %v9243_v22 = vpack.c.bf16 %v8394_v11, %v8393_v61  ;;  %v9248_v9 = vpack.c.bf16 %v8396_v13, %v8395_v30 }
 0xc7e   : > { %v9253_v14 = vpack.c.bf16 %v8398_v38, %v8397_v53  ;;  %v9258_v60 = vpack.c.bf16 %v8400_v26, %v8399_v49  ;;  %v9263_v3 = vpack.c.bf16 %v8402_v51, %v8401_v21  ;;  %v9268_v35 = vpack.c.bf16 %v8404_v17, %v8403_v29 }
 0xc7f   : > { %9234 = vst [vmem:[%s11589_s27] sm:$0xff] %v9233_v0   ;;  %9315 = vst [vmem:[%s11589_s27 + $0x8] sm:$0xff] %v9238_v19   ;;  %v9273_v4 = vpack.c.bf16 %v8406_v16, %v8405_v18  ;;  %v9278_v28 = vpack.c.bf16 %v8408_v25, %v8407_v43  ;;  %v9283_v57 = vpack.c.bf16 %v8410_v31, %v8409_v40 }
 0xc80   : > { %9316 = vst [vmem:[%s11589_s27 + $0x10] sm:$0xff] %v9243_v22   ;;  %9317 = vst [vmem:[%s11589_s27 + $0x18] sm:$0xff] %v9248_v9   ;;  %v9288_v36 = vpack.c.bf16 %v8412_v33, %v8411_v39  ;;  %v9293_v5 = vpack.c.bf16 %v8414_v56, %v8413_v37  ;;  %v9298_v8 = vpack.c.bf16 %v8416_v41, %v8415_v7 }
 0xc81   : > { %9318 = vst [vmem:[%s11589_s27 + $0x20] sm:$0xff] %v9253_v14   ;;  %9319 = vst [vmem:[%s11589_s27 + $0x28] sm:$0xff] %v9258_v60  }
 0xc82   : > { %9320 = vst [vmem:[%s11589_s27 + $0x30] sm:$0xff] %v9263_v3   ;;  %9321 = vst [vmem:[%s11589_s27 + $0x38] sm:$0xff] %v9268_v35  }
 0xc83   : > { %9322 = vst [vmem:[%s11589_s27 + $0x40] sm:$0xff] %v9273_v4   ;;  %9323 = vst [vmem:[%s11589_s27 + $0x48] sm:$0xff] %v9278_v28  }
 0xc84   : > { %9324 = vst [vmem:[%s11589_s27 + $0x50] sm:$0xff] %v9283_v57   ;;  %9325 = vst [vmem:[%s11589_s27 + $0x58] sm:$0xff] %v9288_v36  }
 0xc85   : > { %9326 = vst [vmem:[%s11589_s27 + $0x60] sm:$0xff] %v9293_v5   ;;  %9327 = vst [vmem:[%s11589_s27 + $0x68] sm:$0xff] %v9298_v8  }
 0xc86 PF: > { %s22_s21 = sadd.s32 1, %s11481_s21  }
 0xc87   : > { %p19_p5 = scmp.ge.s32.totalorder %s22_s21, 4  }
 0xc89   :  { %21 = sbr.rel (!%p19_p5) target bundleno = 1 (0x1), region = 110 }

</bundles_post_ra>
